<compile_context>
chip_gen: v6e
topology: v6e:2x2x1
jax: 0.10.0
libtpu: 0.0.40
codegen_flags: <defaults>
</compile_context>

<pallas_src>
import functools
import numpy as np
import jax
import jax.numpy as jnp
from jax import lax
from jax.experimental import pallas as pl
from jax.experimental.pallas import tpu as pltpu


# ----------------------------- config ---------------------------------------
class Config:
    MODEL_SIZE = 32
    DICT_SIZE_1 = 64      # value / decoder vocab
    DICT_SIZE_2 = 48      # type vocab
    NUM_LAYER = 2
    DROPOUT = 0.0         # identity
    START_TOKEN = 1
    END_TOKEN = 2
    MAX_OUTPUT_SIZE = 6
    LR = 1e-3


# ----------------------------- small helpers --------------------------------
def _sigmoid(x):
    return 1.0 / (1.0 + jnp.exp(-x))


def _lstm_cell(gates, c):
    """gates: (B, 4H) pre-activations in torch i|f|g|o order; c: (B, H)."""
    H = gates.shape[-1] // 4
    i = _sigmoid(gates[:, 0 * H:1 * H])
    f = _sigmoid(gates[:, 1 * H:2 * H])
    g = jnp.tanh(gates[:, 2 * H:3 * H])
    o = _sigmoid(gates[:, 3 * H:4 * H])
    c_new = f * c + i * g
    h_new = o * jnp.tanh(c_new)
    return h_new, c_new


def _fullblock(shape):
    n = len(shape)
    return pl.BlockSpec(tuple(shape), lambda i: (0,) * n)


# ----------------------------- shared kernel bodies --------------------------
def _encoder_stack(x, valid, wih_ref, whh_ref, b_ref, ybuf, Bp):
    """Residual LSTM stack over packed (length-masked) sequences.

    x: (T*Bp, H), valid: (T*Bp, 1) register arrays.  Returns (enc, h_T, c_T) where
    h_T/c_T are the last layer's final states (frozen at each sequence's length)."""
    TB, H = x.shape
    T = TB // Bp
    L = wih_ref.shape[0]
    h = jnp.zeros((Bp, H), jnp.float32)
    c = jnp.zeros((Bp, H), jnp.float32)
    for l in range(L):
        # hoisted input projection: one (T*Bp,H)x(H,4H) matmul for all timesteps
        g_all = jnp.dot(x, wih_ref[l], preferred_element_type=jnp.float32) + b_ref[l]
        whh = whh_ref[l]
        h = jnp.zeros((Bp, H), jnp.float32)
        c = jnp.zeros((Bp, H), jnp.float32)
        for t in range(T):                       # serial recurrence: only h @ W_hh
            r0 = t * Bp
            gates = g_all[r0:r0 + Bp, :] + jnp.dot(h, whh,
                                                   preferred_element_type=jnp.float32)
            h_new, c_new = _lstm_cell(gates, c)
            v_t = valid[r0:r0 + Bp, :]           # (Bp, 1) register slice
            h = v_t * h_new + (1.0 - v_t) * h    # packed-seq: freeze past length
            c = v_t * c_new + (1.0 - v_t) * c
            ybuf[r0:r0 + Bp, :] = v_t * h_new    # zeros past length
        x = ybuf[...] + x                        # residual add
    enc = x * valid                              # pad_sequence pads with zeros
    return enc, h, c


def _kv_project(enc, wkv_ref, bkv_ref, Bp):
    TB, H = enc.shape
    Tk = TB // Bp
    kv = jnp.dot(enc, wkv_ref[...], preferred_element_type=jnp.float32) + bkv_ref[...]
    k3 = kv[:, :H].reshape(Tk, Bp, H)
    v3 = kv[:, H:].reshape(Tk, Bp, H)
    return k3, v3


def _decoder_step(x, hs, cs, k3, v3, mask3,
                  wih_ref, whh_ref, b_ref,
                  wq_ref, bq_ref, wa_ref, ba_ref,
                  wih_cx_ref, wih_cc_ref, whh_c_ref, b_c_ref,
                  wfc_ref, bfc_ref, ybuf, Bp):
    """Full decoder forward over Td timesteps.  Returns (logits, new hs, new cs)."""
    TB, H = x.shape
    Td = TB // Bp
    L = wih_ref.shape[0]
    Tk = k3.shape[0]

    # ---- residual LSTM stack ----
    new_hs, new_cs = [], []
    for l in range(L):
        g_all = jnp.dot(x, wih_ref[l], preferred_element_type=jnp.float32) + b_ref[l]
        whh = whh_ref[l]
        h, c = hs[l], cs[l]
        for t in range(Td):
            r0 = t * Bp
            gates = g_all[r0:r0 + Bp, :] + jnp.dot(h, whh,
                                                   preferred_element_type=jnp.float32)
            h, c = _lstm_cell(gates, c)
            ybuf[r0:r0 + Bp, :] = h
        new_hs.append(h)
        new_cs.append(c)
        x = ybuf[...] + x                        # residual add

    # ---- additive attention, vectorized over all Td decoder steps ----
    q = jnp.dot(x, wq_ref[...], preferred_element_type=jnp.float32) + bq_ref[...]
    q4 = q.reshape(Td, 1, Bp, H)
    k4 = k3.reshape(1, Tk, Bp, H)
    s = jnp.tanh(q4 + k4)                                      # (Td, Tk, Bp, H)
    wa4 = wa_ref[...].reshape(1, 1, 1, H)
    ba4 = ba_ref[...].reshape(1, 1, 1, 1)
    logit = jnp.sum(s * wa4, axis=-1, keepdims=True) + ba4     # (Td, Tk, Bp, 1)
    m4 = mask3.reshape(1, Tk, Bp, 1)
    logit = jnp.where(m4 > 0.5, logit, -1000000.0)
    logit = logit - jnp.max(logit, axis=1, keepdims=True)
    p = jnp.exp(logit)
    p = p * pl.reciprocal(jnp.sum(p, axis=1, keepdims=True), approx=True)
    ctx = jnp.sum(p * v3.reshape(1, Tk, Bp, H), axis=1)        # (Td, Bp, H)
    ctx = ctx.reshape(Td * Bp, H)

    # ---- concat-LSTM on [tensor, context]; input projection hoisted and split ----
    g_all = (jnp.dot(x, wih_cx_ref[...], preferred_element_type=jnp.float32)
             + jnp.dot(ctx, wih_cc_ref[...], preferred_element_type=jnp.float32)
             + b_c_ref[...])
    whh_c = whh_c_ref[...]
    h, c = hs[L], cs[L]
    for t in range(Td):
        r0 = t * Bp
        gates = g_all[r0:r0 + Bp, :] + jnp.dot(h, whh_c,
                                               preferred_element_type=jnp.float32)
        h, c = _lstm_cell(gates, c)
        ybuf[r0:r0 + Bp, :] = h
    new_hs.append(h)
    new_cs.append(c)

    # ---- fc projection to vocabulary logits ----
    logits = (jnp.dot(ybuf[...], wfc_ref[...], preferred_element_type=jnp.float32)
              + bfc_ref[...])
    return logits, new_hs, new_cs


# ----------------------------- fused kernels ---------------------------------
def _loss_kernel(Bp, xenc_ref, valid_ref, xdec_ref, tgt_ref,
                 wih_e_ref, whh_e_ref, b_e_ref,
                 wih_d_ref, whh_d_ref, b_d_ref,
                 wq_ref, bq_ref, wkv_ref, bkv_ref, wa_ref, ba_ref,
                 wih_cx_ref, wih_cc_ref, whh_c_ref, b_c_ref,
                 wfc_ref, bfc_ref,
                 loss_ref, ybuf_e, ybuf_d):
    L = wih_d_ref.shape[0]
    valid = valid_ref[...]
    enc, hT, cT = _encoder_stack(xenc_ref[...], valid,
                                 wih_e_ref, whh_e_ref, b_e_ref, ybuf_e, Bp)
    k3, v3 = _kv_project(enc, wkv_ref, bkv_ref, Bp)
    Tk = k3.shape[0]
    mask3 = valid.reshape(Tk, Bp, 1)
    hs = [hT] * (L + 1)                          # dropout p=0.0 -> identity
    cs = [cT] * (L + 1)
    logits, _, _ = _decoder_step(xdec_ref[...], hs, cs, k3, v3, mask3,
                                 wih_d_ref, whh_d_ref, b_d_ref,
                                 wq_ref, bq_ref, wa_ref, ba_ref,
                                 wih_cx_ref, wih_cc_ref, whh_c_ref, b_c_ref,
                                 wfc_ref, bfc_ref, ybuf_d, Bp)
    # fused masked cross entropy (ignore_index=0, mean over non-ignored targets)
    tgt = tgt_ref[...]                           # (N, 1) int32
    N, V = logits.shape
    mx = jnp.max(logits, axis=-1, keepdims=True)
    lse = mx + jnp.log(jnp.sum(jnp.exp(logits - mx), axis=-1, keepdims=True))
    cols = lax.broadcasted_iota(jnp.int32, (N, V), 1)
    picked = jnp.sum(jnp.where(cols == tgt, logits, 0.0), axis=-1, keepdims=True)
    nll = lse - picked                           # (N, 1)
    validt = (tgt != 0).astype(jnp.float32)
    num = jnp.sum(nll * validt, axis=(0, 1), keepdims=True)
    den = jnp.sum(validt, axis=(0, 1), keepdims=True)
    loss_ref[...] = num / den


def _translate_kernel(Bp, max_steps, start_token,
                      xenc_ref, valid_ref, emb_ref,
                      wih_e_ref, whh_e_ref, b_e_ref,
                      wih_d_ref, whh_d_ref, b_d_ref,
                      wq_ref, bq_ref, wkv_ref, bkv_ref, wa_ref, ba_ref,
                      wih_cx_ref, wih_cc_ref, whh_c_ref, b_c_ref,
                      wfc_ref, bfc_ref,
                      toks_ref, ybuf_e, ybuf_d):
    H = xenc_ref.shape[1]
    L = wih_d_ref.shape[0]
    V = wfc_ref.shape[1]
    valid = valid_ref[...]
    enc, hT, cT = _encoder_stack(xenc_ref[...], valid,
                                 wih_e_ref, whh_e_ref, b_e_ref, ybuf_e, Bp)
    k3, v3 = _kv_project(enc, wkv_ref, bkv_ref, Bp)      # hoisted: reused every step
    Tk = k3.shape[0]
    mask3 = valid.reshape(Tk, Bp, 1)
    emb = emb_ref[...]                                   # (V, H) VMEM/vreg resident
    hs = [hT] * (L + 1)
    cs = [cT] * (L + 1)
    cur = jnp.full((Bp, 1), start_token, jnp.int32)
    cols_v = lax.broadcasted_iota(jnp.int32, (Bp, V), 1)
    for step in range(max_steps):                        # fully fused greedy decode
        onehot = (cols_v == cur).astype(jnp.float32)     # (Bp, V)
        x = jnp.dot(onehot, emb, preferred_element_type=jnp.float32)  # embedding
        logits, hs, cs = _decoder_step(x, hs, cs, k3, v3, mask3,
                                       wih_d_ref, whh_d_ref, b_d_ref,
                                       wq_ref, bq_ref, wa_ref, ba_ref,
                                       wih_cx_ref, wih_cc_ref, whh_c_ref, b_c_ref,
                                       wfc_ref, bfc_ref, ybuf_d, Bp)
        # argmax over vocab (first index of max)
        mx = jnp.max(logits, axis=-1, keepdims=True)
        cur = jnp.min(jnp.where(logits >= mx, cols_v, V),
                      axis=-1, keepdims=True).astype(jnp.int32)       # (Bp, 1)
        toks_ref[step] = cur


# ----------------------------- parameters -----------------------------------
def _uniform(key, shape, k):
    return jax.random.uniform(key, shape, jnp.float32, -k, k)


def init_params(cfg, key):
    H = cfg.MODEL_SIZE
    L = cfg.NUM_LAYER
    keys = jax.random.split(key, 20)

    def lstm_p(k_, din, h):
        kk = 1.0 / np.sqrt(h)
        k1, k2, k3, k4 = jax.random.split(k_, 4)
        w_ih = _uniform(k1, (4 * h, din), kk).T             # (din, 4h)
        w_hh = _uniform(k2, (4 * h, h), kk).T               # (h, 4h)
        b = (_uniform(k3, (4 * h,), kk) + _uniform(k4, (4 * h,), kk)).reshape(1, 4 * h)
        return w_ih, w_hh, b

    def linear_p(k_, din, dout):
        kk = 1.0 / np.sqrt(din)
        k1, k2 = jax.random.split(k_)
        return _uniform(k1, (dout, din), kk).T, _uniform(k2, (dout,), kk).reshape(1, dout)

    enc_layers = [lstm_p(keys[2 + i], H, H) for i in range(L)]
    enc = dict(
        emb_t=jax.random.normal(keys[0], (cfg.DICT_SIZE_2, H), jnp.float32),
        emb_v=jax.random.normal(keys[1], (cfg.DICT_SIZE_1, H), jnp.float32),
        wih=jnp.stack([p[0] for p in enc_layers]),
        whh=jnp.stack([p[1] for p in enc_layers]),
        b=jnp.stack([p[2] for p in enc_layers]),
    )

    dec_layers = [lstm_p(keys[7 + i], H, H) for i in range(L)]
    wih_c, whh_c, b_c = lstm_p(keys[11], 2 * H, H)
    wq, bq = linear_p(keys[12], H, H)
    wk, bk = linear_p(keys[13], H, H)
    wv, bv = linear_p(keys[14], H, H)
    wa, ba = linear_p(keys[15], H, 1)
    wfc, bfc = linear_p(keys[16], H, cfg.DICT_SIZE_1)
    dec = dict(
        emb=jax.random.normal(keys[6], (cfg.DICT_SIZE_1, H), jnp.float32),
        wih=jnp.stack([p[0] for p in dec_layers]),
        whh=jnp.stack([p[1] for p in dec_layers]),
        b=jnp.stack([p[2] for p in dec_layers]),
        wih_cx=wih_c[:H], wih_cc=wih_c[H:], whh_c=whh_c, b_c=b_c,
        wq=wq, bq=bq,
        wkv=jnp.concatenate([wk, wv], axis=1),              # fused K|V proj (H, 2H)
        bkv=jnp.concatenate([bk, bv], axis=1),              # (1, 2H)
        wa=wa.reshape(1, H), ba=ba,                          # (1,H), (1,1)
        wfc=wfc, bfc=bfc,
    )
    return dict(enc=enc, dec=dec)


# ----------------------------- jitted wrappers -------------------------------
def _weight_inputs(pe, pd):
    return (pe["wih"], pe["whh"], pe["b"],
            pd["wih"], pd["whh"], pd["b"],
            pd["wq"], pd["bq"], pd["wkv"], pd["bkv"], pd["wa"], pd["ba"],
            pd["wih_cx"], pd["wih_cc"], pd["whh_c"], pd["b_c"],
            pd["wfc"], pd["bfc"])


@jax.jit
def _loss_fn(params, in1_pad, in2_pad, valid, dec_in, dec_tgt):
    pe, pd = params["enc"], params["dec"]
    Te, Bp = in1_pad.shape
    Td = dec_in.shape[0]
    H = pe["emb_t"].shape[1]
    xenc = (jnp.take(pe["emb_t"], in1_pad, axis=0)
            + jnp.take(pe["emb_v"], in2_pad, axis=0)).reshape(Te * Bp, H)
    valid2 = valid.reshape(Te * Bp, 1)
    xdec = jnp.take(pd["emb"], dec_in, axis=0).reshape(Td * Bp, H)
    tgt2 = dec_tgt.reshape(Td * Bp, 1).astype(jnp.int32)
    ins = (xenc, valid2, xdec, tgt2) + _weight_inputs(pe, pd)
    loss = pl.pallas_call(
        functools.partial(_loss_kernel, Bp),
        grid=(1,),
        in_specs=[_fullblock(a.shape) for a in ins],
        out_specs=_fullblock((1, 1)),
        out_shape=jax.ShapeDtypeStruct((1, 1), jnp.float32),
        scratch_shapes=[pltpu.VMEM((Te * Bp, H), jnp.float32),
                        pltpu.VMEM((Td * Bp, H), jnp.float32)],
        compiler_params=pltpu.CompilerParams(dimension_semantics=("arbitrary",)),
    )(*ins)
    return loss[0, 0]


@functools.partial(jax.jit, static_argnums=(0, 1))
def _translate_fn(max_steps, start_token, params, in1_pad, in2_pad, valid):
    pe, pd = params["enc"], params["dec"]
    Te, Bp = in1_pad.shape
    H = pe["emb_t"].shape[1]
    xenc = (jnp.take(pe["emb_t"], in1_pad, axis=0)
            + jnp.take(pe["emb_v"], in2_pad, axis=0)).reshape(Te * Bp, H)
    valid2 = valid.reshape(Te * Bp, 1)
    ins = (xenc, valid2, pd["emb"]) + _weight_inputs(pe, pd)
    toks = pl.pallas_call(
        functools.partial(_translate_kernel, Bp, max_steps, start_token),
        grid=(1,),
        in_specs=[_fullblock(a.shape) for a in ins],
        out_specs=_fullblock((max_steps, Bp, 1)),
        out_shape=jax.ShapeDtypeStruct((max_steps, Bp, 1), jnp.int32),
        scratch_shapes=[pltpu.VMEM((Te * Bp, H), jnp.float32),
                        pltpu.VMEM((Bp, H), jnp.float32)],
        compiler_params=pltpu.CompilerParams(dimension_semantics=("arbitrary",)),
    )(*ins)
    return toks


# ----------------------------- model-level forward ---------------------------
def model_forward(cfg, params, inputs, mode, targets=None):
    in1, in2 = inputs
    lengths = [len(s) for s in in1]
    B = len(in1)
    Bp = max(8, ((B + 7) // 8) * 8)          # pad batch to sublane multiple
    T = max(lengths)
    in1_pad = np.zeros((T, Bp), np.int32)
    in2_pad = np.zeros((T, Bp), np.int32)
    for b in range(B):
        in1_pad[:lengths[b], b] = in1[b]
        in2_pad[:lengths[b], b] = in2[b]
    lens = np.zeros((Bp,), np.int64)
    lens[:B] = lengths
    valid = (np.arange(T)[:, None] < lens[None, :]).astype(np.float32)
    in1_pad = jnp.asarray(in1_pad)
    in2_pad = jnp.asarray(in2_pad)
    valid = jnp.asarray(valid)

    if mode:
        # TODO(synk): backward + Adam step are not reproduced; returns forward loss.
        seqs = [[cfg.START_TOKEN] + list(t) + [cfg.END_TOKEN] for t in targets]
        Tt = max(len(s) for s in seqs)
        tgt_pad = np.zeros((Tt, Bp), np.int32)
        for b in range(B):
            tgt_pad[:len(seqs[b]), b] = seqs[b]
        dec_in = jnp.asarray(tgt_pad[:-1])
        dec_tgt = jnp.asarray(tgt_pad[1:])
        return _loss_fn(params, in1_pad, in2_pad, valid, dec_in, dec_tgt)

    # translate: single fused kernel (encoder + full greedy-decode loop)
    toks = _translate_fn(cfg.MAX_OUTPUT_SIZE, cfg.START_TOKEN,
                         params, in1_pad, in2_pad, valid)
    toks = np.asarray(toks)[:, :B, 0]        # single host sync at the end
    preds = [[cfg.START_TOKEN] for _ in range(B)]
    for row in toks:
        for i in range(B):
            if preds[i][-1] != cfg.END_TOKEN:
                preds[i].append(int(row[i]))
    preds = [x[1:-1] if x[-1] == cfg.END_TOKEN else x[1:] for x in preds]
    return preds


# ----------------------------- main ------------------------------------------
if __name__ == "__main__":
    cfg = Config()
    params = init_params(cfg, jax.random.PRNGKey(0))

    # toy batch: 2 variable-length (type, value) token sequences
    in1 = [[3, 5, 7, 9, 11, 4], [6, 8, 10, 12]]      # type ids < DICT_SIZE_2
    in2 = [[4, 6, 8, 10, 12, 5], [7, 9, 11, 13]]     # value ids < DICT_SIZE_1
    targets = [[5, 9, 13, 7], [8, 12, 6]]            # decoder targets < DICT_SIZE_1

    loss = model_forward(cfg, params, (in1, in2), mode=True, targets=targets)
    loss = jax.block_until_ready(loss)
    assert np.isfinite(float(loss))

    preds = model_forward(cfg, params, (in1, in2), mode=False)
    assert len(preds) == 2
    assert all(len(p) <= cfg.MAX_OUTPUT_SIZE for p in preds)

    print("KERNEL_OK")
</pallas_src>

<mosaic_0001>
module attributes {stable_mosaic.version = 11 : i64} {
  func.func @_loss_kernel(%arg0: i32, %arg1: memref<48x32xf32, #tpu.memory_space<vmem>>, %arg2: memref<48x1xf32, #tpu.memory_space<vmem>>, %arg3: memref<40x32xf32, #tpu.memory_space<vmem>>, %arg4: memref<40x1xi32, #tpu.memory_space<vmem>>, %arg5: memref<2x32x128xf32, #tpu.memory_space<vmem>>, %arg6: memref<2x32x128xf32, #tpu.memory_space<vmem>>, %arg7: memref<2x1x128xf32, #tpu.memory_space<vmem>>, %arg8: memref<2x32x128xf32, #tpu.memory_space<vmem>>, %arg9: memref<2x32x128xf32, #tpu.memory_space<vmem>>, %arg10: memref<2x1x128xf32, #tpu.memory_space<vmem>>, %arg11: memref<32x32xf32, #tpu.memory_space<vmem>>, %arg12: memref<1x32xf32, #tpu.memory_space<vmem>>, %arg13: memref<32x64xf32, #tpu.memory_space<vmem>>, %arg14: memref<1x64xf32, #tpu.memory_space<vmem>>, %arg15: memref<1x32xf32, #tpu.memory_space<vmem>>, %arg16: memref<1x1xf32, #tpu.memory_space<vmem>>, %arg17: memref<32x128xf32, #tpu.memory_space<vmem>>, %arg18: memref<32x128xf32, #tpu.memory_space<vmem>>, %arg19: memref<32x128xf32, #tpu.memory_space<vmem>>, %arg20: memref<1x128xf32, #tpu.memory_space<vmem>>, %arg21: memref<32x64xf32, #tpu.memory_space<vmem>>, %arg22: memref<1x64xf32, #tpu.memory_space<vmem>>, %arg23: memref<1x1xf32, #tpu.memory_space<vmem>>, %arg24: memref<48x32xf32, #tpu.memory_space<vmem>>, %arg25: memref<40x32xf32, #tpu.memory_space<vmem>>) attributes {dimension_semantics = [#tpu.dimension_semantics<arbitrary>], iteration_bounds = array<i64: 1>, scalar_prefetch = 0 : i64, scratch_operands = 2 : i64, tpu.core_type = #tpu.core_type<tc>, window_params = [{pipeline_mode = #tpu.pipeline_mode<synchronous>, transform_indices = @transform_0, window_bounds = array<i64: 48, 32>}, {pipeline_mode = #tpu.pipeline_mode<synchronous>, transform_indices = @transform_1, window_bounds = array<i64: 48, 1>}, {pipeline_mode = #tpu.pipeline_mode<synchronous>, transform_indices = @transform_2, window_bounds = array<i64: 40, 32>}, {pipeline_mode = #tpu.pipeline_mode<synchronous>, transform_indices = @transform_3, window_bounds = array<i64: 40, 1>}, {pipeline_mode = #tpu.pipeline_mode<synchronous>, transform_indices = @transform_4, window_bounds = array<i64: 2, 32, 128>}, {pipeline_mode = #tpu.pipeline_mode<synchronous>, transform_indices = @transform_5, window_bounds = array<i64: 2, 32, 128>}, {pipeline_mode = #tpu.pipeline_mode<synchronous>, transform_indices = @transform_6, window_bounds = array<i64: 2, 1, 128>}, {pipeline_mode = #tpu.pipeline_mode<synchronous>, transform_indices = @transform_7, window_bounds = array<i64: 2, 32, 128>}, {pipeline_mode = #tpu.pipeline_mode<synchronous>, transform_indices = @transform_8, window_bounds = array<i64: 2, 32, 128>}, {pipeline_mode = #tpu.pipeline_mode<synchronous>, transform_indices = @transform_9, window_bounds = array<i64: 2, 1, 128>}, {pipeline_mode = #tpu.pipeline_mode<synchronous>, transform_indices = @transform_10, window_bounds = array<i64: 32, 32>}, {pipeline_mode = #tpu.pipeline_mode<synchronous>, transform_indices = @transform_11, window_bounds = array<i64: 1, 32>}, {pipeline_mode = #tpu.pipeline_mode<synchronous>, transform_indices = @transform_12, window_bounds = array<i64: 32, 64>}, {pipeline_mode = #tpu.pipeline_mode<synchronous>, transform_indices = @transform_13, window_bounds = array<i64: 1, 64>}, {pipeline_mode = #tpu.pipeline_mode<synchronous>, transform_indices = @transform_14, window_bounds = array<i64: 1, 32>}, {pipeline_mode = #tpu.pipeline_mode<synchronous>, transform_indices = @transform_15, window_bounds = array<i64: 1, 1>}, {pipeline_mode = #tpu.pipeline_mode<synchronous>, transform_indices = @transform_16, window_bounds = array<i64: 32, 128>}, {pipeline_mode = #tpu.pipeline_mode<synchronous>, transform_indices = @transform_17, window_bounds = array<i64: 32, 128>}, {pipeline_mode = #tpu.pipeline_mode<synchronous>, transform_indices = @transform_18, window_bounds = array<i64: 32, 128>}, {pipeline_mode = #tpu.pipeline_mode<synchronous>, transform_indices = @transform_19, window_bounds = array<i64: 1, 128>}, {pipeline_mode = #tpu.pipeline_mode<synchronous>, transform_indices = @transform_20, window_bounds = array<i64: 32, 64>}, {pipeline_mode = #tpu.pipeline_mode<synchronous>, transform_indices = @transform_21, window_bounds = array<i64: 1, 64>}, {pipeline_mode = #tpu.pipeline_mode<synchronous>, transform_indices = @transform_22, window_bounds = array<i64: 1, 1>}]} {
    %c0 = arith.constant 0 : index
    %c0_0 = arith.constant 0 : index
    %0 = vector.load %arg2[%c0, %c0_0] : memref<48x1xf32, #tpu.memory_space<vmem>>, vector<48x1xf32>
    %c0_1 = arith.constant 0 : index
    %c0_2 = arith.constant 0 : index
    %1 = vector.load %arg1[%c0_1, %c0_2] : memref<48x32xf32, #tpu.memory_space<vmem>>, vector<48x32xf32>
    %c0_3 = arith.constant 0 : index
    %c0_4 = arith.constant 0 : index
    %c0_5 = arith.constant 0 : index
    %2 = vector.load %arg5[%c0_3, %c0_4, %c0_5] : memref<2x32x128xf32, #tpu.memory_space<vmem>>, vector<1x32x128xf32>
    %3 = vector.shape_cast %2 : vector<1x32x128xf32> to vector<32x128xf32>
    %cst = arith.constant dense<0.000000e+00> : vector<48x128xf32>
    %4 = tpu.matmul %1, %3, %cst {dimension_numbers = #tpu.dot_dimension_numbers<[1], [0], [0], [1], [0, 0, 1, 1], [], []>} : vector<48x32xf32>, vector<32x128xf32>, vector<48x128xf32> -> vector<48x128xf32>
    %c0_6 = arith.constant 0 : index
    %c0_7 = arith.constant 0 : index
    %c0_8 = arith.constant 0 : index
    %5 = vector.load %arg7[%c0_6, %c0_7, %c0_8] : memref<2x1x128xf32, #tpu.memory_space<vmem>>, vector<1x1x128xf32>
    %6 = vector.shape_cast %5 : vector<1x1x128xf32> to vector<1x128xf32>
    %7 = vector.broadcast %6 : vector<1x128xf32> to vector<48x128xf32>
    %8 = arith.addf %4, %7 : vector<48x128xf32>
    %c0_9 = arith.constant 0 : index
    %c0_10 = arith.constant 0 : index
    %c0_11 = arith.constant 0 : index
    %9 = vector.load %arg6[%c0_9, %c0_10, %c0_11] : memref<2x32x128xf32, #tpu.memory_space<vmem>>, vector<1x32x128xf32>
    %10 = vector.shape_cast %9 : vector<1x32x128xf32> to vector<32x128xf32>
    %cst_12 = arith.constant 0.000000e+00 : f32
    %11 = vector.broadcast %cst_12 : f32 to vector<8x32xf32>
    %cst_13 = arith.constant 0.000000e+00 : f32
    %12 = vector.broadcast %cst_13 : f32 to vector<8x32xf32>
    %13 = vector.extract_strided_slice %8 {offsets = [0, 0], sizes = [8, 128], strides = [1, 1]} : vector<48x128xf32> to vector<8x128xf32>
    %cst_14 = arith.constant dense<0.000000e+00> : vector<8x128xf32>
    %14 = tpu.matmul %11, %10, %cst_14 {dimension_numbers = #tpu.dot_dimension_numbers<[1], [0], [0], [1], [0, 0, 1, 1], [], []>} : vector<8x32xf32>, vector<32x128xf32>, vector<8x128xf32> -> vector<8x128xf32>
    %15 = arith.addf %13, %14 : vector<8x128xf32>
    %16 = vector.extract_strided_slice %15 {offsets = [0, 0], sizes = [8, 32], strides = [1, 1]} : vector<8x128xf32> to vector<8x32xf32>
    %cst_15 = arith.constant 0.000000e+00 : f32
    %17 = vector.broadcast %cst_15 : f32 to vector<8x32xf32>
    %18 = arith.subf %17, %16 : vector<8x32xf32>
    %19 = math.exp %18 : vector<8x32xf32>
    %cst_16 = arith.constant 1.000000e+00 : f32
    %20 = vector.broadcast %cst_16 : f32 to vector<8x32xf32>
    %21 = arith.addf %20, %19 : vector<8x32xf32>
    %cst_17 = arith.constant 1.000000e+00 : f32
    %22 = vector.broadcast %cst_17 : f32 to vector<8x32xf32>
    %23 = arith.divf %22, %21 : vector<8x32xf32>
    %24 = vector.extract_strided_slice %15 {offsets = [0, 32], sizes = [8, 32], strides = [1, 1]} : vector<8x128xf32> to vector<8x32xf32>
    %cst_18 = arith.constant 0.000000e+00 : f32
    %25 = vector.broadcast %cst_18 : f32 to vector<8x32xf32>
    %26 = arith.subf %25, %24 : vector<8x32xf32>
    %27 = math.exp %26 : vector<8x32xf32>
    %cst_19 = arith.constant 1.000000e+00 : f32
    %28 = vector.broadcast %cst_19 : f32 to vector<8x32xf32>
    %29 = arith.addf %28, %27 : vector<8x32xf32>
    %cst_20 = arith.constant 1.000000e+00 : f32
    %30 = vector.broadcast %cst_20 : f32 to vector<8x32xf32>
    %31 = arith.divf %30, %29 : vector<8x32xf32>
    %32 = vector.extract_strided_slice %15 {offsets = [0, 64], sizes = [8, 32], strides = [1, 1]} : vector<8x128xf32> to vector<8x32xf32>
    %33 = math.tanh %32 : vector<8x32xf32>
    %34 = vector.extract_strided_slice %15 {offsets = [0, 96], sizes = [8, 32], strides = [1, 1]} : vector<8x128xf32> to vector<8x32xf32>
    %cst_21 = arith.constant 0.000000e+00 : f32
    %35 = vector.broadcast %cst_21 : f32 to vector<8x32xf32>
    %36 = arith.subf %35, %34 : vector<8x32xf32>
    %37 = math.exp %36 : vector<8x32xf32>
    %cst_22 = arith.constant 1.000000e+00 : f32
    %38 = vector.broadcast %cst_22 : f32 to vector<8x32xf32>
    %39 = arith.addf %38, %37 : vector<8x32xf32>
    %cst_23 = arith.constant 1.000000e+00 : f32
    %40 = vector.broadcast %cst_23 : f32 to vector<8x32xf32>
    %41 = arith.divf %40, %39 : vector<8x32xf32>
    %42 = arith.mulf %31, %12 : vector<8x32xf32>
    %43 = arith.mulf %23, %33 : vector<8x32xf32>
    %44 = arith.addf %42, %43 : vector<8x32xf32>
    %45 = math.tanh %44 : vector<8x32xf32>
    %46 = arith.mulf %41, %45 : vector<8x32xf32>
    %47 = vector.extract_strided_slice %0 {offsets = [0, 0], sizes = [8, 1], strides = [1, 1]} : vector<48x1xf32> to vector<8x1xf32>
    %48 = vector.broadcast %47 : vector<8x1xf32> to vector<8x32xf32>
    %49 = arith.mulf %48, %46 : vector<8x32xf32>
    %cst_24 = arith.constant 1.000000e+00 : f32
    %50 = vector.broadcast %cst_24 : f32 to vector<8x1xf32>
    %51 = arith.subf %50, %47 : vector<8x1xf32>
    %52 = vector.broadcast %51 : vector<8x1xf32> to vector<8x32xf32>
    %53 = arith.mulf %52, %11 : vector<8x32xf32>
    %54 = arith.addf %49, %53 : vector<8x32xf32>
    %55 = vector.broadcast %47 : vector<8x1xf32> to vector<8x32xf32>
    %56 = arith.mulf %55, %44 : vector<8x32xf32>
    %cst_25 = arith.constant 1.000000e+00 : f32
    %57 = vector.broadcast %cst_25 : f32 to vector<8x1xf32>
    %58 = arith.subf %57, %47 : vector<8x1xf32>
    %59 = vector.broadcast %58 : vector<8x1xf32> to vector<8x32xf32>
    %60 = arith.mulf %59, %12 : vector<8x32xf32>
    %61 = arith.addf %56, %60 : vector<8x32xf32>
    %62 = vector.broadcast %47 : vector<8x1xf32> to vector<8x32xf32>
    %63 = arith.mulf %62, %46 : vector<8x32xf32>
    %c0_26 = arith.constant 0 : index
    %c0_27 = arith.constant 0 : index
    %64 = vector.load %arg24[%c0_26, %c0_27] : memref<48x32xf32, #tpu.memory_space<vmem>>, vector<8x32xf32>
    tpu.vector_store %arg24[%c0_26, %c0_27], %63 {strides = array<i32>} : memref<48x32xf32, #tpu.memory_space<vmem>>, vector<8x32xf32>,
    %65 = vector.extract_strided_slice %8 {offsets = [8, 0], sizes = [8, 128], strides = [1, 1]} : vector<48x128xf32> to vector<8x128xf32>
    %cst_28 = arith.constant dense<0.000000e+00> : vector<8x128xf32>
    %66 = tpu.matmul %54, %10, %cst_28 {dimension_numbers = #tpu.dot_dimension_numbers<[1], [0], [0], [1], [0, 0, 1, 1], [], []>} : vector<8x32xf32>, vector<32x128xf32>, vector<8x128xf32> -> vector<8x128xf32>
    %67 = arith.addf %65, %66 : vector<8x128xf32>
    %68 = vector.extract_strided_slice %67 {offsets = [0, 0], sizes = [8, 32], strides = [1, 1]} : vector<8x128xf32> to vector<8x32xf32>
    %cst_29 = arith.constant 0.000000e+00 : f32
    %69 = vector.broadcast %cst_29 : f32 to vector<8x32xf32>
    %70 = arith.subf %69, %68 : vector<8x32xf32>
    %71 = math.exp %70 : vector<8x32xf32>
    %cst_30 = arith.constant 1.000000e+00 : f32
    %72 = vector.broadcast %cst_30 : f32 to vector<8x32xf32>
    %73 = arith.addf %72, %71 : vector<8x32xf32>
    %cst_31 = arith.constant 1.000000e+00 : f32
    %74 = vector.broadcast %cst_31 : f32 to vector<8x32xf32>
    %75 = arith.divf %74, %73 : vector<8x32xf32>
    %76 = vector.extract_strided_slice %67 {offsets = [0, 32], sizes = [8, 32], strides = [1, 1]} : vector<8x128xf32> to vector<8x32xf32>
    %cst_32 = arith.constant 0.000000e+00 : f32
    %77 = vector.broadcast %cst_32 : f32 to vector<8x32xf32>
    %78 = arith.subf %77, %76 : vector<8x32xf32>
    %79 = math.exp %78 : vector<8x32xf32>
    %cst_33 = arith.constant 1.000000e+00 : f32
    %80 = vector.broadcast %cst_33 : f32 to vector<8x32xf32>
    %81 = arith.addf %80, %79 : vector<8x32xf32>
    %cst_34 = arith.constant 1.000000e+00 : f32
    %82 = vector.broadcast %cst_34 : f32 to vector<8x32xf32>
    %83 = arith.divf %82, %81 : vector<8x32xf32>
    %84 = vector.extract_strided_slice %67 {offsets = [0, 64], sizes = [8, 32], strides = [1, 1]} : vector<8x128xf32> to vector<8x32xf32>
    %85 = math.tanh %84 : vector<8x32xf32>
    %86 = vector.extract_strided_slice %67 {offsets = [0, 96], sizes = [8, 32], strides = [1, 1]} : vector<8x128xf32> to vector<8x32xf32>
    %cst_35 = arith.constant 0.000000e+00 : f32
    %87 = vector.broadcast %cst_35 : f32 to vector<8x32xf32>
    %88 = arith.subf %87, %86 : vector<8x32xf32>
    %89 = math.exp %88 : vector<8x32xf32>
    %cst_36 = arith.constant 1.000000e+00 : f32
    %90 = vector.broadcast %cst_36 : f32 to vector<8x32xf32>
    %91 = arith.addf %90, %89 : vector<8x32xf32>
    %cst_37 = arith.constant 1.000000e+00 : f32
    %92 = vector.broadcast %cst_37 : f32 to vector<8x32xf32>
    %93 = arith.divf %92, %91 : vector<8x32xf32>
    %94 = arith.mulf %83, %61 : vector<8x32xf32>
    %95 = arith.mulf %75, %85 : vector<8x32xf32>
    %96 = arith.addf %94, %95 : vector<8x32xf32>
    %97 = math.tanh %96 : vector<8x32xf32>
    %98 = arith.mulf %93, %97 : vector<8x32xf32>
    %99 = vector.extract_strided_slice %0 {offsets = [8, 0], sizes = [8, 1], strides = [1, 1]} : vector<48x1xf32> to vector<8x1xf32>
    %100 = vector.broadcast %99 : vector<8x1xf32> to vector<8x32xf32>
    %101 = arith.mulf %100, %98 : vector<8x32xf32>
    %cst_38 = arith.constant 1.000000e+00 : f32
    %102 = vector.broadcast %cst_38 : f32 to vector<8x1xf32>
    %103 = arith.subf %102, %99 : vector<8x1xf32>
    %104 = vector.broadcast %103 : vector<8x1xf32> to vector<8x32xf32>
    %105 = arith.mulf %104, %54 : vector<8x32xf32>
    %106 = arith.addf %101, %105 : vector<8x32xf32>
    %107 = vector.broadcast %99 : vector<8x1xf32> to vector<8x32xf32>
    %108 = arith.mulf %107, %96 : vector<8x32xf32>
    %cst_39 = arith.constant 1.000000e+00 : f32
    %109 = vector.broadcast %cst_39 : f32 to vector<8x1xf32>
    %110 = arith.subf %109, %99 : vector<8x1xf32>
    %111 = vector.broadcast %110 : vector<8x1xf32> to vector<8x32xf32>
    %112 = arith.mulf %111, %61 : vector<8x32xf32>
    %113 = arith.addf %108, %112 : vector<8x32xf32>
    %114 = vector.broadcast %99 : vector<8x1xf32> to vector<8x32xf32>
    %115 = arith.mulf %114, %98 : vector<8x32xf32>
    %c8 = arith.constant 8 : index
    %c0_40 = arith.constant 0 : index
    %116 = vector.load %arg24[%c8, %c0_40] : memref<48x32xf32, #tpu.memory_space<vmem>>, vector<8x32xf32>
    tpu.vector_store %arg24[%c8, %c0_40], %115 {strides = array<i32>} : memref<48x32xf32, #tpu.memory_space<vmem>>, vector<8x32xf32>,
    %117 = vector.extract_strided_slice %8 {offsets = [16, 0], sizes = [8, 128], strides = [1, 1]} : vector<48x128xf32> to vector<8x128xf32>
    %cst_41 = arith.constant dense<0.000000e+00> : vector<8x128xf32>
    %118 = tpu.matmul %106, %10, %cst_41 {dimension_numbers = #tpu.dot_dimension_numbers<[1], [0], [0], [1], [0, 0, 1, 1], [], []>} : vector<8x32xf32>, vector<32x128xf32>, vector<8x128xf32> -> vector<8x128xf32>
    %119 = arith.addf %117, %118 : vector<8x128xf32>
    %120 = vector.extract_strided_slice %119 {offsets = [0, 0], sizes = [8, 32], strides = [1, 1]} : vector<8x128xf32> to vector<8x32xf32>
    %cst_42 = arith.constant 0.000000e+00 : f32
    %121 = vector.broadcast %cst_42 : f32 to vector<8x32xf32>
    %122 = arith.subf %121, %120 : vector<8x32xf32>
    %123 = math.exp %122 : vector<8x32xf32>
    %cst_43 = arith.constant 1.000000e+00 : f32
    %124 = vector.broadcast %cst_43 : f32 to vector<8x32xf32>
    %125 = arith.addf %124, %123 : vector<8x32xf32>
    %cst_44 = arith.constant 1.000000e+00 : f32
    %126 = vector.broadcast %cst_44 : f32 to vector<8x32xf32>
    %127 = arith.divf %126, %125 : vector<8x32xf32>
    %128 = vector.extract_strided_slice %119 {offsets = [0, 32], sizes = [8, 32], strides = [1, 1]} : vector<8x128xf32> to vector<8x32xf32>
    %cst_45 = arith.constant 0.000000e+00 : f32
    %129 = vector.broadcast %cst_45 : f32 to vector<8x32xf32>
    %130 = arith.subf %129, %128 : vector<8x32xf32>
    %131 = math.exp %130 : vector<8x32xf32>
    %cst_46 = arith.constant 1.000000e+00 : f32
    %132 = vector.broadcast %cst_46 : f32 to vector<8x32xf32>
    %133 = arith.addf %132, %131 : vector<8x32xf32>
    %cst_47 = arith.constant 1.000000e+00 : f32
    %134 = vector.broadcast %cst_47 : f32 to vector<8x32xf32>
    %135 = arith.divf %134, %133 : vector<8x32xf32>
    %136 = vector.extract_strided_slice %119 {offsets = [0, 64], sizes = [8, 32], strides = [1, 1]} : vector<8x128xf32> to vector<8x32xf32>
    %137 = math.tanh %136 : vector<8x32xf32>
    %138 = vector.extract_strided_slice %119 {offsets = [0, 96], sizes = [8, 32], strides = [1, 1]} : vector<8x128xf32> to vector<8x32xf32>
    %cst_48 = arith.constant 0.000000e+00 : f32
    %139 = vector.broadcast %cst_48 : f32 to vector<8x32xf32>
    %140 = arith.subf %139, %138 : vector<8x32xf32>
    %141 = math.exp %140 : vector<8x32xf32>
    %cst_49 = arith.constant 1.000000e+00 : f32
    %142 = vector.broadcast %cst_49 : f32 to vector<8x32xf32>
    %143 = arith.addf %142, %141 : vector<8x32xf32>
    %cst_50 = arith.constant 1.000000e+00 : f32
    %144 = vector.broadcast %cst_50 : f32 to vector<8x32xf32>
    %145 = arith.divf %144, %143 : vector<8x32xf32>
    %146 = arith.mulf %135, %113 : vector<8x32xf32>
    %147 = arith.mulf %127, %137 : vector<8x32xf32>
    %148 = arith.addf %146, %147 : vector<8x32xf32>
    %149 = math.tanh %148 : vector<8x32xf32>
    %150 = arith.mulf %145, %149 : vector<8x32xf32>
    %151 = vector.extract_strided_slice %0 {offsets = [16, 0], sizes = [8, 1], strides = [1, 1]} : vector<48x1xf32> to vector<8x1xf32>
    %152 = vector.broadcast %151 : vector<8x1xf32> to vector<8x32xf32>
    %153 = arith.mulf %152, %150 : vector<8x32xf32>
    %cst_51 = arith.constant 1.000000e+00 : f32
    %154 = vector.broadcast %cst_51 : f32 to vector<8x1xf32>
    %155 = arith.subf %154, %151 : vector<8x1xf32>
    %156 = vector.broadcast %155 : vector<8x1xf32> to vector<8x32xf32>
    %157 = arith.mulf %156, %106 : vector<8x32xf32>
    %158 = arith.addf %153, %157 : vector<8x32xf32>
    %159 = vector.broadcast %151 : vector<8x1xf32> to vector<8x32xf32>
    %160 = arith.mulf %159, %148 : vector<8x32xf32>
    %cst_52 = arith.constant 1.000000e+00 : f32
    %161 = vector.broadcast %cst_52 : f32 to vector<8x1xf32>
    %162 = arith.subf %161, %151 : vector<8x1xf32>
    %163 = vector.broadcast %162 : vector<8x1xf32> to vector<8x32xf32>
    %164 = arith.mulf %163, %113 : vector<8x32xf32>
    %165 = arith.addf %160, %164 : vector<8x32xf32>
    %166 = vector.broadcast %151 : vector<8x1xf32> to vector<8x32xf32>
    %167 = arith.mulf %166, %150 : vector<8x32xf32>
    %c16 = arith.constant 16 : index
    %c0_53 = arith.constant 0 : index
    %168 = vector.load %arg24[%c16, %c0_53] : memref<48x32xf32, #tpu.memory_space<vmem>>, vector<8x32xf32>
    tpu.vector_store %arg24[%c16, %c0_53], %167 {strides = array<i32>} : memref<48x32xf32, #tpu.memory_space<vmem>>, vector<8x32xf32>,
    %169 = vector.extract_strided_slice %8 {offsets = [24, 0], sizes = [8, 128], strides = [1, 1]} : vector<48x128xf32> to vector<8x128xf32>
    %cst_54 = arith.constant dense<0.000000e+00> : vector<8x128xf32>
    %170 = tpu.matmul %158, %10, %cst_54 {dimension_numbers = #tpu.dot_dimension_numbers<[1], [0], [0], [1], [0, 0, 1, 1], [], []>} : vector<8x32xf32>, vector<32x128xf32>, vector<8x128xf32> -> vector<8x128xf32>
    %171 = arith.addf %169, %170 : vector<8x128xf32>
    %172 = vector.extract_strided_slice %171 {offsets = [0, 0], sizes = [8, 32], strides = [1, 1]} : vector<8x128xf32> to vector<8x32xf32>
    %cst_55 = arith.constant 0.000000e+00 : f32
    %173 = vector.broadcast %cst_55 : f32 to vector<8x32xf32>
    %174 = arith.subf %173, %172 : vector<8x32xf32>
    %175 = math.exp %174 : vector<8x32xf32>
    %cst_56 = arith.constant 1.000000e+00 : f32
    %176 = vector.broadcast %cst_56 : f32 to vector<8x32xf32>
    %177 = arith.addf %176, %175 : vector<8x32xf32>
    %cst_57 = arith.constant 1.000000e+00 : f32
    %178 = vector.broadcast %cst_57 : f32 to vector<8x32xf32>
    %179 = arith.divf %178, %177 : vector<8x32xf32>
    %180 = vector.extract_strided_slice %171 {offsets = [0, 32], sizes = [8, 32], strides = [1, 1]} : vector<8x128xf32> to vector<8x32xf32>
    %cst_58 = arith.constant 0.000000e+00 : f32
    %181 = vector.broadcast %cst_58 : f32 to vector<8x32xf32>
    %182 = arith.subf %181, %180 : vector<8x32xf32>
    %183 = math.exp %182 : vector<8x32xf32>
    %cst_59 = arith.constant 1.000000e+00 : f32
    %184 = vector.broadcast %cst_59 : f32 to vector<8x32xf32>
    %185 = arith.addf %184, %183 : vector<8x32xf32>
    %cst_60 = arith.constant 1.000000e+00 : f32
    %186 = vector.broadcast %cst_60 : f32 to vector<8x32xf32>
    %187 = arith.divf %186, %185 : vector<8x32xf32>
    %188 = vector.extract_strided_slice %171 {offsets = [0, 64], sizes = [8, 32], strides = [1, 1]} : vector<8x128xf32> to vector<8x32xf32>
    %189 = math.tanh %188 : vector<8x32xf32>
    %190 = vector.extract_strided_slice %171 {offsets = [0, 96], sizes = [8, 32], strides = [1, 1]} : vector<8x128xf32> to vector<8x32xf32>
    %cst_61 = arith.constant 0.000000e+00 : f32
    %191 = vector.broadcast %cst_61 : f32 to vector<8x32xf32>
    %192 = arith.subf %191, %190 : vector<8x32xf32>
    %193 = math.exp %192 : vector<8x32xf32>
    %cst_62 = arith.constant 1.000000e+00 : f32
    %194 = vector.broadcast %cst_62 : f32 to vector<8x32xf32>
    %195 = arith.addf %194, %193 : vector<8x32xf32>
    %cst_63 = arith.constant 1.000000e+00 : f32
    %196 = vector.broadcast %cst_63 : f32 to vector<8x32xf32>
    %197 = arith.divf %196, %195 : vector<8x32xf32>
    %198 = arith.mulf %187, %165 : vector<8x32xf32>
    %199 = arith.mulf %179, %189 : vector<8x32xf32>
    %200 = arith.addf %198, %199 : vector<8x32xf32>
    %201 = math.tanh %200 : vector<8x32xf32>
    %202 = arith.mulf %197, %201 : vector<8x32xf32>
    %203 = vector.extract_strided_slice %0 {offsets = [24, 0], sizes = [8, 1], strides = [1, 1]} : vector<48x1xf32> to vector<8x1xf32>
    %204 = vector.broadcast %203 : vector<8x1xf32> to vector<8x32xf32>
    %205 = arith.mulf %204, %202 : vector<8x32xf32>
    %cst_64 = arith.constant 1.000000e+00 : f32
    %206 = vector.broadcast %cst_64 : f32 to vector<8x1xf32>
    %207 = arith.subf %206, %203 : vector<8x1xf32>
    %208 = vector.broadcast %207 : vector<8x1xf32> to vector<8x32xf32>
    %209 = arith.mulf %208, %158 : vector<8x32xf32>
    %210 = arith.addf %205, %209 : vector<8x32xf32>
    %211 = vector.broadcast %203 : vector<8x1xf32> to vector<8x32xf32>
    %212 = arith.mulf %211, %200 : vector<8x32xf32>
    %cst_65 = arith.constant 1.000000e+00 : f32
    %213 = vector.broadcast %cst_65 : f32 to vector<8x1xf32>
    %214 = arith.subf %213, %203 : vector<8x1xf32>
    %215 = vector.broadcast %214 : vector<8x1xf32> to vector<8x32xf32>
    %216 = arith.mulf %215, %165 : vector<8x32xf32>
    %217 = arith.addf %212, %216 : vector<8x32xf32>
    %218 = vector.broadcast %203 : vector<8x1xf32> to vector<8x32xf32>
    %219 = arith.mulf %218, %202 : vector<8x32xf32>
    %c24 = arith.constant 24 : index
    %c0_66 = arith.constant 0 : index
    %220 = vector.load %arg24[%c24, %c0_66] : memref<48x32xf32, #tpu.memory_space<vmem>>, vector<8x32xf32>
    tpu.vector_store %arg24[%c24, %c0_66], %219 {strides = array<i32>} : memref<48x32xf32, #tpu.memory_space<vmem>>, vector<8x32xf32>,
    %221 = vector.extract_strided_slice %8 {offsets = [32, 0], sizes = [8, 128], strides = [1, 1]} : vector<48x128xf32> to vector<8x128xf32>
    %cst_67 = arith.constant dense<0.000000e+00> : vector<8x128xf32>
    %222 = tpu.matmul %210, %10, %cst_67 {dimension_numbers = #tpu.dot_dimension_numbers<[1], [0], [0], [1], [0, 0, 1, 1], [], []>} : vector<8x32xf32>, vector<32x128xf32>, vector<8x128xf32> -> vector<8x128xf32>
    %223 = arith.addf %221, %222 : vector<8x128xf32>
    %224 = vector.extract_strided_slice %223 {offsets = [0, 0], sizes = [8, 32], strides = [1, 1]} : vector<8x128xf32> to vector<8x32xf32>
    %cst_68 = arith.constant 0.000000e+00 : f32
    %225 = vector.broadcast %cst_68 : f32 to vector<8x32xf32>
    %226 = arith.subf %225, %224 : vector<8x32xf32>
    %227 = math.exp %226 : vector<8x32xf32>
    %cst_69 = arith.constant 1.000000e+00 : f32
    %228 = vector.broadcast %cst_69 : f32 to vector<8x32xf32>
    %229 = arith.addf %228, %227 : vector<8x32xf32>
    %cst_70 = arith.constant 1.000000e+00 : f32
    %230 = vector.broadcast %cst_70 : f32 to vector<8x32xf32>
    %231 = arith.divf %230, %229 : vector<8x32xf32>
    %232 = vector.extract_strided_slice %223 {offsets = [0, 32], sizes = [8, 32], strides = [1, 1]} : vector<8x128xf32> to vector<8x32xf32>
    %cst_71 = arith.constant 0.000000e+00 : f32
    %233 = vector.broadcast %cst_71 : f32 to vector<8x32xf32>
    %234 = arith.subf %233, %232 : vector<8x32xf32>
    %235 = math.exp %234 : vector<8x32xf32>
    %cst_72 = arith.constant 1.000000e+00 : f32
    %236 = vector.broadcast %cst_72 : f32 to vector<8x32xf32>
    %237 = arith.addf %236, %235 : vector<8x32xf32>
    %cst_73 = arith.constant 1.000000e+00 : f32
    %238 = vector.broadcast %cst_73 : f32 to vector<8x32xf32>
    %239 = arith.divf %238, %237 : vector<8x32xf32>
    %240 = vector.extract_strided_slice %223 {offsets = [0, 64], sizes = [8, 32], strides = [1, 1]} : vector<8x128xf32> to vector<8x32xf32>
    %241 = math.tanh %240 : vector<8x32xf32>
    %242 = vector.extract_strided_slice %223 {offsets = [0, 96], sizes = [8, 32], strides = [1, 1]} : vector<8x128xf32> to vector<8x32xf32>
    %cst_74 = arith.constant 0.000000e+00 : f32
    %243 = vector.broadcast %cst_74 : f32 to vector<8x32xf32>
    %244 = arith.subf %243, %242 : vector<8x32xf32>
    %245 = math.exp %244 : vector<8x32xf32>
    %cst_75 = arith.constant 1.000000e+00 : f32
    %246 = vector.broadcast %cst_75 : f32 to vector<8x32xf32>
    %247 = arith.addf %246, %245 : vector<8x32xf32>
    %cst_76 = arith.constant 1.000000e+00 : f32
    %248 = vector.broadcast %cst_76 : f32 to vector<8x32xf32>
    %249 = arith.divf %248, %247 : vector<8x32xf32>
    %250 = arith.mulf %239, %217 : vector<8x32xf32>
    %251 = arith.mulf %231, %241 : vector<8x32xf32>
    %252 = arith.addf %250, %251 : vector<8x32xf32>
    %253 = math.tanh %252 : vector<8x32xf32>
    %254 = arith.mulf %249, %253 : vector<8x32xf32>
    %255 = vector.extract_strided_slice %0 {offsets = [32, 0], sizes = [8, 1], strides = [1, 1]} : vector<48x1xf32> to vector<8x1xf32>
    %256 = vector.broadcast %255 : vector<8x1xf32> to vector<8x32xf32>
    %257 = arith.mulf %256, %254 : vector<8x32xf32>
    %cst_77 = arith.constant 1.000000e+00 : f32
    %258 = vector.broadcast %cst_77 : f32 to vector<8x1xf32>
    %259 = arith.subf %258, %255 : vector<8x1xf32>
    %260 = vector.broadcast %259 : vector<8x1xf32> to vector<8x32xf32>
    %261 = arith.mulf %260, %210 : vector<8x32xf32>
    %262 = arith.addf %257, %261 : vector<8x32xf32>
    %263 = vector.broadcast %255 : vector<8x1xf32> to vector<8x32xf32>
    %264 = arith.mulf %263, %252 : vector<8x32xf32>
    %cst_78 = arith.constant 1.000000e+00 : f32
    %265 = vector.broadcast %cst_78 : f32 to vector<8x1xf32>
    %266 = arith.subf %265, %255 : vector<8x1xf32>
    %267 = vector.broadcast %266 : vector<8x1xf32> to vector<8x32xf32>
    %268 = arith.mulf %267, %217 : vector<8x32xf32>
    %269 = arith.addf %264, %268 : vector<8x32xf32>
    %270 = vector.broadcast %255 : vector<8x1xf32> to vector<8x32xf32>
    %271 = arith.mulf %270, %254 : vector<8x32xf32>
    %c32 = arith.constant 32 : index
    %c0_79 = arith.constant 0 : index
    %272 = vector.load %arg24[%c32, %c0_79] : memref<48x32xf32, #tpu.memory_space<vmem>>, vector<8x32xf32>
    tpu.vector_store %arg24[%c32, %c0_79], %271 {strides = array<i32>} : memref<48x32xf32, #tpu.memory_space<vmem>>, vector<8x32xf32>,
    %273 = vector.extract_strided_slice %8 {offsets = [40, 0], sizes = [8, 128], strides = [1, 1]} : vector<48x128xf32> to vector<8x128xf32>
    %cst_80 = arith.constant dense<0.000000e+00> : vector<8x128xf32>
    %274 = tpu.matmul %262, %10, %cst_80 {dimension_numbers = #tpu.dot_dimension_numbers<[1], [0], [0], [1], [0, 0, 1, 1], [], []>} : vector<8x32xf32>, vector<32x128xf32>, vector<8x128xf32> -> vector<8x128xf32>
    %275 = arith.addf %273, %274 : vector<8x128xf32>
    %276 = vector.extract_strided_slice %275 {offsets = [0, 0], sizes = [8, 32], strides = [1, 1]} : vector<8x128xf32> to vector<8x32xf32>
    %cst_81 = arith.constant 0.000000e+00 : f32
    %277 = vector.broadcast %cst_81 : f32 to vector<8x32xf32>
    %278 = arith.subf %277, %276 : vector<8x32xf32>
    %279 = math.exp %278 : vector<8x32xf32>
    %cst_82 = arith.constant 1.000000e+00 : f32
    %280 = vector.broadcast %cst_82 : f32 to vector<8x32xf32>
    %281 = arith.addf %280, %279 : vector<8x32xf32>
    %cst_83 = arith.constant 1.000000e+00 : f32
    %282 = vector.broadcast %cst_83 : f32 to vector<8x32xf32>
    %283 = arith.divf %282, %281 : vector<8x32xf32>
    %284 = vector.extract_strided_slice %275 {offsets = [0, 32], sizes = [8, 32], strides = [1, 1]} : vector<8x128xf32> to vector<8x32xf32>
    %cst_84 = arith.constant 0.000000e+00 : f32
    %285 = vector.broadcast %cst_84 : f32 to vector<8x32xf32>
    %286 = arith.subf %285, %284 : vector<8x32xf32>
    %287 = math.exp %286 : vector<8x32xf32>
    %cst_85 = arith.constant 1.000000e+00 : f32
    %288 = vector.broadcast %cst_85 : f32 to vector<8x32xf32>
    %289 = arith.addf %288, %287 : vector<8x32xf32>
    %cst_86 = arith.constant 1.000000e+00 : f32
    %290 = vector.broadcast %cst_86 : f32 to vector<8x32xf32>
    %291 = arith.divf %290, %289 : vector<8x32xf32>
    %292 = vector.extract_strided_slice %275 {offsets = [0, 64], sizes = [8, 32], strides = [1, 1]} : vector<8x128xf32> to vector<8x32xf32>
    %293 = math.tanh %292 : vector<8x32xf32>
    %294 = vector.extract_strided_slice %275 {offsets = [0, 96], sizes = [8, 32], strides = [1, 1]} : vector<8x128xf32> to vector<8x32xf32>
    %cst_87 = arith.constant 0.000000e+00 : f32
    %295 = vector.broadcast %cst_87 : f32 to vector<8x32xf32>
    %296 = arith.subf %295, %294 : vector<8x32xf32>
    %297 = math.exp %296 : vector<8x32xf32>
    %cst_88 = arith.constant 1.000000e+00 : f32
    %298 = vector.broadcast %cst_88 : f32 to vector<8x32xf32>
    %299 = arith.addf %298, %297 : vector<8x32xf32>
    %cst_89 = arith.constant 1.000000e+00 : f32
    %300 = vector.broadcast %cst_89 : f32 to vector<8x32xf32>
    %301 = arith.divf %300, %299 : vector<8x32xf32>
    %302 = arith.mulf %291, %269 : vector<8x32xf32>
    %303 = arith.mulf %283, %293 : vector<8x32xf32>
    %304 = arith.addf %302, %303 : vector<8x32xf32>
    %305 = math.tanh %304 : vector<8x32xf32>
    %306 = arith.mulf %301, %305 : vector<8x32xf32>
    %307 = vector.extract_strided_slice %0 {offsets = [40, 0], sizes = [8, 1], strides = [1, 1]} : vector<48x1xf32> to vector<8x1xf32>
    %308 = vector.broadcast %307 : vector<8x1xf32> to vector<8x32xf32>
    %309 = arith.mulf %308, %306 : vector<8x32xf32>
    %c40 = arith.constant 40 : index
    %c0_90 = arith.constant 0 : index
    %310 = vector.load %arg24[%c40, %c0_90] : memref<48x32xf32, #tpu.memory_space<vmem>>, vector<8x32xf32>
    tpu.vector_store %arg24[%c40, %c0_90], %309 {strides = array<i32>} : memref<48x32xf32, #tpu.memory_space<vmem>>, vector<8x32xf32>,
    %c0_91 = arith.constant 0 : index
    %c0_92 = arith.constant 0 : index
    %311 = vector.load %arg24[%c0_91, %c0_92] : memref<48x32xf32, #tpu.memory_space<vmem>>, vector<48x32xf32>
    %312 = arith.addf %311, %1 : vector<48x32xf32>
    %c1 = arith.constant 1 : index
    %c0_93 = arith.constant 0 : index
    %c0_94 = arith.constant 0 : index
    %313 = vector.load %arg5[%c1, %c0_93, %c0_94] : memref<2x32x128xf32, #tpu.memory_space<vmem>>, vector<1x32x128xf32>
    %314 = vector.shape_cast %313 : vector<1x32x128xf32> to vector<32x128xf32>
    %cst_95 = arith.constant dense<0.000000e+00> : vector<48x128xf32>
    %315 = tpu.matmul %312, %314, %cst_95 {dimension_numbers = #tpu.dot_dimension_numbers<[1], [0], [0], [1], [0, 0, 1, 1], [], []>} : vector<48x32xf32>, vector<32x128xf32>, vector<48x128xf32> -> vector<48x128xf32>
    %c1_96 = arith.constant 1 : index
    %c0_97 = arith.constant 0 : index
    %c0_98 = arith.constant 0 : index
    %316 = vector.load %arg7[%c1_96, %c0_97, %c0_98] : memref<2x1x128xf32, #tpu.memory_space<vmem>>, vector<1x1x128xf32>
    %317 = vector.shape_cast %316 : vector<1x1x128xf32> to vector<1x128xf32>
    %318 = vector.broadcast %317 : vector<1x128xf32> to vector<48x128xf32>
    %319 = arith.addf %315, %318 : vector<48x128xf32>
    %c1_99 = arith.constant 1 : index
    %c0_100 = arith.constant 0 : index
    %c0_101 = arith.constant 0 : index
    %320 = vector.load %arg6[%c1_99, %c0_100, %c0_101] : memref<2x32x128xf32, #tpu.memory_space<vmem>>, vector<1x32x128xf32>
    %321 = vector.shape_cast %320 : vector<1x32x128xf32> to vector<32x128xf32>
    %cst_102 = arith.constant 0.000000e+00 : f32
    %322 = vector.broadcast %cst_102 : f32 to vector<8x32xf32>
    %cst_103 = arith.constant 0.000000e+00 : f32
    %323 = vector.broadcast %cst_103 : f32 to vector<8x32xf32>
    %324 = vector.extract_strided_slice %319 {offsets = [0, 0], sizes = [8, 128], strides = [1, 1]} : vector<48x128xf32> to vector<8x128xf32>
    %cst_104 = arith.constant dense<0.000000e+00> : vector<8x128xf32>
    %325 = tpu.matmul %322, %321, %cst_104 {dimension_numbers = #tpu.dot_dimension_numbers<[1], [0], [0], [1], [0, 0, 1, 1], [], []>} : vector<8x32xf32>, vector<32x128xf32>, vector<8x128xf32> -> vector<8x128xf32>
    %326 = arith.addf %324, %325 : vector<8x128xf32>
    %327 = vector.extract_strided_slice %326 {offsets = [0, 0], sizes = [8, 32], strides = [1, 1]} : vector<8x128xf32> to vector<8x32xf32>
    %cst_105 = arith.constant 0.000000e+00 : f32
    %328 = vector.broadcast %cst_105 : f32 to vector<8x32xf32>
    %329 = arith.subf %328, %327 : vector<8x32xf32>
    %330 = math.exp %329 : vector<8x32xf32>
    %cst_106 = arith.constant 1.000000e+00 : f32
    %331 = vector.broadcast %cst_106 : f32 to vector<8x32xf32>
    %332 = arith.addf %331, %330 : vector<8x32xf32>
    %cst_107 = arith.constant 1.000000e+00 : f32
    %333 = vector.broadcast %cst_107 : f32 to vector<8x32xf32>
    %334 = arith.divf %333, %332 : vector<8x32xf32>
    %335 = vector.extract_strided_slice %326 {offsets = [0, 32], sizes = [8, 32], strides = [1, 1]} : vector<8x128xf32> to vector<8x32xf32>
    %cst_108 = arith.constant 0.000000e+00 : f32
    %336 = vector.broadcast %cst_108 : f32 to vector<8x32xf32>
    %337 = arith.subf %336, %335 : vector<8x32xf32>
    %338 = math.exp %337 : vector<8x32xf32>
    %cst_109 = arith.constant 1.000000e+00 : f32
    %339 = vector.broadcast %cst_109 : f32 to vector<8x32xf32>
    %340 = arith.addf %339, %338 : vector<8x32xf32>
    %cst_110 = arith.constant 1.000000e+00 : f32
    %341 = vector.broadcast %cst_110 : f32 to vector<8x32xf32>
    %342 = arith.divf %341, %340 : vector<8x32xf32>
    %343 = vector.extract_strided_slice %326 {offsets = [0, 64], sizes = [8, 32], strides = [1, 1]} : vector<8x128xf32> to vector<8x32xf32>
    %344 = math.tanh %343 : vector<8x32xf32>
    %345 = vector.extract_strided_slice %326 {offsets = [0, 96], sizes = [8, 32], strides = [1, 1]} : vector<8x128xf32> to vector<8x32xf32>
    %cst_111 = arith.constant 0.000000e+00 : f32
    %346 = vector.broadcast %cst_111 : f32 to vector<8x32xf32>
    %347 = arith.subf %346, %345 : vector<8x32xf32>
    %348 = math.exp %347 : vector<8x32xf32>
    %cst_112 = arith.constant 1.000000e+00 : f32
    %349 = vector.broadcast %cst_112 : f32 to vector<8x32xf32>
    %350 = arith.addf %349, %348 : vector<8x32xf32>
    %cst_113 = arith.constant 1.000000e+00 : f32
    %351 = vector.broadcast %cst_113 : f32 to vector<8x32xf32>
    %352 = arith.divf %351, %350 : vector<8x32xf32>
    %353 = arith.mulf %342, %323 : vector<8x32xf32>
    %354 = arith.mulf %334, %344 : vector<8x32xf32>
    %355 = arith.addf %353, %354 : vector<8x32xf32>
    %356 = math.tanh %355 : vector<8x32xf32>
    %357 = arith.mulf %352, %356 : vector<8x32xf32>
    %358 = vector.extract_strided_slice %0 {offsets = [0, 0], sizes = [8, 1], strides = [1, 1]} : vector<48x1xf32> to vector<8x1xf32>
    %359 = vector.broadcast %358 : vector<8x1xf32> to vector<8x32xf32>
    %360 = arith.mulf %359, %357 : vector<8x32xf32>
    %cst_114 = arith.constant 1.000000e+00 : f32
    %361 = vector.broadcast %cst_114 : f32 to vector<8x1xf32>
    %362 = arith.subf %361, %358 : vector<8x1xf32>
    %363 = vector.broadcast %362 : vector<8x1xf32> to vector<8x32xf32>
    %364 = arith.mulf %363, %322 : vector<8x32xf32>
    %365 = arith.addf %360, %364 : vector<8x32xf32>
    %366 = vector.broadcast %358 : vector<8x1xf32> to vector<8x32xf32>
    %367 = arith.mulf %366, %355 : vector<8x32xf32>
    %cst_115 = arith.constant 1.000000e+00 : f32
    %368 = vector.broadcast %cst_115 : f32 to vector<8x1xf32>
    %369 = arith.subf %368, %358 : vector<8x1xf32>
    %370 = vector.broadcast %369 : vector<8x1xf32> to vector<8x32xf32>
    %371 = arith.mulf %370, %323 : vector<8x32xf32>
    %372 = arith.addf %367, %371 : vector<8x32xf32>
    %373 = vector.broadcast %358 : vector<8x1xf32> to vector<8x32xf32>
    %374 = arith.mulf %373, %357 : vector<8x32xf32>
    %c0_116 = arith.constant 0 : index
    %c0_117 = arith.constant 0 : index
    %375 = vector.load %arg24[%c0_116, %c0_117] : memref<48x32xf32, #tpu.memory_space<vmem>>, vector<8x32xf32>
    tpu.vector_store %arg24[%c0_116, %c0_117], %374 {strides = array<i32>} : memref<48x32xf32, #tpu.memory_space<vmem>>, vector<8x32xf32>,
    %376 = vector.extract_strided_slice %319 {offsets = [8, 0], sizes = [8, 128], strides = [1, 1]} : vector<48x128xf32> to vector<8x128xf32>
    %cst_118 = arith.constant dense<0.000000e+00> : vector<8x128xf32>
    %377 = tpu.matmul %365, %321, %cst_118 {dimension_numbers = #tpu.dot_dimension_numbers<[1], [0], [0], [1], [0, 0, 1, 1], [], []>} : vector<8x32xf32>, vector<32x128xf32>, vector<8x128xf32> -> vector<8x128xf32>
    %378 = arith.addf %376, %377 : vector<8x128xf32>
    %379 = vector.extract_strided_slice %378 {offsets = [0, 0], sizes = [8, 32], strides = [1, 1]} : vector<8x128xf32> to vector<8x32xf32>
    %cst_119 = arith.constant 0.000000e+00 : f32
    %380 = vector.broadcast %cst_119 : f32 to vector<8x32xf32>
    %381 = arith.subf %380, %379 : vector<8x32xf32>
    %382 = math.exp %381 : vector<8x32xf32>
    %cst_120 = arith.constant 1.000000e+00 : f32
    %383 = vector.broadcast %cst_120 : f32 to vector<8x32xf32>
    %384 = arith.addf %383, %382 : vector<8x32xf32>
    %cst_121 = arith.constant 1.000000e+00 : f32
    %385 = vector.broadcast %cst_121 : f32 to vector<8x32xf32>
    %386 = arith.divf %385, %384 : vector<8x32xf32>
    %387 = vector.extract_strided_slice %378 {offsets = [0, 32], sizes = [8, 32], strides = [1, 1]} : vector<8x128xf32> to vector<8x32xf32>
    %cst_122 = arith.constant 0.000000e+00 : f32
    %388 = vector.broadcast %cst_122 : f32 to vector<8x32xf32>
    %389 = arith.subf %388, %387 : vector<8x32xf32>
    %390 = math.exp %389 : vector<8x32xf32>
    %cst_123 = arith.constant 1.000000e+00 : f32
    %391 = vector.broadcast %cst_123 : f32 to vector<8x32xf32>
    %392 = arith.addf %391, %390 : vector<8x32xf32>
    %cst_124 = arith.constant 1.000000e+00 : f32
    %393 = vector.broadcast %cst_124 : f32 to vector<8x32xf32>
    %394 = arith.divf %393, %392 : vector<8x32xf32>
    %395 = vector.extract_strided_slice %378 {offsets = [0, 64], sizes = [8, 32], strides = [1, 1]} : vector<8x128xf32> to vector<8x32xf32>
    %396 = math.tanh %395 : vector<8x32xf32>
    %397 = vector.extract_strided_slice %378 {offsets = [0, 96], sizes = [8, 32], strides = [1, 1]} : vector<8x128xf32> to vector<8x32xf32>
    %cst_125 = arith.constant 0.000000e+00 : f32
    %398 = vector.broadcast %cst_125 : f32 to vector<8x32xf32>
    %399 = arith.subf %398, %397 : vector<8x32xf32>
    %400 = math.exp %399 : vector<8x32xf32>
    %cst_126 = arith.constant 1.000000e+00 : f32
    %401 = vector.broadcast %cst_126 : f32 to vector<8x32xf32>
    %402 = arith.addf %401, %400 : vector<8x32xf32>
    %cst_127 = arith.constant 1.000000e+00 : f32
    %403 = vector.broadcast %cst_127 : f32 to vector<8x32xf32>
    %404 = arith.divf %403, %402 : vector<8x32xf32>
    %405 = arith.mulf %394, %372 : vector<8x32xf32>
    %406 = arith.mulf %386, %396 : vector<8x32xf32>
    %407 = arith.addf %405, %406 : vector<8x32xf32>
    %408 = math.tanh %407 : vector<8x32xf32>
    %409 = arith.mulf %404, %408 : vector<8x32xf32>
    %410 = vector.extract_strided_slice %0 {offsets = [8, 0], sizes = [8, 1], strides = [1, 1]} : vector<48x1xf32> to vector<8x1xf32>
    %411 = vector.broadcast %410 : vector<8x1xf32> to vector<8x32xf32>
    %412 = arith.mulf %411, %409 : vector<8x32xf32>
    %cst_128 = arith.constant 1.000000e+00 : f32
    %413 = vector.broadcast %cst_128 : f32 to vector<8x1xf32>
    %414 = arith.subf %413, %410 : vector<8x1xf32>
    %415 = vector.broadcast %414 : vector<8x1xf32> to vector<8x32xf32>
    %416 = arith.mulf %415, %365 : vector<8x32xf32>
    %417 = arith.addf %412, %416 : vector<8x32xf32>
    %418 = vector.broadcast %410 : vector<8x1xf32> to vector<8x32xf32>
    %419 = arith.mulf %418, %407 : vector<8x32xf32>
    %cst_129 = arith.constant 1.000000e+00 : f32
    %420 = vector.broadcast %cst_129 : f32 to vector<8x1xf32>
    %421 = arith.subf %420, %410 : vector<8x1xf32>
    %422 = vector.broadcast %421 : vector<8x1xf32> to vector<8x32xf32>
    %423 = arith.mulf %422, %372 : vector<8x32xf32>
    %424 = arith.addf %419, %423 : vector<8x32xf32>
    %425 = vector.broadcast %410 : vector<8x1xf32> to vector<8x32xf32>
    %426 = arith.mulf %425, %409 : vector<8x32xf32>
    %c8_130 = arith.constant 8 : index
    %c0_131 = arith.constant 0 : index
    %427 = vector.load %arg24[%c8_130, %c0_131] : memref<48x32xf32, #tpu.memory_space<vmem>>, vector<8x32xf32>
    tpu.vector_store %arg24[%c8_130, %c0_131], %426 {strides = array<i32>} : memref<48x32xf32, #tpu.memory_space<vmem>>, vector<8x32xf32>,
    %428 = vector.extract_strided_slice %319 {offsets = [16, 0], sizes = [8, 128], strides = [1, 1]} : vector<48x128xf32> to vector<8x128xf32>
    %cst_132 = arith.constant dense<0.000000e+00> : vector<8x128xf32>
    %429 = tpu.matmul %417, %321, %cst_132 {dimension_numbers = #tpu.dot_dimension_numbers<[1], [0], [0], [1], [0, 0, 1, 1], [], []>} : vector<8x32xf32>, vector<32x128xf32>, vector<8x128xf32> -> vector<8x128xf32>
    %430 = arith.addf %428, %429 : vector<8x128xf32>
    %431 = vector.extract_strided_slice %430 {offsets = [0, 0], sizes = [8, 32], strides = [1, 1]} : vector<8x128xf32> to vector<8x32xf32>
    %cst_133 = arith.constant 0.000000e+00 : f32
    %432 = vector.broadcast %cst_133 : f32 to vector<8x32xf32>
    %433 = arith.subf %432, %431 : vector<8x32xf32>
    %434 = math.exp %433 : vector<8x32xf32>
    %cst_134 = arith.constant 1.000000e+00 : f32
    %435 = vector.broadcast %cst_134 : f32 to vector<8x32xf32>
    %436 = arith.addf %435, %434 : vector<8x32xf32>
    %cst_135 = arith.constant 1.000000e+00 : f32
    %437 = vector.broadcast %cst_135 : f32 to vector<8x32xf32>
    %438 = arith.divf %437, %436 : vector<8x32xf32>
    %439 = vector.extract_strided_slice %430 {offsets = [0, 32], sizes = [8, 32], strides = [1, 1]} : vector<8x128xf32> to vector<8x32xf32>
    %cst_136 = arith.constant 0.000000e+00 : f32
    %440 = vector.broadcast %cst_136 : f32 to vector<8x32xf32>
    %441 = arith.subf %440, %439 : vector<8x32xf32>
    %442 = math.exp %441 : vector<8x32xf32>
    %cst_137 = arith.constant 1.000000e+00 : f32
    %443 = vector.broadcast %cst_137 : f32 to vector<8x32xf32>
    %444 = arith.addf %443, %442 : vector<8x32xf32>
    %cst_138 = arith.constant 1.000000e+00 : f32
    %445 = vector.broadcast %cst_138 : f32 to vector<8x32xf32>
    %446 = arith.divf %445, %444 : vector<8x32xf32>
    %447 = vector.extract_strided_slice %430 {offsets = [0, 64], sizes = [8, 32], strides = [1, 1]} : vector<8x128xf32> to vector<8x32xf32>
    %448 = math.tanh %447 : vector<8x32xf32>
    %449 = vector.extract_strided_slice %430 {offsets = [0, 96], sizes = [8, 32], strides = [1, 1]} : vector<8x128xf32> to vector<8x32xf32>
    %cst_139 = arith.constant 0.000000e+00 : f32
    %450 = vector.broadcast %cst_139 : f32 to vector<8x32xf32>
    %451 = arith.subf %450, %449 : vector<8x32xf32>
    %452 = math.exp %451 : vector<8x32xf32>
    %cst_140 = arith.constant 1.000000e+00 : f32
    %453 = vector.broadcast %cst_140 : f32 to vector<8x32xf32>
    %454 = arith.addf %453, %452 : vector<8x32xf32>
    %cst_141 = arith.constant 1.000000e+00 : f32
    %455 = vector.broadcast %cst_141 : f32 to vector<8x32xf32>
    %456 = arith.divf %455, %454 : vector<8x32xf32>
    %457 = arith.mulf %446, %424 : vector<8x32xf32>
    %458 = arith.mulf %438, %448 : vector<8x32xf32>
    %459 = arith.addf %457, %458 : vector<8x32xf32>
    %460 = math.tanh %459 : vector<8x32xf32>
    %461 = arith.mulf %456, %460 : vector<8x32xf32>
    %462 = vector.extract_strided_slice %0 {offsets = [16, 0], sizes = [8, 1], strides = [1, 1]} : vector<48x1xf32> to vector<8x1xf32>
    %463 = vector.broadcast %462 : vector<8x1xf32> to vector<8x32xf32>
    %464 = arith.mulf %463, %461 : vector<8x32xf32>
    %cst_142 = arith.constant 1.000000e+00 : f32
    %465 = vector.broadcast %cst_142 : f32 to vector<8x1xf32>
    %466 = arith.subf %465, %462 : vector<8x1xf32>
    %467 = vector.broadcast %466 : vector<8x1xf32> to vector<8x32xf32>
    %468 = arith.mulf %467, %417 : vector<8x32xf32>
    %469 = arith.addf %464, %468 : vector<8x32xf32>
    %470 = vector.broadcast %462 : vector<8x1xf32> to vector<8x32xf32>
    %471 = arith.mulf %470, %459 : vector<8x32xf32>
    %cst_143 = arith.constant 1.000000e+00 : f32
    %472 = vector.broadcast %cst_143 : f32 to vector<8x1xf32>
    %473 = arith.subf %472, %462 : vector<8x1xf32>
    %474 = vector.broadcast %473 : vector<8x1xf32> to vector<8x32xf32>
    %475 = arith.mulf %474, %424 : vector<8x32xf32>
    %476 = arith.addf %471, %475 : vector<8x32xf32>
    %477 = vector.broadcast %462 : vector<8x1xf32> to vector<8x32xf32>
    %478 = arith.mulf %477, %461 : vector<8x32xf32>
    %c16_144 = arith.constant 16 : index
    %c0_145 = arith.constant 0 : index
    %479 = vector.load %arg24[%c16_144, %c0_145] : memref<48x32xf32, #tpu.memory_space<vmem>>, vector<8x32xf32>
    tpu.vector_store %arg24[%c16_144, %c0_145], %478 {strides = array<i32>} : memref<48x32xf32, #tpu.memory_space<vmem>>, vector<8x32xf32>,
    %480 = vector.extract_strided_slice %319 {offsets = [24, 0], sizes = [8, 128], strides = [1, 1]} : vector<48x128xf32> to vector<8x128xf32>
    %cst_146 = arith.constant dense<0.000000e+00> : vector<8x128xf32>
    %481 = tpu.matmul %469, %321, %cst_146 {dimension_numbers = #tpu.dot_dimension_numbers<[1], [0], [0], [1], [0, 0, 1, 1], [], []>} : vector<8x32xf32>, vector<32x128xf32>, vector<8x128xf32> -> vector<8x128xf32>
    %482 = arith.addf %480, %481 : vector<8x128xf32>
    %483 = vector.extract_strided_slice %482 {offsets = [0, 0], sizes = [8, 32], strides = [1, 1]} : vector<8x128xf32> to vector<8x32xf32>
    %cst_147 = arith.constant 0.000000e+00 : f32
    %484 = vector.broadcast %cst_147 : f32 to vector<8x32xf32>
    %485 = arith.subf %484, %483 : vector<8x32xf32>
    %486 = math.exp %485 : vector<8x32xf32>
    %cst_148 = arith.constant 1.000000e+00 : f32
    %487 = vector.broadcast %cst_148 : f32 to vector<8x32xf32>
    %488 = arith.addf %487, %486 : vector<8x32xf32>
    %cst_149 = arith.constant 1.000000e+00 : f32
    %489 = vector.broadcast %cst_149 : f32 to vector<8x32xf32>
    %490 = arith.divf %489, %488 : vector<8x32xf32>
    %491 = vector.extract_strided_slice %482 {offsets = [0, 32], sizes = [8, 32], strides = [1, 1]} : vector<8x128xf32> to vector<8x32xf32>
    %cst_150 = arith.constant 0.000000e+00 : f32
    %492 = vector.broadcast %cst_150 : f32 to vector<8x32xf32>
    %493 = arith.subf %492, %491 : vector<8x32xf32>
    %494 = math.exp %493 : vector<8x32xf32>
    %cst_151 = arith.constant 1.000000e+00 : f32
    %495 = vector.broadcast %cst_151 : f32 to vector<8x32xf32>
    %496 = arith.addf %495, %494 : vector<8x32xf32>
    %cst_152 = arith.constant 1.000000e+00 : f32
    %497 = vector.broadcast %cst_152 : f32 to vector<8x32xf32>
    %498 = arith.divf %497, %496 : vector<8x32xf32>
    %499 = vector.extract_strided_slice %482 {offsets = [0, 64], sizes = [8, 32], strides = [1, 1]} : vector<8x128xf32> to vector<8x32xf32>
    %500 = math.tanh %499 : vector<8x32xf32>
    %501 = vector.extract_strided_slice %482 {offsets = [0, 96], sizes = [8, 32], strides = [1, 1]} : vector<8x128xf32> to vector<8x32xf32>
    %cst_153 = arith.constant 0.000000e+00 : f32
    %502 = vector.broadcast %cst_153 : f32 to vector<8x32xf32>
    %503 = arith.subf %502, %501 : vector<8x32xf32>
    %504 = math.exp %503 : vector<8x32xf32>
    %cst_154 = arith.constant 1.000000e+00 : f32
    %505 = vector.broadcast %cst_154 : f32 to vector<8x32xf32>
    %506 = arith.addf %505, %504 : vector<8x32xf32>
    %cst_155 = arith.constant 1.000000e+00 : f32
    %507 = vector.broadcast %cst_155 : f32 to vector<8x32xf32>
    %508 = arith.divf %507, %506 : vector<8x32xf32>
    %509 = arith.mulf %498, %476 : vector<8x32xf32>
    %510 = arith.mulf %490, %500 : vector<8x32xf32>
    %511 = arith.addf %509, %510 : vector<8x32xf32>
    %512 = math.tanh %511 : vector<8x32xf32>
    %513 = arith.mulf %508, %512 : vector<8x32xf32>
    %514 = vector.extract_strided_slice %0 {offsets = [24, 0], sizes = [8, 1], strides = [1, 1]} : vector<48x1xf32> to vector<8x1xf32>
    %515 = vector.broadcast %514 : vector<8x1xf32> to vector<8x32xf32>
    %516 = arith.mulf %515, %513 : vector<8x32xf32>
    %cst_156 = arith.constant 1.000000e+00 : f32
    %517 = vector.broadcast %cst_156 : f32 to vector<8x1xf32>
    %518 = arith.subf %517, %514 : vector<8x1xf32>
    %519 = vector.broadcast %518 : vector<8x1xf32> to vector<8x32xf32>
    %520 = arith.mulf %519, %469 : vector<8x32xf32>
    %521 = arith.addf %516, %520 : vector<8x32xf32>
    %522 = vector.broadcast %514 : vector<8x1xf32> to vector<8x32xf32>
    %523 = arith.mulf %522, %511 : vector<8x32xf32>
    %cst_157 = arith.constant 1.000000e+00 : f32
    %524 = vector.broadcast %cst_157 : f32 to vector<8x1xf32>
    %525 = arith.subf %524, %514 : vector<8x1xf32>
    %526 = vector.broadcast %525 : vector<8x1xf32> to vector<8x32xf32>
    %527 = arith.mulf %526, %476 : vector<8x32xf32>
    %528 = arith.addf %523, %527 : vector<8x32xf32>
    %529 = vector.broadcast %514 : vector<8x1xf32> to vector<8x32xf32>
    %530 = arith.mulf %529, %513 : vector<8x32xf32>
    %c24_158 = arith.constant 24 : index
    %c0_159 = arith.constant 0 : index
    %531 = vector.load %arg24[%c24_158, %c0_159] : memref<48x32xf32, #tpu.memory_space<vmem>>, vector<8x32xf32>
    tpu.vector_store %arg24[%c24_158, %c0_159], %530 {strides = array<i32>} : memref<48x32xf32, #tpu.memory_space<vmem>>, vector<8x32xf32>,
    %532 = vector.extract_strided_slice %319 {offsets = [32, 0], sizes = [8, 128], strides = [1, 1]} : vector<48x128xf32> to vector<8x128xf32>
    %cst_160 = arith.constant dense<0.000000e+00> : vector<8x128xf32>
    %533 = tpu.matmul %521, %321, %cst_160 {dimension_numbers = #tpu.dot_dimension_numbers<[1], [0], [0], [1], [0, 0, 1, 1], [], []>} : vector<8x32xf32>, vector<32x128xf32>, vector<8x128xf32> -> vector<8x128xf32>
    %534 = arith.addf %532, %533 : vector<8x128xf32>
    %535 = vector.extract_strided_slice %534 {offsets = [0, 0], sizes = [8, 32], strides = [1, 1]} : vector<8x128xf32> to vector<8x32xf32>
    %cst_161 = arith.constant 0.000000e+00 : f32
    %536 = vector.broadcast %cst_161 : f32 to vector<8x32xf32>
    %537 = arith.subf %536, %535 : vector<8x32xf32>
    %538 = math.exp %537 : vector<8x32xf32>
    %cst_162 = arith.constant 1.000000e+00 : f32
    %539 = vector.broadcast %cst_162 : f32 to vector<8x32xf32>
    %540 = arith.addf %539, %538 : vector<8x32xf32>
    %cst_163 = arith.constant 1.000000e+00 : f32
    %541 = vector.broadcast %cst_163 : f32 to vector<8x32xf32>
    %542 = arith.divf %541, %540 : vector<8x32xf32>
    %543 = vector.extract_strided_slice %534 {offsets = [0, 32], sizes = [8, 32], strides = [1, 1]} : vector<8x128xf32> to vector<8x32xf32>
    %cst_164 = arith.constant 0.000000e+00 : f32
    %544 = vector.broadcast %cst_164 : f32 to vector<8x32xf32>
    %545 = arith.subf %544, %543 : vector<8x32xf32>
    %546 = math.exp %545 : vector<8x32xf32>
    %cst_165 = arith.constant 1.000000e+00 : f32
    %547 = vector.broadcast %cst_165 : f32 to vector<8x32xf32>
    %548 = arith.addf %547, %546 : vector<8x32xf32>
    %cst_166 = arith.constant 1.000000e+00 : f32
    %549 = vector.broadcast %cst_166 : f32 to vector<8x32xf32>
    %550 = arith.divf %549, %548 : vector<8x32xf32>
    %551 = vector.extract_strided_slice %534 {offsets = [0, 64], sizes = [8, 32], strides = [1, 1]} : vector<8x128xf32> to vector<8x32xf32>
    %552 = math.tanh %551 : vector<8x32xf32>
    %553 = vector.extract_strided_slice %534 {offsets = [0, 96], sizes = [8, 32], strides = [1, 1]} : vector<8x128xf32> to vector<8x32xf32>
    %cst_167 = arith.constant 0.000000e+00 : f32
    %554 = vector.broadcast %cst_167 : f32 to vector<8x32xf32>
    %555 = arith.subf %554, %553 : vector<8x32xf32>
    %556 = math.exp %555 : vector<8x32xf32>
    %cst_168 = arith.constant 1.000000e+00 : f32
    %557 = vector.broadcast %cst_168 : f32 to vector<8x32xf32>
    %558 = arith.addf %557, %556 : vector<8x32xf32>
    %cst_169 = arith.constant 1.000000e+00 : f32
    %559 = vector.broadcast %cst_169 : f32 to vector<8x32xf32>
    %560 = arith.divf %559, %558 : vector<8x32xf32>
    %561 = arith.mulf %550, %528 : vector<8x32xf32>
    %562 = arith.mulf %542, %552 : vector<8x32xf32>
    %563 = arith.addf %561, %562 : vector<8x32xf32>
    %564 = math.tanh %563 : vector<8x32xf32>
    %565 = arith.mulf %560, %564 : vector<8x32xf32>
    %566 = vector.extract_strided_slice %0 {offsets = [32, 0], sizes = [8, 1], strides = [1, 1]} : vector<48x1xf32> to vector<8x1xf32>
    %567 = vector.broadcast %566 : vector<8x1xf32> to vector<8x32xf32>
    %568 = arith.mulf %567, %565 : vector<8x32xf32>
    %cst_170 = arith.constant 1.000000e+00 : f32
    %569 = vector.broadcast %cst_170 : f32 to vector<8x1xf32>
    %570 = arith.subf %569, %566 : vector<8x1xf32>
    %571 = vector.broadcast %570 : vector<8x1xf32> to vector<8x32xf32>
    %572 = arith.mulf %571, %521 : vector<8x32xf32>
    %573 = arith.addf %568, %572 : vector<8x32xf32>
    %574 = vector.broadcast %566 : vector<8x1xf32> to vector<8x32xf32>
    %575 = arith.mulf %574, %563 : vector<8x32xf32>
    %cst_171 = arith.constant 1.000000e+00 : f32
    %576 = vector.broadcast %cst_171 : f32 to vector<8x1xf32>
    %577 = arith.subf %576, %566 : vector<8x1xf32>
    %578 = vector.broadcast %577 : vector<8x1xf32> to vector<8x32xf32>
    %579 = arith.mulf %578, %528 : vector<8x32xf32>
    %580 = arith.addf %575, %579 : vector<8x32xf32>
    %581 = vector.broadcast %566 : vector<8x1xf32> to vector<8x32xf32>
    %582 = arith.mulf %581, %565 : vector<8x32xf32>
    %c32_172 = arith.constant 32 : index
    %c0_173 = arith.constant 0 : index
    %583 = vector.load %arg24[%c32_172, %c0_173] : memref<48x32xf32, #tpu.memory_space<vmem>>, vector<8x32xf32>
    tpu.vector_store %arg24[%c32_172, %c0_173], %582 {strides = array<i32>} : memref<48x32xf32, #tpu.memory_space<vmem>>, vector<8x32xf32>,
    %584 = vector.extract_strided_slice %319 {offsets = [40, 0], sizes = [8, 128], strides = [1, 1]} : vector<48x128xf32> to vector<8x128xf32>
    %cst_174 = arith.constant dense<0.000000e+00> : vector<8x128xf32>
    %585 = tpu.matmul %573, %321, %cst_174 {dimension_numbers = #tpu.dot_dimension_numbers<[1], [0], [0], [1], [0, 0, 1, 1], [], []>} : vector<8x32xf32>, vector<32x128xf32>, vector<8x128xf32> -> vector<8x128xf32>
    %586 = arith.addf %584, %585 : vector<8x128xf32>
    %587 = vector.extract_strided_slice %586 {offsets = [0, 0], sizes = [8, 32], strides = [1, 1]} : vector<8x128xf32> to vector<8x32xf32>
    %cst_175 = arith.constant 0.000000e+00 : f32
    %588 = vector.broadcast %cst_175 : f32 to vector<8x32xf32>
    %589 = arith.subf %588, %587 : vector<8x32xf32>
    %590 = math.exp %589 : vector<8x32xf32>
    %cst_176 = arith.constant 1.000000e+00 : f32
    %591 = vector.broadcast %cst_176 : f32 to vector<8x32xf32>
    %592 = arith.addf %591, %590 : vector<8x32xf32>
    %cst_177 = arith.constant 1.000000e+00 : f32
    %593 = vector.broadcast %cst_177 : f32 to vector<8x32xf32>
    %594 = arith.divf %593, %592 : vector<8x32xf32>
    %595 = vector.extract_strided_slice %586 {offsets = [0, 32], sizes = [8, 32], strides = [1, 1]} : vector<8x128xf32> to vector<8x32xf32>
    %cst_178 = arith.constant 0.000000e+00 : f32
    %596 = vector.broadcast %cst_178 : f32 to vector<8x32xf32>
    %597 = arith.subf %596, %595 : vector<8x32xf32>
    %598 = math.exp %597 : vector<8x32xf32>
    %cst_179 = arith.constant 1.000000e+00 : f32
    %599 = vector.broadcast %cst_179 : f32 to vector<8x32xf32>
    %600 = arith.addf %599, %598 : vector<8x32xf32>
    %cst_180 = arith.constant 1.000000e+00 : f32
    %601 = vector.broadcast %cst_180 : f32 to vector<8x32xf32>
    %602 = arith.divf %601, %600 : vector<8x32xf32>
    %603 = vector.extract_strided_slice %586 {offsets = [0, 64], sizes = [8, 32], strides = [1, 1]} : vector<8x128xf32> to vector<8x32xf32>
    %604 = math.tanh %603 : vector<8x32xf32>
    %605 = vector.extract_strided_slice %586 {offsets = [0, 96], sizes = [8, 32], strides = [1, 1]} : vector<8x128xf32> to vector<8x32xf32>
    %cst_181 = arith.constant 0.000000e+00 : f32
    %606 = vector.broadcast %cst_181 : f32 to vector<8x32xf32>
    %607 = arith.subf %606, %605 : vector<8x32xf32>
    %608 = math.exp %607 : vector<8x32xf32>
    %cst_182 = arith.constant 1.000000e+00 : f32
    %609 = vector.broadcast %cst_182 : f32 to vector<8x32xf32>
    %610 = arith.addf %609, %608 : vector<8x32xf32>
    %cst_183 = arith.constant 1.000000e+00 : f32
    %611 = vector.broadcast %cst_183 : f32 to vector<8x32xf32>
    %612 = arith.divf %611, %610 : vector<8x32xf32>
    %613 = arith.mulf %602, %580 : vector<8x32xf32>
    %614 = arith.mulf %594, %604 : vector<8x32xf32>
    %615 = arith.addf %613, %614 : vector<8x32xf32>
    %616 = math.tanh %615 : vector<8x32xf32>
    %617 = arith.mulf %612, %616 : vector<8x32xf32>
    %618 = vector.extract_strided_slice %0 {offsets = [40, 0], sizes = [8, 1], strides = [1, 1]} : vector<48x1xf32> to vector<8x1xf32>
    %619 = vector.broadcast %618 : vector<8x1xf32> to vector<8x32xf32>
    %620 = arith.mulf %619, %617 : vector<8x32xf32>
    %cst_184 = arith.constant 1.000000e+00 : f32
    %621 = vector.broadcast %cst_184 : f32 to vector<8x1xf32>
    %622 = arith.subf %621, %618 : vector<8x1xf32>
    %623 = vector.broadcast %622 : vector<8x1xf32> to vector<8x32xf32>
    %624 = arith.mulf %623, %573 : vector<8x32xf32>
    %625 = arith.addf %620, %624 : vector<8x32xf32>
    %626 = vector.broadcast %618 : vector<8x1xf32> to vector<8x32xf32>
    %627 = arith.mulf %626, %615 : vector<8x32xf32>
    %cst_185 = arith.constant 1.000000e+00 : f32
    %628 = vector.broadcast %cst_185 : f32 to vector<8x1xf32>
    %629 = arith.subf %628, %618 : vector<8x1xf32>
    %630 = vector.broadcast %629 : vector<8x1xf32> to vector<8x32xf32>
    %631 = arith.mulf %630, %580 : vector<8x32xf32>
    %632 = arith.addf %627, %631 : vector<8x32xf32>
    %633 = vector.broadcast %618 : vector<8x1xf32> to vector<8x32xf32>
    %634 = arith.mulf %633, %617 : vector<8x32xf32>
    %c40_186 = arith.constant 40 : index
    %c0_187 = arith.constant 0 : index
    %635 = vector.load %arg24[%c40_186, %c0_187] : memref<48x32xf32, #tpu.memory_space<vmem>>, vector<8x32xf32>
    tpu.vector_store %arg24[%c40_186, %c0_187], %634 {strides = array<i32>} : memref<48x32xf32, #tpu.memory_space<vmem>>, vector<8x32xf32>,
    %c0_188 = arith.constant 0 : index
    %c0_189 = arith.constant 0 : index
    %636 = vector.load %arg24[%c0_188, %c0_189] : memref<48x32xf32, #tpu.memory_space<vmem>>, vector<48x32xf32>
    %637 = arith.addf %636, %312 : vector<48x32xf32>
    %638 = vector.broadcast %0 : vector<48x1xf32> to vector<48x32xf32>
    %639 = arith.mulf %637, %638 : vector<48x32xf32>
    %c0_190 = arith.constant 0 : index
    %c0_191 = arith.constant 0 : index
    %640 = vector.load %arg13[%c0_190, %c0_191] : memref<32x64xf32, #tpu.memory_space<vmem>>, vector<32x64xf32>
    %cst_192 = arith.constant dense<0.000000e+00> : vector<48x64xf32>
    %641 = tpu.matmul %639, %640, %cst_192 {dimension_numbers = #tpu.dot_dimension_numbers<[1], [0], [0], [1], [0, 0, 1, 1], [], []>} : vector<48x32xf32>, vector<32x64xf32>, vector<48x64xf32> -> vector<48x64xf32>
    %c0_193 = arith.constant 0 : index
    %c0_194 = arith.constant 0 : index
    %642 = vector.load %arg14[%c0_193, %c0_194] : memref<1x64xf32, #tpu.memory_space<vmem>>, vector<1x64xf32>
    %643 = vector.broadcast %642 : vector<1x64xf32> to vector<48x64xf32>
    %644 = arith.addf %641, %643 : vector<48x64xf32>
    %645 = vector.extract_strided_slice %644 {offsets = [0, 0], sizes = [48, 32], strides = [1, 1]} : vector<48x64xf32> to vector<48x32xf32>
    %646 = vector.shape_cast %645 : vector<48x32xf32> to vector<6x8x32xf32>
    %647 = vector.extract_strided_slice %644 {offsets = [0, 32], sizes = [48, 32], strides = [1, 1]} : vector<48x64xf32> to vector<48x32xf32>
    %648 = vector.shape_cast %647 : vector<48x32xf32> to vector<6x8x32xf32>
    %649 = vector.shape_cast %0 : vector<48x1xf32> to vector<6x8x1xf32>
    %c0_195 = arith.constant 0 : index
    %c0_196 = arith.constant 0 : index
    %650 = vector.load %arg3[%c0_195, %c0_196] : memref<40x32xf32, #tpu.memory_space<vmem>>, vector<40x32xf32>
    %c0_197 = arith.constant 0 : index
    %c0_198 = arith.constant 0 : index
    %c0_199 = arith.constant 0 : index
    %651 = vector.load %arg8[%c0_197, %c0_198, %c0_199] : memref<2x32x128xf32, #tpu.memory_space<vmem>>, vector<1x32x128xf32>
    %652 = vector.shape_cast %651 : vector<1x32x128xf32> to vector<32x128xf32>
    %cst_200 = arith.constant dense<0.000000e+00> : vector<40x128xf32>
    %653 = tpu.matmul %650, %652, %cst_200 {dimension_numbers = #tpu.dot_dimension_numbers<[1], [0], [0], [1], [0, 0, 1, 1], [], []>} : vector<40x32xf32>, vector<32x128xf32>, vector<40x128xf32> -> vector<40x128xf32>
    %c0_201 = arith.constant 0 : index
    %c0_202 = arith.constant 0 : index
    %c0_203 = arith.constant 0 : index
    %654 = vector.load %arg10[%c0_201, %c0_202, %c0_203] : memref<2x1x128xf32, #tpu.memory_space<vmem>>, vector<1x1x128xf32>
    %655 = vector.shape_cast %654 : vector<1x1x128xf32> to vector<1x128xf32>
    %656 = vector.broadcast %655 : vector<1x128xf32> to vector<40x128xf32>
    %657 = arith.addf %653, %656 : vector<40x128xf32>
    %c0_204 = arith.constant 0 : index
    %c0_205 = arith.constant 0 : index
    %c0_206 = arith.constant 0 : index
    %658 = vector.load %arg9[%c0_204, %c0_205, %c0_206] : memref<2x32x128xf32, #tpu.memory_space<vmem>>, vector<1x32x128xf32>
    %659 = vector.shape_cast %658 : vector<1x32x128xf32> to vector<32x128xf32>
    %660 = vector.extract_strided_slice %657 {offsets = [0, 0], sizes = [8, 128], strides = [1, 1]} : vector<40x128xf32> to vector<8x128xf32>
    %cst_207 = arith.constant dense<0.000000e+00> : vector<8x128xf32>
    %661 = tpu.matmul %625, %659, %cst_207 {dimension_numbers = #tpu.dot_dimension_numbers<[1], [0], [0], [1], [0, 0, 1, 1], [], []>} : vector<8x32xf32>, vector<32x128xf32>, vector<8x128xf32> -> vector<8x128xf32>
    %662 = arith.addf %660, %661 : vector<8x128xf32>
    %663 = vector.extract_strided_slice %662 {offsets = [0, 0], sizes = [8, 32], strides = [1, 1]} : vector<8x128xf32> to vector<8x32xf32>
    %cst_208 = arith.constant 0.000000e+00 : f32
    %664 = vector.broadcast %cst_208 : f32 to vector<8x32xf32>
    %665 = arith.subf %664, %663 : vector<8x32xf32>
    %666 = math.exp %665 : vector<8x32xf32>
    %cst_209 = arith.constant 1.000000e+00 : f32
    %667 = vector.broadcast %cst_209 : f32 to vector<8x32xf32>
    %668 = arith.addf %667, %666 : vector<8x32xf32>
    %cst_210 = arith.constant 1.000000e+00 : f32
    %669 = vector.broadcast %cst_210 : f32 to vector<8x32xf32>
    %670 = arith.divf %669, %668 : vector<8x32xf32>
    %671 = vector.extract_strided_slice %662 {offsets = [0, 32], sizes = [8, 32], strides = [1, 1]} : vector<8x128xf32> to vector<8x32xf32>
    %cst_211 = arith.constant 0.000000e+00 : f32
    %672 = vector.broadcast %cst_211 : f32 to vector<8x32xf32>
    %673 = arith.subf %672, %671 : vector<8x32xf32>
    %674 = math.exp %673 : vector<8x32xf32>
    %cst_212 = arith.constant 1.000000e+00 : f32
    %675 = vector.broadcast %cst_212 : f32 to vector<8x32xf32>
    %676 = arith.addf %675, %674 : vector<8x32xf32>
    %cst_213 = arith.constant 1.000000e+00 : f32
    %677 = vector.broadcast %cst_213 : f32 to vector<8x32xf32>
    %678 = arith.divf %677, %676 : vector<8x32xf32>
    %679 = vector.extract_strided_slice %662 {offsets = [0, 64], sizes = [8, 32], strides = [1, 1]} : vector<8x128xf32> to vector<8x32xf32>
    %680 = math.tanh %679 : vector<8x32xf32>
    %681 = vector.extract_strided_slice %662 {offsets = [0, 96], sizes = [8, 32], strides = [1, 1]} : vector<8x128xf32> to vector<8x32xf32>
    %cst_214 = arith.constant 0.000000e+00 : f32
    %682 = vector.broadcast %cst_214 : f32 to vector<8x32xf32>
    %683 = arith.subf %682, %681 : vector<8x32xf32>
    %684 = math.exp %683 : vector<8x32xf32>
    %cst_215 = arith.constant 1.000000e+00 : f32
    %685 = vector.broadcast %cst_215 : f32 to vector<8x32xf32>
    %686 = arith.addf %685, %684 : vector<8x32xf32>
    %cst_216 = arith.constant 1.000000e+00 : f32
    %687 = vector.broadcast %cst_216 : f32 to vector<8x32xf32>
    %688 = arith.divf %687, %686 : vector<8x32xf32>
    %689 = arith.mulf %678, %632 : vector<8x32xf32>
    %690 = arith.mulf %670, %680 : vector<8x32xf32>
    %691 = arith.addf %689, %690 : vector<8x32xf32>
    %692 = math.tanh %691 : vector<8x32xf32>
    %693 = arith.mulf %688, %692 : vector<8x32xf32>
    %c0_217 = arith.constant 0 : index
    %c0_218 = arith.constant 0 : index
    %694 = vector.load %arg25[%c0_217, %c0_218] : memref<40x32xf32, #tpu.memory_space<vmem>>, vector<8x32xf32>
    tpu.vector_store %arg25[%c0_217, %c0_218], %693 {strides = array<i32>} : memref<40x32xf32, #tpu.memory_space<vmem>>, vector<8x32xf32>,
    %695 = vector.extract_strided_slice %657 {offsets = [8, 0], sizes = [8, 128], strides = [1, 1]} : vector<40x128xf32> to vector<8x128xf32>
    %cst_219 = arith.constant dense<0.000000e+00> : vector<8x128xf32>
    %696 = tpu.matmul %693, %659, %cst_219 {dimension_numbers = #tpu.dot_dimension_numbers<[1], [0], [0], [1], [0, 0, 1, 1], [], []>} : vector<8x32xf32>, vector<32x128xf32>, vector<8x128xf32> -> vector<8x128xf32>
    %697 = arith.addf %695, %696 : vector<8x128xf32>
    %698 = vector.extract_strided_slice %697 {offsets = [0, 0], sizes = [8, 32], strides = [1, 1]} : vector<8x128xf32> to vector<8x32xf32>
    %cst_220 = arith.constant 0.000000e+00 : f32
    %699 = vector.broadcast %cst_220 : f32 to vector<8x32xf32>
    %700 = arith.subf %699, %698 : vector<8x32xf32>
    %701 = math.exp %700 : vector<8x32xf32>
    %cst_221 = arith.constant 1.000000e+00 : f32
    %702 = vector.broadcast %cst_221 : f32 to vector<8x32xf32>
    %703 = arith.addf %702, %701 : vector<8x32xf32>
    %cst_222 = arith.constant 1.000000e+00 : f32
    %704 = vector.broadcast %cst_222 : f32 to vector<8x32xf32>
    %705 = arith.divf %704, %703 : vector<8x32xf32>
    %706 = vector.extract_strided_slice %697 {offsets = [0, 32], sizes = [8, 32], strides = [1, 1]} : vector<8x128xf32> to vector<8x32xf32>
    %cst_223 = arith.constant 0.000000e+00 : f32
    %707 = vector.broadcast %cst_223 : f32 to vector<8x32xf32>
    %708 = arith.subf %707, %706 : vector<8x32xf32>
    %709 = math.exp %708 : vector<8x32xf32>
    %cst_224 = arith.constant 1.000000e+00 : f32
    %710 = vector.broadcast %cst_224 : f32 to vector<8x32xf32>
    %711 = arith.addf %710, %709 : vector<8x32xf32>
    %cst_225 = arith.constant 1.000000e+00 : f32
    %712 = vector.broadcast %cst_225 : f32 to vector<8x32xf32>
    %713 = arith.divf %712, %711 : vector<8x32xf32>
    %714 = vector.extract_strided_slice %697 {offsets = [0, 64], sizes = [8, 32], strides = [1, 1]} : vector<8x128xf32> to vector<8x32xf32>
    %715 = math.tanh %714 : vector<8x32xf32>
    %716 = vector.extract_strided_slice %697 {offsets = [0, 96], sizes = [8, 32], strides = [1, 1]} : vector<8x128xf32> to vector<8x32xf32>
    %cst_226 = arith.constant 0.000000e+00 : f32
    %717 = vector.broadcast %cst_226 : f32 to vector<8x32xf32>
    %718 = arith.subf %717, %716 : vector<8x32xf32>
    %719 = math.exp %718 : vector<8x32xf32>
    %cst_227 = arith.constant 1.000000e+00 : f32
    %720 = vector.broadcast %cst_227 : f32 to vector<8x32xf32>
    %721 = arith.addf %720, %719 : vector<8x32xf32>
    %cst_228 = arith.constant 1.000000e+00 : f32
    %722 = vector.broadcast %cst_228 : f32 to vector<8x32xf32>
    %723 = arith.divf %722, %721 : vector<8x32xf32>
    %724 = arith.mulf %713, %691 : vector<8x32xf32>
    %725 = arith.mulf %705, %715 : vector<8x32xf32>
    %726 = arith.addf %724, %725 : vector<8x32xf32>
    %727 = math.tanh %726 : vector<8x32xf32>
    %728 = arith.mulf %723, %727 : vector<8x32xf32>
    %c8_229 = arith.constant 8 : index
    %c0_230 = arith.constant 0 : index
    %729 = vector.load %arg25[%c8_229, %c0_230] : memref<40x32xf32, #tpu.memory_space<vmem>>, vector<8x32xf32>
    tpu.vector_store %arg25[%c8_229, %c0_230], %728 {strides = array<i32>} : memref<40x32xf32, #tpu.memory_space<vmem>>, vector<8x32xf32>,
    %730 = vector.extract_strided_slice %657 {offsets = [16, 0], sizes = [8, 128], strides = [1, 1]} : vector<40x128xf32> to vector<8x128xf32>
    %cst_231 = arith.constant dense<0.000000e+00> : vector<8x128xf32>
    %731 = tpu.matmul %728, %659, %cst_231 {dimension_numbers = #tpu.dot_dimension_numbers<[1], [0], [0], [1], [0, 0, 1, 1], [], []>} : vector<8x32xf32>, vector<32x128xf32>, vector<8x128xf32> -> vector<8x128xf32>
    %732 = arith.addf %730, %731 : vector<8x128xf32>
    %733 = vector.extract_strided_slice %732 {offsets = [0, 0], sizes = [8, 32], strides = [1, 1]} : vector<8x128xf32> to vector<8x32xf32>
    %cst_232 = arith.constant 0.000000e+00 : f32
    %734 = vector.broadcast %cst_232 : f32 to vector<8x32xf32>
    %735 = arith.subf %734, %733 : vector<8x32xf32>
    %736 = math.exp %735 : vector<8x32xf32>
    %cst_233 = arith.constant 1.000000e+00 : f32
    %737 = vector.broadcast %cst_233 : f32 to vector<8x32xf32>
    %738 = arith.addf %737, %736 : vector<8x32xf32>
    %cst_234 = arith.constant 1.000000e+00 : f32
    %739 = vector.broadcast %cst_234 : f32 to vector<8x32xf32>
    %740 = arith.divf %739, %738 : vector<8x32xf32>
    %741 = vector.extract_strided_slice %732 {offsets = [0, 32], sizes = [8, 32], strides = [1, 1]} : vector<8x128xf32> to vector<8x32xf32>
    %cst_235 = arith.constant 0.000000e+00 : f32
    %742 = vector.broadcast %cst_235 : f32 to vector<8x32xf32>
    %743 = arith.subf %742, %741 : vector<8x32xf32>
    %744 = math.exp %743 : vector<8x32xf32>
    %cst_236 = arith.constant 1.000000e+00 : f32
    %745 = vector.broadcast %cst_236 : f32 to vector<8x32xf32>
    %746 = arith.addf %745, %744 : vector<8x32xf32>
    %cst_237 = arith.constant 1.000000e+00 : f32
    %747 = vector.broadcast %cst_237 : f32 to vector<8x32xf32>
    %748 = arith.divf %747, %746 : vector<8x32xf32>
    %749 = vector.extract_strided_slice %732 {offsets = [0, 64], sizes = [8, 32], strides = [1, 1]} : vector<8x128xf32> to vector<8x32xf32>
    %750 = math.tanh %749 : vector<8x32xf32>
    %751 = vector.extract_strided_slice %732 {offsets = [0, 96], sizes = [8, 32], strides = [1, 1]} : vector<8x128xf32> to vector<8x32xf32>
    %cst_238 = arith.constant 0.000000e+00 : f32
    %752 = vector.broadcast %cst_238 : f32 to vector<8x32xf32>
    %753 = arith.subf %752, %751 : vector<8x32xf32>
    %754 = math.exp %753 : vector<8x32xf32>
    %cst_239 = arith.constant 1.000000e+00 : f32
    %755 = vector.broadcast %cst_239 : f32 to vector<8x32xf32>
    %756 = arith.addf %755, %754 : vector<8x32xf32>
    %cst_240 = arith.constant 1.000000e+00 : f32
    %757 = vector.broadcast %cst_240 : f32 to vector<8x32xf32>
    %758 = arith.divf %757, %756 : vector<8x32xf32>
    %759 = arith.mulf %748, %726 : vector<8x32xf32>
    %760 = arith.mulf %740, %750 : vector<8x32xf32>
    %761 = arith.addf %759, %760 : vector<8x32xf32>
    %762 = math.tanh %761 : vector<8x32xf32>
    %763 = arith.mulf %758, %762 : vector<8x32xf32>
    %c16_241 = arith.constant 16 : index
    %c0_242 = arith.constant 0 : index
    %764 = vector.load %arg25[%c16_241, %c0_242] : memref<40x32xf32, #tpu.memory_space<vmem>>, vector<8x32xf32>
    tpu.vector_store %arg25[%c16_241, %c0_242], %763 {strides = array<i32>} : memref<40x32xf32, #tpu.memory_space<vmem>>, vector<8x32xf32>,
    %765 = vector.extract_strided_slice %657 {offsets = [24, 0], sizes = [8, 128], strides = [1, 1]} : vector<40x128xf32> to vector<8x128xf32>
    %cst_243 = arith.constant dense<0.000000e+00> : vector<8x128xf32>
    %766 = tpu.matmul %763, %659, %cst_243 {dimension_numbers = #tpu.dot_dimension_numbers<[1], [0], [0], [1], [0, 0, 1, 1], [], []>} : vector<8x32xf32>, vector<32x128xf32>, vector<8x128xf32> -> vector<8x128xf32>
    %767 = arith.addf %765, %766 : vector<8x128xf32>
    %768 = vector.extract_strided_slice %767 {offsets = [0, 0], sizes = [8, 32], strides = [1, 1]} : vector<8x128xf32> to vector<8x32xf32>
    %cst_244 = arith.constant 0.000000e+00 : f32
    %769 = vector.broadcast %cst_244 : f32 to vector<8x32xf32>
    %770 = arith.subf %769, %768 : vector<8x32xf32>
    %771 = math.exp %770 : vector<8x32xf32>
    %cst_245 = arith.constant 1.000000e+00 : f32
    %772 = vector.broadcast %cst_245 : f32 to vector<8x32xf32>
    %773 = arith.addf %772, %771 : vector<8x32xf32>
    %cst_246 = arith.constant 1.000000e+00 : f32
    %774 = vector.broadcast %cst_246 : f32 to vector<8x32xf32>
    %775 = arith.divf %774, %773 : vector<8x32xf32>
    %776 = vector.extract_strided_slice %767 {offsets = [0, 32], sizes = [8, 32], strides = [1, 1]} : vector<8x128xf32> to vector<8x32xf32>
    %cst_247 = arith.constant 0.000000e+00 : f32
    %777 = vector.broadcast %cst_247 : f32 to vector<8x32xf32>
    %778 = arith.subf %777, %776 : vector<8x32xf32>
    %779 = math.exp %778 : vector<8x32xf32>
    %cst_248 = arith.constant 1.000000e+00 : f32
    %780 = vector.broadcast %cst_248 : f32 to vector<8x32xf32>
    %781 = arith.addf %780, %779 : vector<8x32xf32>
    %cst_249 = arith.constant 1.000000e+00 : f32
    %782 = vector.broadcast %cst_249 : f32 to vector<8x32xf32>
    %783 = arith.divf %782, %781 : vector<8x32xf32>
    %784 = vector.extract_strided_slice %767 {offsets = [0, 64], sizes = [8, 32], strides = [1, 1]} : vector<8x128xf32> to vector<8x32xf32>
    %785 = math.tanh %784 : vector<8x32xf32>
    %786 = vector.extract_strided_slice %767 {offsets = [0, 96], sizes = [8, 32], strides = [1, 1]} : vector<8x128xf32> to vector<8x32xf32>
    %cst_250 = arith.constant 0.000000e+00 : f32
    %787 = vector.broadcast %cst_250 : f32 to vector<8x32xf32>
    %788 = arith.subf %787, %786 : vector<8x32xf32>
    %789 = math.exp %788 : vector<8x32xf32>
    %cst_251 = arith.constant 1.000000e+00 : f32
    %790 = vector.broadcast %cst_251 : f32 to vector<8x32xf32>
    %791 = arith.addf %790, %789 : vector<8x32xf32>
    %cst_252 = arith.constant 1.000000e+00 : f32
    %792 = vector.broadcast %cst_252 : f32 to vector<8x32xf32>
    %793 = arith.divf %792, %791 : vector<8x32xf32>
    %794 = arith.mulf %783, %761 : vector<8x32xf32>
    %795 = arith.mulf %775, %785 : vector<8x32xf32>
    %796 = arith.addf %794, %795 : vector<8x32xf32>
    %797 = math.tanh %796 : vector<8x32xf32>
    %798 = arith.mulf %793, %797 : vector<8x32xf32>
    %c24_253 = arith.constant 24 : index
    %c0_254 = arith.constant 0 : index
    %799 = vector.load %arg25[%c24_253, %c0_254] : memref<40x32xf32, #tpu.memory_space<vmem>>, vector<8x32xf32>
    tpu.vector_store %arg25[%c24_253, %c0_254], %798 {strides = array<i32>} : memref<40x32xf32, #tpu.memory_space<vmem>>, vector<8x32xf32>,
    %800 = vector.extract_strided_slice %657 {offsets = [32, 0], sizes = [8, 128], strides = [1, 1]} : vector<40x128xf32> to vector<8x128xf32>
    %cst_255 = arith.constant dense<0.000000e+00> : vector<8x128xf32>
    %801 = tpu.matmul %798, %659, %cst_255 {dimension_numbers = #tpu.dot_dimension_numbers<[1], [0], [0], [1], [0, 0, 1, 1], [], []>} : vector<8x32xf32>, vector<32x128xf32>, vector<8x128xf32> -> vector<8x128xf32>
    %802 = arith.addf %800, %801 : vector<8x128xf32>
    %803 = vector.extract_strided_slice %802 {offsets = [0, 0], sizes = [8, 32], strides = [1, 1]} : vector<8x128xf32> to vector<8x32xf32>
    %cst_256 = arith.constant 0.000000e+00 : f32
    %804 = vector.broadcast %cst_256 : f32 to vector<8x32xf32>
    %805 = arith.subf %804, %803 : vector<8x32xf32>
    %806 = math.exp %805 : vector<8x32xf32>
    %cst_257 = arith.constant 1.000000e+00 : f32
    %807 = vector.broadcast %cst_257 : f32 to vector<8x32xf32>
    %808 = arith.addf %807, %806 : vector<8x32xf32>
    %cst_258 = arith.constant 1.000000e+00 : f32
    %809 = vector.broadcast %cst_258 : f32 to vector<8x32xf32>
    %810 = arith.divf %809, %808 : vector<8x32xf32>
    %811 = vector.extract_strided_slice %802 {offsets = [0, 32], sizes = [8, 32], strides = [1, 1]} : vector<8x128xf32> to vector<8x32xf32>
    %cst_259 = arith.constant 0.000000e+00 : f32
    %812 = vector.broadcast %cst_259 : f32 to vector<8x32xf32>
    %813 = arith.subf %812, %811 : vector<8x32xf32>
    %814 = math.exp %813 : vector<8x32xf32>
    %cst_260 = arith.constant 1.000000e+00 : f32
    %815 = vector.broadcast %cst_260 : f32 to vector<8x32xf32>
    %816 = arith.addf %815, %814 : vector<8x32xf32>
    %cst_261 = arith.constant 1.000000e+00 : f32
    %817 = vector.broadcast %cst_261 : f32 to vector<8x32xf32>
    %818 = arith.divf %817, %816 : vector<8x32xf32>
    %819 = vector.extract_strided_slice %802 {offsets = [0, 64], sizes = [8, 32], strides = [1, 1]} : vector<8x128xf32> to vector<8x32xf32>
    %820 = math.tanh %819 : vector<8x32xf32>
    %821 = vector.extract_strided_slice %802 {offsets = [0, 96], sizes = [8, 32], strides = [1, 1]} : vector<8x128xf32> to vector<8x32xf32>
    %cst_262 = arith.constant 0.000000e+00 : f32
    %822 = vector.broadcast %cst_262 : f32 to vector<8x32xf32>
    %823 = arith.subf %822, %821 : vector<8x32xf32>
    %824 = math.exp %823 : vector<8x32xf32>
    %cst_263 = arith.constant 1.000000e+00 : f32
    %825 = vector.broadcast %cst_263 : f32 to vector<8x32xf32>
    %826 = arith.addf %825, %824 : vector<8x32xf32>
    %cst_264 = arith.constant 1.000000e+00 : f32
    %827 = vector.broadcast %cst_264 : f32 to vector<8x32xf32>
    %828 = arith.divf %827, %826 : vector<8x32xf32>
    %829 = arith.mulf %818, %796 : vector<8x32xf32>
    %830 = arith.mulf %810, %820 : vector<8x32xf32>
    %831 = arith.addf %829, %830 : vector<8x32xf32>
    %832 = math.tanh %831 : vector<8x32xf32>
    %833 = arith.mulf %828, %832 : vector<8x32xf32>
    %c32_265 = arith.constant 32 : index
    %c0_266 = arith.constant 0 : index
    %834 = vector.load %arg25[%c32_265, %c0_266] : memref<40x32xf32, #tpu.memory_space<vmem>>, vector<8x32xf32>
    tpu.vector_store %arg25[%c32_265, %c0_266], %833 {strides = array<i32>} : memref<40x32xf32, #tpu.memory_space<vmem>>, vector<8x32xf32>,
    %c0_267 = arith.constant 0 : index
    %c0_268 = arith.constant 0 : index
    %835 = vector.load %arg25[%c0_267, %c0_268] : memref<40x32xf32, #tpu.memory_space<vmem>>, vector<40x32xf32>
    %836 = arith.addf %835, %650 : vector<40x32xf32>
    %c1_269 = arith.constant 1 : index
    %c0_270 = arith.constant 0 : index
    %c0_271 = arith.constant 0 : index
    %837 = vector.load %arg8[%c1_269, %c0_270, %c0_271] : memref<2x32x128xf32, #tpu.memory_space<vmem>>, vector<1x32x128xf32>
    %838 = vector.shape_cast %837 : vector<1x32x128xf32> to vector<32x128xf32>
    %cst_272 = arith.constant dense<0.000000e+00> : vector<40x128xf32>
    %839 = tpu.matmul %836, %838, %cst_272 {dimension_numbers = #tpu.dot_dimension_numbers<[1], [0], [0], [1], [0, 0, 1, 1], [], []>} : vector<40x32xf32>, vector<32x128xf32>, vector<40x128xf32> -> vector<40x128xf32>
    %c1_273 = arith.constant 1 : index
    %c0_274 = arith.constant 0 : index
    %c0_275 = arith.constant 0 : index
    %840 = vector.load %arg10[%c1_273, %c0_274, %c0_275] : memref<2x1x128xf32, #tpu.memory_space<vmem>>, vector<1x1x128xf32>
    %841 = vector.shape_cast %840 : vector<1x1x128xf32> to vector<1x128xf32>
    %842 = vector.broadcast %841 : vector<1x128xf32> to vector<40x128xf32>
    %843 = arith.addf %839, %842 : vector<40x128xf32>
    %c1_276 = arith.constant 1 : index
    %c0_277 = arith.constant 0 : index
    %c0_278 = arith.constant 0 : index
    %844 = vector.load %arg9[%c1_276, %c0_277, %c0_278] : memref<2x32x128xf32, #tpu.memory_space<vmem>>, vector<1x32x128xf32>
    %845 = vector.shape_cast %844 : vector<1x32x128xf32> to vector<32x128xf32>
    %846 = vector.extract_strided_slice %843 {offsets = [0, 0], sizes = [8, 128], strides = [1, 1]} : vector<40x128xf32> to vector<8x128xf32>
    %cst_279 = arith.constant dense<0.000000e+00> : vector<8x128xf32>
    %847 = tpu.matmul %625, %845, %cst_279 {dimension_numbers = #tpu.dot_dimension_numbers<[1], [0], [0], [1], [0, 0, 1, 1], [], []>} : vector<8x32xf32>, vector<32x128xf32>, vector<8x128xf32> -> vector<8x128xf32>
    %848 = arith.addf %846, %847 : vector<8x128xf32>
    %849 = vector.extract_strided_slice %848 {offsets = [0, 0], sizes = [8, 32], strides = [1, 1]} : vector<8x128xf32> to vector<8x32xf32>
    %cst_280 = arith.constant 0.000000e+00 : f32
    %850 = vector.broadcast %cst_280 : f32 to vector<8x32xf32>
    %851 = arith.subf %850, %849 : vector<8x32xf32>
    %852 = math.exp %851 : vector<8x32xf32>
    %cst_281 = arith.constant 1.000000e+00 : f32
    %853 = vector.broadcast %cst_281 : f32 to vector<8x32xf32>
    %854 = arith.addf %853, %852 : vector<8x32xf32>
    %cst_282 = arith.constant 1.000000e+00 : f32
    %855 = vector.broadcast %cst_282 : f32 to vector<8x32xf32>
    %856 = arith.divf %855, %854 : vector<8x32xf32>
    %857 = vector.extract_strided_slice %848 {offsets = [0, 32], sizes = [8, 32], strides = [1, 1]} : vector<8x128xf32> to vector<8x32xf32>
    %cst_283 = arith.constant 0.000000e+00 : f32
    %858 = vector.broadcast %cst_283 : f32 to vector<8x32xf32>
    %859 = arith.subf %858, %857 : vector<8x32xf32>
    %860 = math.exp %859 : vector<8x32xf32>
    %cst_284 = arith.constant 1.000000e+00 : f32
    %861 = vector.broadcast %cst_284 : f32 to vector<8x32xf32>
    %862 = arith.addf %861, %860 : vector<8x32xf32>
    %cst_285 = arith.constant 1.000000e+00 : f32
    %863 = vector.broadcast %cst_285 : f32 to vector<8x32xf32>
    %864 = arith.divf %863, %862 : vector<8x32xf32>
    %865 = vector.extract_strided_slice %848 {offsets = [0, 64], sizes = [8, 32], strides = [1, 1]} : vector<8x128xf32> to vector<8x32xf32>
    %866 = math.tanh %865 : vector<8x32xf32>
    %867 = vector.extract_strided_slice %848 {offsets = [0, 96], sizes = [8, 32], strides = [1, 1]} : vector<8x128xf32> to vector<8x32xf32>
    %cst_286 = arith.constant 0.000000e+00 : f32
    %868 = vector.broadcast %cst_286 : f32 to vector<8x32xf32>
    %869 = arith.subf %868, %867 : vector<8x32xf32>
    %870 = math.exp %869 : vector<8x32xf32>
    %cst_287 = arith.constant 1.000000e+00 : f32
    %871 = vector.broadcast %cst_287 : f32 to vector<8x32xf32>
    %872 = arith.addf %871, %870 : vector<8x32xf32>
    %cst_288 = arith.constant 1.000000e+00 : f32
    %873 = vector.broadcast %cst_288 : f32 to vector<8x32xf32>
    %874 = arith.divf %873, %872 : vector<8x32xf32>
    %875 = arith.mulf %864, %632 : vector<8x32xf32>
    %876 = arith.mulf %856, %866 : vector<8x32xf32>
    %877 = arith.addf %875, %876 : vector<8x32xf32>
    %878 = math.tanh %877 : vector<8x32xf32>
    %879 = arith.mulf %874, %878 : vector<8x32xf32>
    %c0_289 = arith.constant 0 : index
    %c0_290 = arith.constant 0 : index
    %880 = vector.load %arg25[%c0_289, %c0_290] : memref<40x32xf32, #tpu.memory_space<vmem>>, vector<8x32xf32>
    tpu.vector_store %arg25[%c0_289, %c0_290], %879 {strides = array<i32>} : memref<40x32xf32, #tpu.memory_space<vmem>>, vector<8x32xf32>,
    %881 = vector.extract_strided_slice %843 {offsets = [8, 0], sizes = [8, 128], strides = [1, 1]} : vector<40x128xf32> to vector<8x128xf32>
    %cst_291 = arith.constant dense<0.000000e+00> : vector<8x128xf32>
    %882 = tpu.matmul %879, %845, %cst_291 {dimension_numbers = #tpu.dot_dimension_numbers<[1], [0], [0], [1], [0, 0, 1, 1], [], []>} : vector<8x32xf32>, vector<32x128xf32>, vector<8x128xf32> -> vector<8x128xf32>
    %883 = arith.addf %881, %882 : vector<8x128xf32>
    %884 = vector.extract_strided_slice %883 {offsets = [0, 0], sizes = [8, 32], strides = [1, 1]} : vector<8x128xf32> to vector<8x32xf32>
    %cst_292 = arith.constant 0.000000e+00 : f32
    %885 = vector.broadcast %cst_292 : f32 to vector<8x32xf32>
    %886 = arith.subf %885, %884 : vector<8x32xf32>
    %887 = math.exp %886 : vector<8x32xf32>
    %cst_293 = arith.constant 1.000000e+00 : f32
    %888 = vector.broadcast %cst_293 : f32 to vector<8x32xf32>
    %889 = arith.addf %888, %887 : vector<8x32xf32>
    %cst_294 = arith.constant 1.000000e+00 : f32
    %890 = vector.broadcast %cst_294 : f32 to vector<8x32xf32>
    %891 = arith.divf %890, %889 : vector<8x32xf32>
    %892 = vector.extract_strided_slice %883 {offsets = [0, 32], sizes = [8, 32], strides = [1, 1]} : vector<8x128xf32> to vector<8x32xf32>
    %cst_295 = arith.constant 0.000000e+00 : f32
    %893 = vector.broadcast %cst_295 : f32 to vector<8x32xf32>
    %894 = arith.subf %893, %892 : vector<8x32xf32>
    %895 = math.exp %894 : vector<8x32xf32>
    %cst_296 = arith.constant 1.000000e+00 : f32
    %896 = vector.broadcast %cst_296 : f32 to vector<8x32xf32>
    %897 = arith.addf %896, %895 : vector<8x32xf32>
    %cst_297 = arith.constant 1.000000e+00 : f32
    %898 = vector.broadcast %cst_297 : f32 to vector<8x32xf32>
    %899 = arith.divf %898, %897 : vector<8x32xf32>
    %900 = vector.extract_strided_slice %883 {offsets = [0, 64], sizes = [8, 32], strides = [1, 1]} : vector<8x128xf32> to vector<8x32xf32>
    %901 = math.tanh %900 : vector<8x32xf32>
    %902 = vector.extract_strided_slice %883 {offsets = [0, 96], sizes = [8, 32], strides = [1, 1]} : vector<8x128xf32> to vector<8x32xf32>
    %cst_298 = arith.constant 0.000000e+00 : f32
    %903 = vector.broadcast %cst_298 : f32 to vector<8x32xf32>
    %904 = arith.subf %903, %902 : vector<8x32xf32>
    %905 = math.exp %904 : vector<8x32xf32>
    %cst_299 = arith.constant 1.000000e+00 : f32
    %906 = vector.broadcast %cst_299 : f32 to vector<8x32xf32>
    %907 = arith.addf %906, %905 : vector<8x32xf32>
    %cst_300 = arith.constant 1.000000e+00 : f32
    %908 = vector.broadcast %cst_300 : f32 to vector<8x32xf32>
    %909 = arith.divf %908, %907 : vector<8x32xf32>
    %910 = arith.mulf %899, %877 : vector<8x32xf32>
    %911 = arith.mulf %891, %901 : vector<8x32xf32>
    %912 = arith.addf %910, %911 : vector<8x32xf32>
    %913 = math.tanh %912 : vector<8x32xf32>
    %914 = arith.mulf %909, %913 : vector<8x32xf32>
    %c8_301 = arith.constant 8 : index
    %c0_302 = arith.constant 0 : index
    %915 = vector.load %arg25[%c8_301, %c0_302] : memref<40x32xf32, #tpu.memory_space<vmem>>, vector<8x32xf32>
    tpu.vector_store %arg25[%c8_301, %c0_302], %914 {strides = array<i32>} : memref<40x32xf32, #tpu.memory_space<vmem>>, vector<8x32xf32>,
    %916 = vector.extract_strided_slice %843 {offsets = [16, 0], sizes = [8, 128], strides = [1, 1]} : vector<40x128xf32> to vector<8x128xf32>
    %cst_303 = arith.constant dense<0.000000e+00> : vector<8x128xf32>
    %917 = tpu.matmul %914, %845, %cst_303 {dimension_numbers = #tpu.dot_dimension_numbers<[1], [0], [0], [1], [0, 0, 1, 1], [], []>} : vector<8x32xf32>, vector<32x128xf32>, vector<8x128xf32> -> vector<8x128xf32>
    %918 = arith.addf %916, %917 : vector<8x128xf32>
    %919 = vector.extract_strided_slice %918 {offsets = [0, 0], sizes = [8, 32], strides = [1, 1]} : vector<8x128xf32> to vector<8x32xf32>
    %cst_304 = arith.constant 0.000000e+00 : f32
    %920 = vector.broadcast %cst_304 : f32 to vector<8x32xf32>
    %921 = arith.subf %920, %919 : vector<8x32xf32>
    %922 = math.exp %921 : vector<8x32xf32>
    %cst_305 = arith.constant 1.000000e+00 : f32
    %923 = vector.broadcast %cst_305 : f32 to vector<8x32xf32>
    %924 = arith.addf %923, %922 : vector<8x32xf32>
    %cst_306 = arith.constant 1.000000e+00 : f32
    %925 = vector.broadcast %cst_306 : f32 to vector<8x32xf32>
    %926 = arith.divf %925, %924 : vector<8x32xf32>
    %927 = vector.extract_strided_slice %918 {offsets = [0, 32], sizes = [8, 32], strides = [1, 1]} : vector<8x128xf32> to vector<8x32xf32>
    %cst_307 = arith.constant 0.000000e+00 : f32
    %928 = vector.broadcast %cst_307 : f32 to vector<8x32xf32>
    %929 = arith.subf %928, %927 : vector<8x32xf32>
    %930 = math.exp %929 : vector<8x32xf32>
    %cst_308 = arith.constant 1.000000e+00 : f32
    %931 = vector.broadcast %cst_308 : f32 to vector<8x32xf32>
    %932 = arith.addf %931, %930 : vector<8x32xf32>
    %cst_309 = arith.constant 1.000000e+00 : f32
    %933 = vector.broadcast %cst_309 : f32 to vector<8x32xf32>
    %934 = arith.divf %933, %932 : vector<8x32xf32>
    %935 = vector.extract_strided_slice %918 {offsets = [0, 64], sizes = [8, 32], strides = [1, 1]} : vector<8x128xf32> to vector<8x32xf32>
    %936 = math.tanh %935 : vector<8x32xf32>
    %937 = vector.extract_strided_slice %918 {offsets = [0, 96], sizes = [8, 32], strides = [1, 1]} : vector<8x128xf32> to vector<8x32xf32>
    %cst_310 = arith.constant 0.000000e+00 : f32
    %938 = vector.broadcast %cst_310 : f32 to vector<8x32xf32>
    %939 = arith.subf %938, %937 : vector<8x32xf32>
    %940 = math.exp %939 : vector<8x32xf32>
    %cst_311 = arith.constant 1.000000e+00 : f32
    %941 = vector.broadcast %cst_311 : f32 to vector<8x32xf32>
    %942 = arith.addf %941, %940 : vector<8x32xf32>
    %cst_312 = arith.constant 1.000000e+00 : f32
    %943 = vector.broadcast %cst_312 : f32 to vector<8x32xf32>
    %944 = arith.divf %943, %942 : vector<8x32xf32>
    %945 = arith.mulf %934, %912 : vector<8x32xf32>
    %946 = arith.mulf %926, %936 : vector<8x32xf32>
    %947 = arith.addf %945, %946 : vector<8x32xf32>
    %948 = math.tanh %947 : vector<8x32xf32>
    %949 = arith.mulf %944, %948 : vector<8x32xf32>
    %c16_313 = arith.constant 16 : index
    %c0_314 = arith.constant 0 : index
    %950 = vector.load %arg25[%c16_313, %c0_314] : memref<40x32xf32, #tpu.memory_space<vmem>>, vector<8x32xf32>
    tpu.vector_store %arg25[%c16_313, %c0_314], %949 {strides = array<i32>} : memref<40x32xf32, #tpu.memory_space<vmem>>, vector<8x32xf32>,
    %951 = vector.extract_strided_slice %843 {offsets = [24, 0], sizes = [8, 128], strides = [1, 1]} : vector<40x128xf32> to vector<8x128xf32>
    %cst_315 = arith.constant dense<0.000000e+00> : vector<8x128xf32>
    %952 = tpu.matmul %949, %845, %cst_315 {dimension_numbers = #tpu.dot_dimension_numbers<[1], [0], [0], [1], [0, 0, 1, 1], [], []>} : vector<8x32xf32>, vector<32x128xf32>, vector<8x128xf32> -> vector<8x128xf32>
    %953 = arith.addf %951, %952 : vector<8x128xf32>
    %954 = vector.extract_strided_slice %953 {offsets = [0, 0], sizes = [8, 32], strides = [1, 1]} : vector<8x128xf32> to vector<8x32xf32>
    %cst_316 = arith.constant 0.000000e+00 : f32
    %955 = vector.broadcast %cst_316 : f32 to vector<8x32xf32>
    %956 = arith.subf %955, %954 : vector<8x32xf32>
    %957 = math.exp %956 : vector<8x32xf32>
    %cst_317 = arith.constant 1.000000e+00 : f32
    %958 = vector.broadcast %cst_317 : f32 to vector<8x32xf32>
    %959 = arith.addf %958, %957 : vector<8x32xf32>
    %cst_318 = arith.constant 1.000000e+00 : f32
    %960 = vector.broadcast %cst_318 : f32 to vector<8x32xf32>
    %961 = arith.divf %960, %959 : vector<8x32xf32>
    %962 = vector.extract_strided_slice %953 {offsets = [0, 32], sizes = [8, 32], strides = [1, 1]} : vector<8x128xf32> to vector<8x32xf32>
    %cst_319 = arith.constant 0.000000e+00 : f32
    %963 = vector.broadcast %cst_319 : f32 to vector<8x32xf32>
    %964 = arith.subf %963, %962 : vector<8x32xf32>
    %965 = math.exp %964 : vector<8x32xf32>
    %cst_320 = arith.constant 1.000000e+00 : f32
    %966 = vector.broadcast %cst_320 : f32 to vector<8x32xf32>
    %967 = arith.addf %966, %965 : vector<8x32xf32>
    %cst_321 = arith.constant 1.000000e+00 : f32
    %968 = vector.broadcast %cst_321 : f32 to vector<8x32xf32>
    %969 = arith.divf %968, %967 : vector<8x32xf32>
    %970 = vector.extract_strided_slice %953 {offsets = [0, 64], sizes = [8, 32], strides = [1, 1]} : vector<8x128xf32> to vector<8x32xf32>
    %971 = math.tanh %970 : vector<8x32xf32>
    %972 = vector.extract_strided_slice %953 {offsets = [0, 96], sizes = [8, 32], strides = [1, 1]} : vector<8x128xf32> to vector<8x32xf32>
    %cst_322 = arith.constant 0.000000e+00 : f32
    %973 = vector.broadcast %cst_322 : f32 to vector<8x32xf32>
    %974 = arith.subf %973, %972 : vector<8x32xf32>
    %975 = math.exp %974 : vector<8x32xf32>
    %cst_323 = arith.constant 1.000000e+00 : f32
    %976 = vector.broadcast %cst_323 : f32 to vector<8x32xf32>
    %977 = arith.addf %976, %975 : vector<8x32xf32>
    %cst_324 = arith.constant 1.000000e+00 : f32
    %978 = vector.broadcast %cst_324 : f32 to vector<8x32xf32>
    %979 = arith.divf %978, %977 : vector<8x32xf32>
    %980 = arith.mulf %969, %947 : vector<8x32xf32>
    %981 = arith.mulf %961, %971 : vector<8x32xf32>
    %982 = arith.addf %980, %981 : vector<8x32xf32>
    %983 = math.tanh %982 : vector<8x32xf32>
    %984 = arith.mulf %979, %983 : vector<8x32xf32>
    %c24_325 = arith.constant 24 : index
    %c0_326 = arith.constant 0 : index
    %985 = vector.load %arg25[%c24_325, %c0_326] : memref<40x32xf32, #tpu.memory_space<vmem>>, vector<8x32xf32>
    tpu.vector_store %arg25[%c24_325, %c0_326], %984 {strides = array<i32>} : memref<40x32xf32, #tpu.memory_space<vmem>>, vector<8x32xf32>,
    %986 = vector.extract_strided_slice %843 {offsets = [32, 0], sizes = [8, 128], strides = [1, 1]} : vector<40x128xf32> to vector<8x128xf32>
    %cst_327 = arith.constant dense<0.000000e+00> : vector<8x128xf32>
    %987 = tpu.matmul %984, %845, %cst_327 {dimension_numbers = #tpu.dot_dimension_numbers<[1], [0], [0], [1], [0, 0, 1, 1], [], []>} : vector<8x32xf32>, vector<32x128xf32>, vector<8x128xf32> -> vector<8x128xf32>
    %988 = arith.addf %986, %987 : vector<8x128xf32>
    %989 = vector.extract_strided_slice %988 {offsets = [0, 0], sizes = [8, 32], strides = [1, 1]} : vector<8x128xf32> to vector<8x32xf32>
    %cst_328 = arith.constant 0.000000e+00 : f32
    %990 = vector.broadcast %cst_328 : f32 to vector<8x32xf32>
    %991 = arith.subf %990, %989 : vector<8x32xf32>
    %992 = math.exp %991 : vector<8x32xf32>
    %cst_329 = arith.constant 1.000000e+00 : f32
    %993 = vector.broadcast %cst_329 : f32 to vector<8x32xf32>
    %994 = arith.addf %993, %992 : vector<8x32xf32>
    %cst_330 = arith.constant 1.000000e+00 : f32
    %995 = vector.broadcast %cst_330 : f32 to vector<8x32xf32>
    %996 = arith.divf %995, %994 : vector<8x32xf32>
    %997 = vector.extract_strided_slice %988 {offsets = [0, 32], sizes = [8, 32], strides = [1, 1]} : vector<8x128xf32> to vector<8x32xf32>
    %cst_331 = arith.constant 0.000000e+00 : f32
    %998 = vector.broadcast %cst_331 : f32 to vector<8x32xf32>
    %999 = arith.subf %998, %997 : vector<8x32xf32>
    %1000 = math.exp %999 : vector<8x32xf32>
    %cst_332 = arith.constant 1.000000e+00 : f32
    %1001 = vector.broadcast %cst_332 : f32 to vector<8x32xf32>
    %1002 = arith.addf %1001, %1000 : vector<8x32xf32>
    %cst_333 = arith.constant 1.000000e+00 : f32
    %1003 = vector.broadcast %cst_333 : f32 to vector<8x32xf32>
    %1004 = arith.divf %1003, %1002 : vector<8x32xf32>
    %1005 = vector.extract_strided_slice %988 {offsets = [0, 64], sizes = [8, 32], strides = [1, 1]} : vector<8x128xf32> to vector<8x32xf32>
    %1006 = math.tanh %1005 : vector<8x32xf32>
    %1007 = vector.extract_strided_slice %988 {offsets = [0, 96], sizes = [8, 32], strides = [1, 1]} : vector<8x128xf32> to vector<8x32xf32>
    %cst_334 = arith.constant 0.000000e+00 : f32
    %1008 = vector.broadcast %cst_334 : f32 to vector<8x32xf32>
    %1009 = arith.subf %1008, %1007 : vector<8x32xf32>
    %1010 = math.exp %1009 : vector<8x32xf32>
    %cst_335 = arith.constant 1.000000e+00 : f32
    %1011 = vector.broadcast %cst_335 : f32 to vector<8x32xf32>
    %1012 = arith.addf %1011, %1010 : vector<8x32xf32>
    %cst_336 = arith.constant 1.000000e+00 : f32
    %1013 = vector.broadcast %cst_336 : f32 to vector<8x32xf32>
    %1014 = arith.divf %1013, %1012 : vector<8x32xf32>
    %1015 = arith.mulf %1004, %982 : vector<8x32xf32>
    %1016 = arith.mulf %996, %1006 : vector<8x32xf32>
    %1017 = arith.addf %1015, %1016 : vector<8x32xf32>
    %1018 = math.tanh %1017 : vector<8x32xf32>
    %1019 = arith.mulf %1014, %1018 : vector<8x32xf32>
    %c32_337 = arith.constant 32 : index
    %c0_338 = arith.constant 0 : index
    %1020 = vector.load %arg25[%c32_337, %c0_338] : memref<40x32xf32, #tpu.memory_space<vmem>>, vector<8x32xf32>
    tpu.vector_store %arg25[%c32_337, %c0_338], %1019 {strides = array<i32>} : memref<40x32xf32, #tpu.memory_space<vmem>>, vector<8x32xf32>,
    %c0_339 = arith.constant 0 : index
    %c0_340 = arith.constant 0 : index
    %1021 = vector.load %arg25[%c0_339, %c0_340] : memref<40x32xf32, #tpu.memory_space<vmem>>, vector<40x32xf32>
    %1022 = arith.addf %1021, %836 : vector<40x32xf32>
    %c0_341 = arith.constant 0 : index
    %c0_342 = arith.constant 0 : index
    %1023 = vector.load %arg11[%c0_341, %c0_342] : memref<32x32xf32, #tpu.memory_space<vmem>>, vector<32x32xf32>
    %cst_343 = arith.constant dense<0.000000e+00> : vector<40x32xf32>
    %1024 = tpu.matmul %1022, %1023, %cst_343 {dimension_numbers = #tpu.dot_dimension_numbers<[1], [0], [0], [1], [0, 0, 1, 1], [], []>} : vector<40x32xf32>, vector<32x32xf32>, vector<40x32xf32> -> vector<40x32xf32>
    %c0_344 = arith.constant 0 : index
    %c0_345 = arith.constant 0 : index
    %1025 = vector.load %arg12[%c0_344, %c0_345] : memref<1x32xf32, #tpu.memory_space<vmem>>, vector<1x32xf32>
    %1026 = vector.broadcast %1025 : vector<1x32xf32> to vector<40x32xf32>
    %1027 = arith.addf %1024, %1026 : vector<40x32xf32>
    %1028 = vector.shape_cast %1027 : vector<40x32xf32> to vector<5x1x8x32xf32>
    %1029 = vector.shape_cast %646 : vector<6x8x32xf32> to vector<1x6x8x32xf32>
    %1030 = vector.broadcast %1028 : vector<5x1x8x32xf32> to vector<5x6x8x32xf32>
    %1031 = vector.broadcast %1029 : vector<1x6x8x32xf32> to vector<5x6x8x32xf32>
    %1032 = arith.addf %1030, %1031 : vector<5x6x8x32xf32>
    %1033 = math.tanh %1032 : vector<5x6x8x32xf32>
    %c0_346 = arith.constant 0 : index
    %c0_347 = arith.constant 0 : index
    %1034 = vector.load %arg15[%c0_346, %c0_347] : memref<1x32xf32, #tpu.memory_space<vmem>>, vector<1x32xf32>
    %1035 = vector.shape_cast %1034 : vector<1x32xf32> to vector<1x1x1x32xf32>
    %c0_348 = arith.constant 0 : index
    %c0_349 = arith.constant 0 : index
    %1036 = vector.load %arg16[%c0_348, %c0_349] : memref<1x1xf32, #tpu.memory_space<vmem>>, vector<1x1xf32>
    %1037 = vector.shape_cast %1036 : vector<1x1xf32> to vector<1x1x1x1xf32>
    %1038 = vector.broadcast %1035 : vector<1x1x1x32xf32> to vector<5x6x8x32xf32>
    %1039 = arith.mulf %1033, %1038 : vector<5x6x8x32xf32>
    %cst_350 = arith.constant dense<0.000000e+00> : vector<5x6x8xf32>
    %1040 = vector.multi_reduction <add>, %1039, %cst_350 [3] : vector<5x6x8x32xf32> to vector<5x6x8xf32>
    %1041 = vector.shape_cast %1040 : vector<5x6x8xf32> to vector<5x6x8x1xf32>
    %1042 = vector.broadcast %1037 : vector<1x1x1x1xf32> to vector<5x6x8x1xf32>
    %1043 = arith.addf %1041, %1042 : vector<5x6x8x1xf32>
    %1044 = vector.shape_cast %649 : vector<6x8x1xf32> to vector<1x6x8x1xf32>
    %cst_351 = arith.constant 5.000000e-01 : f32
    %1045 = vector.broadcast %cst_351 : f32 to vector<1x6x8x1xf32>
    %1046 = arith.cmpf ogt, %1044, %1045 : vector<1x6x8x1xf32>
    %cst_352 = arith.constant -1.000000e+06 : f32
    %1047 = vector.shape_cast %1046 : vector<1x6x8x1xi1> to vector<1x6x8x1xi1>
    %1048 = vector.broadcast %1047 : vector<1x6x8x1xi1> to vector<5x6x8x1xi1>
    %1049 = vector.broadcast %cst_352 : f32 to vector<5x6x8x1xf32>
    %1050 = arith.select %1048, %1043, %1049 : vector<5x6x8x1xi1>, vector<5x6x8x1xf32>
    %cst_353 = arith.constant dense<0xFF800000> : vector<5x8x1xf32>
    %1051 = vector.multi_reduction <maximumf>, %1050, %cst_353 [1] : vector<5x6x8x1xf32> to vector<5x8x1xf32>
    %1052 = vector.shape_cast %1051 : vector<5x8x1xf32> to vector<5x1x8x1xf32>
    %1053 = vector.broadcast %1052 : vector<5x1x8x1xf32> to vector<5x6x8x1xf32>
    %1054 = arith.subf %1050, %1053 : vector<5x6x8x1xf32>
    %1055 = math.exp %1054 : vector<5x6x8x1xf32>
    %cst_354 = arith.constant dense<0.000000e+00> : vector<5x8x1xf32>
    %1056 = vector.multi_reduction <add>, %1055, %cst_354 [1] : vector<5x6x8x1xf32> to vector<5x8x1xf32>
    %1057 = vector.shape_cast %1056 : vector<5x8x1xf32> to vector<5x1x8x1xf32>
    %1058 = tpu.reciprocal %1057 {approx = true} : vector<5x1x8x1xf32> -> vector<5x1x8x1xf32>
    %1059 = vector.broadcast %1058 : vector<5x1x8x1xf32> to vector<5x6x8x1xf32>
    %1060 = arith.mulf %1055, %1059 : vector<5x6x8x1xf32>
    %1061 = vector.shape_cast %648 : vector<6x8x32xf32> to vector<1x6x8x32xf32>
    %1062 = vector.broadcast %1060 : vector<5x6x8x1xf32> to vector<5x6x8x32xf32>
    %1063 = vector.broadcast %1061 : vector<1x6x8x32xf32> to vector<5x6x8x32xf32>
    %1064 = arith.mulf %1062, %1063 : vector<5x6x8x32xf32>
    %cst_355 = arith.constant dense<0.000000e+00> : vector<5x8x32xf32>
    %1065 = vector.multi_reduction <add>, %1064, %cst_355 [1] : vector<5x6x8x32xf32> to vector<5x8x32xf32>
    %1066 = vector.shape_cast %1065 : vector<5x8x32xf32> to vector<40x32xf32>
    %c0_356 = arith.constant 0 : index
    %c0_357 = arith.constant 0 : index
    %1067 = vector.load %arg17[%c0_356, %c0_357] : memref<32x128xf32, #tpu.memory_space<vmem>>, vector<32x128xf32>
    %cst_358 = arith.constant dense<0.000000e+00> : vector<40x128xf32>
    %1068 = tpu.matmul %1022, %1067, %cst_358 {dimension_numbers = #tpu.dot_dimension_numbers<[1], [0], [0], [1], [0, 0, 1, 1], [], []>} : vector<40x32xf32>, vector<32x128xf32>, vector<40x128xf32> -> vector<40x128xf32>
    %c0_359 = arith.constant 0 : index
    %c0_360 = arith.constant 0 : index
    %1069 = vector.load %arg18[%c0_359, %c0_360] : memref<32x128xf32, #tpu.memory_space<vmem>>, vector<32x128xf32>
    %cst_361 = arith.constant dense<0.000000e+00> : vector<40x128xf32>
    %1070 = tpu.matmul %1066, %1069, %cst_361 {dimension_numbers = #tpu.dot_dimension_numbers<[1], [0], [0], [1], [0, 0, 1, 1], [], []>} : vector<40x32xf32>, vector<32x128xf32>, vector<40x128xf32> -> vector<40x128xf32>
    %1071 = arith.addf %1068, %1070 : vector<40x128xf32>
    %c0_362 = arith.constant 0 : index
    %c0_363 = arith.constant 0 : index
    %1072 = vector.load %arg20[%c0_362, %c0_363] : memref<1x128xf32, #tpu.memory_space<vmem>>, vector<1x128xf32>
    %1073 = vector.broadcast %1072 : vector<1x128xf32> to vector<40x128xf32>
    %1074 = arith.addf %1071, %1073 : vector<40x128xf32>
    %c0_364 = arith.constant 0 : index
    %c0_365 = arith.constant 0 : index
    %1075 = vector.load %arg19[%c0_364, %c0_365] : memref<32x128xf32, #tpu.memory_space<vmem>>, vector<32x128xf32>
    %1076 = vector.extract_strided_slice %1074 {offsets = [0, 0], sizes = [8, 128], strides = [1, 1]} : vector<40x128xf32> to vector<8x128xf32>
    %cst_366 = arith.constant dense<0.000000e+00> : vector<8x128xf32>
    %1077 = tpu.matmul %625, %1075, %cst_366 {dimension_numbers = #tpu.dot_dimension_numbers<[1], [0], [0], [1], [0, 0, 1, 1], [], []>} : vector<8x32xf32>, vector<32x128xf32>, vector<8x128xf32> -> vector<8x128xf32>
    %1078 = arith.addf %1076, %1077 : vector<8x128xf32>
    %1079 = vector.extract_strided_slice %1078 {offsets = [0, 0], sizes = [8, 32], strides = [1, 1]} : vector<8x128xf32> to vector<8x32xf32>
    %cst_367 = arith.constant 0.000000e+00 : f32
    %1080 = vector.broadcast %cst_367 : f32 to vector<8x32xf32>
    %1081 = arith.subf %1080, %1079 : vector<8x32xf32>
    %1082 = math.exp %1081 : vector<8x32xf32>
    %cst_368 = arith.constant 1.000000e+00 : f32
    %1083 = vector.broadcast %cst_368 : f32 to vector<8x32xf32>
    %1084 = arith.addf %1083, %1082 : vector<8x32xf32>
    %cst_369 = arith.constant 1.000000e+00 : f32
    %1085 = vector.broadcast %cst_369 : f32 to vector<8x32xf32>
    %1086 = arith.divf %1085, %1084 : vector<8x32xf32>
    %1087 = vector.extract_strided_slice %1078 {offsets = [0, 32], sizes = [8, 32], strides = [1, 1]} : vector<8x128xf32> to vector<8x32xf32>
    %cst_370 = arith.constant 0.000000e+00 : f32
    %1088 = vector.broadcast %cst_370 : f32 to vector<8x32xf32>
    %1089 = arith.subf %1088, %1087 : vector<8x32xf32>
    %1090 = math.exp %1089 : vector<8x32xf32>
    %cst_371 = arith.constant 1.000000e+00 : f32
    %1091 = vector.broadcast %cst_371 : f32 to vector<8x32xf32>
    %1092 = arith.addf %1091, %1090 : vector<8x32xf32>
    %cst_372 = arith.constant 1.000000e+00 : f32
    %1093 = vector.broadcast %cst_372 : f32 to vector<8x32xf32>
    %1094 = arith.divf %1093, %1092 : vector<8x32xf32>
    %1095 = vector.extract_strided_slice %1078 {offsets = [0, 64], sizes = [8, 32], strides = [1, 1]} : vector<8x128xf32> to vector<8x32xf32>
    %1096 = math.tanh %1095 : vector<8x32xf32>
    %1097 = vector.extract_strided_slice %1078 {offsets = [0, 96], sizes = [8, 32], strides = [1, 1]} : vector<8x128xf32> to vector<8x32xf32>
    %cst_373 = arith.constant 0.000000e+00 : f32
    %1098 = vector.broadcast %cst_373 : f32 to vector<8x32xf32>
    %1099 = arith.subf %1098, %1097 : vector<8x32xf32>
    %1100 = math.exp %1099 : vector<8x32xf32>
    %cst_374 = arith.constant 1.000000e+00 : f32
    %1101 = vector.broadcast %cst_374 : f32 to vector<8x32xf32>
    %1102 = arith.addf %1101, %1100 : vector<8x32xf32>
    %cst_375 = arith.constant 1.000000e+00 : f32
    %1103 = vector.broadcast %cst_375 : f32 to vector<8x32xf32>
    %1104 = arith.divf %1103, %1102 : vector<8x32xf32>
    %1105 = arith.mulf %1094, %632 : vector<8x32xf32>
    %1106 = arith.mulf %1086, %1096 : vector<8x32xf32>
    %1107 = arith.addf %1105, %1106 : vector<8x32xf32>
    %1108 = math.tanh %1107 : vector<8x32xf32>
    %1109 = arith.mulf %1104, %1108 : vector<8x32xf32>
    %c0_376 = arith.constant 0 : index
    %c0_377 = arith.constant 0 : index
    %1110 = vector.load %arg25[%c0_376, %c0_377] : memref<40x32xf32, #tpu.memory_space<vmem>>, vector<8x32xf32>
    tpu.vector_store %arg25[%c0_376, %c0_377], %1109 {strides = array<i32>} : memref<40x32xf32, #tpu.memory_space<vmem>>, vector<8x32xf32>,
    %1111 = vector.extract_strided_slice %1074 {offsets = [8, 0], sizes = [8, 128], strides = [1, 1]} : vector<40x128xf32> to vector<8x128xf32>
    %cst_378 = arith.constant dense<0.000000e+00> : vector<8x128xf32>
    %1112 = tpu.matmul %1109, %1075, %cst_378 {dimension_numbers = #tpu.dot_dimension_numbers<[1], [0], [0], [1], [0, 0, 1, 1], [], []>} : vector<8x32xf32>, vector<32x128xf32>, vector<8x128xf32> -> vector<8x128xf32>
    %1113 = arith.addf %1111, %1112 : vector<8x128xf32>
    %1114 = vector.extract_strided_slice %1113 {offsets = [0, 0], sizes = [8, 32], strides = [1, 1]} : vector<8x128xf32> to vector<8x32xf32>
    %cst_379 = arith.constant 0.000000e+00 : f32
    %1115 = vector.broadcast %cst_379 : f32 to vector<8x32xf32>
    %1116 = arith.subf %1115, %1114 : vector<8x32xf32>
    %1117 = math.exp %1116 : vector<8x32xf32>
    %cst_380 = arith.constant 1.000000e+00 : f32
    %1118 = vector.broadcast %cst_380 : f32 to vector<8x32xf32>
    %1119 = arith.addf %1118, %1117 : vector<8x32xf32>
    %cst_381 = arith.constant 1.000000e+00 : f32
    %1120 = vector.broadcast %cst_381 : f32 to vector<8x32xf32>
    %1121 = arith.divf %1120, %1119 : vector<8x32xf32>
    %1122 = vector.extract_strided_slice %1113 {offsets = [0, 32], sizes = [8, 32], strides = [1, 1]} : vector<8x128xf32> to vector<8x32xf32>
    %cst_382 = arith.constant 0.000000e+00 : f32
    %1123 = vector.broadcast %cst_382 : f32 to vector<8x32xf32>
    %1124 = arith.subf %1123, %1122 : vector<8x32xf32>
    %1125 = math.exp %1124 : vector<8x32xf32>
    %cst_383 = arith.constant 1.000000e+00 : f32
    %1126 = vector.broadcast %cst_383 : f32 to vector<8x32xf32>
    %1127 = arith.addf %1126, %1125 : vector<8x32xf32>
    %cst_384 = arith.constant 1.000000e+00 : f32
    %1128 = vector.broadcast %cst_384 : f32 to vector<8x32xf32>
    %1129 = arith.divf %1128, %1127 : vector<8x32xf32>
    %1130 = vector.extract_strided_slice %1113 {offsets = [0, 64], sizes = [8, 32], strides = [1, 1]} : vector<8x128xf32> to vector<8x32xf32>
    %1131 = math.tanh %1130 : vector<8x32xf32>
    %1132 = vector.extract_strided_slice %1113 {offsets = [0, 96], sizes = [8, 32], strides = [1, 1]} : vector<8x128xf32> to vector<8x32xf32>
    %cst_385 = arith.constant 0.000000e+00 : f32
    %1133 = vector.broadcast %cst_385 : f32 to vector<8x32xf32>
    %1134 = arith.subf %1133, %1132 : vector<8x32xf32>
    %1135 = math.exp %1134 : vector<8x32xf32>
    %cst_386 = arith.constant 1.000000e+00 : f32
    %1136 = vector.broadcast %cst_386 : f32 to vector<8x32xf32>
    %1137 = arith.addf %1136, %1135 : vector<8x32xf32>
    %cst_387 = arith.constant 1.000000e+00 : f32
    %1138 = vector.broadcast %cst_387 : f32 to vector<8x32xf32>
    %1139 = arith.divf %1138, %1137 : vector<8x32xf32>
    %1140 = arith.mulf %1129, %1107 : vector<8x32xf32>
    %1141 = arith.mulf %1121, %1131 : vector<8x32xf32>
    %1142 = arith.addf %1140, %1141 : vector<8x32xf32>
    %1143 = math.tanh %1142 : vector<8x32xf32>
    %1144 = arith.mulf %1139, %1143 : vector<8x32xf32>
    %c8_388 = arith.constant 8 : index
    %c0_389 = arith.constant 0 : index
    %1145 = vector.load %arg25[%c8_388, %c0_389] : memref<40x32xf32, #tpu.memory_space<vmem>>, vector<8x32xf32>
    tpu.vector_store %arg25[%c8_388, %c0_389], %1144 {strides = array<i32>} : memref<40x32xf32, #tpu.memory_space<vmem>>, vector<8x32xf32>,
    %1146 = vector.extract_strided_slice %1074 {offsets = [16, 0], sizes = [8, 128], strides = [1, 1]} : vector<40x128xf32> to vector<8x128xf32>
    %cst_390 = arith.constant dense<0.000000e+00> : vector<8x128xf32>
    %1147 = tpu.matmul %1144, %1075, %cst_390 {dimension_numbers = #tpu.dot_dimension_numbers<[1], [0], [0], [1], [0, 0, 1, 1], [], []>} : vector<8x32xf32>, vector<32x128xf32>, vector<8x128xf32> -> vector<8x128xf32>
    %1148 = arith.addf %1146, %1147 : vector<8x128xf32>
    %1149 = vector.extract_strided_slice %1148 {offsets = [0, 0], sizes = [8, 32], strides = [1, 1]} : vector<8x128xf32> to vector<8x32xf32>
    %cst_391 = arith.constant 0.000000e+00 : f32
    %1150 = vector.broadcast %cst_391 : f32 to vector<8x32xf32>
    %1151 = arith.subf %1150, %1149 : vector<8x32xf32>
    %1152 = math.exp %1151 : vector<8x32xf32>
    %cst_392 = arith.constant 1.000000e+00 : f32
    %1153 = vector.broadcast %cst_392 : f32 to vector<8x32xf32>
    %1154 = arith.addf %1153, %1152 : vector<8x32xf32>
    %cst_393 = arith.constant 1.000000e+00 : f32
    %1155 = vector.broadcast %cst_393 : f32 to vector<8x32xf32>
    %1156 = arith.divf %1155, %1154 : vector<8x32xf32>
    %1157 = vector.extract_strided_slice %1148 {offsets = [0, 32], sizes = [8, 32], strides = [1, 1]} : vector<8x128xf32> to vector<8x32xf32>
    %cst_394 = arith.constant 0.000000e+00 : f32
    %1158 = vector.broadcast %cst_394 : f32 to vector<8x32xf32>
    %1159 = arith.subf %1158, %1157 : vector<8x32xf32>
    %1160 = math.exp %1159 : vector<8x32xf32>
    %cst_395 = arith.constant 1.000000e+00 : f32
    %1161 = vector.broadcast %cst_395 : f32 to vector<8x32xf32>
    %1162 = arith.addf %1161, %1160 : vector<8x32xf32>
    %cst_396 = arith.constant 1.000000e+00 : f32
    %1163 = vector.broadcast %cst_396 : f32 to vector<8x32xf32>
    %1164 = arith.divf %1163, %1162 : vector<8x32xf32>
    %1165 = vector.extract_strided_slice %1148 {offsets = [0, 64], sizes = [8, 32], strides = [1, 1]} : vector<8x128xf32> to vector<8x32xf32>
    %1166 = math.tanh %1165 : vector<8x32xf32>
    %1167 = vector.extract_strided_slice %1148 {offsets = [0, 96], sizes = [8, 32], strides = [1, 1]} : vector<8x128xf32> to vector<8x32xf32>
    %cst_397 = arith.constant 0.000000e+00 : f32
    %1168 = vector.broadcast %cst_397 : f32 to vector<8x32xf32>
    %1169 = arith.subf %1168, %1167 : vector<8x32xf32>
    %1170 = math.exp %1169 : vector<8x32xf32>
    %cst_398 = arith.constant 1.000000e+00 : f32
    %1171 = vector.broadcast %cst_398 : f32 to vector<8x32xf32>
    %1172 = arith.addf %1171, %1170 : vector<8x32xf32>
    %cst_399 = arith.constant 1.000000e+00 : f32
    %1173 = vector.broadcast %cst_399 : f32 to vector<8x32xf32>
    %1174 = arith.divf %1173, %1172 : vector<8x32xf32>
    %1175 = arith.mulf %1164, %1142 : vector<8x32xf32>
    %1176 = arith.mulf %1156, %1166 : vector<8x32xf32>
    %1177 = arith.addf %1175, %1176 : vector<8x32xf32>
    %1178 = math.tanh %1177 : vector<8x32xf32>
    %1179 = arith.mulf %1174, %1178 : vector<8x32xf32>
    %c16_400 = arith.constant 16 : index
    %c0_401 = arith.constant 0 : index
    %1180 = vector.load %arg25[%c16_400, %c0_401] : memref<40x32xf32, #tpu.memory_space<vmem>>, vector<8x32xf32>
    tpu.vector_store %arg25[%c16_400, %c0_401], %1179 {strides = array<i32>} : memref<40x32xf32, #tpu.memory_space<vmem>>, vector<8x32xf32>,
    %1181 = vector.extract_strided_slice %1074 {offsets = [24, 0], sizes = [8, 128], strides = [1, 1]} : vector<40x128xf32> to vector<8x128xf32>
    %cst_402 = arith.constant dense<0.000000e+00> : vector<8x128xf32>
    %1182 = tpu.matmul %1179, %1075, %cst_402 {dimension_numbers = #tpu.dot_dimension_numbers<[1], [0], [0], [1], [0, 0, 1, 1], [], []>} : vector<8x32xf32>, vector<32x128xf32>, vector<8x128xf32> -> vector<8x128xf32>
    %1183 = arith.addf %1181, %1182 : vector<8x128xf32>
    %1184 = vector.extract_strided_slice %1183 {offsets = [0, 0], sizes = [8, 32], strides = [1, 1]} : vector<8x128xf32> to vector<8x32xf32>
    %cst_403 = arith.constant 0.000000e+00 : f32
    %1185 = vector.broadcast %cst_403 : f32 to vector<8x32xf32>
    %1186 = arith.subf %1185, %1184 : vector<8x32xf32>
    %1187 = math.exp %1186 : vector<8x32xf32>
    %cst_404 = arith.constant 1.000000e+00 : f32
    %1188 = vector.broadcast %cst_404 : f32 to vector<8x32xf32>
    %1189 = arith.addf %1188, %1187 : vector<8x32xf32>
    %cst_405 = arith.constant 1.000000e+00 : f32
    %1190 = vector.broadcast %cst_405 : f32 to vector<8x32xf32>
    %1191 = arith.divf %1190, %1189 : vector<8x32xf32>
    %1192 = vector.extract_strided_slice %1183 {offsets = [0, 32], sizes = [8, 32], strides = [1, 1]} : vector<8x128xf32> to vector<8x32xf32>
    %cst_406 = arith.constant 0.000000e+00 : f32
    %1193 = vector.broadcast %cst_406 : f32 to vector<8x32xf32>
    %1194 = arith.subf %1193, %1192 : vector<8x32xf32>
    %1195 = math.exp %1194 : vector<8x32xf32>
    %cst_407 = arith.constant 1.000000e+00 : f32
    %1196 = vector.broadcast %cst_407 : f32 to vector<8x32xf32>
    %1197 = arith.addf %1196, %1195 : vector<8x32xf32>
    %cst_408 = arith.constant 1.000000e+00 : f32
    %1198 = vector.broadcast %cst_408 : f32 to vector<8x32xf32>
    %1199 = arith.divf %1198, %1197 : vector<8x32xf32>
    %1200 = vector.extract_strided_slice %1183 {offsets = [0, 64], sizes = [8, 32], strides = [1, 1]} : vector<8x128xf32> to vector<8x32xf32>
    %1201 = math.tanh %1200 : vector<8x32xf32>
    %1202 = vector.extract_strided_slice %1183 {offsets = [0, 96], sizes = [8, 32], strides = [1, 1]} : vector<8x128xf32> to vector<8x32xf32>
    %cst_409 = arith.constant 0.000000e+00 : f32
    %1203 = vector.broadcast %cst_409 : f32 to vector<8x32xf32>
    %1204 = arith.subf %1203, %1202 : vector<8x32xf32>
    %1205 = math.exp %1204 : vector<8x32xf32>
    %cst_410 = arith.constant 1.000000e+00 : f32
    %1206 = vector.broadcast %cst_410 : f32 to vector<8x32xf32>
    %1207 = arith.addf %1206, %1205 : vector<8x32xf32>
    %cst_411 = arith.constant 1.000000e+00 : f32
    %1208 = vector.broadcast %cst_411 : f32 to vector<8x32xf32>
    %1209 = arith.divf %1208, %1207 : vector<8x32xf32>
    %1210 = arith.mulf %1199, %1177 : vector<8x32xf32>
    %1211 = arith.mulf %1191, %1201 : vector<8x32xf32>
    %1212 = arith.addf %1210, %1211 : vector<8x32xf32>
    %1213 = math.tanh %1212 : vector<8x32xf32>
    %1214 = arith.mulf %1209, %1213 : vector<8x32xf32>
    %c24_412 = arith.constant 24 : index
    %c0_413 = arith.constant 0 : index
    %1215 = vector.load %arg25[%c24_412, %c0_413] : memref<40x32xf32, #tpu.memory_space<vmem>>, vector<8x32xf32>
    tpu.vector_store %arg25[%c24_412, %c0_413], %1214 {strides = array<i32>} : memref<40x32xf32, #tpu.memory_space<vmem>>, vector<8x32xf32>,
    %1216 = vector.extract_strided_slice %1074 {offsets = [32, 0], sizes = [8, 128], strides = [1, 1]} : vector<40x128xf32> to vector<8x128xf32>
    %cst_414 = arith.constant dense<0.000000e+00> : vector<8x128xf32>
    %1217 = tpu.matmul %1214, %1075, %cst_414 {dimension_numbers = #tpu.dot_dimension_numbers<[1], [0], [0], [1], [0, 0, 1, 1], [], []>} : vector<8x32xf32>, vector<32x128xf32>, vector<8x128xf32> -> vector<8x128xf32>
    %1218 = arith.addf %1216, %1217 : vector<8x128xf32>
    %1219 = vector.extract_strided_slice %1218 {offsets = [0, 0], sizes = [8, 32], strides = [1, 1]} : vector<8x128xf32> to vector<8x32xf32>
    %cst_415 = arith.constant 0.000000e+00 : f32
    %1220 = vector.broadcast %cst_415 : f32 to vector<8x32xf32>
    %1221 = arith.subf %1220, %1219 : vector<8x32xf32>
    %1222 = math.exp %1221 : vector<8x32xf32>
    %cst_416 = arith.constant 1.000000e+00 : f32
    %1223 = vector.broadcast %cst_416 : f32 to vector<8x32xf32>
    %1224 = arith.addf %1223, %1222 : vector<8x32xf32>
    %cst_417 = arith.constant 1.000000e+00 : f32
    %1225 = vector.broadcast %cst_417 : f32 to vector<8x32xf32>
    %1226 = arith.divf %1225, %1224 : vector<8x32xf32>
    %1227 = vector.extract_strided_slice %1218 {offsets = [0, 32], sizes = [8, 32], strides = [1, 1]} : vector<8x128xf32> to vector<8x32xf32>
    %cst_418 = arith.constant 0.000000e+00 : f32
    %1228 = vector.broadcast %cst_418 : f32 to vector<8x32xf32>
    %1229 = arith.subf %1228, %1227 : vector<8x32xf32>
    %1230 = math.exp %1229 : vector<8x32xf32>
    %cst_419 = arith.constant 1.000000e+00 : f32
    %1231 = vector.broadcast %cst_419 : f32 to vector<8x32xf32>
    %1232 = arith.addf %1231, %1230 : vector<8x32xf32>
    %cst_420 = arith.constant 1.000000e+00 : f32
    %1233 = vector.broadcast %cst_420 : f32 to vector<8x32xf32>
    %1234 = arith.divf %1233, %1232 : vector<8x32xf32>
    %1235 = vector.extract_strided_slice %1218 {offsets = [0, 64], sizes = [8, 32], strides = [1, 1]} : vector<8x128xf32> to vector<8x32xf32>
    %1236 = math.tanh %1235 : vector<8x32xf32>
    %1237 = vector.extract_strided_slice %1218 {offsets = [0, 96], sizes = [8, 32], strides = [1, 1]} : vector<8x128xf32> to vector<8x32xf32>
    %cst_421 = arith.constant 0.000000e+00 : f32
    %1238 = vector.broadcast %cst_421 : f32 to vector<8x32xf32>
    %1239 = arith.subf %1238, %1237 : vector<8x32xf32>
    %1240 = math.exp %1239 : vector<8x32xf32>
    %cst_422 = arith.constant 1.000000e+00 : f32
    %1241 = vector.broadcast %cst_422 : f32 to vector<8x32xf32>
    %1242 = arith.addf %1241, %1240 : vector<8x32xf32>
    %cst_423 = arith.constant 1.000000e+00 : f32
    %1243 = vector.broadcast %cst_423 : f32 to vector<8x32xf32>
    %1244 = arith.divf %1243, %1242 : vector<8x32xf32>
    %1245 = arith.mulf %1234, %1212 : vector<8x32xf32>
    %1246 = arith.mulf %1226, %1236 : vector<8x32xf32>
    %1247 = arith.addf %1245, %1246 : vector<8x32xf32>
    %1248 = math.tanh %1247 : vector<8x32xf32>
    %1249 = arith.mulf %1244, %1248 : vector<8x32xf32>
    %c32_424 = arith.constant 32 : index
    %c0_425 = arith.constant 0 : index
    %1250 = vector.load %arg25[%c32_424, %c0_425] : memref<40x32xf32, #tpu.memory_space<vmem>>, vector<8x32xf32>
    tpu.vector_store %arg25[%c32_424, %c0_425], %1249 {strides = array<i32>} : memref<40x32xf32, #tpu.memory_space<vmem>>, vector<8x32xf32>,
    %c0_426 = arith.constant 0 : index
    %c0_427 = arith.constant 0 : index
    %1251 = vector.load %arg25[%c0_426, %c0_427] : memref<40x32xf32, #tpu.memory_space<vmem>>, vector<40x32xf32>
    %c0_428 = arith.constant 0 : index
    %c0_429 = arith.constant 0 : index
    %1252 = vector.load %arg21[%c0_428, %c0_429] : memref<32x64xf32, #tpu.memory_space<vmem>>, vector<32x64xf32>
    %cst_430 = arith.constant dense<0.000000e+00> : vector<40x64xf32>
    %1253 = tpu.matmul %1251, %1252, %cst_430 {dimension_numbers = #tpu.dot_dimension_numbers<[1], [0], [0], [1], [0, 0, 1, 1], [], []>} : vector<40x32xf32>, vector<32x64xf32>, vector<40x64xf32> -> vector<40x64xf32>
    %c0_431 = arith.constant 0 : index
    %c0_432 = arith.constant 0 : index
    %1254 = vector.load %arg22[%c0_431, %c0_432] : memref<1x64xf32, #tpu.memory_space<vmem>>, vector<1x64xf32>
    %1255 = vector.broadcast %1254 : vector<1x64xf32> to vector<40x64xf32>
    %1256 = arith.addf %1253, %1255 : vector<40x64xf32>
    %c0_433 = arith.constant 0 : index
    %c0_434 = arith.constant 0 : index
    %1257 = vector.load %arg4[%c0_433, %c0_434] : memref<40x1xi32, #tpu.memory_space<vmem>>, vector<40x1xi32>
    %cst_435 = arith.constant dense<0xFF800000> : vector<40xf32>
    %1258 = vector.multi_reduction <maximumf>, %1256, %cst_435 [1] : vector<40x64xf32> to vector<40xf32>
    %1259 = vector.shape_cast %1258 : vector<40xf32> to vector<40x1xf32>
    %1260 = vector.broadcast %1259 : vector<40x1xf32> to vector<40x64xf32>
    %1261 = arith.subf %1256, %1260 : vector<40x64xf32>
    %1262 = math.exp %1261 : vector<40x64xf32>
    %cst_436 = arith.constant dense<0.000000e+00> : vector<40xf32>
    %1263 = vector.multi_reduction <add>, %1262, %cst_436 [1] : vector<40x64xf32> to vector<40xf32>
    %1264 = vector.shape_cast %1263 : vector<40xf32> to vector<40x1xf32>
    %1265 = math.log %1264 : vector<40x1xf32>
    %1266 = arith.addf %1259, %1265 : vector<40x1xf32>
    %1267 = tpu.iota {dimensions = array<i32: 1>} : vector<40x64xi32>
    %1268 = vector.broadcast %1257 : vector<40x1xi32> to vector<40x64xi32>
    %1269 = arith.cmpi eq, %1267, %1268 : vector<40x64xi32>
    %cst_437 = arith.constant 0.000000e+00 : f32
    %1270 = vector.broadcast %cst_437 : f32 to vector<40x64xf32>
    %1271 = arith.select %1269, %1256, %1270 : vector<40x64xi1>, vector<40x64xf32>
    %cst_438 = arith.constant dense<0.000000e+00> : vector<40xf32>
    %1272 = vector.multi_reduction <add>, %1271, %cst_438 [1] : vector<40x64xf32> to vector<40xf32>
    %1273 = vector.shape_cast %1272 : vector<40xf32> to vector<40x1xf32>
    %1274 = arith.subf %1266, %1273 : vector<40x1xf32>
    %c0_i32 = arith.constant 0 : i32
    %1275 = vector.broadcast %c0_i32 : i32 to vector<40x1xi32>
    %1276 = arith.cmpi ne, %1257, %1275 : vector<40x1xi32>
    %1277 = arith.extui %1276 : vector<40x1xi1> to vector<40x1xi32>
    %1278 = arith.sitofp %1277 : vector<40x1xi32> to vector<40x1xf32>
    %1279 = arith.mulf %1274, %1278 : vector<40x1xf32>
    %1280 = vector.shape_cast %1279 : vector<40x1xf32> to vector<1x40x1xf32>
    %cst_439 = arith.constant dense<0.000000e+00> : vector<1xf32>
    %1281 = vector.multi_reduction <add>, %1280, %cst_439 [1, 2] : vector<1x40x1xf32> to vector<1xf32>
    %1282 = vector.shape_cast %1281 : vector<1xf32> to vector<1x1x1xf32>
    %1283 = vector.extract %1282[0, 0, 0] : f32 from vector<1x1x1xf32>
    %1284 = vector.broadcast %1283 : f32 to vector<1x1xf32>
    %1285 = vector.shape_cast %1278 : vector<40x1xf32> to vector<1x40x1xf32>
    %cst_440 = arith.constant dense<0.000000e+00> : vector<1xf32>
    %1286 = vector.multi_reduction <add>, %1285, %cst_440 [1, 2] : vector<1x40x1xf32> to vector<1xf32>
    %1287 = vector.shape_cast %1286 : vector<1xf32> to vector<1x1x1xf32>
    %1288 = vector.extract %1287[0, 0, 0] : f32 from vector<1x1x1xf32>
    %1289 = vector.broadcast %1288 : f32 to vector<1x1xf32>
    %1290 = arith.divf %1284, %1289 : vector<1x1xf32>
    %c0_441 = arith.constant 0 : index
    %c0_442 = arith.constant 0 : index
    %1291 = vector.load %arg23[%c0_441, %c0_442] : memref<1x1xf32, #tpu.memory_space<vmem>>, vector<1x1xf32>
    tpu.vector_store %arg23[%c0_441, %c0_442], %1290 {strides = array<i32>} : memref<1x1xf32, #tpu.memory_space<vmem>>, vector<1x1xf32>,
    return
  }
  func.func @transform_0(%arg0: i32) -> (i32, i32) {
    %c0_i32 = arith.constant 0 : i32
    %c0_i32_0 = arith.constant 0 : i32
    %c0_i32_1 = arith.constant 0 : i32
    return %c0_i32, %c0_i32_0 : i32, i32
  }
  func.func @transform_1(%arg0: i32) -> (i32, i32) {
    %c0_i32 = arith.constant 0 : i32
    %c0_i32_0 = arith.constant 0 : i32
    %c0_i32_1 = arith.constant 0 : i32
    return %c0_i32, %c0_i32_0 : i32, i32
  }
  func.func @transform_2(%arg0: i32) -> (i32, i32) {
    %c0_i32 = arith.constant 0 : i32
    %c0_i32_0 = arith.constant 0 : i32
    %c0_i32_1 = arith.constant 0 : i32
    return %c0_i32, %c0_i32_0 : i32, i32
  }
  func.func @transform_3(%arg0: i32) -> (i32, i32) {
    %c0_i32 = arith.constant 0 : i32
    %c0_i32_0 = arith.constant 0 : i32
    %c0_i32_1 = arith.constant 0 : i32
    return %c0_i32, %c0_i32_0 : i32, i32
  }
  func.func @transform_4(%arg0: i32) -> (i32, i32, i32) {
    %c0_i32 = arith.constant 0 : i32
    %c0_i32_0 = arith.constant 0 : i32
    %c0_i32_1 = arith.constant 0 : i32
    %c0_i32_2 = arith.constant 0 : i32
    return %c0_i32, %c0_i32_0, %c0_i32_1 : i32, i32, i32
  }
  func.func @transform_5(%arg0: i32) -> (i32, i32, i32) {
    %c0_i32 = arith.constant 0 : i32
    %c0_i32_0 = arith.constant 0 : i32
    %c0_i32_1 = arith.constant 0 : i32
    %c0_i32_2 = arith.constant 0 : i32
    return %c0_i32, %c0_i32_0, %c0_i32_1 : i32, i32, i32
  }
  func.func @transform_6(%arg0: i32) -> (i32, i32, i32) {
    %c0_i32 = arith.constant 0 : i32
    %c0_i32_0 = arith.constant 0 : i32
    %c0_i32_1 = arith.constant 0 : i32
    %c0_i32_2 = arith.constant 0 : i32
    return %c0_i32, %c0_i32_0, %c0_i32_1 : i32, i32, i32
  }
  func.func @transform_7(%arg0: i32) -> (i32, i32, i32) {
    %c0_i32 = arith.constant 0 : i32
    %c0_i32_0 = arith.constant 0 : i32
    %c0_i32_1 = arith.constant 0 : i32
    %c0_i32_2 = arith.constant 0 : i32
    return %c0_i32, %c0_i32_0, %c0_i32_1 : i32, i32, i32
  }
  func.func @transform_8(%arg0: i32) -> (i32, i32, i32) {
    %c0_i32 = arith.constant 0 : i32
    %c0_i32_0 = arith.constant 0 : i32
    %c0_i32_1 = arith.constant 0 : i32
    %c0_i32_2 = arith.constant 0 : i32
    return %c0_i32, %c0_i32_0, %c0_i32_1 : i32, i32, i32
  }
  func.func @transform_9(%arg0: i32) -> (i32, i32, i32) {
    %c0_i32 = arith.constant 0 : i32
    %c0_i32_0 = arith.constant 0 : i32
    %c0_i32_1 = arith.constant 0 : i32
    %c0_i32_2 = arith.constant 0 : i32
    return %c0_i32, %c0_i32_0, %c0_i32_1 : i32, i32, i32
  }
  func.func @transform_10(%arg0: i32) -> (i32, i32) {
    %c0_i32 = arith.constant 0 : i32
    %c0_i32_0 = arith.constant 0 : i32
    %c0_i32_1 = arith.constant 0 : i32
    return %c0_i32, %c0_i32_0 : i32, i32
  }
  func.func @transform_11(%arg0: i32) -> (i32, i32) {
    %c0_i32 = arith.constant 0 : i32
    %c0_i32_0 = arith.constant 0 : i32
    %c0_i32_1 = arith.constant 0 : i32
    return %c0_i32, %c0_i32_0 : i32, i32
  }
  func.func @transform_12(%arg0: i32) -> (i32, i32) {
    %c0_i32 = arith.constant 0 : i32
    %c0_i32_0 = arith.constant 0 : i32
    %c0_i32_1 = arith.constant 0 : i32
    return %c0_i32, %c0_i32_0 : i32, i32
  }
  func.func @transform_13(%arg0: i32) -> (i32, i32) {
    %c0_i32 = arith.constant 0 : i32
    %c0_i32_0 = arith.constant 0 : i32
    %c0_i32_1 = arith.constant 0 : i32
    return %c0_i32, %c0_i32_0 : i32, i32
  }
  func.func @transform_14(%arg0: i32) -> (i32, i32) {
    %c0_i32 = arith.constant 0 : i32
    %c0_i32_0 = arith.constant 0 : i32
    %c0_i32_1 = arith.constant 0 : i32
    return %c0_i32, %c0_i32_0 : i32, i32
  }
  func.func @transform_15(%arg0: i32) -> (i32, i32) {
    %c0_i32 = arith.constant 0 : i32
    %c0_i32_0 = arith.constant 0 : i32
    %c0_i32_1 = arith.constant 0 : i32
    return %c0_i32, %c0_i32_0 : i32, i32
  }
  func.func @transform_16(%arg0: i32) -> (i32, i32) {
    %c0_i32 = arith.constant 0 : i32
    %c0_i32_0 = arith.constant 0 : i32
    %c0_i32_1 = arith.constant 0 : i32
    return %c0_i32, %c0_i32_0 : i32, i32
  }
  func.func @transform_17(%arg0: i32) -> (i32, i32) {
    %c0_i32 = arith.constant 0 : i32
    %c0_i32_0 = arith.constant 0 : i32
    %c0_i32_1 = arith.constant 0 : i32
    return %c0_i32, %c0_i32_0 : i32, i32
  }
  func.func @transform_18(%arg0: i32) -> (i32, i32) {
    %c0_i32 = arith.constant 0 : i32
    %c0_i32_0 = arith.constant 0 : i32
    %c0_i32_1 = arith.constant 0 : i32
    return %c0_i32, %c0_i32_0 : i32, i32
  }
  func.func @transform_19(%arg0: i32) -> (i32, i32) {
    %c0_i32 = arith.constant 0 : i32
    %c0_i32_0 = arith.constant 0 : i32
    %c0_i32_1 = arith.constant 0 : i32
    return %c0_i32, %c0_i32_0 : i32, i32
  }
  func.func @transform_20(%arg0: i32) -> (i32, i32) {
    %c0_i32 = arith.constant 0 : i32
    %c0_i32_0 = arith.constant 0 : i32
    %c0_i32_1 = arith.constant 0 : i32
    return %c0_i32, %c0_i32_0 : i32, i32
  }
  func.func @transform_21(%arg0: i32) -> (i32, i32) {
    %c0_i32 = arith.constant 0 : i32
    %c0_i32_0 = arith.constant 0 : i32
    %c0_i32_1 = arith.constant 0 : i32
    return %c0_i32, %c0_i32_0 : i32, i32
  }
  func.func @transform_22(%arg0: i32) -> (i32, i32) {
    %c0_i32 = arith.constant 0 : i32
    %c0_i32_0 = arith.constant 0 : i32
    %c0_i32_1 = arith.constant 0 : i32
    return %c0_i32, %c0_i32_0 : i32, i32
  }
}

</mosaic_0001>

<bundles_post_ra>
// kernel: _loss_fn.1
= control target key start
LH: loop header
LB: loop body
LE: loop exit
PB: predicated region body
PF: predicated region fallthrough
CT: control target
= control target key end

     0   :  { %s8305_s0 = inlined_call_operand.vmem [shape: f32[48,32], index: 0, kind: input, shape index: {}]   ;;  %s8306_s1 = inlined_call_operand.vmem [shape: f32[48,1], index: 1, kind: input, shape index: {}]   ;;  %s8307_s2 = inlined_call_operand.vmem [shape: f32[40,32], index: 2, kind: input, shape index: {}]   ;;  %s8308_s3 = inlined_call_operand.vmem [shape: s32[40,1], index: 3, kind: input, shape index: {}]   ;;  %s8309_s4 = inlined_call_operand.vmem [shape: f32[2,32,128], index: 4, kind: input, shape index: {}]   ;;  %s8310_s5 = inlined_call_operand.vmem [shape: f32[2,32,128], index: 5, kind: input, shape index: {}]   ;;  %s8311_s6 = inlined_call_operand.vmem [shape: f32[2,1,128], index: 6, kind: input, shape index: {}]   ;;  %s8312_s7 = inlined_call_operand.vmem [shape: f32[2,32,128], index: 7, kind: input, shape index: {}]   ;;  %s8313_s8 = inlined_call_operand.vmem [shape: f32[2,32,128], index: 8, kind: input, shape index: {}]   ;;  %s8314_s9 = inlined_call_operand.vmem [shape: f32[2,1,128], index: 9, kind: input, shape index: {}]   ;;  %s8315_s10 = inlined_call_operand.vmem [shape: f32[32,32], index: 10, kind: input, shape index: {}]   ;;  %s8316_s11 = inlined_call_operand.vmem [shape: f32[1,32], index: 11, kind: input, shape index: {}]   ;;  %s8317_s12 = inlined_call_operand.vmem [shape: f32[32,64], index: 12, kind: input, shape index: {}]   ;;  %s8318_s13 = inlined_call_operand.vmem [shape: f32[1,64], index: 13, kind: input, shape index: {}]   ;;  %s8319_s14 = inlined_call_operand.vmem [shape: f32[1,32], index: 14, kind: input, shape index: {}]   ;;  %s8320_s15 = inlined_call_operand.<no memory space> [shape: f32[1,1], index: 15, kind: input, shape index: {}]   ;;  %s8321_s16 = inlined_call_operand.vmem [shape: f32[32,128], index: 16, kind: input, shape index: {}]   ;;  %s8322_s17 = inlined_call_operand.vmem [shape: f32[32,128], index: 17, kind: input, shape index: {}]   ;;  %s8323_s18 = inlined_call_operand.vmem [shape: f32[32,128], index: 18, kind: input, shape index: {}]   ;;  %s8324_s19 = inlined_call_operand.vmem [shape: f32[1,128], index: 19, kind: input, shape index: {}]   ;;  %s8325_s20 = inlined_call_operand.vmem [shape: f32[32,64], index: 20, kind: input, shape index: {}]   ;;  %s8326_s21 = inlined_call_operand.vmem [shape: f32[1,64], index: 21, kind: input, shape index: {}]   ;;  %s8327_s22 = inlined_call_operand.hbm [shape: f32[1,1], index: 22, kind: output, shape index: {}]  }
   0x1   :  { %8335 = sst [smem:[#allocation8_spill]] %s8305_s0  ;;  %v27_v0 = vstv %s8320_s15 }
   0x2   :  { %8336 = sst [smem:[#allocation9_spill]] %s8306_s1  ;;  %28 = vst [vmem:[#allocation4] sm:$0x1] %v27_v0 }
   0x3   :  { %8337 = sst [smem:[#allocation10_spill]] %s8307_s2 }
   0x4   :  { %8338 = sst [smem:[#allocation11_spill]] %s8308_s3 }
   0x5   :  { %8339 = sst [smem:[#allocation12_spill]] %s8309_s4 }
   0x6   :  { %8340 = sst [smem:[#allocation13_spill]] %s8310_s5 }
   0x7   :  { %8341 = sst [smem:[#allocation14_spill]] %s8311_s6 }
   0x8   :  { %s8342_s4 = sld [smem:[#allocation12_spill]]  ;;  %vm97_vm0 = vcmask 261120   ;;  %v6299_v4 = vmov 0.0  }
   0x9   :  { %s8343_s24 = sld [smem:[#allocation8_spill]]  ;;  %5432 = vmatprep.subr.mxu1 %v6299_v4 }
   0xa   :  { %s8344_s2 = sld [smem:[#allocation13_spill]] }
   0xe   :  { %v89_v1 = vld [vmem:[%s8342_s4 + $0x18] sm:$0xff]  ;;  %v88_v2 = vld [vmem:[%s8342_s4 + $0x10] sm:$0xff]  ;;  %v87_v5 = vld [vmem:[%s8342_s4 + $0x8] sm:$0xff] }
   0xf   :  { %5404 = vmatprep.subr.mxu0 %v89_v1  ;;  %v6433_v3 = vld [vmem:[%s8343_s24] sm:$0xff] }
  0x10   :  { %5405 = vmatpush3.msra.mxu0 %v89_v1  ;;  %5412 = vmatprep.mubr.msk.f32.mxu0 %vm97_vm0, %v6433_v3  ;;  %v6444_v6 = vld [vmem:[%s8344_s2 + $0x18] sm:$0xff]  ;;  %v86_v7 = vld [vmem:[%s8342_s4] sm:$0xff]  ;;  %v6453_v8 = vld [vmem:[%s8344_s2 + $0x10] sm:$0xff] }
  0x11   :  { %5406 = vmatprep.subr.mxu0 %v88_v2  ;;  %5433 = vmatpush3.msra.mxu1 %v6444_v6 }
  0x12   :  { %5407 = vmatpush3.msra.mxu0 %v88_v2  ;;  %5434 = vmatprep.subr.mxu1 %v6299_v4 }
  0x13   :  { %29 = vsyncpa [#allocation6], 0  ;;  %5408 = vmatprep.subr.mxu0 %v87_v5  ;;  %5435 = vmatpush3.msra.mxu1 %v6453_v8  ;;  %v6460_v9 = vld [vmem:[%s8343_s24 + $0x8] sm:$0xff]  ;;  %v6471_v11 = vld [vmem:[%s8343_s24 + $0x10] sm:$0xff]  ;;  %vm6300_vm1 = vmmov 0   ;;  %s8345_s23 = sld [smem:[#allocation9_spill]] }
  0x14   :  { %5409 = vmatpush3.msra.mxu0 %v87_v5  ;;  %v6465_v10 = vld [vmem:[%s8344_s2 + $0x8] sm:$0xff]  ;;  %5436 = vmatprep.subr.mxu1 %v6299_v4  ;;  %v6484_v12 = vld [vmem:[%s8343_s24 + $0x18] sm:$0xff]  ;;  %v6489_v13 = vld [vmem:[%s8344_s2] sm:$0xff]  ;;  %v6301_v17 = vmov 0   ;;  %s8346_s15 = sld [smem:[#allocation14_spill]]  ;;  %s6302_s6 = smov 64  }
  0x15   :  { %5410 = vmatprep.subr.mxu0 %v86_v7  ;;  %5437 = vmatpush3.msra.mxu1 %v6465_v10  ;;  %v6495_v14 = vld [vmem:[%s8343_s24 + $0x20] sm:$0xff]  ;;  %v6510_v15 = vld [vmem:[%s8343_s24 + $0x28] sm:$0xff]  ;;  %s6303_s25 = smov 32   ;;  %s8347_s1 = sld [smem:[#allocation10_spill]]  ;;  %vm3560_vm4 = vcmask 7168   ;;  %vm3976_vm9 = vcmask 523520  }
  0x16   :  { %5411 = vmatpush3.msra.mxu0 %v86_v7  ;;  %5438 = vmatprep.subr.mxu1 %v6299_v4  ;;  %vm4895_vm10 = vcmask 523264   ;;  %s8348_s27 = sld [smem:[#allocation11_spill]] }
  0x17   :  { %5413 = vmatmul.mubr.msk.f32.vlgmr.msra.gmra.mxu0 %vm97_vm0, %v6460_v9  ;;  %5421 = vmatprep.subr.mxu0 %v6299_v4 }
  0x18   :  { %5422 = vmatpush3.msra.mxu0 %v6444_v6  ;;  %5415 = vmatprep.mubr.msk.f32.mxu0 %vm97_vm0, %v6471_v11 }
  0x19   :  { %5423 = vmatprep.subr.mxu0 %v6299_v4  ;;  %5439 = vmatpush3.msra.mxu1 %v6489_v13  ;;  %v74_v16 = vld [vmem:[%s8345_s23] sm:$0xff]  ;;  %v75_v59 = vld [vmem:[%s8345_s23 + $0x8] sm:$0xff] }
  0x1a   :  { %5424 = vmatpush3.msra.mxu0 %v6453_v8  ;;  %5440 = vmatprep.mubr.msk.f32.mxu1 %vm6300_vm1, %v6299_v4  ;;  %v319_v18 = vsub.f32 1.0, %v74_v16  ;;  %v5079_v19 = vld [vmem:[%s8346_s15] ss:$0 sm:$0xff]  ;;  %v440_v5 = vsub.f32 1.0, %v75_v59 }
  0x1b   :  { %5416 = vmatmul.mubr.msk.f32.gmra.mxu0 %vm97_vm0, %v6484_v12  ;;  %5425 = vmatprep.subr.mxu0 %v6299_v4 }
  0x1c   :  { %5418 = vmatprep.mubr.msk.f32.mxu0 %vm97_vm0, %v6495_v14  ;;  %5426 = vmatpush3.msra.mxu0 %v6465_v10 }
  0x1d   :  { %5427 = vmatprep.subr.mxu0 %v6299_v4  ;;  %5454 = vmatprep.subr.mxu1 %v6299_v4 }
  0x1e   :  { %5428 = vmatpush3.msra.mxu0 %v6489_v13  ;;  %5901 = vset.pattern.permute.xlu1 %v6301_v17 }
  0x1f   :  { %5419 = vmatmul.mubr.msk.f32.gmra.mxu0 %vm97_vm0, %v6510_v15  ;;  %5443 = vmatprep.subr.mxu0 %v6299_v4 }
  0x20   :  { %5429 = vmatprep.mubr.msk.f32.mxu0 %vm6300_vm1, %v6299_v4  ;;  %5902 = vset.pattern.permute.xlu0 %v6301_v17 }
  0x21   :  { %315 = vperm.xlu1 %5901, %v74_v16  }
  0x23   :  { %5430 = vmatmul.mubr.f32.vlgmr.msra.gmra.mxu0 %v6299_v4 }
  0x24   :  { %5444 = vmatpush3.msra.mxu0 %v6444_v6  ;;  %5451 = vmatprep.mubr.msk.f32.mxu0 %vm6300_vm1, %v6299_v4 }
  0x25   :  { %5445 = vmatprep.subr.mxu0 %v6299_v4  ;;  %322 = vperm.xlu1 %5901, %v319_v18  }
  0x26   :  { %5446 = vmatpush3.msra.mxu0 %v6453_v8 }
  0x27   :  { %5447 = vmatprep.subr.mxu0 %v6299_v4 }
  0x28   :  { %5448 = vmatpush3.msra.mxu0 %v6465_v10 }
  0x29   :  { %5449 = vmatprep.subr.mxu0 %v6299_v4 }
  0x2a   :  { %5450 = vmatpush3.msra.mxu0 %v6489_v13 }
  0x2b   :  { %5465 = vmatprep.subr.mxu0 %v6299_v4 }
  0x9c   :  { %v6548_v47 = vpop.permute.xlu1 %315 }
  0xa0   :  { %v323_v48 = vpop.permute.xlu1 %322 }
  0xa1   :  { %v6550_v51 = vmul.f32 0.0, %v323_v48 }
  0xd7   :  { %v5414_v20 = vpop.f32.mrf.mxu0 }
  0xd8   :  { %v188_v21 = vadd.f32 %v5414_v20, %v5079_v19 }
  0xd9   :  { %v182_v22 = vpop.f32.mrf.mxu0 }
  0xda   :  { %v183_v30 = vadd.f32 %v5079_v19, %v182_v22 }
  0xdb   :  { %v5417_v23 = vpop.f32.mrf.mxu0 }
  0xdc   :  { %v6537_v24 = vadd.f32 %v5417_v23, %v5079_v19 }
  0xdd   :  { %v192_v25 = vpop.f32.mrf.mxu0 }
  0xde   :  { %v6539_v26 = vadd.f32 %v5079_v19, %v192_v25 }
  0xdf   :  { %v5420_v27 = vpop.f32.mrf.mxu0 }
  0xe0   :  { %v6541_v28 = vadd.f32 %v5420_v27, %v5079_v19 }
  0xe1   :  { %v202_v29 = vpop.f32.mrf.mxu0 }
  0xe2   :  { %v6543_v31 = vadd.f32 %v5079_v19, %v202_v29 }
  0xe3   :  { %v284_v32 = vpop.f32.mrf.mxu0 }
  0xe4   :  { %v288_v33 = vadd.f32 %v284_v32, %v183_v30 }
  0xe5   :  { %v5431_v34 = vpop.f32.mrf.mxu0 }
  0xe6   :  { %5903 = vtanh.f32 %v288_v33  ;;  %v289_v36 = vsub.f32 0.0, %v288_v33 }
  0xe8   :  { %v290_v37 = vmul.f32 1.442695, %v289_v36 }
  0xea   :  { %5905 = vpow2.f32 %v290_v37  ;;  %v76_v37 = vld [vmem:[%s8345_s23 + $0x10] sm:$0xff] }
  0xf3   :  { %v5904_v35 = vpop.eup %5903 }
  0xf4   :  { %298 = vrot.lane.b32.xlu0 %v5904_v35, %s6302_s6 }
  0xf7   :  { %v5906_v38 = vpop.eup %5905 }
  0xf8   :  { %v292_v39 = vadd.f32 1.0, %v5906_v38 }
  0xfa   :  { %5907 = vrcp.f32 %v292_v39 }
 0x107   :  { %v5908_v40 = vpop.eup %5907 }
 0x108   :  { %v296_v43 = vmul.f32 0.0, %v5908_v40 }
 0x166   :  { %v299_v41 = vpop.permute.xlu0 %298 }
 0x167   :  { %v301_v42 = vmul.f32 %v5908_v40, %v299_v41 }
 0x169   :  { %303 = vrot.lane.b32.xlu0 %v301_v42, %s6303_s25 }
 0x1db   :  { %v304_v44 = vpop.permute.xlu0 %303 }
 0x1dc   :  { %v306_v45 = vadd.f32 %v304_v44, %v296_v43 }
 0x1de   :  { %5909 = vtanh.f32 %v306_v45  ;;  %v327_v7 = vmul.f32 %v6548_v47, %v306_v45 }
 0x1e0   :  { %v328_v16 = vadd.f32 %v327_v7, %v6550_v51 }
 0x1eb   :  { %v5910_v46 = vpop.eup %5909 }
 0x1ec   :  { %309 = vrot.lane.b32.xlu0 %v5910_v46, %s6302_s6 }
 0x25e   :  { %v310_v49 = vpop.permute.xlu0 %309 }
 0x25f   :  { %v312_v50 = vmul.f32 %v5908_v40, %v310_v49 }
 0x261   :  { %v6553_v52 = vmul.f32 %v6548_v47, %v312_v50 }
 0x263   :  { %v326_v53 = vadd.f32 %v6550_v51, %v6553_v52 }
 0x265   :  { %335 = vrot.lane.b32.xlu1 %v326_v53, %s6303_s25 }
 0x2d7   :  { %v336_v54 = vpop.permute.xlu1 %335 }
 0x2d8   :  { %5441 = vmatmul.mubr.msk.f32.vlgmr.msra.gmra.mxu1 %vm97_vm0, %v336_v54 }
 0x2d9   :  { %5455 = vmatpush3.msra.mxu1 %v6444_v6  ;;  %5462 = vmatprep.mubr.msk.f32.mxu1 %vm6300_vm1, %v6299_v4 }
 0x2da   :  { %5456 = vmatprep.subr.mxu1 %v6299_v4 }
 0x2db   :  { %5457 = vmatpush3.msra.mxu1 %v6453_v8 }
 0x2dc   :  { %5458 = vmatprep.subr.mxu1 %v6299_v4 }
 0x2dd   :  { %5459 = vmatpush3.msra.mxu1 %v6465_v10 }
 0x2de   :  { %5460 = vmatprep.subr.mxu1 %v6299_v4 }
 0x2df   :  { %5461 = vmatpush3.msra.mxu1 %v6489_v13 }
 0x2e0   :  { %5476 = vmatprep.subr.mxu1 %v6299_v4 }
 0x398   :  { %v405_v55 = vpop.f32.mrf.mxu1 }
 0x399   :  { %v409_v56 = vadd.f32 %v405_v55, %v188_v21 }
 0x39a   :  { %v5442_v57 = vpop.f32.mrf.mxu1 }
 0x39b   :  { %5911 = vtanh.f32 %v409_v56  ;;  %v410_v60 = vsub.f32 0.0, %v409_v56 }
 0x39d   :  { %v411_v61 = vmul.f32 1.442695, %v410_v60 }
 0x39f   :  { %5913 = vpow2.f32 %v411_v61 }
 0x3a8   :  { %v5912_v58 = vpop.eup %5911 }
 0x3a9   :  { %419 = vrot.lane.b32.xlu0 %v5912_v58, %s6302_s6 }
 0x3ac   :  { %v5914_v62 = vpop.eup %5913 }
 0x3ad   :  { %436 = vperm.xlu0 %5902, %v75_v59   ;;  %v413_v63 = vadd.f32 1.0, %v5914_v62 }
 0x3af   :  { %5915 = vrcp.f32 %v413_v63 }
 0x3bc   :  { %v5916_v0 = vpop.eup %5915 }
 0x3bd   :  { %v417_v17 = vmul.f32 %v5916_v0, %v328_v16 }
 0x41b   :  { %v420_v1 = vpop.permute.xlu0 %419 }
 0x41c   :  { %v422_v2 = vmul.f32 %v5916_v0, %v420_v1 }
 0x41e   :  { %424 = vrot.lane.b32.xlu1 %v422_v2, %s6303_s25 }
 0x422   :  { %443 = vperm.xlu1 %5901, %v440_v5  }
 0x428   :  { %v6579_v25 = vpop.permute.xlu0 %436 }
 0x490   :  { %v425_v18 = vpop.permute.xlu1 %424 }
 0x491   :  { %v427_v19 = vadd.f32 %v425_v18, %v417_v17 }
 0x493   :  { %5917 = vtanh.f32 %v427_v19  ;;  %v448_v46 = vmul.f32 %v6579_v25, %v427_v19 }
 0x49d   :  { %v6577_v21 = vpop.permute.xlu1 %443 }
 0x49e   :  { %v446_v29 = vmul.f32 %v6577_v21, %v326_v53  ;;  %v449_v45 = vmul.f32 %v6577_v21, %v328_v16 }
 0x4a0   :  { %v5918_v20 = vpop.eup %5917  ;;  %v450_v48 = vadd.f32 %v449_v45, %v448_v46 }
 0x4a1   :  { %430 = vrot.lane.b32.xlu1 %v5918_v20, %s6302_s6 }
 0x513   :  { %v431_v22 = vpop.permute.xlu1 %430 }
 0x514   :  { %v433_v23 = vmul.f32 %v5916_v0, %v431_v22 }
 0x516   :  { %v6582_v27 = vmul.f32 %v6579_v25, %v433_v23 }
 0x518   :  { %v447_v30 = vadd.f32 %v446_v29, %v6582_v27 }
 0x51a   :  { %457 = vrot.lane.b32.xlu0 %v447_v30, %s6303_s25 }
 0x58c   :  { %v458_v32 = vpop.permute.xlu0 %457 }
 0x58d   :  { %5452 = vmatmul.mubr.msk.f32.vlgmr.msra.gmra.mxu0 %vm97_vm0, %v458_v32 }
 0x58e   :  { %5466 = vmatpush3.msra.mxu0 %v6444_v6  ;;  %5473 = vmatprep.mubr.msk.f32.mxu0 %vm6300_vm1, %v6299_v4 }
 0x58f   :  { %5467 = vmatprep.subr.mxu0 %v6299_v4 }
 0x590   :  { %5468 = vmatpush3.msra.mxu0 %v6453_v8 }
 0x591   :  { %5469 = vmatprep.subr.mxu0 %v6299_v4 }
 0x592   :  { %5470 = vmatpush3.msra.mxu0 %v6465_v10 }
 0x593   :  { %5471 = vmatprep.subr.mxu0 %v6299_v4 }
 0x594   :  { %5472 = vmatpush3.msra.mxu0 %v6489_v13 }
 0x64d   :  { %v527_v33 = vpop.f32.mrf.mxu0 }
 0x64e   :  { %v531_v34 = vadd.f32 %v527_v33, %v6539_v26  ;;  %v562_v26 = vsub.f32 1.0, %v76_v37 }
 0x64f   :  { %v5453_v35 = vpop.f32.mrf.mxu0 }
 0x650   :  { %5919 = vtanh.f32 %v531_v34  ;;  %v532_v38 = vsub.f32 0.0, %v531_v34 }
 0x652   :  { %v533_v39 = vmul.f32 1.442695, %v532_v38 }
 0x654   :  { %5921 = vpow2.f32 %v533_v39 }
 0x65d   :  { %v5920_v36 = vpop.eup %5919 }
 0x65e   :  { %541 = vrot.lane.b32.xlu1 %v5920_v36, %s6302_s6 }
 0x661   :  { %v5922_v40 = vpop.eup %5921 }
 0x662   :  { %558 = vperm.xlu1 %5901, %v76_v37   ;;  %v535_v41 = vadd.f32 1.0, %v5922_v40 }
 0x664   :  { %5923 = vrcp.f32 %v535_v41 }
 0x671   :  { %v5924_v42 = vpop.eup %5923 }
 0x672   :  { %v539_v49 = vmul.f32 %v5924_v42, %v450_v48 }
 0x6d0   :  { %v542_v43 = vpop.permute.xlu1 %541 }
 0x6d1   :  { %v544_v44 = vmul.f32 %v5924_v42, %v542_v43 }
 0x6d3   :  { %546 = vrot.lane.b32.xlu0 %v544_v44, %s6303_s25  ;;  %v78_v44 = vld [vmem:[%s8345_s23 + $0x20] sm:$0xff] }
 0x6d7   :  { %565 = vperm.xlu0 %5902, %v562_v26  }
 0x6dd   :  { %v6606_v55 = vpop.permute.xlu1 %558 }
 0x745   :  { %v547_v50 = vpop.permute.xlu0 %546 }
 0x746   :  { %v549_v53 = vadd.f32 %v547_v50, %v539_v49 }
 0x748   :  { %5925 = vtanh.f32 %v549_v53  ;;  %v570_v19 = vmul.f32 %v6606_v55, %v549_v53 }
 0x752   :  { %v6608_v56 = vpop.permute.xlu0 %565 }
 0x753   :  { %v568_v60 = vmul.f32 %v6608_v56, %v447_v30  ;;  %v571_v18 = vmul.f32 %v6608_v56, %v450_v48 }
 0x755   :  { %v5926_v54 = vpop.eup %5925  ;;  %v572_v20 = vadd.f32 %v571_v18, %v570_v19 }
 0x756   :  { %552 = vrot.lane.b32.xlu1 %v5926_v54, %s6302_s6 }
 0x7c8   :  { %v553_v57 = vpop.permute.xlu1 %552 }
 0x7c9   :  { %v555_v58 = vmul.f32 %v5924_v42, %v553_v57 }
 0x7cb   :  { %v6611_v59 = vmul.f32 %v6606_v55, %v555_v58 }
 0x7cd   :  { %v569_v61 = vadd.f32 %v568_v60, %v6611_v59 }
 0x7cf   :  { %579 = vrot.lane.b32.xlu0 %v569_v61, %s6303_s25 }
 0x841   :  { %v580_v62 = vpop.permute.xlu0 %579 }
 0x842   :  { %5463 = vmatmul.mubr.msk.f32.vlgmr.msra.gmra.mxu1 %vm97_vm0, %v580_v62 }
 0x843   :  { %5477 = vmatpush3.msra.mxu1 %v6444_v6  ;;  %5484 = vmatprep.mubr.msk.f32.mxu1 %vm6300_vm1, %v6299_v4 }
 0x844   :  { %5478 = vmatprep.subr.mxu1 %v6299_v4 }
 0x845   :  { %5479 = vmatpush3.msra.mxu1 %v6453_v8  ;;  %v77_v8 = vld [vmem:[%s8345_s23 + $0x18] sm:$0xff] }
 0x846   :  { %5480 = vmatprep.subr.mxu1 %v6299_v4 }
 0x847   :  { %5481 = vmatpush3.msra.mxu1 %v6465_v10 }
 0x848   :  { %5482 = vmatprep.subr.mxu1 %v6299_v4 }
 0x849   :  { %5483 = vmatpush3.msra.mxu1 %v6489_v13 }
 0x84a   :  { %5504 = vmatprep.subr.mxu1 %v6299_v4 }
 0x902   :  { %v649_v63 = vpop.f32.mrf.mxu1 }
 0x903   :  { %v653_v6 = vadd.f32 %v649_v63, %v6537_v24  ;;  %v684_v24 = vsub.f32 1.0, %v77_v8  ;;  %v5094_v63 = vld [vmem:[%s8342_s4 + $0x38] sm:$0xff] }
 0x904   :  { %v5464_v0 = vpop.f32.mrf.mxu1  ;;  %5487 = vmatprep.subr.mxu0 %v5094_v63 }
 0x905   :  { %5927 = vtanh.f32 %v653_v6  ;;  %v654_v10 = vsub.f32 0.0, %v653_v6  ;;  %v5092_v6 = vld [vmem:[%s8342_s4 + $0x28] sm:$0xff]  ;;  %v5091_v0 = vld [vmem:[%s8342_s4 + $0x20] sm:$0xff] }
 0x907   :  { %v655_v2 = vmul.f32 1.442695, %v654_v10 }
 0x909   :  { %5929 = vpow2.f32 %v655_v2 }
 0x912   :  { %v5928_v1 = vpop.eup %5927 }
 0x913   :  { %663 = vrot.lane.b32.xlu1 %v5928_v1, %s6302_s6 }
 0x916   :  { %v5930_v5 = vpop.eup %5929 }
 0x917   :  { %680 = vperm.xlu1 %5901, %v77_v8   ;;  %v657_v13 = vadd.f32 1.0, %v5930_v5 }
 0x919   :  { %5931 = vrcp.f32 %v657_v13 }
 0x926   :  { %v5932_v7 = vpop.eup %5931 }
 0x927   :  { %v661_v22 = vmul.f32 %v5932_v7, %v572_v20 }
 0x985   :  { %v664_v16 = vpop.permute.xlu1 %663 }
 0x986   :  { %v666_v17 = vmul.f32 %v5932_v7, %v664_v16 }
 0x988   :  { %668 = vrot.lane.b32.xlu0 %v666_v17, %s6303_s25 }
 0x98c   :  { %687 = vperm.xlu0 %5902, %v684_v24  }
 0x992   :  { %v6636_v32 = vpop.permute.xlu1 %680 }
 0x9fa   :  { %v669_v23 = vpop.permute.xlu0 %668 }
 0x9fb   :  { %v671_v29 = vadd.f32 %v669_v23, %v661_v22  ;;  %v6710_v22 = vld [vmem:[%s8344_s2 + $0x30] sm:$0xff]  ;;  %v6724_v23 = vld [vmem:[%s8344_s2 + $0x20] sm:$0xff] }
 0x9fd   :  { %5933 = vtanh.f32 %v671_v29  ;;  %v692_v57 = vmul.f32 %v6636_v32, %v671_v29 }
 0xa07   :  { %v6638_v33 = vpop.permute.xlu0 %687 }
 0xa08   :  { %v690_v37 = vmul.f32 %v6638_v33, %v569_v61  ;;  %v693_v54 = vmul.f32 %v6638_v33, %v572_v20  ;;  %v6704_v20 = vld [vmem:[%s8344_s2 + $0x38] sm:$0xff] }
 0xa0a   :  { %v5934_v30 = vpop.eup %5933  ;;  %v6657_v58 = vadd.f32 %v693_v54, %v692_v57 }
 0xa0b   :  { %674 = vrot.lane.b32.xlu1 %v5934_v30, %s6302_s6 }
 0xa7d   :  { %v675_v34 = vpop.permute.xlu1 %674 }
 0xa7e   :  { %v677_v35 = vmul.f32 %v5932_v7, %v675_v34 }
 0xa80   :  { %v6641_v36 = vmul.f32 %v6636_v32, %v677_v35 }
 0xa82   :  { %v691_v38 = vadd.f32 %v690_v37, %v6641_v36 }
 0xa84   :  { %701 = vrot.lane.b32.xlu0 %v691_v38, %s6303_s25 }
 0xaf6   :  { %v702_v39 = vpop.permute.xlu0 %701 }
 0xaf7   :  { %5474 = vmatmul.mubr.msk.f32.vlgmr.msra.gmra.mxu0 %vm97_vm0, %v702_v39  ;;  %v6757_v39 = vld [vmem:[%s8346_s15 + $0x1] ss:$0 sm:$0xff] }
 0xaf8   :  { %5488 = vmatpush3.msra.mxu0 %v5094_v63 }
 0xbb7   :  { %v771_v40 = vpop.f32.mrf.mxu0 }
 0xbb8   :  { %v775_v41 = vadd.f32 %v771_v40, %v6543_v31  ;;  %v806_v31 = vsub.f32 1.0, %v78_v44 }
 0xbb9   :  { %v5475_v42 = vpop.f32.mrf.mxu0 }
 0xbba   :  { %5935 = vtanh.f32 %v775_v41  ;;  %v776_v26 = vsub.f32 0.0, %v775_v41 }
 0xbbc   :  { %v777_v45 = vmul.f32 1.442695, %v776_v26 }
 0xbbe   :  { %5937 = vpow2.f32 %v777_v45 }
 0xbc7   :  { %v5936_v43 = vpop.eup %5935 }
 0xbc8   :  { %785 = vrot.lane.b32.xlu1 %v5936_v43, %s6302_s6 }
 0xbcb   :  { %v5938_v46 = vpop.eup %5937 }
 0xbcc   :  { %802 = vperm.xlu1 %5901, %v78_v44   ;;  %v779_v48 = vadd.f32 1.0, %v5938_v46 }
 0xbce   :  { %5939 = vrcp.f32 %v779_v48 }
 0xbdb   :  { %v5940_v49 = vpop.eup %5939 }
 0xbdc   :  { %v783_v60 = vmul.f32 %v5940_v49, %v6657_v58 }
 0xc3a   :  { %v786_v50 = vpop.permute.xlu1 %785 }
 0xc3b   :  { %v788_v53 = vmul.f32 %v5940_v49, %v786_v50 }
 0xc3d   :  { %790 = vrot.lane.b32.xlu0 %v788_v53, %s6303_s25 }
 0xc41   :  { %809 = vperm.xlu0 %5902, %v806_v31  }
 0xc45   :  { %330 = vrot.lane.b32.xlu0 %v6553_v52, %s6303_s25  ;;  %v5093_v52 = vld [vmem:[%s8342_s4 + $0x30] sm:$0xff] }
 0xc46   :  { %5489 = vmatprep.subr.mxu0 %v5093_v52 }
 0xc47   :  { %5490 = vmatpush3.msra.mxu0 %v5093_v52  ;;  %v6687_v13 = vpop.permute.xlu1 %802 }
 0xc48   :  { %5491 = vmatprep.subr.mxu0 %v5092_v6 }
 0xc49   :  { %5492 = vmatpush3.msra.mxu0 %v5092_v6 }
 0xc4a   :  { %5493 = vmatprep.subr.mxu0 %v5091_v0 }
 0xc4b   :  { %5494 = vmatpush3.msra.mxu0 %v5091_v0 }
 0xc4c   :  { %5515 = vmatprep.subr.mxu0 %v6299_v4 }
 0xcaf   :  { %v791_v61 = vpop.permute.xlu0 %790 }
 0xcb0   :  { %v6660_v62 = vadd.f32 %v791_v61, %v783_v60  ;;  %v6766_v61 = vld [vmem:[%s8345_s23 + $0x28] sm:$0xff] }
 0xcb2   :  { %5941 = vtanh.f32 %v6660_v62 }
 0xcbc   :  { %v6675_v1 = vpop.permute.xlu0 %809 }
 0xcbd   :  { %v812_v24 = vmul.f32 %v6675_v1, %v691_v38  ;;  %v815_v0 = vmul.f32 %v6675_v1, %v6657_v58 }
 0xcbf   :  { %v5942_v8 = vpop.eup %5941 }
 0xcc0   :  { %v331_v10 = vpop.permute.xlu0 %330  ;;  %796 = vrot.lane.b32.xlu1 %v5942_v8, %s6302_s6  ;;  %v814_v8 = vmul.f32 %v6687_v13, %v6660_v62 }
 0xcc1   :  { %333 = vst.msk [vmem:[#allocation2] sm:$0xff] %vm97_vm0, %v331_v10 }
 0xcc2   :  { %v816_v10 = vadd.f32 %v815_v0, %v814_v8 }
 0xcc4   :  { %452 = vrot.lane.b32.xlu1 %v6582_v27, %s6303_s25 }
 0xcc8   :  { %v933_v2 = vld [vmem:[#allocation2] sm:$0xff] }
 0xcc9   :  { %v6683_v5 = vadd.f32 %v933_v2, %v6433_v3 }
 0xccb   :  { %5495 = vmatprep.mubr.msk.f32.mxu0 %vm97_vm0, %v6683_v5 }
 0xd32   :  { %v797_v7 = vpop.permute.xlu1 %796 }
 0xd33   :  { %v799_v16 = vmul.f32 %v5940_v49, %v797_v7 }
 0xd35   :  { %v6690_v17 = vmul.f32 %v6687_v13, %v799_v16 }
 0xd36   :  { %v453_v18 = vpop.permute.xlu1 %452 }
 0xd37   :  { %455 = vst.msk [vmem:[#allocation2 + $0x8] sm:$0xff] %vm97_vm0, %v453_v18  ;;  %v813_v27 = vadd.f32 %v812_v24, %v6690_v17 }
 0xd39   :  { %823 = vrot.lane.b32.xlu0 %v813_v27, %s6303_s25 }
 0xd3e   :  { %v934_v3 = vld [vmem:[#allocation2 + $0x8] sm:$0xff] }
 0xd3f   :  { %v6697_v19 = vadd.f32 %v934_v3, %v6460_v9  ;;  %v6717_v9 = vld [vmem:[%s8344_s2 + $0x28] sm:$0xff] }
 0xd41   :  { %5496 = vmatmul.mubr.msk.f32.vlgmr.msra.gmra.mxu0 %vm97_vm0, %v6697_v19 }
 0xd42   :  { %5516 = vmatpush3.msra.mxu0 %v6704_v20 }
 0xd43   :  { %5517 = vmatprep.subr.mxu0 %v6299_v4 }
 0xd44   :  { %5518 = vmatpush3.msra.mxu0 %v6710_v22 }
 0xd45   :  { %5519 = vmatprep.subr.mxu0 %v6299_v4 }
 0xd46   :  { %5520 = vmatpush3.msra.mxu0 %v6717_v9 }
 0xd47   :  { %5521 = vmatprep.subr.mxu0 %v6299_v4 }
 0xd48   :  { %5522 = vmatpush3.msra.mxu0 %v6724_v23 }
 0xd49   :  { %5537 = vmatprep.subr.mxu0 %v6299_v4 }
 0xdab   :  { %v824_v29 = vpop.permute.xlu0 %823 }
 0xdac   :  { %5485 = vmatmul.mubr.msk.f32.vlgmr.msra.gmra.mxu1 %vm97_vm0, %v824_v29 }
 0xdad   :  { %5505 = vmatpush3.msra.mxu1 %v6704_v20  ;;  %5512 = vmatprep.mubr.msk.f32.mxu1 %vm6300_vm1, %v6299_v4 }
 0xdae   :  { %5506 = vmatprep.subr.mxu1 %v6299_v4 }
 0xdaf   :  { %5507 = vmatpush3.msra.mxu1 %v6710_v22 }
 0xdb0   :  { %5508 = vmatprep.subr.mxu1 %v6299_v4 }
 0xdb1   :  { %5509 = vmatpush3.msra.mxu1 %v6717_v9 }
 0xdb2   :  { %5510 = vmatprep.subr.mxu1 %v6299_v4 }
 0xdb3   :  { %5511 = vmatpush3.msra.mxu1 %v6724_v23 }
 0xdb4   :  { %5513 = vmatmul.mubr.f32.vlgmr.msra.gmra.mxu1 %v6299_v4  ;;  %5526 = vmatprep.subr.mxu1 %v6299_v4 }
 0xdb5   :  { %5527 = vmatpush3.msra.mxu1 %v6704_v20  ;;  %5534 = vmatprep.mubr.msk.f32.mxu1 %vm6300_vm1, %v6299_v4 }
 0xdb6   :  { %5528 = vmatprep.subr.mxu1 %v6299_v4 }
 0xdb7   :  { %5529 = vmatpush3.msra.mxu1 %v6710_v22 }
 0xdb8   :  { %5530 = vmatprep.subr.mxu1 %v6299_v4 }
 0xdb9   :  { %5531 = vmatpush3.msra.mxu1 %v6717_v9 }
 0xdba   :  { %5532 = vmatprep.subr.mxu1 %v6299_v4 }
 0xdbb   :  { %5533 = vmatpush3.msra.mxu1 %v6724_v23 }
 0xdbc   :  { %5548 = vmatprep.subr.mxu1 %v6299_v4 }
 0xe01   :  { %v6751_v30 = vpop.f32.mrf.mxu0 }
 0xe03   :  { %v1042_v38 = vpop.f32.mrf.mxu0 }
 0xe04   :  { %v1043_v40 = vadd.f32 %v6757_v39, %v1042_v38 }
 0xe6c   :  { %v893_v34 = vpop.f32.mrf.mxu1 }
 0xe6d   :  { %v897_v35 = vadd.f32 %v893_v34, %v6541_v28 }
 0xe6e   :  { %v5486_v37 = vpop.f32.mrf.mxu1 }
 0xe6f   :  { %5943 = vtanh.f32 %v897_v35  ;;  %v898_v28 = vsub.f32 0.0, %v897_v35 }
 0xe71   :  { %v899_v45 = vmul.f32 1.442695, %v898_v28 }
 0xe74   :  { %v1142_v41 = vpop.f32.mrf.mxu1 }
 0xe75   :  { %v1146_v42 = vadd.f32 %v1142_v41, %v1043_v40 }
 0xe76   :  { %v5514_v43 = vpop.f32.mrf.mxu1 }
 0xe77   :  { %5945 = vtanh.f32 %v1146_v42  ;;  %v1147_v46 = vsub.f32 0.0, %v1146_v42 }
 0xe78   :  { %5947 = vpow2.f32 %v899_v45 }
 0xe79   :  { %v1148_v48 = vmul.f32 1.442695, %v1147_v46 }
 0xe7b   :  { %5949 = vpow2.f32 %v1148_v48 }
 0xe7c   :  { %v5944_v44 = vpop.eup %5943 }
 0xe7d   :  { %907 = vrot.lane.b32.xlu1 %v5944_v44, %s6302_s6 }
 0xe84   :  { %v5946_v26 = vpop.eup %5945 }
 0xe85   :  { %1156 = vrot.lane.b32.xlu0 %v5946_v26, %s6302_s6  ;;  %v5948_v49 = vpop.eup %5947 }
 0xe86   :  { %v901_v50 = vadd.f32 1.0, %v5948_v49 }
 0xe88   :  { %5951 = vrcp.f32 %v901_v50  ;;  %v5950_v53 = vpop.eup %5949 }
 0xe89   :  { %v1150_v31 = vadd.f32 1.0, %v5950_v53  ;;  %v1048_v53 = vadd.f32 %v6751_v30, %v6757_v39 }
 0xe8b   :  { %5953 = vrcp.f32 %v1150_v31 }
 0xe95   :  { %v5952_v54 = vpop.eup %5951 }
 0xe96   :  { %v905_v2 = vmul.f32 %v5952_v54, %v816_v10 }
 0xe98   :  { %v5954_v63 = vpop.eup %5953 }
 0xe99   :  { %v1154_v24 = vmul.f32 0.0, %v5954_v63 }
 0xeef   :  { %v908_v57 = vpop.permute.xlu1 %907 }
 0xef0   :  { %v910_v60 = vmul.f32 %v5952_v54, %v908_v57 }
 0xef2   :  { %912 = vrot.lane.b32.xlu1 %v910_v60, %s6303_s25 }
 0xef6   :  { %924 = vperm.xlu1 %5901, %v6766_v61  }
 0xef7   :  { %v1157_v52 = vpop.permute.xlu0 %1156 }
 0xef8   :  { %v1159_v6 = vmul.f32 %v5954_v63, %v1157_v52 }
 0xefa   :  { %1161 = vrot.lane.b32.xlu0 %v1159_v6, %s6303_s25 }
 0xf64   :  { %v913_v7 = vpop.permute.xlu1 %912 }
 0xf65   :  { %v915_v16 = vadd.f32 %v913_v7, %v905_v2 }
 0xf67   :  { %5955 = vtanh.f32 %v915_v16 }
 0xf6c   :  { %v1162_v18 = vpop.permute.xlu0 %1161 }
 0xf6d   :  { %v6774_v27 = vadd.f32 %v1162_v18, %v1154_v24 }
 0xf6f   :  { %5957 = vtanh.f32 %v6774_v27  ;;  %v1173_v30 = vmul.f32 %v6774_v27, %v6548_v47 }
 0xf71   :  { %v6785_v34 = vpop.permute.xlu1 %924  ;;  %v1174_v7 = vadd.f32 %v1173_v30, %v6550_v51 }
 0xf74   :  { %v5956_v3 = vpop.eup %5955 }
 0xf75   :  { %918 = vrot.lane.b32.xlu0 %v5956_v3, %s6302_s6 }
 0xf79   :  { %574 = vrot.lane.b32.xlu0 %v6611_v59, %s6303_s25 }
 0xf7c   :  { %v5958_v58 = vpop.eup %5957 }
 0xf7d   :  { %1167 = vrot.lane.b32.xlu1 %v5958_v58, %s6302_s6  ;;  %818 = vrot.lane.b32.xlu0 %v6690_v17, %s6303_s25 }
 0xf81   :  { %696 = vrot.lane.b32.xlu1 %v6641_v36, %s6303_s25 }
 0xfe7   :  { %v919_v62 = vpop.permute.xlu0 %918 }
 0xfe8   :  { %v921_v29 = vmul.f32 %v5952_v54, %v919_v62 }
 0xfea   :  { %v927_v35 = vmul.f32 %v6785_v34, %v921_v29 }
 0xfeb   :  { %v575_v37 = vpop.permute.xlu0 %574 }
 0xfec   :  { %577 = vst.msk [vmem:[#allocation2 + $0x10] sm:$0xff] %vm97_vm0, %v575_v37  ;;  %929 = vrot.lane.b32.xlu1 %v927_v35, %s6303_s25 }
 0xfef   :  { %v1168_v59 = vpop.permute.xlu1 %1167  ;;  %v819_v38 = vpop.permute.xlu0 %818 }
 0xff0   :  { %v1170_v40 = vmul.f32 %v5954_v63, %v1168_v59  ;;  %821 = vst.msk [vmem:[#allocation2 + $0x20] sm:$0xff] %vm97_vm0, %v819_v38 }
 0xff2   :  { %v6792_v17 = vmul.f32 %v1170_v40, %v6548_v47 }
 0xff3   :  { %v697_v36 = vpop.permute.xlu1 %696  ;;  %v935_v41 = vld [vmem:[#allocation2 + $0x10] sm:$0xff] }
 0xff4   :  { %699 = vst.msk [vmem:[#allocation2 + $0x18] sm:$0xff] %vm97_vm0, %v697_v36  ;;  %v1172_v42 = vadd.f32 %v6792_v17, %v6550_v51  ;;  %v6798_v43 = vadd.f32 %v935_v41, %v6471_v11 }
 0xff6   :  { %1181 = vrot.lane.b32.xlu0 %v1172_v42, %s6303_s25  ;;  %5498 = vmatprep.mubr.msk.f32.mxu0 %vm97_vm0, %v6798_v43  ;;  %v1281_v35 = vmul.f32 %v1172_v42, %v6577_v21 }
 0xff7   :  { %v937_v44 = vld [vmem:[#allocation2 + $0x20] sm:$0xff] }
 0xff8   :  { %v6807_v45 = vadd.f32 %v937_v44, %v6495_v14 }
 0xffb   :  { %v936_v26 = vld [vmem:[#allocation2 + $0x18] sm:$0xff] }
 0xffc   :  { %v6804_v28 = vadd.f32 %v936_v26, %v6484_v12 }
 0xffe   :  { %5499 = vmatmul.mubr.msk.f32.gmra.mxu0 %vm97_vm0, %v6804_v28 }
 0xfff   :  { %5501 = vmatprep.mubr.msk.f32.mxu0 %vm97_vm0, %v6807_v45 }
0x105e   :  { %v930_v11 = vpop.permute.xlu1 %929 }
0x105f   :  { %932 = vst.msk [vmem:[#allocation2 + $0x28] sm:$0xff] %vm97_vm0, %v930_v11 }
0x1066   :  { %v938_v46 = vld [vmem:[#allocation2 + $0x28] sm:$0xff] }
0x1067   :  { %v6815_v48 = vadd.f32 %v938_v46, %v6510_v15 }
0x1068   :  { %v1182_v12 = vpop.permute.xlu0 %1181 }
0x1069   :  { %5502 = vmatmul.mubr.msk.f32.gmra.mxu0 %vm97_vm0, %v6815_v48 }
0x106a   :  { %5523 = vmatprep.mubr.msk.f32.mxu0 %vm6300_vm1, %v6299_v4 }
0x106d   :  { %5524 = vmatmul.mubr.msk.f32.vlgmr.msra.gmra.mxu0 %vm97_vm0, %v1182_v12 }
0x106e   :  { %5538 = vmatpush3.msra.mxu0 %v6704_v20  ;;  %5545 = vmatprep.mubr.msk.f32.mxu0 %vm6300_vm1, %v6299_v4 }
0x106f   :  { %5539 = vmatprep.subr.mxu0 %v6299_v4 }
0x1070   :  { %5540 = vmatpush3.msra.mxu0 %v6710_v22 }
0x1071   :  { %5541 = vmatprep.subr.mxu0 %v6299_v4 }
0x1072   :  { %5542 = vmatpush3.msra.mxu0 %v6717_v9 }
0x1073   :  { %5543 = vmatprep.subr.mxu0 %v6299_v4 }
0x1074   :  { %5544 = vmatpush3.msra.mxu0 %v6724_v23 }
0x1075   :  { %5559 = vmatprep.subr.mxu0 %v6299_v4 }
0x10be   :  { %v6832_v14 = vpop.f32.mrf.mxu0 }
0x10c0   :  { %v1052_v15 = vpop.f32.mrf.mxu0 }
0x10c1   :  { %v1053_v51 = vadd.f32 %v6757_v39, %v1052_v15 }
0x1129   :  { %v6834_v49 = vpop.f32.mrf.mxu0 }
0x112b   :  { %v6836_v50 = vpop.f32.mrf.mxu0 }
0x112d   :  { %v1251_v31 = vpop.f32.mrf.mxu0 }
0x112e   :  { %v1255_v54 = vadd.f32 %v1251_v31, %v1048_v53  ;;  %v1284_v53 = vmul.f32 %v1174_v7, %v6577_v21 }
0x112f   :  { %v5525_v57 = vpop.f32.mrf.mxu0 }
0x1130   :  { %5959 = vtanh.f32 %v1255_v54  ;;  %v1256_v63 = vsub.f32 0.0, %v1255_v54 }
0x1132   :  { %v1257_v52 = vmul.f32 1.442695, %v1256_v63 }
0x1134   :  { %5961 = vpow2.f32 %v1257_v52 }
0x113d   :  { %v5960_v60 = vpop.eup %5959 }
0x113e   :  { %1265 = vrot.lane.b32.xlu1 %v5960_v60, %s6302_s6 }
0x1141   :  { %v5962_v6 = vpop.eup %5961 }
0x1142   :  { %v1259_v0 = vadd.f32 1.0, %v5962_v6 }
0x1144   :  { %5963 = vrcp.f32 %v1259_v0 }
0x1151   :  { %v5964_v8 = vpop.eup %5963 }
0x1152   :  { %v1263_v16 = vmul.f32 %v5964_v8, %v1174_v7 }
0x11b0   :  { %v1266_v10 = vpop.permute.xlu1 %1265 }
0x11b1   :  { %v1268_v2 = vmul.f32 %v5964_v8, %v1266_v10 }
0x11b3   :  { %1270 = vrot.lane.b32.xlu0 %v1268_v2, %s6303_s25 }
0x1225   :  { %v1271_v24 = vpop.permute.xlu0 %1270 }
0x1226   :  { %v1273_v18 = vadd.f32 %v1271_v24, %v1263_v16 }
0x1228   :  { %5965 = vtanh.f32 %v1273_v18  ;;  %v1283_v15 = vmul.f32 %v1273_v18, %v6579_v25 }
0x122a   :  { %v1285_v31 = vadd.f32 %v1284_v53, %v1283_v15 }
0x1235   :  { %v5966_v3 = vpop.eup %5965 }
0x1236   :  { %1276 = vrot.lane.b32.xlu1 %v5966_v3, %s6302_s6 }
0x12a8   :  { %v1277_v58 = vpop.permute.xlu1 %1276 }
0x12a9   :  { %v1279_v62 = vmul.f32 %v5964_v8, %v1277_v58 }
0x12ab   :  { %v6847_v29 = vmul.f32 %v1279_v62, %v6579_v25  ;;  %v1395_v62 = vmul.f32 %v1285_v31, %v6608_v56 }
0x12ad   :  { %v1282_v37 = vadd.f32 %v1281_v35, %v6847_v29 }
0x12af   :  { %1292 = vrot.lane.b32.xlu0 %v1282_v37, %s6303_s25  ;;  %v1392_v8 = vmul.f32 %v1282_v37, %v6608_v56  ;;  %v1063_v56 = vadd.f32 %v6757_v39, %v6836_v50 }
0x1321   :  { %v1293_v27 = vpop.permute.xlu0 %1292 }
0x1322   :  { %5535 = vmatmul.mubr.msk.f32.vlgmr.msra.gmra.mxu1 %vm97_vm0, %v1293_v27 }
0x1323   :  { %5549 = vmatpush3.msra.mxu1 %v6704_v20  ;;  %5556 = vmatprep.mubr.msk.f32.mxu1 %vm6300_vm1, %v6299_v4 }
0x1324   :  { %5550 = vmatprep.subr.mxu1 %v6299_v4 }
0x1325   :  { %5551 = vmatpush3.msra.mxu1 %v6710_v22 }
0x1326   :  { %5552 = vmatprep.subr.mxu1 %v6299_v4 }
0x1327   :  { %5553 = vmatpush3.msra.mxu1 %v6717_v9 }
0x1328   :  { %5554 = vmatprep.subr.mxu1 %v6299_v4 }
0x1329   :  { %5555 = vmatpush3.msra.mxu1 %v6724_v23 }
0x13e2   :  { %v1362_v59 = vpop.f32.mrf.mxu1 }
0x13e3   :  { %v1366_v38 = vadd.f32 %v1362_v59, %v1053_v51 }
0x13e4   :  { %v5536_v40 = vpop.f32.mrf.mxu1 }
0x13e5   :  { %5967 = vtanh.f32 %v1366_v38  ;;  %v1367_v41 = vsub.f32 0.0, %v1366_v38 }
0x13e7   :  { %v1368_v42 = vmul.f32 1.442695, %v1367_v41 }
0x13e9   :  { %5969 = vpow2.f32 %v1368_v42 }
0x13f2   :  { %v5968_v36 = vpop.eup %5967 }
0x13f3   :  { %1376 = vrot.lane.b32.xlu1 %v5968_v36, %s6302_s6 }
0x13f6   :  { %v5970_v44 = vpop.eup %5969 }
0x13f7   :  { %v1370_v26 = vadd.f32 1.0, %v5970_v44 }
0x13f9   :  { %5971 = vrcp.f32 %v1370_v26 }
0x1406   :  { %v5972_v11 = vpop.eup %5971 }
0x1407   :  { %v1374_v54 = vmul.f32 %v5972_v11, %v1285_v31 }
0x1465   :  { %v1377_v46 = vpop.permute.xlu1 %1376 }
0x1466   :  { %v1379_v12 = vmul.f32 %v5972_v11, %v1377_v46 }
0x1468   :  { %1381 = vrot.lane.b32.xlu0 %v1379_v12, %s6303_s25 }
0x14da   :  { %v1382_v57 = vpop.permute.xlu0 %1381 }
0x14db   :  { %v1384_v60 = vadd.f32 %v1382_v57, %v1374_v54 }
0x14dd   :  { %5973 = vtanh.f32 %v1384_v60 }
0x14ea   :  { %v5974_v63 = vpop.eup %5973 }
0x14eb   :  { %1387 = vrot.lane.b32.xlu1 %v5974_v63, %s6302_s6 }
0x155d   :  { %v1388_v52 = vpop.permute.xlu1 %1387 }
0x155e   :  { %v1390_v6 = vmul.f32 %v5972_v11, %v1388_v52 }
0x1560   :  { %v6869_v0 = vmul.f32 %v1390_v6, %v6606_v55 }
0x1562   :  { %v1393_v10 = vadd.f32 %v1392_v8, %v6869_v0 }
0x1564   :  { %1403 = vrot.lane.b32.xlu0 %v1393_v10, %s6303_s25  ;;  %v1503_v41 = vmul.f32 %v1393_v10, %v6638_v33 }
0x15d6   :  { %v1404_v21 = vpop.permute.xlu0 %1403 }
0x15d7   :  { %5546 = vmatmul.mubr.msk.f32.vlgmr.msra.gmra.mxu0 %vm97_vm0, %v1404_v21 }
0x15d8   :  { %5560 = vmatpush3.msra.mxu0 %v6704_v20  ;;  %5567 = vmatprep.mubr.msk.f32.mxu0 %vm6300_vm1, %v6299_v4  ;;  %v1058_v20 = vadd.f32 %v6832_v14, %v6757_v39  ;;  %v1394_v14 = vmul.f32 %v1384_v60, %v6606_v55 }
0x15d9   :  { %5561 = vmatprep.subr.mxu0 %v6299_v4 }
0x15da   :  { %5562 = vmatpush3.msra.mxu0 %v6710_v22  ;;  %v1396_v35 = vadd.f32 %v1395_v62, %v1394_v14 }
0x15db   :  { %5563 = vmatprep.subr.mxu0 %v6299_v4 }
0x15dc   :  { %5564 = vmatpush3.msra.mxu0 %v6717_v9  ;;  %v1506_v52 = vmul.f32 %v1396_v35, %v6638_v33 }
0x15dd   :  { %5565 = vmatprep.subr.mxu0 %v6299_v4 }
0x15de   :  { %5566 = vmatpush3.msra.mxu0 %v6724_v23 }
0x15df   :  { %5587 = vmatprep.subr.mxu0 %v6299_v4 }
0x1697   :  { %v1473_v2 = vpop.f32.mrf.mxu0 }
0x1698   :  { %v1477_v30 = vadd.f32 %v1473_v2, %v1058_v20 }
0x1699   :  { %v5547_v7 = vpop.f32.mrf.mxu0 }
0x169a   :  { %5975 = vtanh.f32 %v1477_v30  ;;  %v1478_v22 = vsub.f32 0.0, %v1477_v30 }
0x169c   :  { %v1479_v24 = vmul.f32 1.442695, %v1478_v22 }
0x169e   :  { %5977 = vpow2.f32 %v1479_v24  ;;  %v1068_v24 = vadd.f32 %v6834_v49, %v6757_v39  ;;  %v1725_v39 = vsub.f32 1.0, %v6766_v61  ;;  %v1762_v61 = vld [vmem:[%s8317_s12 + $0x18] sm:$0xff] }
0x169f   :  { %5570 = vmatprep.subr.mxu1 %v1762_v61 }
0x16a7   :  { %v5976_v16 = vpop.eup %5975 }
0x16a8   :  { %1487 = vrot.lane.b32.xlu1 %v5976_v16, %s6302_s6 }
0x16ab   :  { %v5978_v9 = vpop.eup %5977 }
0x16ac   :  { %v1481_v18 = vadd.f32 1.0, %v5978_v9 }
0x16ae   :  { %5979 = vrcp.f32 %v1481_v18 }
0x16bb   :  { %v5980_v3 = vpop.eup %5979 }
0x16bc   :  { %v1485_v37 = vmul.f32 %v5980_v3, %v1396_v35 }
0x171a   :  { %v1488_v23 = vpop.permute.xlu1 %1487 }
0x171b   :  { %v1490_v58 = vmul.f32 %v5980_v3, %v1488_v23 }
0x171d   :  { %1492 = vrot.lane.b32.xlu0 %v1490_v58, %s6303_s25 }
0x178f   :  { %v1493_v27 = vpop.permute.xlu0 %1492 }
0x1790   :  { %v1495_v51 = vadd.f32 %v1493_v27, %v1485_v37 }
0x1792   :  { %5981 = vtanh.f32 %v1495_v51  ;;  %v1505_v50 = vmul.f32 %v1495_v51, %v6636_v32 }
0x1794   :  { %v1507_v6 = vadd.f32 %v1506_v52, %v1505_v50  ;;  %v6981_v50 = vld [vmem:[%s8313_s8 + $0x18] sm:$0xff] }
0x179f   :  { %v5982_v59 = vpop.eup %5981 }
0x17a0   :  { %1498 = vrot.lane.b32.xlu1 %v5982_v59, %s6302_s6  ;;  %v1617_v59 = vmul.f32 %v1507_v6, %v6675_v1 }
0x1812   :  { %v1499_v38 = vpop.permute.xlu1 %1498 }
0x1813   :  { %v1501_v40 = vmul.f32 %v5980_v3, %v1499_v38 }
0x1815   :  { %v1502_v36 = vmul.f32 %v1501_v40, %v6636_v32 }
0x1817   :  { %v1504_v42 = vadd.f32 %v1503_v41, %v1502_v36 }
0x1819   :  { %1514 = vrot.lane.b32.xlu0 %v1504_v42, %s6303_s25  ;;  %v1614_v16 = vmul.f32 %v1504_v42, %v6675_v1 }
0x188b   :  { %v1515_v44 = vpop.permute.xlu0 %1514 }
0x188c   :  { %5557 = vmatmul.mubr.msk.f32.vlgmr.msra.gmra.mxu1 %vm97_vm0, %v1515_v44  ;;  %v1760_v44 = vld [vmem:[%s8317_s12 + $0x8] sm:$0xff] }
0x188d   :  { %5571 = vmatpush3.msra.mxu1 %v1762_v61 }
0x194c   :  { %v1584_v26 = vpop.f32.mrf.mxu1 }
0x194d   :  { %v1588_v11 = vadd.f32 %v1584_v26, %v1063_v56  ;;  %v1759_v56 = vld [vmem:[%s8317_s12] sm:$0xff] }
0x194e   :  { %v5558_v46 = vpop.f32.mrf.mxu1 }
0x194f   :  { %5983 = vtanh.f32 %v1588_v11  ;;  %v1589_v15 = vsub.f32 0.0, %v1588_v11  ;;  %v1891_v46 = vld [vmem:[%s8312_s7 + $0x18] sm:$0xff] }
0x1951   :  { %v1590_v53 = vmul.f32 1.442695, %v1589_v15 }
0x1953   :  { %5985 = vpow2.f32 %v1590_v53 }
0x195c   :  { %v5984_v12 = vpop.eup %5983 }
0x195d   :  { %1598 = vrot.lane.b32.xlu1 %v5984_v12, %s6302_s6  ;;  %v1890_v12 = vld [vmem:[%s8312_s7 + $0x10] sm:$0xff] }
0x1960   :  { %v5986_v31 = vpop.eup %5985 }
0x1961   :  { %v1592_v54 = vadd.f32 1.0, %v5986_v31 }
0x1963   :  { %5987 = vrcp.f32 %v1592_v54  ;;  %v1888_v54 = vld [vmem:[%s8312_s7] sm:$0xff] }
0x1970   :  { %v5988_v57 = vpop.eup %5987 }
0x1971   :  { %v1596_v8 = vmul.f32 %v5988_v57, %v1507_v6  ;;  %v6991_v6 = vld [vmem:[%s8313_s8 + $0x10] sm:$0xff] }
0x19cf   :  { %v1599_v60 = vpop.permute.xlu1 %1598 }
0x19d0   :  { %v1601_v63 = vmul.f32 %v5988_v57, %v1599_v60  ;;  %v6972_v60 = vld [vmem:[%s8347_s1] sm:$0xff] }
0x19d2   :  { %1603 = vrot.lane.b32.xlu0 %v1601_v63, %s6303_s25 }
0x1a44   :  { %v1604_v10 = vpop.permute.xlu0 %1603 }
0x1a45   :  { %v1606_v21 = vadd.f32 %v1604_v10, %v1596_v8  ;;  %v6999_v10 = vld [vmem:[%s8313_s8 + $0x8] sm:$0xff] }
0x1a47   :  { %5989 = vtanh.f32 %v1606_v21  ;;  %v1616_v49 = vmul.f32 %v1606_v21, %v6687_v13 }
0x1a49   :  { %v6922_v38 = vadd.f32 %v1617_v59, %v1616_v49 }
0x1a54   :  { %v5990_v20 = vpop.eup %5989 }
0x1a55   :  { %1609 = vrot.lane.b32.xlu1 %v5990_v20, %s6302_s6 }
0x1ac7   :  { %v1610_v2 = vpop.permute.xlu1 %1609 }
0x1ac8   :  { %v1612_v30 = vmul.f32 %v5988_v57, %v1610_v2 }
0x1aca   :  { %v1613_v7 = vmul.f32 %v1612_v30, %v6687_v13  ;;  %v7007_v30 = vld [vmem:[%s8313_s8] sm:$0xff] }
0x1acc   :  { %v6905_v22 = vadd.f32 %v1614_v16, %v1613_v7 }
0x1ace   :  { %1625 = vrot.lane.b32.xlu0 %v6905_v22, %s6303_s25 }
0x1b40   :  { %v1626_v33 = vpop.permute.xlu0 %1625 }
0x1b41   :  { %5568 = vmatmul.mubr.msk.f32.vlgmr.msra.gmra.mxu0 %vm97_vm0, %v1626_v33 }
0x1b42   :  { %5595 = vmatprep.mubr.msk.f32.mxu0 %vm6300_vm1, %v6299_v4  ;;  %5588 = vmatpush3.msra.mxu0 %v1891_v46 }
0x1b43   :  { %5589 = vmatprep.subr.mxu0 %v6299_v4 }
0x1b44   :  { %5590 = vmatpush3.msra.mxu0 %v1890_v12 }
0x1b45   :  { %5591 = vmatprep.subr.mxu0 %v6299_v4 }
0x1c01   :  { %v1695_v9 = vpop.f32.mrf.mxu0 }
0x1c02   :  { %v1699_v18 = vadd.f32 %v1695_v9, %v1068_v24 }
0x1c03   :  { %v5569_v3 = vpop.f32.mrf.mxu0 }
0x1c04   :  { %5991 = vtanh.f32 %v1699_v18  ;;  %v1700_v58 = vsub.f32 0.0, %v1699_v18 }
0x1c06   :  { %v1701_v14 = vmul.f32 1.442695, %v1700_v58 }
0x1c08   :  { %5993 = vpow2.f32 %v1701_v14 }
0x1c11   :  { %v5992_v23 = vpop.eup %5991 }
0x1c12   :  { %1709 = vrot.lane.b32.xlu1 %v5992_v23, %s6302_s6 }
0x1c15   :  { %v5994_v62 = vpop.eup %5993 }
0x1c16   :  { %v1703_v35 = vadd.f32 1.0, %v5994_v62 }
0x1c18   :  { %5995 = vrcp.f32 %v1703_v35  ;;  %v7066_v35 = vld [vmem:[%s8314_s9] ss:$0 sm:$0xff] }
0x1c25   :  { %v5996_v37 = vpop.eup %5995 }
0x1c26   :  { %v1707_v40 = vmul.f32 %v5996_v37, %v6922_v38 }
0x1c84   :  { %v1710_v27 = vpop.permute.xlu1 %1709 }
0x1c85   :  { %v1712_v51 = vmul.f32 %v5996_v37, %v1710_v27 }
0x1c87   :  { %1714 = vrot.lane.b32.xlu0 %v1712_v51, %s6303_s25 }
0x1c8b   :  { %1728 = vperm.xlu0 %5902, %v1725_v39  }
0x1c8f   :  { %1287 = vrot.lane.b32.xlu0 %v6847_v29, %s6303_s25  ;;  %v1761_v29 = vld [vmem:[%s8317_s12 + $0x10] sm:$0xff] }
0x1c90   :  { %5572 = vmatprep.subr.mxu1 %v1761_v29 }
0x1c91   :  { %5573 = vmatpush3.msra.mxu1 %v1761_v29 }
0x1c92   :  { %5574 = vmatprep.subr.mxu1 %v1760_v44 }
0x1c93   :  { %1509 = vrot.lane.b32.xlu0 %v1502_v36, %s6303_s25  ;;  %5575 = vmatpush3.msra.mxu1 %v1760_v44 }
0x1c94   :  { %5576 = vmatprep.subr.mxu1 %v1759_v56 }
0x1c95   :  { %5577 = vmatpush3.msra.mxu1 %v1759_v56 }
0x1c96   :  { %5610 = vmatprep.subr.mxu1 %v6299_v4 }
0x1cf9   :  { %v1715_v41 = vpop.permute.xlu0 %1714 }
0x1cfa   :  { %v6925_v42 = vadd.f32 %v1715_v41, %v1707_v40 }
0x1cfc   :  { %5997 = vtanh.f32 %v6925_v42  ;;  %v1733_v46 = vmul.f32 %v6925_v42, %v6785_v34 }
0x1d06   :  { %v6934_v36 = vpop.permute.xlu0 %1728 }
0x1d07   :  { %v1731_v53 = vmul.f32 %v6934_v36, %v6905_v22 }
0x1d09   :  { %v5998_v1 = vpop.eup %5997 }
0x1d0a   :  { %v1288_v26 = vpop.permute.xlu0 %1287  ;;  %1720 = vrot.lane.b32.xlu1 %v5998_v1, %s6302_s6 }
0x1d0b   :  { %1290 = vst.msk [vmem:[#allocation2 + $0x8] sm:$0xff] %vm97_vm0, %v1288_v26 }
0x1d0e   :  { %v1510_v11 = vpop.permute.xlu0 %1509  ;;  %1176 = vrot.lane.b32.xlu1 %v6792_v17, %s6303_s25  ;;  %v1889_v17 = vld [vmem:[%s8312_s7 + $0x8] sm:$0xff] }
0x1d0f   :  { %1512 = vst.msk [vmem:[#allocation2 + $0x18] sm:$0xff] %vm97_vm0, %v1510_v11  ;;  %5592 = vmatpush3.msra.mxu0 %v1889_v17  ;;  %v1734_v11 = vmul.f32 %v6934_v36, %v6922_v38 }
0x1d10   :  { %5593 = vmatprep.subr.mxu0 %v6299_v4 }
0x1d11   :  { %5594 = vmatpush3.msra.mxu0 %v1888_v54  ;;  %v7079_v12 = vadd.f32 %v1734_v11, %v1733_v46 }
0x1d12   :  { %1398 = vrot.lane.b32.xlu1 %v6869_v0, %s6303_s25  ;;  %5596 = vmatmul.mubr.msk.f32.vlgmr.msra.gmra.mxu0 %vm97_vm0, %v6972_v60  ;;  %v1742_v8 = vld [vmem:[#allocation2 + $0x8] sm:$0xff] }
0x1d13   :  { %5598 = vmatprep.mubr.msk.f32.mxu0 %vm6300_vm1, %v6299_v4  ;;  %5632 = vmatprep.subr.mxu0 %v6299_v4  ;;  %v1748_v2 = vadd.f32 %v1742_v8, %v6697_v19 }
0x1d14   :  { %5633 = vmatpush3.msra.mxu0 %v6981_v50 }
0x1d15   :  { %5634 = vmatprep.subr.mxu0 %v6299_v4  ;;  %v1754_v19 = vmul.f32 %v1748_v2, %v6579_v25 }
0x1d16   :  { %1620 = vrot.lane.b32.xlu1 %v1613_v7, %s6303_s25  ;;  %5635 = vmatpush3.msra.mxu0 %v6991_v6  ;;  %v1744_v16 = vld [vmem:[#allocation2 + $0x18] sm:$0xff] }
0x1d17   :  { %5636 = vmatprep.subr.mxu0 %v6299_v4  ;;  %v1750_v24 = vadd.f32 %v1744_v16, %v6804_v28 }
0x1d18   :  { %5637 = vmatpush3.msra.mxu0 %v6999_v10 }
0x1d19   :  { %5638 = vmatprep.subr.mxu0 %v6299_v4  ;;  %v1756_v18 = vmul.f32 %v1750_v24, %v6636_v32 }
0x1d1a   :  { %5639 = vmatpush3.msra.mxu0 %v7007_v30 }
0x1d1b   :  { %5654 = vmatprep.subr.mxu0 %v6299_v4 }
0x1d7c   :  { %v1721_v0 = vpop.permute.xlu1 %1720 }
0x1d7d   :  { %v1723_v15 = vmul.f32 %v5996_v37, %v1721_v0 }
0x1d7f   :  { %v1724_v31 = vmul.f32 %v1723_v15, %v6785_v34 }
0x1d80   :  { %v1177_v57 = vpop.permute.xlu1 %1176 }
0x1d81   :  { %1179 = vst.msk [vmem:[#allocation2] sm:$0xff] %vm97_vm0, %v1177_v57  ;;  %1737 = vrot.lane.b32.xlu0 %v1724_v31, %s6303_s25  ;;  %v1732_v63 = vadd.f32 %v1731_v53, %v1724_v31  ;;  %v7085_v53 = vld [vmem:[%s8347_s1 + $0x8] sm:$0xff] }
0x1d82   :  { %5599 = vmatmul.mubr.msk.f32.gmra.mxu0 %vm97_vm0, %v7085_v53 }
0x1d83   :  { %2009 = vrot.lane.b32.xlu1 %v1732_v63, %s6303_s25  ;;  %5601 = vmatprep.mubr.msk.f32.mxu0 %vm6300_vm1, %v6299_v4 }
0x1d84   :  { %v1399_v52 = vpop.permute.xlu1 %1398 }
0x1d85   :  { %1401 = vst.msk [vmem:[#allocation2 + $0x10] sm:$0xff] %vm97_vm0, %v1399_v52 }
0x1d88   :  { %v1621_v21 = vpop.permute.xlu1 %1620  ;;  %v1741_v20 = vld [vmem:[#allocation2] sm:$0xff] }
0x1d89   :  { %1623 = vst.msk [vmem:[#allocation2 + $0x20] sm:$0xff] %vm97_vm0, %v1621_v21  ;;  %v1747_v7 = vadd.f32 %v1741_v20, %v6683_v5 }
0x1d8b   :  { %v1753_v22 = vmul.f32 %v1747_v7, %v6548_v47 }
0x1d8c   :  { %v1743_v33 = vld [vmem:[#allocation2 + $0x10] sm:$0xff] }
0x1d8d   :  { %5578 = vmatprep.mubr.msk.f32.mxu1 %vm97_vm0, %v1753_v22  ;;  %v1749_v9 = vadd.f32 %v1743_v33, %v6798_v43 }
0x1d8e   :  { %5579 = vmatmul.mubr.msk.f32.vlgmr.msra.gmra.mxu1 %vm97_vm0, %v1754_v19 }
0x1d8f   :  { %v1755_v5 = vmul.f32 %v1749_v9, %v6606_v55  ;;  %5611 = vmatpush3.msra.mxu1 %v6981_v50 }
0x1d90   :  { %v1745_v3 = vld [vmem:[#allocation2 + $0x20] sm:$0xff]  ;;  %5612 = vmatprep.subr.mxu1 %v6299_v4 }
0x1d91   :  { %5581 = vmatprep.mubr.msk.f32.mxu1 %vm97_vm0, %v1755_v5  ;;  %v1751_v47 = vadd.f32 %v1745_v3, %v6807_v45  ;;  %5613 = vmatpush3.msra.mxu1 %v6991_v6  ;;  %v7120_v3 = vld [vmem:[%s8347_s1 + $0x18] sm:$0xff] }
0x1d92   :  { %5582 = vmatmul.mubr.msk.f32.gmra.mxu1 %vm97_vm0, %v1756_v18  ;;  %5614 = vmatprep.subr.mxu1 %v6299_v4  ;;  %v7111_v18 = vld [vmem:[%s8347_s1 + $0x10] sm:$0xff] }
0x1d93   :  { %v1757_v25 = vmul.f32 %v1751_v47, %v6687_v13  ;;  %5615 = vmatpush3.msra.mxu1 %v6999_v10  ;;  %5602 = vmatmul.mubr.msk.f32.gmra.mxu0 %vm97_vm0, %v7111_v18  ;;  %v7129_v47 = vld [vmem:[%s8347_s1 + $0x20] sm:$0xff] }
0x1d94   :  { %5616 = vmatprep.subr.mxu1 %v6299_v4  ;;  %5604 = vmatprep.mubr.msk.f32.mxu0 %vm6300_vm1, %v6299_v4 }
0x1d95   :  { %5584 = vmatprep.mubr.msk.f32.mxu1 %vm97_vm0, %v1757_v25  ;;  %5617 = vmatpush3.msra.mxu1 %v7007_v30 }
0x1d96   :  { %5621 = vmatprep.subr.mxu1 %v6299_v4 }
0x1d97   :  { %5605 = vmatmul.mubr.msk.f32.gmra.mxu0 %vm97_vm0, %v7120_v3 }
0x1d98   :  { %5607 = vmatprep.mubr.msk.f32.mxu0 %vm6300_vm1, %v6299_v4 }
0x1d9b   :  { %5608 = vmatmul.mubr.msk.f32.gmra.mxu0 %vm97_vm0, %v7129_v47 }
0x1d9c   :  { %5640 = vmatprep.mubr.msk.f32.mxu0 %vm6300_vm1, %v6299_v4 }
0x1dd2   :  { %v1980_v45 = vpop.f32.mrf.mxu0 }
0x1dd3   :  { %v1981_v27 = vadd.f32 %v7066_v35, %v1980_v45 }
0x1df3   :  { %v1738_v55 = vpop.permute.xlu0 %1737 }
0x1df4   :  { %1740 = vst.msk [vmem:[#allocation2 + $0x28] sm:$0xff] %vm97_vm0, %v1738_v55 }
0x1df5   :  { %v7041_v13 = vpop.permute.xlu1 %2009 }
0x1dfb   :  { %v1746_v32 = vld [vmem:[#allocation2 + $0x28] sm:$0xff] }
0x1dfc   :  { %v1752_v43 = vadd.f32 %v1746_v32, %v6815_v48  ;;  %v5597_v48 = vpop.f32.mrf.mxu0 }
0x1dfe   :  { %v1758_v28 = vmul.f32 %v1752_v43, %v6785_v34 }
0x1e00   :  { %5585 = vmatmul.mubr.msk.f32.gmra.mxu1 %vm97_vm0, %v1758_v28 }
0x1e01   :  { %5618 = vmatprep.mubr.msk.f32.mxu1 %vm6300_vm1, %v6299_v4 }
0x1e04   :  { %5619 = vmatmul.mubr.msk.f32.vlgmr.msra.gmra.mxu1 %vm97_vm0, %v7041_v13 }
0x1e05   :  { %5622 = vmatpush3.msra.mxu1 %v6981_v50  ;;  %5629 = vmatprep.mubr.msk.f32.mxu1 %vm6300_vm1, %v6299_v4 }
0x1e06   :  { %5623 = vmatprep.subr.mxu1 %v6299_v4 }
0x1e07   :  { %5624 = vmatpush3.msra.mxu1 %v6991_v6 }
0x1e08   :  { %5625 = vmatprep.subr.mxu1 %v6299_v4 }
0x1e09   :  { %5626 = vmatpush3.msra.mxu1 %v6999_v10 }
0x1e0a   :  { %5627 = vmatprep.subr.mxu1 %v6299_v4 }
0x1e0b   :  { %5628 = vmatpush3.msra.mxu1 %v7007_v30 }
0x1e0c   :  { %5643 = vmatprep.subr.mxu1 %v6299_v4 }
0x1e42   :  { %v1985_v36 = vpop.f32.mrf.mxu0 }
0x1e43   :  { %v1986_v57 = vadd.f32 %v7066_v35, %v1985_v36  ;;  %v5131_v36 = vld [vmem:[%s8312_s7 + $0x28] sm:$0xff] }
0x1e44   :  { %v5600_v31 = vpop.f32.mrf.mxu0 }
0x1e4e   :  { %v7055_v23 = vpop.f32.mrf.mxu1 }
0x1e50   :  { %v7057_v58 = vpop.f32.mrf.mxu1 }
0x1e52   :  { %v7059_v14 = vpop.f32.mrf.mxu1 }
0x1e53   :  { %v1990_v43 = vpop.f32.mrf.mxu0 }
0x1e54   :  { %v7061_v62 = vpop.f32.mrf.mxu1 }
0x1e55   :  { %v5603_v28 = vpop.f32.mrf.mxu0 }
0x1e57   :  { %v7137_v45 = vpop.f32.mrf.mxu0 }
0x1e59   :  { %v5606_v48 = vpop.f32.mrf.mxu0 }
0x1ec0   :  { %v7068_v37 = vpop.f32.mrf.mxu1 }
0x1ec2   :  { %v7071_v51 = vpop.f32.mrf.mxu1 }
0x1ec4   :  { %v2079_v39 = vpop.f32.mrf.mxu1 }
0x1ec5   :  { %v2083_v49 = vadd.f32 %v2079_v39, %v1981_v27  ;;  %v7139_v27 = vpop.f32.mrf.mxu0 }
0x1ec6   :  { %v5620_v59 = vpop.f32.mrf.mxu1 }
0x1ec7   :  { %5999 = vtanh.f32 %v2083_v49  ;;  %v2084_v41 = vsub.f32 0.0, %v2083_v49  ;;  %v5609_v39 = vpop.f32.mrf.mxu0  ;;  %v1991_v59 = vadd.f32 %v7066_v35, %v1990_v43 }
0x1ec9   :  { %v2085_v61 = vmul.f32 1.442695, %v2084_v41 }
0x1ecb   :  { %6001 = vpow2.f32 %v2085_v61 }
0x1ed4   :  { %v6000_v40 = vpop.eup %5999 }
0x1ed5   :  { %2093 = vrot.lane.b32.xlu0 %v6000_v40, %s6302_s6 }
0x1ed8   :  { %v6002_v29 = vpop.eup %6001 }
0x1ed9   :  { %v2087_v1 = vadd.f32 1.0, %v6002_v29 }
0x1edb   :  { %6003 = vrcp.f32 %v2087_v1 }
0x1ee8   :  { %v6004_v44 = vpop.eup %6003 }
0x1ee9   :  { %v2091_v17 = vmul.f32 %v6004_v44, %v7079_v12 }
0x1f47   :  { %v2094_v56 = vpop.permute.xlu0 %2093 }
0x1f48   :  { %v2096_v26 = vmul.f32 %v6004_v44, %v2094_v56 }
0x1f4a   :  { %2098 = vrot.lane.b32.xlu1 %v2096_v26, %s6303_s25 }
0x1fbc   :  { %v2099_v0 = vpop.permute.xlu1 %2098 }
0x1fbd   :  { %v2101_v15 = vadd.f32 %v2099_v0, %v2091_v17 }
0x1fbf   :  { %6005 = vtanh.f32 %v2101_v15 }
0x1fcc   :  { %v6006_v38 = vpop.eup %6005 }
0x1fcd   :  { %2104 = vrot.lane.b32.xlu0 %v6006_v38, %s6302_s6  ;;  %v5133_v38 = vld [vmem:[%s8312_s7 + $0x38] sm:$0xff] }
0x203f   :  { %v2105_v34 = vpop.permute.xlu0 %2104 }
0x2040   :  { %v2107_v42 = vmul.f32 %v6004_v44, %v2105_v34 }
0x2042   :  { %2109 = vrot.lane.b32.xlu1 %v2107_v42, %s6303_s25  ;;  %v5132_v42 = vld [vmem:[%s8312_s7 + $0x30] sm:$0xff] }
0x20b4   :  { %v2110_v54 = vpop.permute.xlu1 %2109 }
0x20b5   :  { %2112 = vst.msk [vmem:[#allocation3] sm:$0xff] %vm97_vm0, %v2110_v54  ;;  %5630 = vmatmul.mubr.msk.f32.vlgmr.msra.gmra.mxu1 %vm97_vm0, %v2110_v54  ;;  %v5130_v54 = vld [vmem:[%s8312_s7 + $0x20] sm:$0xff] }
0x20b6   :  { %5644 = vmatpush3.msra.mxu1 %v6981_v50  ;;  %5651 = vmatprep.mubr.msk.f32.mxu1 %vm6300_vm1, %v6299_v4 }
0x20b7   :  { %5645 = vmatprep.subr.mxu1 %v6299_v4 }
0x20b8   :  { %5646 = vmatpush3.msra.mxu1 %v6991_v6 }
0x20b9   :  { %5647 = vmatprep.subr.mxu1 %v6299_v4 }
0x20ba   :  { %5648 = vmatpush3.msra.mxu1 %v6999_v10 }
0x20bb   :  { %5649 = vmatprep.subr.mxu1 %v6299_v4 }
0x20bc   :  { %5650 = vmatpush3.msra.mxu1 %v7007_v30  ;;  %v2521_v31 = vld [vmem:[#allocation3] sm:$0xff] }
0x20bd   :  { %5665 = vmatprep.subr.mxu1 %v6299_v4 }
0x2175   :  { %v2181_v63 = vpop.f32.mrf.mxu1 }
0x2176   :  { %v2185_v52 = vadd.f32 %v2181_v63, %v1986_v57  ;;  %v7178_v57 = vadd.f32 %v2521_v31, %v6972_v60 }
0x2177   :  { %v5631_v8 = vpop.f32.mrf.mxu1 }
0x2178   :  { %6007 = vtanh.f32 %v2185_v52  ;;  %v2186_v20 = vsub.f32 0.0, %v2185_v52 }
0x217a   :  { %v2187_v2 = vmul.f32 1.442695, %v2186_v20 }
0x217c   :  { %6009 = vpow2.f32 %v2187_v2 }
0x2185   :  { %v6008_v21 = vpop.eup %6007 }
0x2186   :  { %2195 = vrot.lane.b32.xlu0 %v6008_v21, %s6302_s6 }
0x2189   :  { %v6010_v7 = vpop.eup %6009 }
0x218a   :  { %v2189_v16 = vadd.f32 1.0, %v6010_v7 }
0x218c   :  { %6011 = vrcp.f32 %v2189_v16 }
0x2199   :  { %v6012_v22 = vpop.eup %6011 }
0x219a   :  { %v2193_v24 = vmul.f32 %v6012_v22, %v2101_v15 }
0x21f8   :  { %v2196_v19 = vpop.permute.xlu0 %2195 }
0x21f9   :  { %v2198_v33 = vmul.f32 %v6012_v22, %v2196_v19 }
0x21fb   :  { %2200 = vrot.lane.b32.xlu1 %v2198_v33, %s6303_s25 }
0x226d   :  { %v2201_v9 = vpop.permute.xlu1 %2200 }
0x226e   :  { %v2203_v5 = vadd.f32 %v2201_v9, %v2193_v24 }
0x2270   :  { %6013 = vtanh.f32 %v2203_v5 }
0x227d   :  { %v6014_v25 = vpop.eup %6013 }
0x227e   :  { %2206 = vrot.lane.b32.xlu0 %v6014_v25, %s6302_s6 }
0x22f0   :  { %v2207_v55 = vpop.permute.xlu0 %2206 }
0x22f1   :  { %v2209_v32 = vmul.f32 %v6012_v22, %v2207_v55 }
0x22f3   :  { %2211 = vrot.lane.b32.xlu1 %v2209_v32, %s6303_s25 }
0x2365   :  { %v2212_v49 = vpop.permute.xlu1 %2211 }
0x2366   :  { %2214 = vst.msk [vmem:[#allocation3 + $0x8] sm:$0xff] %vm97_vm0, %v2212_v49  ;;  %5641 = vmatmul.mubr.msk.f32.vlgmr.msra.gmra.mxu0 %vm97_vm0, %v2212_v49 }
0x2367   :  { %5655 = vmatpush3.msra.mxu0 %v6981_v50  ;;  %5662 = vmatprep.mubr.msk.f32.mxu0 %vm6300_vm1, %v6299_v4 }
0x2368   :  { %5656 = vmatprep.subr.mxu0 %v6299_v4 }
0x2369   :  { %5657 = vmatpush3.msra.mxu0 %v6991_v6 }
0x236a   :  { %5658 = vmatprep.subr.mxu0 %v6299_v4 }
0x236b   :  { %5659 = vmatpush3.msra.mxu0 %v6999_v10 }
0x236c   :  { %5660 = vmatprep.subr.mxu0 %v6299_v4 }
0x236d   :  { %5661 = vmatpush3.msra.mxu0 %v7007_v30  ;;  %v2522_v63 = vld [vmem:[#allocation3 + $0x8] sm:$0xff] }
0x236e   :  { %5688 = vmatprep.subr.mxu0 %v6299_v4  ;;  %v7186_v52 = vadd.f32 %v2522_v63, %v7085_v53  ;;  %v1996_v53 = vadd.f32 %v7066_v35, %v7137_v45 }
0x2426   :  { %v2283_v50 = vpop.f32.mrf.mxu0 }
0x2427   :  { %v2287_v40 = vadd.f32 %v2283_v50, %v1991_v59  ;;  %v7216_v59 = vld [vmem:[%s8313_s8 + $0x38] sm:$0xff]  ;;  %v7222_v50 = vld [vmem:[%s8313_s8 + $0x30] sm:$0xff] }
0x2428   :  { %v5642_v41 = vpop.f32.mrf.mxu0 }
0x2429   :  { %6015 = vtanh.f32 %v2287_v40  ;;  %v2288_v6 = vsub.f32 0.0, %v2287_v40  ;;  %v7229_v40 = vld [vmem:[%s8313_s8 + $0x28] sm:$0xff]  ;;  %v7236_v41 = vld [vmem:[%s8313_s8 + $0x20] sm:$0xff]  ;;  %s6304_s8 = smov 96  }
0x242b   :  { %v2289_v29 = vmul.f32 1.442695, %v2288_v6 }
0x242d   :  { %6017 = vpow2.f32 %v2289_v29 }
0x2436   :  { %v6016_v61 = vpop.eup %6015 }
0x2437   :  { %2297 = vrot.lane.b32.xlu0 %v6016_v61, %s6302_s6 }
0x243a   :  { %v6018_v1 = vpop.eup %6017 }
0x243b   :  { %v2291_v10 = vadd.f32 1.0, %v6018_v1 }
0x243d   :  { %6019 = vrcp.f32 %v2291_v10 }
0x244a   :  { %v6020_v44 = vpop.eup %6019 }
0x244b   :  { %v2295_v26 = vmul.f32 %v6020_v44, %v2203_v5 }
0x24a9   :  { %v2298_v56 = vpop.permute.xlu0 %2297 }
0x24aa   :  { %v2300_v30 = vmul.f32 %v6020_v44, %v2298_v56 }
0x24ac   :  { %2302 = vrot.lane.b32.xlu1 %v2300_v30, %s6303_s25 }
0x251e   :  { %v2303_v11 = vpop.permute.xlu1 %2302 }
0x251f   :  { %v2305_v46 = vadd.f32 %v2303_v11, %v2295_v26  ;;  %v7278_v26 = vld [vmem:[%s8314_s9 + $0x1] ss:$0 sm:$0xff] }
0x2521   :  { %6021 = vtanh.f32 %v2305_v46 }
0x252e   :  { %v6022_v17 = vpop.eup %6021 }
0x252f   :  { %2308 = vrot.lane.b32.xlu0 %v6022_v17, %s6302_s6 }
0x25a1   :  { %v2309_v0 = vpop.permute.xlu0 %2308 }
0x25a2   :  { %v2311_v15 = vmul.f32 %v6020_v44, %v2309_v0 }
0x25a4   :  { %2313 = vrot.lane.b32.xlu1 %v2311_v15, %s6303_s25 }
0x2616   :  { %v2314_v34 = vpop.permute.xlu1 %2313 }
0x2617   :  { %2316 = vst.msk [vmem:[#allocation3 + $0x10] sm:$0xff] %vm97_vm0, %v2314_v34  ;;  %5652 = vmatmul.mubr.msk.f32.vlgmr.msra.gmra.mxu1 %vm97_vm0, %v2314_v34 }
0x2618   :  { %5666 = vmatpush3.msra.mxu1 %v5133_v38  ;;  %5673 = vmatprep.mubr.msk.f32.mxu1 %vm6300_vm1, %v6299_v4 }
0x2619   :  { %5667 = vmatprep.subr.mxu1 %v6299_v4 }
0x261a   :  { %5668 = vmatpush3.msra.mxu1 %v5132_v42 }
0x261b   :  { %5669 = vmatprep.subr.mxu1 %v6299_v4 }
0x261c   :  { %5670 = vmatpush3.msra.mxu1 %v5131_v36 }
0x261d   :  { %5671 = vmatprep.subr.mxu1 %v6299_v4 }
0x261e   :  { %5672 = vmatpush3.msra.mxu1 %v5130_v54  ;;  %v2523_v8 = vld [vmem:[#allocation3 + $0x10] sm:$0xff] }
0x261f   :  { %5674 = vmatmul.mubr.msk.f32.vlgmr.msra.gmra.mxu1 %vm97_vm0, %v7178_v57  ;;  %5710 = vmatprep.subr.mxu1 %v6299_v4  ;;  %v7193_v60 = vadd.f32 %v2523_v8, %v7111_v18 }
0x2620   :  { %5676 = vmatprep.mubr.msk.f32.mxu1 %vm6300_vm1, %v6299_v4  ;;  %5711 = vmatpush3.msra.mxu1 %v7216_v59 }
0x2621   :  { %5712 = vmatprep.subr.mxu1 %v6299_v4 }
0x2622   :  { %5713 = vmatpush3.msra.mxu1 %v7222_v50 }
0x2623   :  { %5677 = vmatmul.mubr.msk.f32.gmra.mxu1 %vm97_vm0, %v7186_v52  ;;  %5714 = vmatprep.subr.mxu1 %v6299_v4 }
0x2624   :  { %5679 = vmatprep.mubr.msk.f32.mxu1 %vm6300_vm1, %v6299_v4  ;;  %5715 = vmatpush3.msra.mxu1 %v7229_v40 }
0x2625   :  { %5716 = vmatprep.subr.mxu1 %v6299_v4 }
0x2626   :  { %5717 = vmatpush3.msra.mxu1 %v7236_v41 }
0x2627   :  { %5680 = vmatmul.mubr.msk.f32.gmra.mxu1 %vm97_vm0, %v7193_v60  ;;  %5732 = vmatprep.subr.mxu1 %v6299_v4 }
0x2628   :  { %5682 = vmatprep.mubr.msk.f32.mxu1 %vm6300_vm1, %v6299_v4 }
0x26d7   :  { %v2385_v21 = vpop.f32.mrf.mxu1 }
0x26d8   :  { %v2389_v20 = vadd.f32 %v2385_v21, %v1996_v53 }
0x26d9   :  { %v5653_v2 = vpop.f32.mrf.mxu1 }
0x26da   :  { %6023 = vtanh.f32 %v2389_v20  ;;  %v2390_v5 = vsub.f32 0.0, %v2389_v20 }
0x26dc   :  { %v2391_v18 = vmul.f32 1.442695, %v2390_v5 }
0x26de   :  { %6025 = vpow2.f32 %v2391_v18 }
0x26df   :  { %v7201_v7 = vpop.f32.mrf.mxu1 }
0x26e0   :  { %v2626_v11 = vadd.f32 %v7278_v26, %v7201_v7 }
0x26e1   :  { %v5675_v16 = vpop.f32.mrf.mxu1 }
0x26e3   :  { %v7203_v22 = vpop.f32.mrf.mxu1 }
0x26e5   :  { %v5678_v19 = vpop.f32.mrf.mxu1 }
0x26e7   :  { %v6024_v33 = vpop.eup %6023  ;;  %v7205_v24 = vpop.f32.mrf.mxu1 }
0x26e8   :  { %2399 = vrot.lane.b32.xlu0 %v6024_v33, %s6302_s6 }
0x26e9   :  { %v5681_v9 = vpop.f32.mrf.mxu1 }
0x26eb   :  { %v6026_v25 = vpop.eup %6025 }
0x26ec   :  { %v2393_v55 = vadd.f32 1.0, %v6026_v25 }
0x26ee   :  { %6027 = vrcp.f32 %v2393_v55 }
0x26fb   :  { %v6028_v32 = vpop.eup %6027 }
0x26fc   :  { %v2397_v45 = vmul.f32 %v6028_v32, %v2305_v46 }
0x275a   :  { %v2400_v43 = vpop.permute.xlu0 %2399 }
0x275b   :  { %v2402_v28 = vmul.f32 %v6028_v32, %v2400_v43 }
0x275d   :  { %2404 = vrot.lane.b32.xlu1 %v2402_v28, %s6303_s25 }
0x27cf   :  { %v2405_v48 = vpop.permute.xlu1 %2404 }
0x27d0   :  { %v7209_v39 = vadd.f32 %v2405_v48, %v2397_v45 }
0x27d2   :  { %6029 = vtanh.f32 %v7209_v39 }
0x27df   :  { %v6030_v49 = vpop.eup %6029 }
0x27e0   :  { %2410 = vrot.lane.b32.xlu0 %v6030_v49, %s6302_s6 }
0x2852   :  { %v2411_v61 = vpop.permute.xlu0 %2410 }
0x2853   :  { %v2413_v6 = vmul.f32 %v6028_v32, %v2411_v61  ;;  %v2631_v61 = vadd.f32 %v7278_v26, %v7203_v22 }
0x2855   :  { %2415 = vrot.lane.b32.xlu1 %v2413_v6, %s6303_s25 }
0x28c7   :  { %v2416_v29 = vpop.permute.xlu1 %2415 }
0x28c8   :  { %2418 = vst.msk [vmem:[#allocation3 + $0x18] sm:$0xff] %vm97_vm0, %v2416_v29  ;;  %5663 = vmatmul.mubr.msk.f32.vlgmr.msra.gmra.mxu0 %vm97_vm0, %v2416_v29 }
0x28c9   :  { %5689 = vmatpush3.msra.mxu0 %v7216_v59  ;;  %5696 = vmatprep.mubr.msk.f32.mxu0 %vm6300_vm1, %v6299_v4 }
0x28ca   :  { %5690 = vmatprep.subr.mxu0 %v6299_v4 }
0x28cb   :  { %5691 = vmatpush3.msra.mxu0 %v7222_v50 }
0x28cc   :  { %5692 = vmatprep.subr.mxu0 %v6299_v4 }
0x28cd   :  { %5693 = vmatpush3.msra.mxu0 %v7229_v40 }
0x28ce   :  { %5694 = vmatprep.subr.mxu0 %v6299_v4 }
0x28cf   :  { %5695 = vmatpush3.msra.mxu0 %v7236_v41  ;;  %v2524_v1 = vld [vmem:[#allocation3 + $0x18] sm:$0xff] }
0x28d0   :  { %5697 = vmatmul.mubr.msk.f32.vlgmr.msra.gmra.mxu0 %vm97_vm0, %v7041_v13  ;;  %v7256_v10 = vadd.f32 %v2524_v1, %v7120_v3  ;;  %5699 = vmatprep.subr.mxu0 %v6299_v4  ;;  %v2001_v3 = vadd.f32 %v7066_v35, %v7139_v27 }
0x28d1   :  { %5700 = vmatpush3.msra.mxu0 %v7216_v59  ;;  %5707 = vmatprep.mubr.msk.f32.mxu0 %vm6300_vm1, %v6299_v4 }
0x28d2   :  { %5683 = vmatmul.mubr.msk.f32.gmra.mxu1 %vm97_vm0, %v7256_v10  ;;  %5701 = vmatprep.subr.mxu0 %v6299_v4 }
0x28d3   :  { %5702 = vmatpush3.msra.mxu0 %v7222_v50  ;;  %5685 = vmatprep.mubr.msk.f32.mxu1 %vm6300_vm1, %v6299_v4 }
0x28d4   :  { %5703 = vmatprep.subr.mxu0 %v6299_v4 }
0x28d5   :  { %5704 = vmatpush3.msra.mxu0 %v7229_v40 }
0x28d6   :  { %5705 = vmatprep.subr.mxu0 %v6299_v4 }
0x28d7   :  { %5706 = vmatpush3.msra.mxu0 %v7236_v41 }
0x28d8   :  { %5721 = vmatprep.subr.mxu0 %v6299_v4 }
0x2988   :  { %v2487_v44 = vpop.f32.mrf.mxu0 }
0x2989   :  { %v2491_v56 = vadd.f32 %v2487_v44, %v2001_v3 }
0x298a   :  { %v5664_v30 = vpop.f32.mrf.mxu0 }
0x298b   :  { %v2492_v7 = vsub.f32 0.0, %v2491_v56 }
0x298d   :  { %v2493_v16 = vmul.f32 1.442695, %v2492_v7 }
0x2990   :  { %v2720_v46 = vpop.f32.mrf.mxu0 }
0x2991   :  { %v2724_v17 = vadd.f32 %v2720_v46, %v2626_v11 }
0x2992   :  { %v5698_v0 = vpop.f32.mrf.mxu0  ;;  %v7282_v15 = vpop.f32.mrf.mxu1 }
0x2993   :  { %6031 = vtanh.f32 %v2724_v17  ;;  %v2725_v35 = vsub.f32 0.0, %v2724_v17 }
0x2994   :  { %v5684_v38 = vpop.f32.mrf.mxu1 }
0x2995   :  { %v2726_v27 = vmul.f32 1.442695, %v2725_v35 }
0x2997   :  { %6033 = vpow2.f32 %v2726_v27 }
0x29a0   :  { %v6032_v34 = vpop.eup %6031 }
0x29a1   :  { %2734 = vrot.lane.b32.xlu0 %v6032_v34, %s6302_s6 }
0x29a4   :  { %v6034_v42 = vpop.eup %6033 }
0x29a5   :  { %v2728_v36 = vadd.f32 1.0, %v6034_v42 }
0x29a7   :  { %6035 = vrcp.f32 %v2728_v36 }
0x29b4   :  { %v6036_v31 = vpop.eup %6035 }
0x29b5   :  { %v2732_v8 = vmul.f32 %v6036_v31, %v7079_v12 }
0x2a13   :  { %v2735_v54 = vpop.permute.xlu0 %2734 }
0x2a14   :  { %v2737_v63 = vmul.f32 %v6036_v31, %v2735_v54 }
0x2a16   :  { %2739 = vrot.lane.b32.xlu1 %v2737_v63, %s6303_s25 }
0x2a88   :  { %v2740_v53 = vpop.permute.xlu1 %2739 }
0x2a89   :  { %v7287_v21 = vadd.f32 %v2740_v53, %v2732_v8 }
0x2a8b   :  { %6037 = vtanh.f32 %v7287_v21 }
0x2a8c   :  { %6039 = vtanh.f32 %v2491_v56 }
0x2a8d   :  { %6041 = vpow2.f32 %v2493_v16 }
0x2a98   :  { %v6038_v20 = vpop.eup %6037 }
0x2a99   :  { %2745 = vrot.lane.b32.xlu0 %v6038_v20, %s6302_s6  ;;  %v6040_v2 = vpop.eup %6039 }
0x2a9a   :  { %v6042_v19 = vpop.eup %6041 }
0x2a9b   :  { %v2495_v33 = vadd.f32 1.0, %v6042_v19 }
0x2a9d   :  { %2501 = vrot.lane.b32.xlu0 %v6040_v2, %s6302_s6  ;;  %6043 = vrcp.f32 %v2495_v33 }
0x2aaa   :  { %v6044_v18 = vpop.eup %6043 }
0x2aab   :  { %v2499_v43 = vmul.f32 %v6044_v18, %v7209_v39 }
0x2b0b   :  { %v2746_v9 = vpop.permute.xlu0 %2745 }
0x2b0c   :  { %v2748_v5 = vmul.f32 %v6036_v31, %v2746_v9 }
0x2b0e   :  { %2750 = vrot.lane.b32.xlu1 %v2748_v5, %s6303_s25 }
0x2b0f   :  { %v2502_v25 = vpop.permute.xlu0 %2501 }
0x2b10   :  { %v2504_v55 = vmul.f32 %v6044_v18, %v2502_v25 }
0x2b12   :  { %2506 = vrot.lane.b32.xlu0 %v2504_v55, %s6303_s25 }
0x2b80   :  { %v2751_v32 = vpop.permute.xlu1 %2750 }
0x2b81   :  { %2753 = vst.msk [vmem:[#allocation3] sm:$0xff] %vm97_vm0, %v2751_v32  ;;  %5708 = vmatmul.mubr.msk.f32.vlgmr.msra.gmra.mxu0 %vm97_vm0, %v2751_v32  ;;  %v3175_v32 = vld [vmem:[%s8315_s10 + $0x18] sm:$0xff] }
0x2b82   :  { %5722 = vmatpush3.msra.mxu0 %v7216_v59  ;;  %5729 = vmatprep.mubr.msk.f32.mxu0 %vm6300_vm1, %v6299_v4 }
0x2b83   :  { %5723 = vmatprep.subr.mxu0 %v6299_v4 }
0x2b84   :  { %v2507_v28 = vpop.permute.xlu0 %2506  ;;  %5724 = vmatpush3.msra.mxu0 %v7222_v50 }
0x2b85   :  { %v2509_v45 = vadd.f32 %v2507_v28, %v2499_v43  ;;  %5725 = vmatprep.subr.mxu0 %v6299_v4  ;;  %v3174_v28 = vld [vmem:[%s8315_s10 + $0x10] sm:$0xff] }
0x2b86   :  { %5726 = vmatpush3.msra.mxu0 %v7229_v40 }
0x2b87   :  { %6045 = vtanh.f32 %v2509_v45  ;;  %5727 = vmatprep.subr.mxu0 %v6299_v4  ;;  %v3173_v45 = vld [vmem:[%s8315_s10 + $0x8] sm:$0xff] }
0x2b88   :  { %5728 = vmatpush3.msra.mxu0 %v7236_v41 }
0x2b89   :  { %5743 = vmatprep.subr.mxu0 %v6299_v4 }
0x2b94   :  { %v6046_v48 = vpop.eup %6045 }
0x2b95   :  { %2512 = vrot.lane.b32.xlu0 %v6046_v48, %s6302_s6  ;;  %v3162_v48 = vld [vmem:[#allocation3] sm:$0xff] }
0x2c07   :  { %v2513_v39 = vpop.permute.xlu0 %2512 }
0x2c08   :  { %v2515_v49 = vmul.f32 %v6044_v18, %v2513_v39  ;;  %v3172_v39 = vld [vmem:[%s8315_s10] sm:$0xff] }
0x2c0a   :  { %2517 = vrot.lane.b32.xlu0 %v2515_v49, %s6303_s25  ;;  %v7364_v49 = vadd.f32 %v3162_v48, %v7178_v57  ;;  %v7426_v48 = vld [vmem:[%s8318_s13] ss:$0 sm:$0xff] }
0x2c41   :  { %v2822_v6 = vpop.f32.mrf.mxu0 }
0x2c42   :  { %v2826_v29 = vadd.f32 %v2822_v6, %v2631_v61 }
0x2c43   :  { %v5709_v1 = vpop.f32.mrf.mxu0 }
0x2c44   :  { %6047 = vtanh.f32 %v2826_v29  ;;  %v2827_v22 = vsub.f32 0.0, %v2826_v29 }
0x2c46   :  { %v2828_v11 = vmul.f32 1.442695, %v2827_v22 }
0x2c48   :  { %6049 = vpow2.f32 %v2828_v11 }
0x2c51   :  { %v6048_v3 = vpop.eup %6047 }
0x2c52   :  { %2836 = vrot.lane.b32.xlu1 %v6048_v3, %s6302_s6 }
0x2c55   :  { %v6050_v46 = vpop.eup %6049 }
0x2c56   :  { %v2830_v17 = vadd.f32 1.0, %v6050_v46 }
0x2c58   :  { %6051 = vrcp.f32 %v2830_v17 }
0x2c65   :  { %v6052_v0 = vpop.eup %6051 }
0x2c7c   :  { %v2518_v44 = vpop.permute.xlu0 %2517 }
0x2c7d   :  { %2520 = vst.msk [vmem:[#allocation3 + $0x20] sm:$0xff] %vm97_vm0, %v2518_v44 }
0x2c84   :  { %v2525_v56 = vld [vmem:[#allocation3 + $0x20] sm:$0xff] }
0x2c85   :  { %v7314_v30 = vadd.f32 %v2525_v56, %v7129_v47  ;;  %v2834_v47 = vmul.f32 %v6052_v0, %v7287_v21 }
0x2c87   :  { %5686 = vmatmul.mubr.msk.f32.gmra.mxu1 %vm97_vm0, %v7314_v30 }
0x2c88   :  { %5718 = vmatprep.mubr.msk.f32.mxu1 %vm6300_vm1, %v6299_v4 }
0x2cc4   :  { %v2837_v38 = vpop.permute.xlu1 %2836 }
0x2cc5   :  { %v2839_v34 = vmul.f32 %v6052_v0, %v2837_v38 }
0x2cc7   :  { %2841 = vrot.lane.b32.xlu1 %v2839_v34, %s6303_s25 }
0x2d39   :  { %v2842_v35 = vpop.permute.xlu1 %2841 }
0x2d3a   :  { %v2844_v27 = vadd.f32 %v2842_v35, %v2834_v47 }
0x2d3c   :  { %6053 = vtanh.f32 %v2844_v27 }
0x2d47   :  { %v7322_v42 = vpop.f32.mrf.mxu1 }
0x2d49   :  { %v6054_v36 = vpop.eup %6053  ;;  %v5687_v31 = vpop.f32.mrf.mxu1 }
0x2d4a   :  { %2847 = vrot.lane.b32.xlu1 %v6054_v36, %s6302_s6 }
0x2dbc   :  { %v2848_v54 = vpop.permute.xlu1 %2847 }
0x2dbd   :  { %v2850_v63 = vmul.f32 %v6052_v0, %v2848_v54 }
0x2dbf   :  { %2852 = vrot.lane.b32.xlu1 %v2850_v63, %s6303_s25 }
0x2e31   :  { %v2853_v8 = vpop.permute.xlu1 %2852 }
0x2e32   :  { %2855 = vst.msk [vmem:[#allocation3 + $0x8] sm:$0xff] %vm97_vm0, %v2853_v8  ;;  %5719 = vmatmul.mubr.msk.f32.vlgmr.msra.gmra.mxu1 %vm97_vm0, %v2853_v8 }
0x2e33   :  { %5733 = vmatpush3.msra.mxu1 %v7216_v59  ;;  %5740 = vmatprep.mubr.msk.f32.mxu1 %vm6300_vm1, %v6299_v4  ;;  %v2636_v59 = vadd.f32 %v7278_v26, %v7205_v24 }
0x2e34   :  { %5734 = vmatprep.subr.mxu1 %v6299_v4 }
0x2e35   :  { %5735 = vmatpush3.msra.mxu1 %v7222_v50 }
0x2e36   :  { %5736 = vmatprep.subr.mxu1 %v6299_v4 }
0x2e37   :  { %5737 = vmatpush3.msra.mxu1 %v7229_v40 }
0x2e38   :  { %5738 = vmatprep.subr.mxu1 %v6299_v4 }
0x2e39   :  { %5739 = vmatpush3.msra.mxu1 %v7236_v41  ;;  %v3163_v61 = vld [vmem:[#allocation3 + $0x8] sm:$0xff] }
0x2e3a   :  { %5766 = vmatprep.subr.mxu1 %v6299_v4  ;;  %v7372_v6 = vadd.f32 %v3163_v61, %v7186_v52  ;;  %v2641_v52 = vadd.f32 %v7278_v26, %v7282_v15 }
0x2ef2   :  { %v2924_v53 = vpop.f32.mrf.mxu1 }
0x2ef3   :  { %v2928_v21 = vadd.f32 %v2924_v53, %v2636_v59 }
0x2ef4   :  { %v5720_v20 = vpop.f32.mrf.mxu1 }
0x2ef5   :  { %6055 = vtanh.f32 %v2928_v21  ;;  %v2929_v50 = vsub.f32 0.0, %v2928_v21 }
0x2ef7   :  { %v2930_v7 = vmul.f32 1.442695, %v2929_v50  ;;  %v2646_v50 = vadd.f32 %v7278_v26, %v7322_v42 }
0x2ef9   :  { %6057 = vpow2.f32 %v2930_v7 }
0x2f02   :  { %v6056_v2 = vpop.eup %6055 }
0x2f03   :  { %2938 = vrot.lane.b32.xlu0 %v6056_v2, %s6302_s6 }
0x2f06   :  { %v6058_v40 = vpop.eup %6057 }
0x2f07   :  { %v2932_v16 = vadd.f32 1.0, %v6058_v40 }
0x2f09   :  { %6059 = vrcp.f32 %v2932_v16 }
0x2f16   :  { %v6060_v19 = vpop.eup %6059 }
0x2f17   :  { %v2936_v9 = vmul.f32 %v6060_v19, %v2844_v27 }
0x2f75   :  { %v2939_v41 = vpop.permute.xlu0 %2938 }
0x2f76   :  { %v2941_v33 = vmul.f32 %v6060_v19, %v2939_v41 }
0x2f78   :  { %2943 = vrot.lane.b32.xlu1 %v2941_v33, %s6303_s25 }
0x2fea   :  { %v2944_v24 = vpop.permute.xlu1 %2943 }
0x2feb   :  { %v2946_v5 = vadd.f32 %v2944_v24, %v2936_v9 }
0x2fed   :  { %6061 = vtanh.f32 %v2946_v5 }
0x2ffa   :  { %v6062_v18 = vpop.eup %6061 }
0x2ffb   :  { %2949 = vrot.lane.b32.xlu0 %v6062_v18, %s6302_s6 }
0x306d   :  { %v2950_v25 = vpop.permute.xlu0 %2949 }
0x306e   :  { %v2952_v55 = vmul.f32 %v6060_v19, %v2950_v25 }
0x3070   :  { %2954 = vrot.lane.b32.xlu1 %v2952_v55, %s6303_s25 }
0x30e2   :  { %v2955_v43 = vpop.permute.xlu1 %2954 }
0x30e3   :  { %2957 = vst.msk [vmem:[#allocation3 + $0x10] sm:$0xff] %vm97_vm0, %v2955_v43  ;;  %5730 = vmatmul.mubr.msk.f32.vlgmr.msra.gmra.mxu0 %vm97_vm0, %v2955_v43 }
0x30e4   :  { %5744 = vmatpush3.msra.mxu0 %v3175_v32  ;;  %5751 = vmatprep.mubr.msk.f32.mxu0 %vm6300_vm1, %v6299_v4 }
0x30e5   :  { %5745 = vmatprep.subr.mxu0 %v6299_v4 }
0x30e6   :  { %5746 = vmatpush3.msra.mxu0 %v3174_v28  ;;  %v7417_v28 = vld [vmem:[%s8316_s11] ss:$0 sm:$0xff] }
0x30e7   :  { %5747 = vmatprep.subr.mxu0 %v6299_v4 }
0x30e8   :  { %5748 = vmatpush3.msra.mxu0 %v3173_v45 }
0x30e9   :  { %5749 = vmatprep.subr.mxu0 %v6299_v4 }
0x30ea   :  { %5750 = vmatpush3.msra.mxu0 %v3172_v39  ;;  %v3164_v29 = vld [vmem:[#allocation3 + $0x10] sm:$0xff]  ;;  %v7430_v39 = vadd.f32 %v7426_v48, %v7057_v58 }
0x30eb   :  { %5752 = vmatmul.mubr.msk.f32.vlgmr.msra.gmra.mxu0 %vm97_vm0, %v7364_v49  ;;  %5789 = vmatprep.subr.mxu0 %v6299_v4  ;;  %v7379_v57 = vadd.f32 %v3164_v29, %v7193_v60  ;;  %v7436_v29 = vadd.f32 %v7426_v48, %v7061_v62  ;;  %v7452_v62 = vadd.f32 %v7055_v23, %v7426_v48 }
0x30ec   :  { %5754 = vmatprep.mubr.msk.f32.mxu0 %vm6300_vm1, %v6299_v4 }
0x30ef   :  { %5755 = vmatmul.mubr.msk.f32.gmra.mxu0 %vm97_vm0, %v7372_v6 }
0x30f0   :  { %5757 = vmatprep.mubr.msk.f32.mxu0 %vm6300_vm1, %v6299_v4 }
0x30f3   :  { %5758 = vmatmul.mubr.msk.f32.gmra.mxu0 %vm97_vm0, %v7379_v57 }
0x30f4   :  { %5760 = vmatprep.mubr.msk.f32.mxu0 %vm6300_vm1, %v6299_v4 }
0x31a3   :  { %v3026_v1 = vpop.f32.mrf.mxu0 }
0x31a4   :  { %v3030_v3 = vadd.f32 %v3026_v1, %v2641_v52  ;;  %v7442_v1 = vadd.f32 %v7059_v14, %v7426_v48 }
0x31a5   :  { %v5731_v44 = vpop.f32.mrf.mxu0 }
0x31a6   :  { %6063 = vtanh.f32 %v3030_v3  ;;  %v3031_v38 = vsub.f32 0.0, %v3030_v3 }
0x31a8   :  { %v3032_v34 = vmul.f32 1.442695, %v3031_v38 }
0x31aa   :  { %6065 = vpow2.f32 %v3032_v34 }
0x31ab   :  { %v3264_v56 = vpop.f32.mrf.mxu0 }
0x31ac   :  { %v7421_v45 = vadd.f32 %v7417_v28, %v3264_v56 }
0x31ad   :  { %v5753_v22 = vpop.f32.mrf.mxu0 }
0x31ae   :  { %v3288_v61 = vadd.f32 %v7421_v45, %v7430_v39  ;;  %v3290_v52 = vadd.f32 %v7421_v45, %v7436_v29  ;;  %v3291_v58 = vadd.f32 %v7421_v45, %v7442_v1  ;;  %v7461_v22 = vld [vmem:[%s8319_s14] ss:$0 sm:$0xff] }
0x31af   :  { %v7387_v11 = vpop.f32.mrf.mxu0 }
0x31b0   :  { %v7446_v3 = vadd.f32 %v7417_v28, %v7387_v11 }
0x31b1   :  { %v5756_v46 = vpop.f32.mrf.mxu0 }
0x31b2   :  { %v3295_v44 = vadd.f32 %v7446_v3, %v7452_v62  ;;  %v3296_v14 = vadd.f32 %v7446_v3, %v7436_v29  ;;  %v3297_v46 = vadd.f32 %v7446_v3, %v7442_v1 }
0x31b3   :  { %v6064_v60 = vpop.eup %6063  ;;  %v7389_v17 = vpop.f32.mrf.mxu0 }
0x31b4   :  { %3040 = vrot.lane.b32.xlu0 %v6064_v60, %s6302_s6  ;;  %v7465_v11 = vadd.f32 %v7417_v28, %v7389_v17 }
0x31b5   :  { %v5759_v0 = vpop.f32.mrf.mxu0 }
0x31b6   :  { %v3301_v34 = vadd.f32 %v7465_v11, %v7452_v62 }
0x31b7   :  { %v6066_v47 = vpop.eup %6065 }
0x31b8   :  { %v3034_v15 = vadd.f32 1.0, %v6066_v47 }
0x31ba   :  { %6067 = vrcp.f32 %v3034_v15 }
0x31c7   :  { %v6068_v35 = vpop.eup %6067 }
0x31c8   :  { %v3038_v31 = vmul.f32 %v6068_v35, %v2946_v5 }
0x3226   :  { %v3041_v27 = vpop.permute.xlu0 %3040 }
0x3227   :  { %v3043_v36 = vmul.f32 %v6068_v35, %v3041_v27 }
0x3229   :  { %3045 = vrot.lane.b32.xlu1 %v3043_v36, %s6303_s25  ;;  %v3303_v36 = vadd.f32 %v7465_v11, %v7442_v1 }
0x329b   :  { %v3046_v54 = vpop.permute.xlu1 %3045 }
0x329c   :  { %v3048_v63 = vadd.f32 %v3046_v54, %v3038_v31 }
0x329e   :  { %6069 = vtanh.f32 %v3048_v63 }
0x32ab   :  { %v6070_v8 = vpop.eup %6069 }
0x32ac   :  { %3051 = vrot.lane.b32.xlu0 %v6070_v8, %s6302_s6 }
0x331e   :  { %v3052_v59 = vpop.permute.xlu0 %3051 }
0x331f   :  { %v3054_v53 = vmul.f32 %v6068_v35, %v3052_v59  ;;  %v3302_v35 = vadd.f32 %v7465_v11, %v7436_v29 }
0x3321   :  { %3056 = vrot.lane.b32.xlu1 %v3054_v53, %s6303_s25 }
0x3393   :  { %v3057_v21 = vpop.permute.xlu1 %3056 }
0x3394   :  { %3059 = vst.msk [vmem:[#allocation3 + $0x18] sm:$0xff] %vm97_vm0, %v3057_v21  ;;  %5741 = vmatmul.mubr.msk.f32.vlgmr.msra.gmra.mxu1 %vm97_vm0, %v3057_v21 }
0x3395   :  { %5774 = vmatprep.mubr.msk.f32.mxu1 %vm6300_vm1, %v6299_v4 }
0x339b   :  { %v3165_v20 = vld [vmem:[#allocation3 + $0x18] sm:$0xff] }
0x339c   :  { %v7400_v2 = vadd.f32 %v3165_v20, %v7256_v10 }
0x339e   :  { %5761 = vmatmul.mubr.msk.f32.gmra.mxu0 %vm97_vm0, %v7400_v2 }
0x339f   :  { %5763 = vmatprep.mubr.msk.f32.mxu0 %vm6300_vm1, %v6299_v4 }
0x3454   :  { %v3128_v7 = vpop.f32.mrf.mxu1 }
0x3455   :  { %v3132_v40 = vadd.f32 %v3128_v7, %v2646_v50 }
0x3456   :  { %v5742_v16 = vpop.f32.mrf.mxu1 }
0x3457   :  { %6071 = vtanh.f32 %v3132_v40  ;;  %v3133_v10 = vsub.f32 0.0, %v3132_v40 }
0x3459   :  { %v3134_v9 = vmul.f32 1.442695, %v3133_v10 }
0x345b   :  { %6073 = vpow2.f32 %v3134_v9 }
0x345e   :  { %v3279_v19 = vpop.f32.mrf.mxu0 }
0x345f   :  { %v7481_v31 = vadd.f32 %v7417_v28, %v3279_v19 }
0x3460   :  { %v5762_v41 = vpop.f32.mrf.mxu0 }
0x3461   :  { %v3307_v21 = vadd.f32 %v7481_v31, %v7452_v62  ;;  %v3308_v40 = vadd.f32 %v7481_v31, %v7436_v29 }
0x3464   :  { %v6072_v33 = vpop.eup %6071 }
0x3465   :  { %3142 = vrot.lane.b32.xlu0 %v6072_v33, %s6302_s6  ;;  %v3309_v33 = vadd.f32 %v7481_v31, %v7442_v1 }
0x3468   :  { %v6074_v24 = vpop.eup %6073 }
0x3469   :  { %v3136_v5 = vadd.f32 1.0, %v6074_v24 }
0x346b   :  { %6075 = vrcp.f32 %v3136_v5 }
0x3478   :  { %v7409_v18 = vpop.eup %6075 }
0x3479   :  { %v3140_v42 = vmul.f32 %v7409_v18, %v3048_v63 }
0x34d7   :  { %v3143_v25 = vpop.permute.xlu0 %3142 }
0x34d8   :  { %v3145_v26 = vmul.f32 %v7409_v18, %v3143_v25 }
0x34da   :  { %3147 = vrot.lane.b32.xlu1 %v3145_v26, %s6303_s25 }
0x354c   :  { %v3148_v55 = vpop.permute.xlu1 %3147 }
0x354d   :  { %v3150_v32 = vadd.f32 %v3148_v55, %v3140_v42 }
0x354f   :  { %6077 = vtanh.f32 %v3150_v32 }
0x3550   :  { %6079 = vtanh.f32 %v3288_v61 }
0x3551   :  { %6081 = vtanh.f32 %v3290_v52 }
0x3552   :  { %6083 = vtanh.f32 %v3291_v58 }
0x3553   :  { %6085 = vtanh.f32 %v3295_v44 }
0x3554   :  { %6087 = vtanh.f32 %v3296_v14 }
0x3555   :  { %6089 = vtanh.f32 %v3297_v46  ;;  %v4034_v46 = vld [vmem:[%s8321_s16 + $0x10] sm:$0xff] }
0x3556   :  { %6091 = vtanh.f32 %v3301_v34 }
0x3557   :  { %6093 = vtanh.f32 %v3302_v35  ;;  %v7538_v35 = vadd.f32 %v7068_v37, %v7426_v48 }
0x3558   :  { %6095 = vtanh.f32 %v3303_v36  ;;  %v3300_v36 = vadd.f32 %v7465_v11, %v7430_v39 }
0x3559   :  { %6097 = vtanh.f32 %v3307_v21 }
0x355a   :  { %6099 = vtanh.f32 %v3308_v40 }
0x355b   :  { %6101 = vtanh.f32 %v3309_v33  ;;  %v3305_v33 = vadd.f32 %v7465_v11, %v7538_v35 }
0x355c   :  { %v6078_v43 = vpop.eup %6077 }
0x355d   :  { %3153 = vrot.lane.b32.xlu0 %v6078_v43, %s6302_s6  ;;  %v6080_v56 = vpop.eup %6079 }
0x355e   :  { %v3356_v23 = vmul.f32 %v6080_v56, %v7461_v22  ;;  %v6082_v60 = vpop.eup %6081 }
0x355f   :  { %v3358_v38 = vmul.f32 %v6082_v60, %v7461_v22  ;;  %v6084_v47 = vpop.eup %6083 }
0x3560   :  { %v3386_v0 = vsel %vm97_vm0, %v3356_v23, 0.0  ;;  %v3359_v15 = vmul.f32 %v6084_v47, %v7461_v22  ;;  %v6086_v27 = vpop.eup %6085  ;;  %v4035_v23 = vld [vmem:[%s8321_s16 + $0x18] sm:$0xff]  ;;  %v3289_v47 = vadd.f32 %v7421_v45, %v7452_v62 }
0x3561   :  { %v3392_v17 = vsel %vm97_vm0, %v3358_v38, 0.0  ;;  %v3363_v63 = vmul.f32 %v6086_v27, %v7461_v22  ;;  %v6088_v8 = vpop.eup %6087  ;;  %5790 = vmatpush3.msra.mxu0 %v4035_v23  ;;  %v4032_v38 = vld [vmem:[%s8321_s16] sm:$0xff]  ;;  %v3293_v27 = vadd.f32 %v7421_v45, %v7538_v35 }
0x3562   :  { %v3395_v54 = vsel %vm97_vm0, %v3359_v15, 0.0  ;;  %v3364_v53 = vmul.f32 %v6088_v8, %v7461_v22  ;;  %v6090_v20 = vpop.eup %6089  ;;  %5791 = vmatprep.subr.mxu0 %v6299_v4  ;;  %6103 = vtanh.f32 %v3289_v47  ;;  %v7532_v15 = vadd.f32 %v7426_v48, %v7071_v51 }
0x3563   :  { %v3407_v59 = vsel %vm97_vm0, %v3363_v63, 0.0  ;;  %v3365_v7 = vmul.f32 %v6090_v20, %v7461_v22  ;;  %v6092_v16 = vpop.eup %6091  ;;  %5792 = vmatpush3.msra.mxu0 %v4034_v46  ;;  %v3306_v20 = vadd.f32 %v7481_v31, %v7430_v39 }
0x3564   :  { %v3410_v50 = vsel %vm97_vm0, %v3364_v53, 0.0  ;;  %v3369_v41 = vmul.f32 %v6092_v16, %v7461_v22  ;;  %v6094_v10 = vpop.eup %6093  ;;  %5793 = vmatprep.subr.mxu0 %v6299_v4  ;;  %v3298_v63 = vadd.f32 %v7446_v3, %v7532_v15 }
0x3565   :  { %v3413_v19 = vsel %vm97_vm0, %v3365_v7, 0.0  ;;  %v3370_v24 = vmul.f32 %v6094_v10, %v7461_v22  ;;  %v6096_v5 = vpop.eup %6095 }
0x3566   :  { %v3425_v9 = vsel %vm97_vm0, %v3369_v41, 0.0  ;;  %v3371_v26 = vmul.f32 %v6096_v5, %v7461_v22  ;;  %v6098_v42 = vpop.eup %6097  ;;  %v3310_v5 = vadd.f32 %v7481_v31, %v7532_v15 }
0x3567   :  { %v3428_v25 = vsel %vm97_vm0, %v3370_v24, 0.0  ;;  %v3375_v32 = vmul.f32 %v6098_v42, %v7461_v22  ;;  %v6100_v43 = vpop.eup %6099 }
0x3568   :  { %v3431_v55 = vsel %vm97_vm0, %v3371_v26, 0.0  ;;  %v3376_v52 = vmul.f32 %v6100_v43, %v7461_v22  ;;  %v6102_v58 = vpop.eup %6101 }
0x3569   :  { %v3443_v61 = vsel %vm97_vm0, %v3375_v32, 0.0  ;;  %v3377_v14 = vmul.f32 %v6102_v58, %v7461_v22 }
0x356a   :  { %v3446_v44 = vsel %vm97_vm0, %v3376_v52, 0.0 }
0x356b   :  { %v3449_v56 = vsel %vm97_vm0, %v3377_v14, 0.0 }
0x357c   :  { %3387 = vadd.xlane.f32.xlu0 %v3386_v0  ;;  %v4033_v0 = vld [vmem:[%s8321_s16 + $0x8] sm:$0xff]  ;;  %s6305_s16 = smov [#allocation5]  }
0x357d   :  { %5794 = vmatpush3.msra.mxu0 %v4033_v0  ;;  %s5071_s28 = sshll.u32 %s6305_s16, 4  ;;  %s5072_s28 = int_to_ptr.vmem [resolvable:$true] %s5071_s28 }
0x357e   :  { %5795 = vmatprep.subr.mxu0 %v6299_v4  ;;  %s6277_s15 = scalar_lea.vmem %s5072_s28, 16  ;;  %s6281_s29 = scalar_lea.vmem %s5072_s28, 32 }
0x357f   :  { %5796 = vmatpush3.msra.mxu0 %v4032_v38  ;;  %p6278_p0 = scmp.ne.s32.totalorder %s5072_s28, %s6277_s15  ;;  %p6282_p1 = scmp.lt.s32.totalorder %s5072_s28, %s5072_s28 }
0x3580   :  { %3393 = vadd.xlane.f32.xlu0 %v3392_v17  ;;  %5834 = vmatprep.subr.mxu0 %v6299_v4  ;;  %v3294_v17 = vadd.f32 %v7446_v3, %v7430_v39  ;;  %p6283_p2 = scmp.lt.s32.totalorder %s6281_s29, %s6277_s15 }
0x3582   :  { %6105 = vtanh.f32 %v3294_v17  ;;  %p6284_p3 = por %p6283_p2, %p6282_p1 }
0x3584   :  { %3396 = vadd.xlane.f32.xlu0 %v3395_v54  ;;  %v6104_v54 = vpop.eup %6103  ;;  %p6285_p4 = pnand %p6284_p3, %p6278_p0 }
0x3585   :  { %v3357_v51 = vmul.f32 %v6104_v54, %v7461_v22 }
0x3588   :  { %3408 = vadd.xlane.f32.xlu0 %v3407_v59  ;;  %v3389_v59 = vsel %vm97_vm0, %v3357_v51, 0.0 }
0x358c   :  { %3411 = vadd.xlane.f32.xlu0 %v3410_v50 }
0x358f   :  { %v6106_v8 = vpop.eup %6105 }
0x3590   :  { %3414 = vadd.xlane.f32.xlu0 %v3413_v19  ;;  %v3362_v37 = vmul.f32 %v6106_v8, %v7461_v22 }
0x3592   :  { %v3404_v53 = vsel %vm97_vm0, %v3362_v37, 0.0 }
0x3594   :  { %3426 = vadd.xlane.f32.xlu0 %v3425_v9 }
0x3598   :  { %3429 = vadd.xlane.f32.xlu0 %v3428_v25 }
0x359c   :  { %3432 = vadd.xlane.f32.xlu0 %v3431_v55 }
0x35a0   :  { %3444 = vadd.xlane.f32.xlu0 %v3443_v61 }
0x35a4   :  { %3447 = vadd.xlane.f32.xlu0 %v3446_v44 }
0x35a8   :  { %3450 = vadd.xlane.f32.xlu0 %v3449_v56 }
0x35cf   :  { %v3154_v60 = vpop.permute.xlu0 %3153 }
0x35d0   :  { %v3156_v34 = vmul.f32 %v7409_v18, %v3154_v60  ;;  %v3292_v18 = vadd.f32 %v7421_v45, %v7532_v15  ;;  %v3299_v45 = vadd.f32 %v7446_v3, %v7538_v35  ;;  %v3304_v3 = vadd.f32 %v7465_v11, %v7532_v15 }
0x35d2   :  { %3158 = vrot.lane.b32.xlu1 %v3156_v34, %s6303_s25  ;;  %6107 = vtanh.f32 %v3292_v18 }
0x35d3   :  { %6109 = vtanh.f32 %v3293_v27 }
0x35d4   :  { %6111 = vtanh.f32 %v3300_v36 }
0x35d5   :  { %6113 = vtanh.f32 %v3298_v63  ;;  %v7622_v63 = vld [vmem:[#allocation4] ss:$0 sm:$0xff] }
0x35d6   :  { %6115 = vtanh.f32 %v3299_v45 }
0x35d7   :  { %6117 = vtanh.f32 %v3306_v20 }
0x35d8   :  { %6119 = vtanh.f32 %v3304_v3 }
0x35d9   :  { %6121 = vtanh.f32 %v3305_v33 }
0x35da   :  { %6123 = vtanh.f32 %v3310_v5 }
0x35df   :  { %v6108_v48 = vpop.eup %6107 }
0x35e0   :  { %v3360_v21 = vmul.f32 %v6108_v48, %v7461_v22  ;;  %v6110_v50 = vpop.eup %6109  ;;  %v7631_v48 = vld [vmem:[%s8345_s23] sm:$0xff] }
0x35e1   :  { %v3361_v40 = vmul.f32 %v6110_v50, %v7461_v22  ;;  %v6112_v16 = vpop.eup %6111  ;;  %vm3512_vm2 = vcmp.gt.f32.partialorder %v7631_v48, 0.5 }
0x35e2   :  { %v3398_v7 = vsel %vm97_vm0, %v3360_v21, 0.0  ;;  %v3368_v41 = vmul.f32 %v6112_v16, %v7461_v22  ;;  %v6114_v10 = vpop.eup %6113  ;;  %v7639_v21 = vld [vmem:[%s8345_s23 + $0x8] sm:$0xff]  ;;  %v7651_v16 = vld [vmem:[%s8345_s23 + $0x10] sm:$0xff] }
0x35e3   :  { %v3401_v19 = vsel %vm97_vm0, %v3361_v40, 0.0  ;;  %v3366_v24 = vmul.f32 %v6114_v10, %v7461_v22  ;;  %v6116_v25 = vpop.eup %6115  ;;  %vm3513_vm3 = vcmp.gt.f32.partialorder %v7639_v21, 0.5  ;;  %vm3514_vm5 = vcmp.gt.f32.partialorder %v7651_v16, 0.5 }
0x35e4   :  { %v3422_v9 = vsel %vm97_vm0, %v3368_v41, 0.0  ;;  %v3367_v42 = vmul.f32 %v6116_v25, %v7461_v22  ;;  %v6118_v55 = vpop.eup %6117 }
0x35e5   :  { %v3416_v26 = vsel %vm97_vm0, %v3366_v24, 0.0  ;;  %v3374_v32 = vmul.f32 %v6118_v55, %v7461_v22  ;;  %v6120_v43 = vpop.eup %6119  ;;  %v7663_v24 = vld [vmem:[%s8345_s23 + $0x18] sm:$0xff] }
0x35e6   :  { %v3419_v11 = vsel %vm97_vm0, %v3367_v42, 0.0  ;;  %v3372_v52 = vmul.f32 %v6120_v43, %v7461_v22  ;;  %v6122_v58 = vpop.eup %6121  ;;  %vm3515_vm6 = vcmp.gt.f32.partialorder %v7663_v24, 0.5 }
0x35e7   :  { %v3440_v61 = vsel %vm97_vm0, %v3374_v32, 0.0  ;;  %v3373_v14 = vmul.f32 %v6122_v58, %v7461_v22  ;;  %v6124_v56 = vpop.eup %6123 }
0x35e8   :  { %v3434_v44 = vsel %vm97_vm0, %v3372_v52, 0.0  ;;  %v3378_v46 = vmul.f32 %v6124_v56, %v7461_v22 }
0x35e9   :  { %v3437_v23 = vsel %vm97_vm0, %v3373_v14, 0.0  ;;  %v7684_v14 = vld [vmem:[%s8345_s23 + $0x28] sm:$0xff] }
0x35ea   :  { %v3452_v60 = vsel %vm97_vm0, %v3378_v46, 0.0  ;;  %vm3517_vm8 = vcmp.gt.f32.partialorder %v7684_v14, 0.5 }
0x35f6   :  { %3390 = vadd.xlane.f32.xlu1 %v3389_v59 }
0x35fa   :  { %3405 = vadd.xlane.f32.xlu1 %v3404_v53 }
0x35fe   :  { %3399 = vadd.xlane.f32.xlu1 %v3398_v7 }
0x3602   :  { %3402 = vadd.xlane.f32.xlu1 %v3401_v19 }
0x3606   :  { %3423 = vadd.xlane.f32.xlu1 %v3422_v9 }
0x360a   :  { %3417 = vadd.xlane.f32.xlu1 %v3416_v26 }
0x360e   :  { %3420 = vadd.xlane.f32.xlu1 %v3419_v11  ;;  %v7673_v11 = vld [vmem:[%s8345_s23 + $0x20] sm:$0xff] }
0x360f   :  { %vm3516_vm7 = vcmp.gt.f32.partialorder %v7673_v11, 0.5 }
0x3612   :  { %3441 = vadd.xlane.f32.xlu1 %v3440_v61 }
0x3616   :  { %3435 = vadd.xlane.f32.xlu1 %v3434_v44 }
0x361a   :  { %3438 = vadd.xlane.f32.xlu1 %v3437_v23 }
0x361e   :  { %3453 = vadd.xlane.f32.xlu1 %v3452_v60 }
0x3644   :  { %v3159_v0 = vpop.permute.xlu1 %3158 }
0x3645   :  { %3161 = vst.msk [vmem:[#allocation3 + $0x20] sm:$0xff] %vm97_vm0, %v3159_v0 }
0x364c   :  { %v3166_v38 = vld [vmem:[#allocation3 + $0x20] sm:$0xff] }
0x364d   :  { %v3171_v34 = vadd.f32 %v3166_v38, %v7314_v30  ;;  %v7602_v30 = vpop.xlane.xlu0 %3387 }
0x364f   :  { %5764 = vmatmul.mubr.msk.f32.gmra.mxu0 %vm97_vm0, %v3171_v34 }
0x3650   :  { %5797 = vmatprep.mubr.msk.f32.mxu0 %vm6300_vm1, %v6299_v4 }
0x3653   :  { %5798 = vmatmul.mubr.msk.f32.vlgmr.msra.gmra.mxu0 %vm97_vm0, %v7364_v49  ;;  %v7604_v49 = vpop.xlane.xlu0 %3393 }
0x3654   :  { %5800 = vmatprep.mubr.msk.f32.mxu0 %vm6300_vm1, %v6299_v4 }
0x3657   :  { %5801 = vmatmul.mubr.msk.f32.gmra.mxu0 %vm97_vm0, %v7372_v6  ;;  %v7606_v6 = vpop.xlane.xlu0 %3396 }
0x3658   :  { %5803 = vmatprep.mubr.msk.f32.mxu0 %vm6300_vm1, %v6299_v4 }
0x365b   :  { %5804 = vmatmul.mubr.msk.f32.gmra.mxu0 %vm97_vm0, %v7379_v57  ;;  %v7608_v57 = vpop.xlane.xlu0 %3408 }
0x365c   :  { %5806 = vmatprep.mubr.msk.f32.mxu0 %vm6300_vm1, %v6299_v4 }
0x365f   :  { %5807 = vmatmul.mubr.msk.f32.gmra.mxu0 %vm97_vm0, %v7400_v2  ;;  %v7612_v17 = vpop.xlane.xlu0 %3411 }
0x3660   :  { %5809 = vmatprep.mubr.msk.f32.mxu0 %vm6300_vm1, %v6299_v4 }
0x3663   :  { %5810 = vmatmul.mubr.msk.f32.gmra.mxu0 %vm97_vm0, %v3171_v34  ;;  %v7616_v18 = vpop.xlane.xlu0 %3414 }
0x3664   :  { %5842 = vmatprep.mubr.msk.f32.mxu0 %vm6300_vm1, %v6299_v4 }
0x3667   :  { %v3427_v54 = vpop.xlane.xlu0 %3426 }
0x3668   :  { %v3495_v45 = vadd.f32 %v7622_v63, %v3427_v54 }
0x366a   :  { %v3543_v50 = vsel %vm3513_vm3, %v3495_v45, -1000000.0 }
0x366b   :  { %v3430_v59 = vpop.xlane.xlu0 %3429  ;;  %v3584_v19 = vsel %vm3560_vm4, %v3543_v50, -inf }
0x366c   :  { %v3496_v7 = vadd.f32 %v7622_v63, %v3430_v59 }
0x366e   :  { %v3544_v33 = vsel %vm3514_vm5, %v3496_v7, -1000000.0 }
0x366f   :  { %v3433_v40 = vpop.xlane.xlu0 %3432  ;;  %v3586_v5 = vsel %vm3560_vm4, %v3544_v33, -inf }
0x3670   :  { %v3497_v10 = vadd.f32 %v7622_v63, %v3433_v40 }
0x3672   :  { %v3545_v26 = vsel %vm3515_vm6, %v3497_v10, -1000000.0 }
0x3673   :  { %v3588_v43 = vsel %vm3560_vm4, %v3545_v26, -inf }
0x367f   :  { %v7610_v47 = vpop.xlane.xlu1 %3390 }
0x3683   :  { %v7614_v2 = vpop.xlane.xlu1 %3405 }
0x3687   :  { %v7618_v27 = vpop.xlane.xlu1 %3399 }
0x368b   :  { %v7620_v36 = vpop.xlane.xlu1 %3402 }
0x368f   :  { %v3424_v51 = vpop.xlane.xlu1 %3423 }
0x3690   :  { %v3494_v8 = vadd.f32 %v7622_v63, %v3424_v51 }
0x3692   :  { %v3542_v53 = vsel %vm3512_vm2, %v3494_v8, -1000000.0 }
0x3693   :  { %v7625_v37 = vpop.xlane.xlu1 %3417  ;;  %v3583_v3 = vsel %vm3560_vm4, %v3542_v53, -inf }
0x3694   :  { %v3585_v9 = vmax.f32 %v3583_v3, %v3584_v19 }
0x3696   :  { %v3587_v42 = vmax.f32 %v3585_v9, %v3586_v5 }
0x3697   :  { %v7642_v20 = vpop.xlane.xlu1 %3420 }
0x3698   :  { %v3589_v58 = vmax.f32 %v3587_v42, %v3588_v43 }
0x369b   :  { %v7655_v41 = vpop.xlane.xlu1 %3441 }
0x369f   :  { %v3436_v25 = vpop.xlane.xlu1 %3435 }
0x36a0   :  { %v3498_v55 = vadd.f32 %v7622_v63, %v3436_v25 }
0x36a2   :  { %v3546_v32 = vsel %vm3516_vm7, %v3498_v55, -1000000.0 }
0x36a3   :  { %v3590_v61 = vsel %vm3560_vm4, %v3546_v32, -inf  ;;  %v3439_v52 = vpop.xlane.xlu1 %3438 }
0x36a4   :  { %v3499_v44 = vadd.f32 %v7622_v63, %v3439_v52  ;;  %v3591_v56 = vmax.f32 %v3589_v58, %v3590_v61 }
0x36a6   :  { %v3547_v23 = vsel %vm3517_vm8, %v3499_v44, -1000000.0 }
0x36a7   :  { %v3592_v46 = vsel %vm3560_vm4, %v3547_v23, -inf }
0x36a8   :  { %v3593_v60 = vmax.f32 %v3591_v56, %v3592_v46 }
0x36aa   :  { %v3628_v0 = vsub.f32 %v3542_v53, %v3593_v60  ;;  %v3629_v38 = vsub.f32 %v3543_v50, %v3593_v60  ;;  %v3630_v34 = vsub.f32 %v3544_v33, %v3593_v60  ;;  %v3631_v54 = vsub.f32 %v3545_v26, %v3593_v60 }
0x36ab   :  { %v3632_v51 = vsub.f32 %v3546_v32, %v3593_v60  ;;  %v3633_v45 = vsub.f32 %v3547_v23, %v3593_v60 }
0x36ac   :  { %v3670_v8 = vmul.f32 1.442695, %v3628_v0  ;;  %v3672_v59 = vmul.f32 1.442695, %v3629_v38  ;;  %v3674_v7 = vmul.f32 1.442695, %v3630_v34  ;;  %v3483_v0 = vadd.f32 %v7622_v63, %v7610_v47 }
0x36ad   :  { %v3676_v40 = vmul.f32 1.442695, %v3631_v54  ;;  %v3678_v3 = vmul.f32 1.442695, %v3632_v51  ;;  %v3680_v19 = vmul.f32 1.442695, %v3633_v45  ;;  %v3482_v38 = vadd.f32 %v7622_v63, %v7602_v30 }
0x36ae   :  { %6125 = vpow2.f32 %v3670_v8  ;;  %v3531_v34 = vsel %vm3513_vm3, %v3483_v0, -1000000.0  ;;  %v3484_v51 = vadd.f32 %v7622_v63, %v7604_v49  ;;  %v3485_v47 = vadd.f32 %v7622_v63, %v7606_v6 }
0x36af   :  { %6127 = vpow2.f32 %v3672_v59  ;;  %v3530_v54 = vsel %vm3512_vm2, %v3482_v38, -1000000.0  ;;  %v3562_v8 = vsel %vm3560_vm4, %v3531_v34, -inf  ;;  %v3487_v49 = vadd.f32 %v7622_v63, %v7620_v36 }
0x36b0   :  { %6129 = vpow2.f32 %v3674_v7  ;;  %v3561_v59 = vsel %vm3560_vm4, %v3530_v54, -inf  ;;  %v3532_v45 = vsel %vm3514_vm5, %v3484_v51, -1000000.0  ;;  %v3486_v7 = vadd.f32 %v7622_v63, %v7618_v27 }
0x36b1   :  { %6131 = vpow2.f32 %v3676_v40  ;;  %v3563_v30 = vmax.f32 %v3561_v59, %v3562_v8  ;;  %v3488_v40 = vadd.f32 %v7622_v63, %v7614_v2  ;;  %v3535_v2 = vsel %vm3517_vm8, %v3487_v49, -1000000.0 }
0x36b2   :  { %6133 = vpow2.f32 %v3678_v3  ;;  %v3564_v3 = vsel %vm3560_vm4, %v3532_v45, -inf  ;;  %v3534_v6 = vsel %vm3516_vm7, %v3486_v7, -1000000.0  ;;  %v3493_v0 = vadd.f32 %v7622_v63, %v7642_v20 }
0x36b3   :  { %6135 = vpow2.f32 %v3680_v19  ;;  %v3533_v19 = vsel %vm3515_vm6, %v3485_v47, -1000000.0  ;;  %v3536_v27 = vsel %vm3512_vm2, %v3488_v40, -1000000.0 }
0x36b4   :  { %v3566_v36 = vsel %vm3560_vm4, %v3533_v19, -inf }
0x36bb   :  { %v7690_v10 = vpop.eup %6125 }
0x36bc   :  { %v7692_v53 = vpop.eup %6127  ;;  %v3728_v50 = vsel %vm3560_vm4, %v7690_v10, 0.0 }
0x36bd   :  { %v3729_v33 = vsel %vm3560_vm4, %v7692_v53, 0.0  ;;  %v7698_v9 = vpop.eup %6129 }
0x36be   :  { %v3730_v5 = vadd.f32 %v3729_v33, %v3728_v50  ;;  %v7700_v25 = vpop.eup %6131  ;;  %v3731_v26 = vsel %vm3560_vm4, %v7698_v9, 0.0  ;;  %v3489_v50 = vadd.f32 %v7622_v63, %v7608_v57  ;;  %v3565_v33 = vmax.f32 %v3563_v30, %v3564_v3 }
0x36bf   :  { %v6134_v42 = vpop.eup %6133  ;;  %v3733_v32 = vsel %vm3560_vm4, %v7700_v25, 0.0  ;;  %v7775_v30 = vsel %vm3517_vm8, %v3493_v0, -1000000.0 }
0x36c0   :  { %v3732_v55 = vadd.f32 %v3731_v26, %v3730_v5  ;;  %v6136_v43 = vpop.eup %6135  ;;  %v3735_v52 = vsel %vm3560_vm4, %v6134_v42, 0.0  ;;  %v3490_v5 = vadd.f32 %v7622_v63, %v7612_v17  ;;  %v3568_v26 = vsel %vm3560_vm4, %v3534_v6, -inf }
0x36c1   :  { %v3737_v44 = vsel %vm3560_vm4, %v6136_v43, 0.0  ;;  %v3537_v57 = vsel %vm3513_vm3, %v3489_v50, -1000000.0 }
0x36c2   :  { %v3734_v61 = vadd.f32 %v3733_v32, %v3732_v55  ;;  %v3572_v55 = vsel %vm3560_vm4, %v3536_v27, -inf  ;;  %v3570_v32 = vsel %vm3560_vm4, %v3535_v2, -inf }
0x36c4   :  { %v3736_v58 = vadd.f32 %v3735_v52, %v3734_v61  ;;  %v3573_v61 = vsel %vm3560_vm4, %v3537_v57, -inf  ;;  %v3538_v52 = vsel %vm3514_vm5, %v3490_v5, -1000000.0 }
0x36c5   :  { %v3574_v17 = vmax.f32 %v3572_v55, %v3573_v61  ;;  %v3575_v38 = vsel %vm3560_vm4, %v3538_v52, -inf  ;;  %v3311_v55 = vadd.f32 %v7481_v31, %v7538_v35 }
0x36c6   :  { %v3738_v56 = vadd.f32 %v3737_v44, %v3736_v58  ;;  %v3491_v58 = vadd.f32 %v7622_v63, %v7616_v18 }
0x36c7   :  { %v3576_v8 = vmax.f32 %v3574_v17, %v3575_v38 }
0x36c8   :  { %6137 = vrcp.f32 %v3738_v56  ;;  %v3492_v56 = vadd.f32 %v7622_v63, %v7625_v37  ;;  %v3539_v51 = vsel %vm3515_vm6, %v3491_v58, -1000000.0 }
0x36c9   :  { %v3577_v37 = vsel %vm3560_vm4, %v3539_v51, -inf }
0x36ca   :  { %v7771_v47 = vsel %vm3516_vm7, %v3492_v56, -1000000.0  ;;  %v3578_v40 = vmax.f32 %v3576_v8, %v3577_v37 }
0x36cb   :  { %v3579_v20 = vsel %vm3560_vm4, %v7771_v47, -inf }
0x36cc   :  { %v3580_v3 = vmax.f32 %v3578_v40, %v3579_v20 }
0x36d5   :  { %v7708_v23 = vpop.eup %6137 }
0x36d6   :  { %v7711_v46 = vmul.f32 %v7708_v23, %v6134_v42  ;;  %v7714_v60 = vmul.f32 %v7708_v23, %v6136_v43  ;;  %v3567_v42 = vmax.f32 %v3565_v33, %v3566_v36 }
0x36d8   :  { %v3569_v43 = vmax.f32 %v3567_v42, %v3568_v26 }
0x36da   :  { %v3571_v44 = vmax.f32 %v3569_v43, %v3570_v32 }
0x36dc   :  { %v3616_v59 = vsub.f32 %v3530_v54, %v3571_v44  ;;  %v3617_v18 = vsub.f32 %v3531_v34, %v3571_v44  ;;  %v3581_v54 = vsel %vm3560_vm4, %v7775_v30, -inf  ;;  %v3618_v50 = vsub.f32 %v3532_v45, %v3571_v44 }
0x36dd   :  { %v7782_v33 = vmax.f32 %v3580_v3, %v3581_v54  ;;  %v3619_v34 = vsub.f32 %v3533_v19, %v3571_v44  ;;  %v3620_v42 = vsub.f32 %v3534_v6, %v3571_v44  ;;  %v3621_v32 = vsub.f32 %v3535_v2, %v3571_v44 }
0x36de   :  { %v3646_v7 = vmul.f32 1.442695, %v3616_v59  ;;  %v3648_v49 = vmul.f32 1.442695, %v3617_v18  ;;  %v3650_v36 = vmul.f32 1.442695, %v3618_v50 }
0x36df   :  { %v3622_v5 = vsub.f32 %v3536_v27, %v7782_v33  ;;  %v3623_v26 = vsub.f32 %v3537_v57, %v7782_v33  ;;  %v3652_v43 = vmul.f32 1.442695, %v3619_v34  ;;  %v3654_v45 = vmul.f32 1.442695, %v3620_v42 }
0x36e0   :  { %6139 = vpow2.f32 %v3646_v7  ;;  %v3656_v17 = vmul.f32 1.442695, %v3621_v32  ;;  %v3624_v19 = vsub.f32 %v3538_v52, %v7782_v33  ;;  %v3625_v52 = vsub.f32 %v3539_v51, %v7782_v33 }
0x36e1   :  { %6141 = vpow2.f32 %v3648_v49  ;;  %v3658_v61 = vmul.f32 1.442695, %v3622_v5  ;;  %v3660_v58 = vmul.f32 1.442695, %v3623_v26  ;;  %v3626_v51 = vsub.f32 %v7771_v47, %v7782_v33 }
0x36e2   :  { %6143 = vpow2.f32 %v3650_v36  ;;  %v3662_v38 = vmul.f32 1.442695, %v3624_v19  ;;  %v3664_v7 = vmul.f32 1.442695, %v3625_v52  ;;  %v3627_v5 = vsub.f32 %v7775_v30, %v7782_v33 }
0x36e3   :  { %6145 = vtanh.f32 %v3311_v55  ;;  %v3666_v47 = vmul.f32 1.442695, %v3626_v51 }
0x36e4   :  { %6147 = vpow2.f32 %v3652_v43  ;;  %v3668_v30 = vmul.f32 1.442695, %v3627_v5 }
0x36e5   :  { %6149 = vpow2.f32 %v3658_v61 }
0x36e6   :  { %6151 = vpow2.f32 %v3660_v58 }
0x36e7   :  { %6153 = vpow2.f32 %v3654_v45 }
0x36e8   :  { %6155 = vpow2.f32 %v3656_v17 }
0x36ed   :  { %v7790_v57 = vpop.eup %6139 }
0x36ee   :  { %v7792_v31 = vpop.eup %6141  ;;  %v3706_v59 = vsel %vm3560_vm4, %v7790_v57, 0.0 }
0x36ef   :  { %v3707_v18 = vsel %vm3560_vm4, %v7792_v31, 0.0  ;;  %v7810_v49 = vpop.eup %6143 }
0x36f0   :  { %v3708_v54 = vadd.f32 %v3707_v18, %v3706_v59  ;;  %v6146_v34 = vpop.eup %6145  ;;  %v3709_v36 = vsel %vm3560_vm4, %v7810_v49, 0.0 }
0x36f1   :  { %v7819_v42 = vpop.eup %6147 }
0x36f2   :  { %v3710_v55 = vadd.f32 %v3709_v36, %v3708_v54  ;;  %v7821_v32 = vpop.eup %6149  ;;  %v3711_v45 = vsel %vm3560_vm4, %v7819_v42, 0.0 }
0x36f3   :  { %v7823_v61 = vpop.eup %6151 }
0x36f4   :  { %v7825_v58 = vpop.eup %6153  ;;  %v3712_v19 = vadd.f32 %v3711_v45, %v3710_v55 }
0x36f5   :  { %v7831_v17 = vpop.eup %6155 }
0x370f   :  { %v3284_v56 = vpop.f32.mrf.mxu0 }
0x3710   :  { %v3285_v27 = vadd.f32 %v7417_v28, %v3284_v56 }
0x3711   :  { %v5765_v6 = vpop.f32.mrf.mxu0 }
0x3712   :  { %v3312_v2 = vadd.f32 %v3285_v27, %v7430_v39  ;;  %v3313_v44 = vadd.f32 %v3285_v27, %v7452_v62  ;;  %v3314_v0 = vadd.f32 %v3285_v27, %v7436_v29  ;;  %v3316_v28 = vadd.f32 %v3285_v27, %v7532_v15 }
0x3713   :  { %v7798_v8 = vpop.f32.mrf.mxu0  ;;  %v3315_v20 = vadd.f32 %v3285_v27, %v7442_v1  ;;  %v3317_v50 = vadd.f32 %v3285_v27, %v7538_v35  ;;  %v3717_v27 = vsel %vm3560_vm4, %v7821_v32, 0.0  ;;  %v3718_v6 = vsel %vm3560_vm4, %v7823_v61, 0.0 }
0x3714   :  { %6157 = vtanh.f32 %v3312_v2 }
0x3715   :  { %v5799_v37 = vpop.f32.mrf.mxu0  ;;  %6159 = vtanh.f32 %v3313_v44 }
0x3716   :  { %6161 = vtanh.f32 %v3314_v0 }
0x3717   :  { %6163 = vpow2.f32 %v3662_v38  ;;  %v7808_v40 = vpop.f32.mrf.mxu0  ;;  %v3713_v38 = vsel %vm3560_vm4, %v7825_v58, 0.0 }
0x3718   :  { %6165 = vtanh.f32 %v3316_v28  ;;  %v3714_v37 = vadd.f32 %v3713_v38, %v3712_v19 }
0x3719   :  { %v5802_v3 = vpop.f32.mrf.mxu0  ;;  %6167 = vtanh.f32 %v3315_v20  ;;  %v3719_v20 = vadd.f32 %v3718_v6, %v3717_v27 }
0x371a   :  { %6169 = vpow2.f32 %v3664_v7  ;;  %v3379_v7 = vmul.f32 %v6146_v34, %v7461_v22 }
0x371b   :  { %v7817_v26 = vpop.f32.mrf.mxu0  ;;  %6171 = vtanh.f32 %v3317_v50 }
0x371c   :  { %6173 = vpow2.f32 %v3666_v47  ;;  %v3715_v47 = vsel %vm3560_vm4, %v7831_v17, 0.0  ;;  %v3455_v19 = vsel %vm97_vm0, %v3379_v7, 0.0 }
0x371d   :  { %v5805_v43 = vpop.f32.mrf.mxu0  ;;  %6175 = vpow2.f32 %v3668_v30  ;;  %v3716_v45 = vadd.f32 %v3715_v47, %v3714_v37 }
0x371f   :  { %v7829_v33 = vpop.f32.mrf.mxu0  ;;  %6177 = vrcp.f32 %v3716_v45 }
0x3721   :  { %v6158_v56 = vpop.eup %6157  ;;  %v5808_v2 = vpop.f32.mrf.mxu0 }
0x3722   :  { %v6160_v44 = vpop.eup %6159  ;;  %v3380_v0 = vmul.f32 %v6158_v56, %v7461_v22 }
0x3723   :  { %v6162_v52 = vpop.eup %6161  ;;  %v7840_v28 = vpop.f32.mrf.mxu0  ;;  %v3381_v59 = vmul.f32 %v6160_v44, %v7461_v22 }
0x3724   :  { %v6164_v18 = vpop.eup %6163  ;;  %v3458_v51 = vsel %vm97_vm0, %v3380_v0, 0.0  ;;  %v3382_v36 = vmul.f32 %v6162_v52, %v7461_v22 }
0x3725   :  { %v6166_v54 = vpop.eup %6165  ;;  %v5811_v3 = vpop.f32.mrf.mxu0  ;;  %3459 = vadd.xlane.f32.xlu1 %v3458_v51  ;;  %v3461_v50 = vsel %vm97_vm0, %v3381_v59, 0.0  ;;  %v3720_v55 = vsel %vm3560_vm4, %v6164_v18, 0.0 }
0x3726   :  { %v6168_v5 = vpop.eup %6167  ;;  %3462 = vadd.xlane.f32.xlu0 %v3461_v50  ;;  %v3721_v30 = vadd.f32 %v3720_v55, %v3719_v20  ;;  %v3384_v34 = vmul.f32 %v6166_v54, %v7461_v22  ;;  %v3464_v56 = vsel %vm97_vm0, %v3382_v36, 0.0 }
0x3727   :  { %v6170_v43 = vpop.eup %6169  ;;  %v3383_v27 = vmul.f32 %v6168_v5, %v7461_v22 }
0x3728   :  { %v6172_v6 = vpop.eup %6171  ;;  %v3722_v2 = vsel %vm3560_vm4, %v6170_v43, 0.0  ;;  %v3470_v52 = vsel %vm97_vm0, %v3384_v34, 0.0 }
0x3729   :  { %3456 = vadd.xlane.f32.xlu1 %v3455_v19  ;;  %v6174_v44 = vpop.eup %6173  ;;  %v3723_v0 = vadd.f32 %v3722_v2, %v3721_v30  ;;  %v3467_v38 = vsel %vm97_vm0, %v3383_v27, 0.0  ;;  %v3385_v59 = vmul.f32 %v6172_v6, %v7461_v22 }
0x372a   :  { %3465 = vadd.xlane.f32.xlu0 %v3464_v56  ;;  %v3724_v37 = vsel %vm3560_vm4, %v6174_v44, 0.0  ;;  %v6176_v20 = vpop.eup %6175 }
0x372b   :  { %v3725_v51 = vadd.f32 %v3724_v37, %v3723_v0  ;;  %v3473_v7 = vsel %vm97_vm0, %v3385_v59, 0.0  ;;  %v3726_v54 = vsel %vm3560_vm4, %v6176_v20, 0.0 }
0x372c   :  { %v6178_v50 = vpop.eup %6177 }
0x372d   :  { %3471 = vadd.xlane.f32.xlu1 %v3470_v52  ;;  %v3727_v3 = vadd.f32 %v3726_v54, %v3725_v51  ;;  %v3766_v36 = vmul.f32 %v6178_v50, %v7790_v57  ;;  %v3768_v5 = vmul.f32 %v6178_v50, %v7810_v49  ;;  %v3769_v22 = vmul.f32 %v6178_v50, %v7819_v42 }
0x372e   :  { %3468 = vadd.xlane.f32.xlu0 %v3467_v38  ;;  %v3767_v55 = vmul.f32 %v6178_v50, %v7792_v31  ;;  %v3770_v57 = vmul.f32 %v6178_v50, %v7825_v58  ;;  %v3771_v42 = vmul.f32 %v6178_v50, %v7831_v17  ;;  %v3779_v31 = vmul.f32 %v7708_v23, %v7692_v53 }
0x372f   :  { %6179 = vrcp.f32 %v3727_v3  ;;  %v3781_v58 = vmul.f32 %v7708_v23, %v7700_v25  ;;  %v3500_v53 = vadd.f32 %v7622_v63, %v7655_v41 }
0x3731   :  { %v3548_v56 = vsel %vm3512_vm2, %v3500_v53, -1000000.0 }
0x3732   :  { %3474 = vadd.xlane.f32.xlu0 %v3473_v7  ;;  %v3594_v25 = vsel %vm3560_vm4, %v3548_v56, -inf }
0x373c   :  { %v6180_v47 = vpop.eup %6179 }
0x373d   :  { %v3773_v45 = vmul.f32 %v6180_v47, %v7823_v61  ;;  %v3772_v30 = vmul.f32 %v6180_v47, %v7821_v32  ;;  %v3774_v19 = vmul.f32 %v6180_v47, %v6164_v18  ;;  %v3775_v49 = vmul.f32 %v6180_v47, %v6170_v43  ;;  %v3445_v43 = vpop.xlane.xlu0 %3444 }
0x373e   :  { %3798 = vperm.xlu1 %5901, %v3766_v36   ;;  %v3778_v61 = vmul.f32 %v7708_v23, %v7690_v10  ;;  %v3780_v32 = vmul.f32 %v7708_v23, %v7698_v9  ;;  %v3776_v18 = vmul.f32 %v6180_v47, %v6174_v44  ;;  %v3777_v17 = vmul.f32 %v6180_v47, %v6176_v20  ;;  %v3454_v23 = vpop.xlane.xlu1 %3453 }
0x373f   :  { %v3501_v10 = vadd.f32 %v7622_v63, %v3445_v43  ;;  %v3504_v52 = vadd.f32 %v7622_v63, %v3454_v23 }
0x3741   :  { %v3448_v34 = vpop.xlane.xlu0 %3447  ;;  %v3549_v9 = vsel %vm3513_vm3, %v3501_v10, -1000000.0  ;;  %v3552_v51 = vsel %vm3516_vm7, %v3504_v52, -1000000.0 }
0x3742   :  { %3808 = vperm.xlu1 %5901, %v3768_v5   ;;  %v3502_v27 = vadd.f32 %v7622_v63, %v3448_v34  ;;  %v3595_v2 = vsel %vm3560_vm4, %v3549_v9, -inf  ;;  %v3601_v36 = vsel %vm3560_vm4, %v3552_v51, -inf }
0x3743   :  { %v3596_v0 = vmax.f32 %v3594_v25, %v3595_v2 }
0x3744   :  { %v3550_v41 = vsel %vm3514_vm5, %v3502_v27, -1000000.0 }
0x3745   :  { %v3451_v6 = vpop.xlane.xlu0 %3450  ;;  %v3597_v38 = vsel %vm3560_vm4, %v3550_v41, -inf }
0x3746   :  { %3813 = vperm.xlu1 %5901, %v3769_v22   ;;  %v3503_v44 = vadd.f32 %v7622_v63, %v3451_v6  ;;  %v3598_v20 = vmax.f32 %v3596_v0, %v3597_v38 }
0x3748   :  { %3803 = vperm.xlu0 %5902, %v3767_v55   ;;  %v3551_v37 = vsel %vm3515_vm6, %v3503_v44, -1000000.0 }
0x3749   :  { %v3599_v50 = vsel %vm3560_vm4, %v3551_v37, -inf }
0x374a   :  { %3833 = vperm.xlu1 %5901, %v3773_v45   ;;  %v3600_v22 = vmax.f32 %v3598_v20, %v3599_v50 }
0x374c   :  { %3828 = vperm.xlu0 %5902, %v3772_v30  }
0x374e   :  { %3838 = vperm.xlu1 %5901, %v3774_v19  }
0x3750   :  { %3818 = vperm.xlu0 %5902, %v3770_v57   ;;  %v3602_v57 = vmax.f32 %v3600_v22, %v3601_v36 }
0x3752   :  { %3843 = vperm.xlu1 %5901, %v3775_v49  }
0x3754   :  { %3823 = vperm.xlu0 %5902, %v3771_v42  }
0x3756   :  { %3863 = vperm.xlu1 %5901, %v3779_v31  }
0x3758   :  { %3858 = vperm.xlu0 %5902, %v3778_v61  }
0x375a   :  { %3868 = vperm.xlu1 %5901, %v3780_v32  }
0x375c   :  { %3848 = vperm.xlu0 %5902, %v3776_v18  }
0x375e   :  { %3873 = vperm.xlu1 %5901, %v3781_v58  }
0x3760   :  { %3853 = vperm.xlu0 %5902, %v3777_v17  }
0x37ae   :  { %v3460_v59 = vpop.xlane.xlu1 %3459 }
0x37af   :  { %v3463_v7 = vpop.xlane.xlu0 %3462  ;;  %v3506_v54 = vadd.f32 %v7622_v63, %v3460_v59 }
0x37b0   :  { %v3507_v3 = vadd.f32 %v7622_v63, %v3463_v7 }
0x37b1   :  { %v3554_v45 = vsel %vm3512_vm2, %v3506_v54, -1000000.0 }
0x37b2   :  { %v3457_v5 = vpop.xlane.xlu1 %3456  ;;  %v3555_v30 = vsel %vm3513_vm3, %v3507_v3, -1000000.0  ;;  %v3605_v32 = vsel %vm3560_vm4, %v3554_v45, -inf }
0x37b3   :  { %v3505_v47 = vadd.f32 %v7622_v63, %v3457_v5  ;;  %v3466_v55 = vpop.xlane.xlu0 %3465  ;;  %v3606_v48 = vsel %vm3560_vm4, %v3555_v30, -inf }
0x37b4   :  { %v3508_v19 = vadd.f32 %v7622_v63, %v3466_v55  ;;  %v3607_v6 = vmax.f32 %v3605_v32, %v3606_v48 }
0x37b5   :  { %v3553_v49 = vsel %vm3517_vm8, %v3505_v47, -1000000.0 }
0x37b6   :  { %v3603_v42 = vsel %vm3560_vm4, %v3553_v49, -inf  ;;  %v3556_v31 = vsel %vm3514_vm5, %v3508_v19, -1000000.0  ;;  %v3472_v61 = vpop.xlane.xlu1 %3471 }
0x37b7   :  { %v3604_v18 = vmax.f32 %v3602_v57, %v3603_v42  ;;  %v3469_v58 = vpop.xlane.xlu0 %3468  ;;  %v3608_v21 = vsel %vm3560_vm4, %v3556_v31, -inf  ;;  %v3510_v17 = vadd.f32 %v7622_v63, %v3472_v61 }
0x37b8   :  { %v3509_v43 = vadd.f32 %v7622_v63, %v3469_v58  ;;  %v3609_v59 = vmax.f32 %v3607_v6, %v3608_v21 }
0x37b9   :  { %v3634_v53 = vsub.f32 %v3548_v56, %v3604_v18  ;;  %v3635_v34 = vsub.f32 %v3549_v9, %v3604_v18  ;;  %v3636_v10 = vsub.f32 %v3550_v41, %v3604_v18  ;;  %v3637_v27 = vsub.f32 %v3551_v37, %v3604_v18 }
0x37ba   :  { %v3638_v16 = vsub.f32 %v3552_v51, %v3604_v18  ;;  %v3557_v25 = vsel %vm3515_vm6, %v3509_v43, -1000000.0  ;;  %v3639_v23 = vsub.f32 %v3553_v49, %v3604_v18  ;;  %v3558_v20 = vsel %vm3516_vm7, %v3510_v17, -1000000.0 }
0x37bb   :  { %v3682_v2 = vmul.f32 1.442695, %v3634_v53  ;;  %v3684_v44 = vmul.f32 1.442695, %v3635_v34  ;;  %v3686_v0 = vmul.f32 1.442695, %v3636_v10  ;;  %v3475_v52 = vpop.xlane.xlu0 %3474 }
0x37bc   :  { %v3688_v38 = vmul.f32 1.442695, %v3637_v27  ;;  %v3511_v56 = vadd.f32 %v7622_v63, %v3475_v52  ;;  %v3610_v9 = vsel %vm3560_vm4, %v3557_v25, -inf  ;;  %v3690_v41 = vmul.f32 1.442695, %v3638_v16 }
0x37bd   :  { %6181 = vpow2.f32 %v3682_v2  ;;  %v3611_v37 = vmax.f32 %v3609_v59, %v3610_v9  ;;  %v3692_v51 = vmul.f32 1.442695, %v3639_v23  ;;  %v3612_v7 = vsel %vm3560_vm4, %v3558_v20, -inf  ;;  %v3799_v2 = vpop.permute.xlu1 %3798 }
0x37be   :  { %6183 = vpow2.f32 %v3684_v44  ;;  %v3559_v24 = vsel %vm3517_vm8, %v3511_v56, -1000000.0 }
0x37bf   :  { %6185 = vpow2.f32 %v3686_v0  ;;  %v3614_v54 = vsel %vm3560_vm4, %v3559_v24, -inf  ;;  %v3613_v11 = vmax.f32 %v3611_v37, %v3612_v7 }
0x37c0   :  { %6187 = vpow2.f32 %v3688_v38 }
0x37c1   :  { %6189 = vpow2.f32 %v3690_v41  ;;  %v3615_v3 = vmax.f32 %v3613_v11, %v3614_v54 }
0x37c2   :  { %6191 = vpow2.f32 %v3692_v51  ;;  %v3809_v51 = vpop.permute.xlu1 %3808 }
0x37c3   :  { %v3640_v63 = vsub.f32 %v3554_v45, %v3615_v3  ;;  %v3641_v50 = vsub.f32 %v3555_v30, %v3615_v3  ;;  %v3642_v36 = vsub.f32 %v3556_v31, %v3615_v3  ;;  %v3643_v5 = vsub.f32 %v3557_v25, %v3615_v3  ;;  %v3804_v6 = vpop.permute.xlu0 %3803 }
0x37c4   :  { %v3644_v22 = vsub.f32 %v3558_v20, %v3615_v3  ;;  %v3645_v19 = vsub.f32 %v3559_v24, %v3615_v3 }
0x37c5   :  { %v3694_v47 = vmul.f32 1.442695, %v3640_v63  ;;  %v3696_v55 = vmul.f32 1.442695, %v3641_v50  ;;  %v3698_v14 = vmul.f32 1.442695, %v3642_v36 }
0x37c6   :  { %v3700_v57 = vmul.f32 1.442695, %v3643_v5  ;;  %v3702_v49 = vmul.f32 1.442695, %v3644_v22  ;;  %v3704_v48 = vmul.f32 1.442695, %v3645_v19  ;;  %v3814_v5 = vpop.permute.xlu1 %3813 }
0x37c7   :  { %6193 = vpow2.f32 %v3694_v47  ;;  %v3829_v9 = vpop.permute.xlu0 %3828 }
0x37c8   :  { %6195 = vpow2.f32 %v3696_v55 }
0x37c9   :  { %6197 = vpow2.f32 %v3698_v14 }
0x37ca   :  { %v6182_v42 = vpop.eup %6181  ;;  %6199 = vpow2.f32 %v3700_v57  ;;  %v3834_v19 = vpop.permute.xlu1 %3833 }
0x37cb   :  { %v6184_v61 = vpop.eup %6183  ;;  %v3739_v32 = vsel %vm3560_vm4, %v6182_v42, 0.0  ;;  %6201 = vpow2.f32 %v3702_v49  ;;  %v3819_v50 = vpop.permute.xlu0 %3818 }
0x37cc   :  { %v6186_v45 = vpop.eup %6185  ;;  %v3740_v30 = vsel %vm3560_vm4, %v6184_v61, 0.0  ;;  %6203 = vpow2.f32 %v3704_v48 }
0x37cd   :  { %v6188_v31 = vpop.eup %6187  ;;  %v3741_v18 = vadd.f32 %v3740_v30, %v3739_v32  ;;  %v3742_v58 = vsel %vm3560_vm4, %v6186_v45, 0.0  ;;  %v3947_v30 = vmul.f32 %v3804_v6, %v7452_v62 }
0x37ce   :  { %v6190_v21 = vpop.eup %6189  ;;  %v3744_v53 = vsel %vm3560_vm4, %v6188_v31, 0.0  ;;  %v3839_v32 = vpop.permute.xlu1 %3838 }
0x37cf   :  { %v3743_v17 = vadd.f32 %v3742_v58, %v3741_v18  ;;  %v7929_v43 = vpop.eup %6191  ;;  %v3746_v10 = vsel %vm3560_vm4, %v6190_v21, 0.0  ;;  %v3824_v47 = vpop.permute.xlu0 %3823 }
0x37d0   :  { %v3748_v16 = vsel %vm3560_vm4, %v7929_v43, 0.0 }
0x37d1   :  { %v3745_v34 = vadd.f32 %v3744_v53, %v3743_v17  ;;  %v3953_v53 = vmul.f32 %v3834_v19, %v7452_v62 }
0x37d3   :  { %v3747_v27 = vadd.f32 %v3746_v10, %v3745_v34  ;;  %v7950_v49 = vpop.permute.xlu0 %3858  ;;  %v3844_v34 = vpop.permute.xlu1 %3843 }
0x37d4   :  { %v6194_v25 = vpop.eup %6193 }
0x37d5   :  { %v3749_v23 = vadd.f32 %v3748_v16, %v3747_v27  ;;  %v6196_v44 = vpop.eup %6195  ;;  %v3750_v0 = vsel %vm3560_vm4, %v6194_v25, 0.0 }
0x37d6   :  { %v6198_v52 = vpop.eup %6197  ;;  %v3751_v38 = vsel %vm3560_vm4, %v6196_v44, 0.0 }
0x37d7   :  { %6205 = vrcp.f32 %v3749_v23  ;;  %v7937_v59 = vpop.eup %6199  ;;  %v3752_v20 = vadd.f32 %v3751_v38, %v3750_v0  ;;  %v3753_v56 = vsel %vm3560_vm4, %v6198_v52, 0.0  ;;  %v3949_v38 = vmul.f32 %v3814_v5, %v7442_v1 }
0x37d8   :  { %v7940_v41 = vpop.eup %6201  ;;  %v3755_v24 = vsel %vm3560_vm4, %v7937_v59, 0.0 }
0x37d9   :  { %v3754_v37 = vadd.f32 %v3753_v56, %v3752_v20  ;;  %v7944_v7 = vpop.eup %6203  ;;  %v3757_v11 = vsel %vm3560_vm4, %v7940_v41, 0.0  ;;  %v3950_v56 = vmul.f32 %v3819_v50, %v7532_v15  ;;  %v4038_v50 = vld [vmem:[%s8322_s17 + $0x10] sm:$0xff] }
0x37da   :  { %v3759_v63 = vsel %vm3560_vm4, %v7944_v7, 0.0 }
0x37db   :  { %v3756_v54 = vadd.f32 %v3755_v24, %v3754_v37 }
0x37dd   :  { %v3758_v3 = vadd.f32 %v3757_v11, %v3756_v54  ;;  %v3951_v54 = vmul.f32 %v3824_v47, %v7538_v35 }
0x37df   :  { %v3760_v36 = vadd.f32 %v3759_v63, %v3758_v3  ;;  %v4039_v3 = vld [vmem:[%s8322_s17 + $0x18] sm:$0xff] }
0x37e0   :  { %5767 = vmatpush3.msra.mxu1 %v4039_v3 }
0x37e1   :  { %6207 = vrcp.f32 %v3760_v36  ;;  %5768 = vmatprep.subr.mxu1 %v6299_v4 }
0x37e2   :  { %5769 = vmatpush3.msra.mxu1 %v4038_v50 }
0x37e3   :  { %5770 = vmatprep.subr.mxu1 %v6299_v4 }
0x37e4   :  { %v6206_v22 = vpop.eup %6205 }
0x37e5   :  { %v3785_v55 = vmul.f32 %v6206_v22, %v6184_v61  ;;  %v3784_v14 = vmul.f32 %v6206_v22, %v6182_v42  ;;  %v3786_v57 = vmul.f32 %v6206_v22, %v6186_v45  ;;  %v3787_v48 = vmul.f32 %v6206_v22, %v6188_v31  ;;  %v3849_v42 = vpop.permute.xlu0 %3848 }
0x37e6   :  { %v3946_v61 = vmul.f32 %v3799_v2, %v7430_v39  ;;  %v3788_v58 = vmul.f32 %v6206_v22, %v6190_v21  ;;  %v3978_v45 = vsel %vm3976_vm9, %v3947_v30, 0.0  ;;  %v3948_v31 = vmul.f32 %v3809_v51, %v7436_v29 }
0x37e7   :  { %3893 = vperm.xlu1 %5901, %v3785_v55   ;;  %3888 = vperm.xlu0 %5902, %v3784_v14   ;;  %v3989_v21 = vsel %vm3976_vm9, %v3953_v53, 0.0  ;;  %v3955_v2 = vmul.f32 %v3844_v34, %v7442_v1  ;;  %v3789_v24 = vmul.f32 %v6206_v22, %v7929_v43  ;;  %v3984_v43 = vsel %vm3976_vm9, %v3950_v56, 0.0 }
0x37e8   :  { %v3977_v10 = vsel %vm3976_vm9, %v3946_v61, 0.0  ;;  %v3986_v14 = vsel %vm3976_vm9, %v3951_v54, 0.0 }
0x37e9   :  { %v3979_v27 = vadd.f32 %v3978_v45, %v3977_v10  ;;  %v3854_v0 = vpop.permute.xlu0 %3853  ;;  %v3993_v51 = vsel %vm3976_vm9, %v3955_v2, 0.0 }
0x37ea   :  { %v3957_v11 = vmul.f32 %v3854_v0, %v7538_v35 }
0x37eb   :  { %3898 = vperm.xlu1 %5901, %v3786_v57   ;;  %3878 = vperm.xlu0 %5902, %v7711_v46   ;;  %v3952_v46 = vmul.f32 %v3829_v9, %v7430_v39 }
0x37ec   :  { %v3997_v19 = vsel %vm3976_vm9, %v3957_v11, 0.0 }
0x37ed   :  { %v3988_v23 = vsel %vm3976_vm9, %v3952_v46, 0.0 }
0x37ee   :  { %v6208_v18 = vpop.eup %6207  ;;  %v3990_v9 = vadd.f32 %v3989_v21, %v3988_v23 }
0x37ef   :  { %3903 = vperm.xlu1 %5901, %v3787_v48   ;;  %3883 = vperm.xlu0 %5902, %v7714_v60   ;;  %v3791_v17 = vmul.f32 %v6208_v18, %v6196_v44  ;;  %v3954_v60 = vmul.f32 %v3839_v32, %v7436_v29  ;;  %v3792_v6 = vmul.f32 %v6208_v18, %v6198_v52  ;;  %v3980_v44 = vsel %vm3976_vm9, %v3948_v31, 0.0  ;;  %v4037_v48 = vld [vmem:[%s8322_s17 + $0x8] sm:$0xff] }
0x37f0   :  { %v3790_v16 = vmul.f32 %v6208_v18, %v6194_v25  ;;  %v3956_v52 = vmul.f32 %v3849_v42, %v7532_v15  ;;  %v3981_v25 = vadd.f32 %v3980_v44, %v3979_v27  ;;  %v3793_v37 = vmul.f32 %v6208_v18, %v7937_v59  ;;  %5771 = vmatpush3.msra.mxu1 %v4037_v48 }
0x37f1   :  { %v3991_v20 = vsel %vm3976_vm9, %v3954_v60, 0.0  ;;  %v3982_v59 = vsel %vm3976_vm9, %v3949_v38, 0.0  ;;  %v3795_v47 = vmul.f32 %v6208_v18, %v7944_v7  ;;  %v3794_v55 = vmul.f32 %v6208_v18, %v7940_v41  ;;  %v4036_v41 = vld [vmem:[%s8322_s17] sm:$0xff]  ;;  %5772 = vmatprep.subr.mxu1 %v6299_v4  ;;  %v3864_v18 = vpop.permute.xlu1 %3863  ;;  %v8010_v60 = vld [vmem:[%s8323_s18 + $0x18] sm:$0xff] }
0x37f2   :  { %v3992_v63 = vadd.f32 %v3991_v20, %v3990_v9  ;;  %v3995_v36 = vsel %vm3976_vm9, %v3956_v52, 0.0  ;;  %v3983_v5 = vadd.f32 %v3982_v59, %v3981_v25  ;;  %5773 = vmatpush3.msra.mxu1 %v4036_v41  ;;  %5835 = vmatpush3.msra.mxu0 %v8010_v60  ;;  %v8053_v41 = vld [vmem:[%s8323_s18] sm:$0xff] }
0x37f3   :  { %3908 = vperm.xlu0 %5902, %v3788_v58   ;;  %3923 = vperm.xlu1 %5901, %v3791_v17   ;;  %v3959_v58 = vmul.f32 %v3864_v18, %v7452_v62  ;;  %v3958_v17 = vmul.f32 %v7950_v49, %v7430_v39  ;;  %v8017_v49 = vld [vmem:[%s8323_s18 + $0x10] sm:$0xff] }
0x37f4   :  { %v3994_v22 = vadd.f32 %v3993_v51, %v3992_v63  ;;  %v3985_v57 = vadd.f32 %v3984_v43, %v3983_v5  ;;  %5812 = vmatprep.subr.mxu1 %v6299_v4  ;;  %5836 = vmatprep.subr.mxu0 %v6299_v4  ;;  %v8036_v43 = vld [vmem:[%s8323_s18 + $0x8] sm:$0xff] }
0x37f5   :  { %v3869_v61 = vpop.permute.xlu1 %3868  ;;  %v4000_v31 = vsel %vm3976_vm9, %v3959_v58, 0.0  ;;  %v3999_v34 = vsel %vm3976_vm9, %v3958_v17, 0.0  ;;  %5837 = vmatpush3.msra.mxu0 %v8017_v49 }
0x37f6   :  { %v3996_v32 = vadd.f32 %v3995_v36, %v3994_v22  ;;  %v3987_v7 = vadd.f32 %v3986_v14, %v3985_v57  ;;  %v3960_v45 = vmul.f32 %v3869_v61, %v7436_v29  ;;  %5838 = vmatprep.subr.mxu0 %v6299_v4 }
0x37f7   :  { %3928 = vperm.xlu1 %5901, %v3792_v6   ;;  %3918 = vperm.xlu0 %5902, %v3790_v16   ;;  %v4001_v6 = vadd.f32 %v4000_v31, %v3999_v34 }
0x37f8   :  { %v3998_v30 = vadd.f32 %v3997_v19, %v3996_v32  ;;  %v4002_v27 = vsel %vm3976_vm9, %v3960_v45, 0.0  ;;  %5839 = vmatpush3.msra.mxu0 %v8036_v43 }
0x37f9   :  { %v3874_v42 = vpop.permute.xlu1 %3873  ;;  %v4003_v44 = vadd.f32 %v4002_v27, %v4001_v6  ;;  %5840 = vmatprep.subr.mxu0 %v6299_v4 }
0x37fa   :  { %v3961_v10 = vmul.f32 %v3874_v42, %v7442_v1  ;;  %5841 = vmatpush3.msra.mxu0 %v8053_v41 }
0x37fb   :  { %3933 = vperm.xlu1 %5901, %v3793_v37   ;;  %3913 = vperm.xlu0 %5902, %v3789_v24  }
0x37fc   :  { %v4004_v23 = vsel %vm3976_vm9, %v3961_v10, 0.0  ;;  %5856 = vmatprep.subr.mxu0 %v6299_v4 }
0x37fd   :  { %v4005_v38 = vadd.f32 %v4004_v23, %v4003_v44 }
0x37ff   :  { %3943 = vperm.xlu1 %5901, %v3795_v47   ;;  %3938 = vperm.xlu0 %5902, %v3794_v55  }
0x3803   :  { %4045 = vrot.lane.b32.xlu0 %v3987_v7, %s6304_s8  ;;  %4047 = vrot.lane.b32.xlu1 %v3998_v30, %s6304_s8 }
0x3862   :  { %v3894_v53 = vpop.permute.xlu1 %3893  ;;  %v3889_v46 = vpop.permute.xlu0 %3888 }
0x3863   :  { %v3965_v52 = vmul.f32 %v3894_v53, %v7452_v62  ;;  %v3964_v25 = vmul.f32 %v3889_v46, %v7430_v39 }
0x3865   :  { %v4011_v63 = vsel %vm3976_vm9, %v3965_v52, 0.0  ;;  %v4010_v50 = vsel %vm3976_vm9, %v3964_v25, 0.0 }
0x3866   :  { %v3899_v16 = vpop.permute.xlu1 %3898  ;;  %v3879_v21 = vpop.permute.xlu0 %3878  ;;  %v4012_v47 = vadd.f32 %v4011_v63, %v4010_v50 }
0x3867   :  { %v3962_v2 = vmul.f32 %v3879_v21, %v7532_v15  ;;  %v3966_v24 = vmul.f32 %v3899_v16, %v7436_v29 }
0x3869   :  { %v4006_v0 = vsel %vm3976_vm9, %v3962_v2, 0.0  ;;  %v4013_v36 = vsel %vm3976_vm9, %v3966_v24, 0.0 }
0x386a   :  { %v3904_v20 = vpop.permute.xlu1 %3903  ;;  %v3884_v56 = vpop.permute.xlu0 %3883  ;;  %v4007_v37 = vadd.f32 %v4006_v0, %v4005_v38  ;;  %v4014_v48 = vadd.f32 %v4013_v36, %v4012_v47 }
0x386b   :  { %v3963_v9 = vmul.f32 %v3884_v56, %v7538_v35  ;;  %v3967_v59 = vmul.f32 %v3904_v20, %v7442_v1 }
0x386d   :  { %v4008_v51 = vsel %vm3976_vm9, %v3963_v9, 0.0  ;;  %v4015_v19 = vsel %vm3976_vm9, %v3967_v59, 0.0 }
0x386e   :  { %v4009_v54 = vadd.f32 %v4008_v51, %v4007_v37  ;;  %v3924_v11 = vpop.permute.xlu1 %3923  ;;  %v3909_v3 = vpop.permute.xlu0 %3908  ;;  %v4016_v18 = vadd.f32 %v4015_v19, %v4014_v48 }
0x386f   :  { %v3971_v5 = vmul.f32 %v3924_v11, %v7452_v62  ;;  %v3968_v22 = vmul.f32 %v3909_v3, %v7532_v15  ;;  %v8113_v3 = vld [vmem:[%s8324_s19] ss:$0 sm:$0xff] }
0x3870   :  { %4049 = vrot.lane.b32.xlu0 %v4009_v54, %s6304_s8 }
0x3871   :  { %v4022_v7 = vsel %vm3976_vm9, %v3971_v5, 0.0  ;;  %v4017_v30 = vsel %vm3976_vm9, %v3968_v22, 0.0 }
0x3872   :  { %v3929_v55 = vpop.permute.xlu1 %3928  ;;  %v3919_v14 = vpop.permute.xlu0 %3918  ;;  %v4018_v45 = vadd.f32 %v4017_v30, %v4016_v18 }
0x3873   :  { %v3972_v57 = vmul.f32 %v3929_v55, %v7436_v29  ;;  %v3970_v32 = vmul.f32 %v3919_v14, %v7430_v39 }
0x3875   :  { %v4021_v62 = vsel %vm3976_vm9, %v3970_v32, 0.0  ;;  %v4024_v39 = vsel %vm3976_vm9, %v3972_v57, 0.0 }
0x3876   :  { %v4023_v61 = vadd.f32 %v4022_v7, %v4021_v62  ;;  %v3934_v42 = vpop.permute.xlu1 %3933  ;;  %v3914_v58 = vpop.permute.xlu0 %3913 }
0x3877   :  { %v3973_v29 = vmul.f32 %v3934_v42, %v7442_v1  ;;  %v3969_v17 = vmul.f32 %v3914_v58, %v7538_v35 }
0x3878   :  { %v4025_v53 = vadd.f32 %v4024_v39, %v4023_v61 }
0x3879   :  { %v4026_v46 = vsel %vm3976_vm9, %v3973_v29, 0.0  ;;  %v4019_v31 = vsel %vm3976_vm9, %v3969_v17, 0.0 }
0x387a   :  { %v4020_v34 = vadd.f32 %v4019_v31, %v4018_v45  ;;  %v3944_v10 = vpop.permute.xlu1 %3943  ;;  %v3939_v27 = vpop.permute.xlu0 %3938  ;;  %v4027_v21 = vadd.f32 %v4026_v46, %v4025_v53 }
0x387b   :  { %v3975_v6 = vmul.f32 %v3944_v10, %v7538_v35  ;;  %v3974_v16 = vmul.f32 %v3939_v27, %v7532_v15 }
0x387c   :  { %4051 = vrot.lane.b32.xlu1 %v4020_v34, %s6304_s8 }
0x387d   :  { %v4028_v1 = vsel %vm3976_vm9, %v3974_v16, 0.0  ;;  %v4030_v44 = vsel %vm3976_vm9, %v3975_v6, 0.0 }
0x387e   :  { %v4029_v23 = vadd.f32 %v4028_v1, %v4027_v21  ;;  %v4046_v2 = vpop.permute.xlu0 %4045  ;;  %v4048_v15 = vpop.permute.xlu1 %4047 }
0x387f   :  { %5775 = vmatmul.mubr.msk.f32.vlgmr.msra.gmra.mxu1 %vm97_vm0, %v4046_v2 }
0x3880   :  { %v4031_v0 = vadd.f32 %v4030_v44, %v4029_v23  ;;  %5777 = vmatprep.mubr.msk.f32.mxu1 %vm6300_vm1, %v6299_v4  ;;  %5813 = vmatpush3.msra.mxu1 %v8010_v60 }
0x3881   :  { %5814 = vmatprep.subr.mxu1 %v6299_v4 }
0x3882   :  { %4053 = vrot.lane.b32.xlu0 %v4031_v0, %s6304_s8  ;;  %5815 = vmatpush3.msra.mxu1 %v8017_v49 }
0x3883   :  { %5778 = vmatmul.mubr.msk.f32.gmra.mxu1 %vm97_vm0, %v4048_v15  ;;  %5816 = vmatprep.subr.mxu1 %v6299_v4 }
0x3884   :  { %5780 = vmatprep.mubr.msk.f32.mxu1 %vm6300_vm1, %v6299_v4  ;;  %5817 = vmatpush3.msra.mxu1 %v8036_v43 }
0x3885   :  { %5818 = vmatprep.subr.mxu1 %v6299_v4 }
0x3886   :  { %5819 = vmatpush3.msra.mxu1 %v8053_v41 }
0x3887   :  { %5823 = vmatprep.subr.mxu1 %v6299_v4 }
0x38e2   :  { %v4050_v35 = vpop.permute.xlu0 %4049 }
0x38e3   :  { %5781 = vmatmul.mubr.msk.f32.gmra.mxu1 %vm97_vm0, %v4050_v35 }
0x38e4   :  { %5783 = vmatprep.mubr.msk.f32.mxu1 %vm6300_vm1, %v6299_v4 }
0x38ee   :  { %v4052_v38 = vpop.permute.xlu1 %4051 }
0x38ef   :  { %5784 = vmatmul.mubr.msk.f32.gmra.mxu1 %vm97_vm0, %v4052_v38 }
0x38f0   :  { %5786 = vmatprep.mubr.msk.f32.mxu1 %vm6300_vm1, %v6299_v4 }
0x38f4   :  { %v4054_v20 = vpop.permute.xlu0 %4053 }
0x38f5   :  { %5787 = vmatmul.mubr.msk.f32.gmra.mxu1 %vm97_vm0, %v4054_v20 }
0x38f6   :  { %5820 = vmatprep.mubr.msk.f32.mxu1 %vm6300_vm1, %v6299_v4 }
0x38f9   :  { %5821 = vmatmul.mubr.msk.f32.vlgmr.msra.gmra.mxu1 %vm97_vm0, %v7041_v13 }
0x38fa   :  { %5824 = vmatpush3.msra.mxu1 %v8010_v60  ;;  %5831 = vmatprep.mubr.msk.f32.mxu1 %vm6300_vm1, %v6299_v4 }
0x38fb   :  { %5825 = vmatprep.subr.mxu1 %v6299_v4 }
0x38fc   :  { %5826 = vmatpush3.msra.mxu1 %v8017_v49 }
0x38fd   :  { %5827 = vmatprep.subr.mxu1 %v6299_v4 }
0x38fe   :  { %5828 = vmatpush3.msra.mxu1 %v8036_v43 }
0x38ff   :  { %5829 = vmatprep.subr.mxu1 %v6299_v4 }
0x3900   :  { %5830 = vmatpush3.msra.mxu1 %v8053_v41 }
0x3901   :  { %5845 = vmatprep.subr.mxu1 %v6299_v4 }
0x393f   :  { %v4131_v13 = vpop.f32.mrf.mxu1 }
0x3940   :  { %v4222_v54 = vadd.f32 %v7798_v8, %v4131_v13 }
0x3941   :  { %v5776_v56 = vpop.f32.mrf.mxu1 }
0x3942   :  { %v4252_v50 = vadd.f32 %v8113_v3, %v4222_v54 }
0x3943   :  { %v4136_v52 = vpop.f32.mrf.mxu1 }
0x3945   :  { %v5779_v25 = vpop.f32.mrf.mxu1 }
0x39a3   :  { %v8103_v9 = vpop.f32.mrf.mxu1 }
0x39a4   :  { %v4232_v0 = vadd.f32 %v7817_v26, %v8103_v9 }
0x39a5   :  { %v5782_v37 = vpop.f32.mrf.mxu1 }
0x39af   :  { %v8105_v24 = vpop.f32.mrf.mxu1 }
0x39b1   :  { %v5785_v51 = vpop.f32.mrf.mxu1 }
0x39b5   :  { %v8108_v11 = vpop.f32.mrf.mxu1 }
0x39b7   :  { %v5788_v63 = vpop.f32.mrf.mxu1 }
0x39b9   :  { %v4327_v59 = vpop.f32.mrf.mxu1 }
0x39ba   :  { %v4331_v36 = vadd.f32 %v4327_v59, %v4252_v50  ;;  %v4777_v50 = vld [vmem:[%s8325_s20 + $0x18] sm:$0xff] }
0x39bb   :  { %v5822_v5 = vpop.f32.mrf.mxu1 }
0x39bc   :  { %6209 = vtanh.f32 %v4331_v36  ;;  %v4332_v47 = vsub.f32 0.0, %v4331_v36  ;;  %v4776_v36 = vld [vmem:[%s8325_s20 + $0x10] sm:$0xff]  ;;  %v4775_v5 = vld [vmem:[%s8325_s20 + $0x8] sm:$0xff] }
0x39be   :  { %v4333_v55 = vmul.f32 1.442695, %v4332_v47 }
0x39c0   :  { %6211 = vpow2.f32 %v4333_v55 }
0x39c9   :  { %v6210_v22 = vpop.eup %6209 }
0x39ca   :  { %4341 = vrot.lane.b32.xlu1 %v6210_v22, %s6302_s6  ;;  %v4774_v22 = vld [vmem:[%s8325_s20] sm:$0xff] }
0x39cd   :  { %v6212_v8 = vpop.eup %6211 }
0x39ce   :  { %v4335_v14 = vadd.f32 1.0, %v6212_v8 }
0x39d0   :  { %6213 = vrcp.f32 %v4335_v14  ;;  %v4237_v14 = vadd.f32 %v7829_v33, %v8105_v24 }
0x39dd   :  { %v6214_v19 = vpop.eup %6213 }
0x39de   :  { %v4339_v48 = vmul.f32 %v6214_v19, %v7079_v12  ;;  %v4227_v12 = vadd.f32 %v7808_v40, %v4136_v52 }
0x39e0   :  { %v4253_v58 = vadd.f32 %v8113_v3, %v4227_v12 }
0x3a3c   :  { %v4342_v57 = vpop.permute.xlu1 %4341 }
0x3a3d   :  { %v4344_v32 = vmul.f32 %v6214_v19, %v4342_v57 }
0x3a3f   :  { %4346 = vrot.lane.b32.xlu0 %v4344_v32, %s6303_s25 }
0x3ab1   :  { %v4347_v7 = vpop.permute.xlu0 %4346 }
0x3ab2   :  { %v4349_v30 = vadd.f32 %v4347_v7, %v4339_v48 }
0x3ab4   :  { %6215 = vtanh.f32 %v4349_v30 }
0x3ac1   :  { %v6216_v62 = vpop.eup %6215 }
0x3ac2   :  { %4352 = vrot.lane.b32.xlu1 %v6216_v62, %s6302_s6 }
0x3b34   :  { %v4353_v18 = vpop.permute.xlu1 %4352 }
0x3b35   :  { %v4355_v61 = vmul.f32 %v6214_v19, %v4353_v18  ;;  %v4255_v19 = vadd.f32 %v8113_v3, %v4237_v14 }
0x3b37   :  { %4357 = vrot.lane.b32.xlu0 %v4355_v61, %s6303_s25 }
0x3ba9   :  { %v4358_v42 = vpop.permute.xlu0 %4357 }
0x3baa   :  { %4360 = vst.msk [vmem:[#allocation3] sm:$0xff] %vm97_vm0, %v4358_v42  ;;  %5832 = vmatmul.mubr.msk.f32.vlgmr.msra.gmra.mxu1 %vm97_vm0, %v4358_v42 }
0x3bab   :  { %5846 = vmatpush3.msra.mxu1 %v8010_v60  ;;  %5853 = vmatprep.mubr.msk.f32.mxu1 %vm6300_vm1, %v6299_v4 }
0x3bac   :  { %5847 = vmatprep.subr.mxu1 %v6299_v4 }
0x3bad   :  { %5848 = vmatpush3.msra.mxu1 %v8017_v49 }
0x3bae   :  { %5849 = vmatprep.subr.mxu1 %v6299_v4 }
0x3baf   :  { %5850 = vmatpush3.msra.mxu1 %v8036_v43 }
0x3bb0   :  { %5851 = vmatprep.subr.mxu1 %v6299_v4 }
0x3bb1   :  { %5852 = vmatpush3.msra.mxu1 %v8053_v41  ;;  %v4769_v47 = vld [vmem:[#allocation3] sm:$0xff] }
0x3bb2   :  { %5867 = vmatprep.subr.mxu1 %v6299_v4 }
0x3c6a   :  { %v4429_v39 = vpop.f32.mrf.mxu1 }
0x3c6b   :  { %v4433_v29 = vadd.f32 %v4429_v39, %v4253_v58 }
0x3c6c   :  { %v5833_v17 = vpop.f32.mrf.mxu1 }
0x3c6d   :  { %6217 = vtanh.f32 %v4433_v29  ;;  %v4434_v53 = vsub.f32 0.0, %v4433_v29 }
0x3c6f   :  { %v4435_v46 = vmul.f32 1.442695, %v4434_v53 }
0x3c71   :  { %6219 = vpow2.f32 %v4435_v46 }
0x3c7a   :  { %v6218_v45 = vpop.eup %6217 }
0x3c7b   :  { %4443 = vrot.lane.b32.xlu1 %v6218_v45, %s6302_s6 }
0x3c7e   :  { %v6220_v31 = vpop.eup %6219 }
0x3c7f   :  { %v4437_v34 = vadd.f32 1.0, %v6220_v31 }
0x3c81   :  { %6221 = vrcp.f32 %v4437_v34 }
0x3c8e   :  { %v6222_v10 = vpop.eup %6221 }
0x3c8f   :  { %v4441_v40 = vmul.f32 %v6222_v10, %v4349_v30 }
0x3ced   :  { %v4444_v27 = vpop.permute.xlu1 %4443 }
0x3cee   :  { %v4446_v6 = vmul.f32 %v6222_v10, %v4444_v27 }
0x3cf0   :  { %4448 = vrot.lane.b32.xlu0 %v4446_v6, %s6303_s25 }
0x3d62   :  { %v4449_v16 = vpop.permute.xlu0 %4448 }
0x3d63   :  { %v4451_v21 = vadd.f32 %v4449_v16, %v4441_v40  ;;  %v4242_v16 = vadd.f32 %v7840_v28, %v8108_v11 }
0x3d65   :  { %6223 = vtanh.f32 %v4451_v21 }
0x3d72   :  { %v6224_v1 = vpop.eup %6223 }
0x3d73   :  { %4454 = vrot.lane.b32.xlu1 %v6224_v1, %s6302_s6 }
0x3de5   :  { %v4455_v23 = vpop.permute.xlu1 %4454 }
0x3de6   :  { %v4457_v2 = vmul.f32 %v6222_v10, %v4455_v23 }
0x3de8   :  { %4459 = vrot.lane.b32.xlu0 %v4457_v2, %s6303_s25 }
0x3e5a   :  { %v4460_v44 = vpop.permute.xlu0 %4459 }
0x3e5b   :  { %4462 = vst.msk [vmem:[#allocation3 + $0x8] sm:$0xff] %vm97_vm0, %v4460_v44  ;;  %5843 = vmatmul.mubr.msk.f32.vlgmr.msra.gmra.mxu0 %vm97_vm0, %v4460_v44 }
0x3e5c   :  { %5857 = vmatpush3.msra.mxu0 %v8010_v60  ;;  %5864 = vmatprep.mubr.msk.f32.mxu0 %vm6300_vm1, %v6299_v4  ;;  %v4254_v60 = vadd.f32 %v8113_v3, %v4232_v0 }
0x3e5d   :  { %5858 = vmatprep.subr.mxu0 %v6299_v4 }
0x3e5e   :  { %5859 = vmatpush3.msra.mxu0 %v8017_v49 }
0x3e5f   :  { %5860 = vmatprep.subr.mxu0 %v6299_v4 }
0x3e60   :  { %5861 = vmatpush3.msra.mxu0 %v8036_v43 }
0x3e61   :  { %5862 = vmatprep.subr.mxu0 %v6299_v4 }
0x3e62   :  { %5863 = vmatpush3.msra.mxu0 %v8053_v41  ;;  %v4770_v55 = vld [vmem:[#allocation3 + $0x8] sm:$0xff] }
0x3f1b   :  { %v4531_v15 = vpop.f32.mrf.mxu0 }
0x3f1c   :  { %v4535_v35 = vadd.f32 %v4531_v15, %v4254_v60 }
0x3f1d   :  { %v5844_v38 = vpop.f32.mrf.mxu0 }
0x3f1e   :  { %6225 = vtanh.f32 %v4535_v35  ;;  %v4536_v49 = vsub.f32 0.0, %v4535_v35 }
0x3f20   :  { %v4537_v13 = vmul.f32 1.442695, %v4536_v49 }
0x3f22   :  { %6227 = vpow2.f32 %v4537_v13 }
0x3f2b   :  { %v6226_v20 = vpop.eup %6225 }
0x3f2c   :  { %4545 = vrot.lane.b32.xlu1 %v6226_v20, %s6302_s6 }
0x3f2f   :  { %v6228_v43 = vpop.eup %6227 }
0x3f30   :  { %v4539_v56 = vadd.f32 1.0, %v6228_v43 }
0x3f32   :  { %6229 = vrcp.f32 %v4539_v56 }
0x3f3f   :  { %v6230_v52 = vpop.eup %6229 }
0x3f40   :  { %v4543_v26 = vmul.f32 %v6230_v52, %v4451_v21  ;;  %v4256_v21 = vadd.f32 %v8113_v3, %v4242_v16 }
0x3f9e   :  { %v4546_v41 = vpop.permute.xlu1 %4545 }
0x3f9f   :  { %v4548_v25 = vmul.f32 %v6230_v52, %v4546_v41 }
0x3fa1   :  { %4550 = vrot.lane.b32.xlu0 %v4548_v25, %s6303_s25 }
0x4013   :  { %v4551_v9 = vpop.permute.xlu0 %4550 }
0x4014   :  { %v4553_v37 = vadd.f32 %v4551_v9, %v4543_v26 }
0x4016   :  { %6231 = vtanh.f32 %v4553_v37 }
0x4023   :  { %v6232_v51 = vpop.eup %6231 }
0x4024   :  { %4556 = vrot.lane.b32.xlu1 %v6232_v51, %s6302_s6  ;;  %v8224_v51 = vld [vmem:[%s8348_s27 + $0x10] sm:$0xff] }
0x4096   :  { %v4557_v54 = vpop.permute.xlu1 %4556 }
0x4097   :  { %v4559_v63 = vmul.f32 %v6230_v52, %v4557_v54  ;;  %v5174_v52 = vld [vmem:[%s8326_s21] ss:$0 sm:$0xff]  ;;  %v8230_v54 = vld [vmem:[%s8348_s27 + $0x18] sm:$0xff] }
0x4098   :  { %vm5006_vm5 = vcmp.ne.s32.totalorder %v8230_v54, 0 }
0x4099   :  { %4561 = vrot.lane.b32.xlu0 %v4559_v63, %s6303_s25 }
0x410b   :  { %v4562_v59 = vpop.permute.xlu0 %4561 }
0x410c   :  { %4564 = vst.msk [vmem:[#allocation3 + $0x10] sm:$0xff] %vm97_vm0, %v4562_v59  ;;  %5854 = vmatmul.mubr.msk.f32.vlgmr.msra.gmra.mxu1 %vm97_vm0, %v4562_v59 }
0x410d   :  { %5868 = vmatpush3.msra.mxu1 %v4777_v50  ;;  %5875 = vmatprep.mubr.msk.f32.mxu1 %vm6300_vm1, %v6299_v4 }
0x410e   :  { %5869 = vmatprep.subr.mxu1 %v6299_v4 }
0x410f   :  { %5870 = vmatpush3.msra.mxu1 %v4776_v36 }
0x4110   :  { %5871 = vmatprep.subr.mxu1 %v6299_v4 }
0x4111   :  { %5872 = vmatpush3.msra.mxu1 %v4775_v5 }
0x4112   :  { %5873 = vmatprep.subr.mxu1 %v6299_v4 }
0x4113   :  { %5874 = vmatpush3.msra.mxu1 %v4774_v22  ;;  %v4771_v8 = vld [vmem:[#allocation3 + $0x10] sm:$0xff] }
0x4114   :  { %5876 = vmatmul.mubr.msk.f32.vlgmr.msra.gmra.mxu1 %vm97_vm0, %v4769_v47 }
0x4115   :  { %5878 = vmatprep.mubr.msk.f32.mxu1 %vm6300_vm1, %v6299_v4 }
0x4118   :  { %5879 = vmatmul.mubr.msk.f32.gmra.mxu1 %vm97_vm0, %v4770_v55 }
0x4119   :  { %5881 = vmatprep.mubr.msk.f32.mxu1 %vm6300_vm1, %v6299_v4 }
0x411c   :  { %5882 = vmatmul.mubr.msk.f32.gmra.mxu1 %vm97_vm0, %v4771_v8 }
0x411d   :  { %5884 = vmatprep.mubr.msk.f32.mxu1 %vm6300_vm1, %v6299_v4 }
0x41cc   :  { %v4633_v57 = vpop.f32.mrf.mxu1 }
0x41cd   :  { %v4637_v32 = vadd.f32 %v4633_v57, %v4255_v19 }
0x41ce   :  { %v5855_v48 = vpop.f32.mrf.mxu1 }
0x41cf   :  { %6233 = vtanh.f32 %v4637_v32  ;;  %v4638_v58 = vsub.f32 0.0, %v4637_v32  ;;  %v4956_v32 = vlaneseq }
0x41d1   :  { %v4639_v39 = vmul.f32 1.442695, %v4638_v58 }
0x41d3   :  { %6235 = vpow2.f32 %v4639_v39 }
0x41d4   :  { %v4866_v7 = vpop.f32.mrf.mxu1 }
0x41d5   :  { %v4867_v41 = vadd.f32 %v5174_v52, %v4866_v7  ;;  %v4957_v7 = vand.u32 127, %v4956_v32 }
0x41d6   :  { %v5877_v30 = vpop.f32.mrf.mxu1 }
0x41d7   :  { %v4896_v26 = vsel %vm4895_vm10, %v4867_v41, -inf }
0x41d8   :  { %v8188_v62 = vpop.f32.mrf.mxu1 }
0x41d9   :  { %v8235_v59 = vadd.f32 %v5174_v52, %v8188_v62 }
0x41da   :  { %v5880_v18 = vpop.f32.mrf.mxu1 }
0x41db   :  { %v4899_v5 = vsel %vm4895_vm10, %v8235_v59, -inf }
0x41dc   :  { %v6234_v61 = vpop.eup %6233  ;;  %v8190_v42 = vpop.f32.mrf.mxu1 }
0x41dd   :  { %4647 = vrot.lane.b32.xlu1 %v6234_v61, %s6302_s6  ;;  %v4877_v36 = vadd.f32 %v5174_v52, %v8190_v42 }
0x41de   :  { %v5883_v12 = vpop.f32.mrf.mxu1 }
0x41df   :  { %v4902_v22 = vsel %vm4895_vm10, %v4877_v36, -inf }
0x41e0   :  { %v6236_v33 = vpop.eup %6235 }
0x41e1   :  { %v4641_v24 = vadd.f32 1.0, %v6236_v33 }
0x41e3   :  { %6237 = vrcp.f32 %v4641_v24 }
0x41f0   :  { %v6238_v29 = vpop.eup %6237 }
0x41f1   :  { %v4645_v53 = vmul.f32 %v6238_v29, %v4553_v37  ;;  %v8218_v37 = vld [vmem:[%s8348_s27] sm:$0xff] }
0x424f   :  { %v4648_v17 = vpop.permute.xlu1 %4647 }
0x4250   :  { %v4650_v45 = vmul.f32 %v6238_v29, %v4648_v17 }
0x4252   :  { %4652 = vrot.lane.b32.xlu0 %v4650_v45, %s6303_s25 }
0x42c4   :  { %v4653_v46 = vpop.permute.xlu0 %4652 }
0x42c5   :  { %v4655_v31 = vadd.f32 %v4653_v46, %v4645_v53 }
0x42c7   :  { %6239 = vtanh.f32 %v4655_v31 }
0x42d4   :  { %v6240_v34 = vpop.eup %6239 }
0x42d5   :  { %4658 = vrot.lane.b32.xlu1 %v6240_v34, %s6302_s6  ;;  %v4894_v34 = vld [vmem:[%s8348_s27 + $0x20] sm:$0xff] }
0x42d6   :  { %vm5007_vm2 = vcmp.ne.s32.totalorder %v4894_v34, 0 }
0x4347   :  { %v4659_v10 = vpop.permute.xlu1 %4658 }
0x4348   :  { %v4661_v27 = vmul.f32 %v6238_v29, %v4659_v10 }
0x434a   :  { %4663 = vrot.lane.b32.xlu0 %v4661_v27, %s6303_s25 }
0x43bc   :  { %v4664_v6 = vpop.permute.xlu0 %4663 }
0x43bd   :  { %4666 = vst.msk [vmem:[#allocation3 + $0x18] sm:$0xff] %vm97_vm0, %v4664_v6  ;;  %5865 = vmatmul.mubr.msk.f32.vlgmr.msra.gmra.mxu0 %vm97_vm0, %v4664_v6 }
0x43c4   :  { %v4772_v40 = vld [vmem:[#allocation3 + $0x18] sm:$0xff] }
0x43c5   :  { %5885 = vmatmul.mubr.msk.f32.gmra.mxu1 %vm97_vm0, %v4772_v40 }
0x43c6   :  { %5887 = vmatprep.mubr.msk.f32.mxu1 %vm6300_vm1, %v6299_v4  ;;  %vm5005_vm1 = vcmp.ne.s32.totalorder %v8224_v51, 0 }
0x447d   :  { %v4735_v1 = vpop.f32.mrf.mxu0 }
0x447e   :  { %v4739_v23 = vadd.f32 %v4735_v1, %v4256_v21 }
0x447f   :  { %v5866_v2 = vpop.f32.mrf.mxu0 }
0x4480   :  { %6241 = vtanh.f32 %v4739_v23  ;;  %v4740_v15 = vsub.f32 0.0, %v4739_v23 }
0x4482   :  { %v4741_v35 = vmul.f32 1.442695, %v4740_v15 }
0x4484   :  { %6243 = vpow2.f32 %v4741_v35 }
0x4485   :  { %v4881_v44 = vpop.f32.mrf.mxu1 }
0x4486   :  { %v8210_v25 = vadd.f32 %v5174_v52, %v4881_v44 }
0x4487   :  { %v5886_v0 = vpop.f32.mrf.mxu1 }
0x4488   :  { %v4905_v9 = vsel %vm4895_vm10, %v8210_v25, -inf }
0x448d   :  { %v6242_v60 = vpop.eup %6241 }
0x448e   :  { %4749 = vrot.lane.b32.xlu1 %v6242_v60, %s6302_s6 }
0x4491   :  { %v6244_v38 = vpop.eup %6243 }
0x4492   :  { %v4743_v20 = vadd.f32 1.0, %v6244_v38 }
0x4494   :  { %6245 = vrcp.f32 %v4743_v20 }
0x44a1   :  { %v6246_v49 = vpop.eup %6245 }
0x44a2   :  { %v4747_v11 = vmul.f32 %v6246_v49, %v4655_v31  ;;  %v4891_v31 = vld [vmem:[%s8348_s27 + $0x8] sm:$0xff] }
0x44a3   :  { %vm5004_vm3 = vcmp.ne.s32.totalorder %v4891_v31, 0 }
0x4500   :  { %v4750_v13 = vpop.permute.xlu1 %4749 }
0x4501   :  { %v4752_v28 = vmul.f32 %v6246_v49, %v4750_v13 }
0x4503   :  { %4754 = vrot.lane.b32.xlu0 %v4752_v28, %s6303_s25 }
0x4575   :  { %v4755_v3 = vpop.permute.xlu0 %4754 }
0x4576   :  { %v4757_v43 = vadd.f32 %v4755_v3, %v4747_v11 }
0x4578   :  { %6247 = vtanh.f32 %v4757_v43 }
0x4585   :  { %v6248_v56 = vpop.eup %6247 }
0x4586   :  { %4760 = vrot.lane.b32.xlu1 %v6248_v56, %s6302_s6 }
0x45aa   :  { %4897 = vmax.xlane.f32.xlu1 %v4896_v26 }
0x45ae   :  { %4906 = vmax.xlane.f32.xlu1 %v4905_v9  ;;  %v5182_v9 = vsel %vm5005_vm1, 1.0, %v6299_v4 }
0x45bf   :  { %4959 = vperm.xlu1 %5901, %v8218_v37  }
0x45c3   :  { %4965 = vperm.xlu1 %5901, %v8224_v51   ;;  %v5183_v51 = vsel %vm5006_vm5, 1.0, %v6299_v4 }
0x45c7   :  { %4968 = vperm.xlu1 %5901, %v8230_v54  }
0x45f8   :  { %v4761_v63 = vpop.permute.xlu1 %4760 }
0x45f9   :  { %v4763_v50 = vmul.f32 %v6246_v49, %v4761_v63  ;;  %v5181_v63 = vsel %vm5004_vm3, 1.0, %v6299_v4 }
0x45fb   :  { %4765 = vrot.lane.b32.xlu0 %v4763_v50, %s6303_s25  ;;  %v5043_v50 = vsel %vm3560_vm4, %v5181_v63, 0.0 }
0x461a   :  { %4900 = vmax.xlane.f32.xlu0 %v4899_v5 }
0x461e   :  { %4903 = vmax.xlane.f32.xlu0 %v4902_v22 }
0x4633   :  { %v8241_v47 = vpop.xlane.xlu1 %4897 }
0x4634   :  { %v4911_v55 = vsub.f32 %v4867_v41, %v8241_v47 }
0x4636   :  { %v4916_v8 = vmul.f32 1.442695, %v4911_v55 }
0x4637   :  { %v8244_v14 = vpop.xlane.xlu1 %4906 }
0x4638   :  { %6249 = vpow2.f32 %v4916_v8  ;;  %v4914_v19 = vsub.f32 %v8210_v25, %v8244_v14 }
0x463a   :  { %v4922_v57 = vmul.f32 1.442695, %v4914_v19 }
0x463b   :  { %v4960_v48 = vpop.permute.xlu1 %4959 }
0x463c   :  { %6251 = vpow2.f32 %v4922_v57  ;;  %vm4973_vm11 = vcmp.eq.s32.totalorder %v4957_v7, %v4960_v48 }
0x463d   :  { %v4978_v12 = vsel %vm4973_vm11, %v4867_v41, 0.0 }
0x463e   :  { %v4983_v58 = vsel %vm4895_vm10, %v4978_v12, 0.0 }
0x463f   :  { %v4966_v61 = vpop.permute.xlu1 %4965 }
0x4640   :  { %vm4975_vm12 = vcmp.eq.s32.totalorder %v4957_v7, %v4966_v61 }
0x4641   :  { %v4980_v39 = vsel %vm4975_vm12, %v4877_v36, 0.0 }
0x4642   :  { %v4989_v33 = vsel %vm4895_vm10, %v4980_v39, 0.0 }
0x4643   :  { %v4969_v28 = vpop.permute.xlu1 %4968 }
0x4644   :  { %vm4976_vm15 = vcmp.eq.s32.totalorder %v4957_v7, %v4969_v28 }
0x4645   :  { %v6250_v30 = vpop.eup %6249  ;;  %v4981_v56 = vsel %vm4976_vm15, %v8210_v25, 0.0  ;;  %v5045_v25 = vsel %vm3560_vm4, %v5182_v9, 0.0 }
0x4646   :  { %v4926_v62 = vsel %vm4895_vm10, %v6250_v30, 0.0 }
0x4647   :  { %4927 = vadd.xlane.f32.xlu1 %v4926_v62 }
0x4649   :  { %v6252_v18 = vpop.eup %6251 }
0x464a   :  { %v4935_v42 = vsel %vm4895_vm10, %v6252_v18, 0.0 }
0x464b   :  { %4936 = vadd.xlane.f32.xlu1 %v4935_v42 }
0x464f   :  { %4984 = vadd.xlane.f32.xlu1 %v4983_v58 }
0x4653   :  { %4990 = vadd.xlane.f32.xlu1 %v4989_v33 }
0x466d   :  { %v4766_v24 = vpop.permute.xlu0 %4765 }
0x466e   :  { %4768 = vst.msk [vmem:[#allocation3 + $0x20] sm:$0xff] %vm97_vm0, %v4766_v24 }
0x4675   :  { %v4773_v29 = vld [vmem:[#allocation3 + $0x20] sm:$0xff] }
0x4676   :  { %5888 = vmatmul.mubr.msk.f32.gmra.mxu1 %vm97_vm0, %v4773_v29  ;;  %vm5003_vm0 = vcmp.ne.s32.totalorder %v8218_v37, 0  ;;  %v5184_v37 = vsel %vm5007_vm2, 1.0, %v6299_v4 }
0x4677   :  { %v5180_v41 = vsel %vm5003_vm0, 1.0, %v6299_v4  ;;  %v5049_v22 = vsel %vm3560_vm4, %v5184_v37, 0.0 }
0x4678   :  { %v5042_v26 = vsel %vm3560_vm4, %v5180_v41, 0.0 }
0x46a3   :  { %v8261_v10 = vpop.xlane.xlu0 %4900 }
0x46a4   :  { %v4912_v27 = vsub.f32 %v8235_v59, %v8261_v10 }
0x46a6   :  { %v4918_v40 = vmul.f32 1.442695, %v4912_v27 }
0x46a7   :  { %v8265_v6 = vpop.xlane.xlu0 %4903 }
0x46a8   :  { %v4913_v16 = vsub.f32 %v4877_v36, %v8265_v6  ;;  %6253 = vpow2.f32 %v4918_v40  ;;  %v5047_v36 = vsel %vm3560_vm4, %v5183_v51, 0.0 }
0x46aa   :  { %v4920_v21 = vmul.f32 1.442695, %v4913_v16 }
0x46ac   :  { %6255 = vpow2.f32 %v4920_v21 }
0x46b5   :  { %v6254_v1 = vpop.eup %6253 }
0x46b6   :  { %v4929_v23 = vsel %vm4895_vm10, %v6254_v1, 0.0 }
0x46b9   :  { %v6256_v2 = vpop.eup %6255 }
0x46ba   :  { %v4932_v44 = vsel %vm4895_vm10, %v6256_v2, 0.0 }
0x46d0   :  { %v4928_v57 = vpop.xlane.xlu1 %4927 }
0x46d4   :  { %v4937_v32 = vpop.xlane.xlu1 %4936 }
0x46d8   :  { %v4985_v58 = vpop.xlane.xlu1 %4984 }
0x4736   :  { %v4886_v17 = vpop.f32.mrf.mxu1 }
0x4737   :  { %v4887_v45 = vadd.f32 %v5174_v52, %v4886_v17  ;;  %v4992_v52 = vsel %vm4895_vm10, %v4981_v56, 0.0 }
0x4738   :  { %v5889_v53 = vpop.f32.mrf.mxu1 }
0x4739   :  { %v4908_v46 = vsel %vm4895_vm10, %v4887_v45, -inf }
0x473a   :  { %4909 = vmax.xlane.f32.xlu0 %v4908_v46  ;;  %v4991_v46 = vpop.xlane.xlu1 %4990 }
0x4750   :  { %4962 = vperm.xlu0 %5902, %v4891_v31  }
0x4754   :  { %4971 = vperm.xlu0 %5902, %v4894_v34  }
0x4773   :  { %4930 = vadd.xlane.f32.xlu0 %v4929_v23 }
0x4777   :  { %4933 = vadd.xlane.f32.xlu0 %v4932_v44 }
0x47c3   :  { %v8270_v0 = vpop.xlane.xlu0 %4909 }
0x47c4   :  { %v4915_v60 = vsub.f32 %v4887_v45, %v8270_v0 }
0x47c6   :  { %v4924_v15 = vmul.f32 1.442695, %v4915_v60 }
0x47c8   :  { %6257 = vpow2.f32 %v4924_v15 }
0x47c9   :  { %6259 = vlog2.f32 %v4928_v57 }
0x47cb   :  { %v4963_v35 = vpop.permute.xlu0 %4962 }
0x47cc   :  { %vm4974_vm14 = vcmp.eq.s32.totalorder %v4957_v7, %v4963_v35 }
0x47cd   :  { %v4979_v3 = vsel %vm4974_vm14, %v8235_v59, 0.0  ;;  %v5044_v59 = vadd.f32 %v5043_v50, %v5042_v26 }
0x47ce   :  { %v4986_v43 = vsel %vm4895_vm10, %v4979_v3, 0.0 }
0x47cf   :  { %v4972_v38 = vpop.permute.xlu0 %4971  ;;  %v5046_v5 = vadd.f32 %v5045_v25, %v5044_v59 }
0x47d0   :  { %vm4977_vm13 = vcmp.eq.s32.totalorder %v4957_v7, %v4972_v38 }
0x47d1   :  { %v4982_v20 = vsel %vm4977_vm13, %v4887_v45, 0.0  ;;  %v5048_v55 = vadd.f32 %v5047_v36, %v5046_v5 }
0x47d2   :  { %v4995_v49 = vsel %vm4895_vm10, %v4982_v20, 0.0 }
0x47d3   :  { %4996 = vadd.xlane.f32.xlu1 %v4995_v49  ;;  %v5050_v8 = vadd.f32 %v5049_v22, %v5048_v55 }
0x47d5   :  { %v6258_v13 = vpop.eup %6257 }
0x47d6   :  { %v4938_v11 = vsel %vm4895_vm10, %v6258_v13, 0.0  ;;  %v6260_v48 = vpop.eup %6259 }
0x47d7   :  { %4939 = vadd.xlane.f32.xlu0 %v4938_v11  ;;  %5051 = vadd.xlane.f32.xlu1 %v5050_v8  ;;  %v4942_v30 = vmul.f32 0.6931472, %v6260_v48 }
0x47d9   :  { %v4951_v61 = vadd.f32 %v4942_v30, %v8241_v47 }
0x47db   :  { %4987 = vadd.xlane.f32.xlu0 %v4986_v43  ;;  %v4998_v29 = vsub.f32 %v4951_v61, %v4985_v58 }
0x47dd   :  { %v5018_v34 = vmul.f32 %v5180_v41, %v4998_v29 }
0x47df   :  { %4993 = vadd.xlane.f32.xlu0 %v4992_v52  ;;  %v5023_v21 = vsel %vm3560_vm4, %v5018_v34, 0.0 }
0x47fc   :  { %v4931_v19 = vpop.xlane.xlu0 %4930 }
0x47fd   :  { %6261 = vlog2.f32 %v4931_v19 }
0x4800   :  { %v4934_v54 = vpop.xlane.xlu0 %4933 }
0x4801   :  { %6263 = vlog2.f32 %v4934_v54 }
0x4802   :  { %6265 = vlog2.f32 %v4937_v32 }
0x480a   :  { %v6262_v7 = vpop.eup %6261 }
0x480b   :  { %v4944_v62 = vmul.f32 0.6931472, %v6262_v7 }
0x480d   :  { %v4952_v39 = vadd.f32 %v4944_v62, %v8261_v10 }
0x480e   :  { %v6264_v4 = vpop.eup %6263 }
0x480f   :  { %v4946_v42 = vmul.f32 0.6931472, %v6264_v4  ;;  %v6266_v12 = vpop.eup %6265 }
0x4810   :  { %v4948_v24 = vmul.f32 0.6931472, %v6266_v12 }
0x4811   :  { %v4953_v17 = vadd.f32 %v4946_v42, %v8265_v6 }
0x4812   :  { %v4954_v40 = vadd.f32 %v4948_v24, %v8244_v14 }
0x4813   :  { %v5000_v27 = vsub.f32 %v4953_v17, %v4991_v46 }
0x4815   :  { %v5020_v1 = vmul.f32 %v5182_v9, %v5000_v27 }
0x4817   :  { %v5026_v60 = vsel %vm3560_vm4, %v5020_v1, 0.0 }
0x485c   :  { %v4997_v15 = vpop.xlane.xlu1 %4996 }
0x4860   :  { %v4940_v18 = vpop.xlane.xlu0 %4939  ;;  %v5052_v11 = vpop.xlane.xlu1 %5051 }
0x4861   :  { %6267 = vlog2.f32 %v4940_v18  ;;  %v5053_v3 = vrot.slane %v5052_v11, 4 }
0x4863   :  { %v5054_v43 = vadd.f32 %v5053_v3, %v5052_v11 }
0x4864   :  { %v4988_v33 = vpop.xlane.xlu0 %4987 }
0x4865   :  { %v4999_v45 = vsub.f32 %v4952_v39, %v4988_v33  ;;  %v5055_v56 = vrot.slane %v5054_v43, 2 }
0x4867   :  { %v5019_v53 = vmul.f32 %v5181_v63, %v4999_v45  ;;  %v5056_v26 = vadd.f32 %v5055_v56, %v5054_v43 }
0x4868   :  { %v4994_v31 = vpop.xlane.xlu0 %4993 }
0x4869   :  { %v5024_v47 = vsel %vm3560_vm4, %v5019_v53, 0.0  ;;  %v5001_v16 = vsub.f32 %v4954_v40, %v4994_v31  ;;  %v5057_v25 = vrot.slane %v5056_v26, 1 }
0x486a   :  { %v5025_v23 = vadd.f32 %v5024_v47, %v5023_v21 }
0x486b   :  { %v5021_v44 = vmul.f32 %v5183_v51, %v5001_v16  ;;  %v5058_v51 = vadd.f32 %v5057_v25, %v5056_v26 }
0x486c   :  { %v5027_v35 = vadd.f32 %v5026_v60, %v5025_v23 }
0x486d   :  { %v5028_v20 = vsel %vm3560_vm4, %v5021_v44, 0.0 }
0x486e   :  { %v6268_v10 = vpop.eup %6267  ;;  %v5029_v49 = vadd.f32 %v5028_v20, %v5027_v35 }
0x486f   :  { %v4950_v2 = vmul.f32 0.6931472, %v6268_v10 }
0x4871   :  { %v4955_v6 = vadd.f32 %v4950_v2, %v8270_v0 }
0x4873   :  { %v5002_v38 = vsub.f32 %v4955_v6, %v4997_v15 }
0x4875   :  { %v5022_v14 = vmul.f32 %v5184_v37, %v5002_v38 }
0x4877   :  { %v5030_v13 = vsel %vm3560_vm4, %v5022_v14, 0.0  ;;  %vm5063_vm4 = vcmask 0  }
0x4878   :  { %v5031_v28 = vadd.f32 %v5030_v13, %v5029_v49 }
0x487a   :  { %5032 = vadd.xlane.f32.xlu0 %v5031_v28 }
0x4903   :  { %v5033_v52 = vpop.xlane.xlu0 %5032 }
0x4904   :  { %v5034_v41 = vrot.slane %v5033_v52, 4 }
0x4906   :  { %v5035_v0 = vadd.f32 %v5034_v41, %v5033_v52 }
0x4908   :  { %v5036_v9 = vrot.slane %v5035_v0, 2 }
0x490a   :  { %v5037_v63 = vadd.f32 %v5036_v9, %v5035_v0 }
0x490c   :  { %v5038_v50 = vrot.slane %v5037_v63, 1 }
0x490e   :  { %v5039_v59 = vadd.f32 %v5038_v50, %v5037_v63 }
0x4910   :  { %5890 = vpush %v5039_v59 }
0x4911   :  { %5892 = vpush %v5058_v51 }
0x4941   :  { %s5891_s2 = spop %5890 }
0x4942   :  { %s5893_s9 = spop %5892  ;;  %v5041_v5 = vstv %s5891_s2 }
0x4943   :  { %v5060_v37 = vstv %s5893_s9 }
0x4944   :  { %6269 = vrcp.f32 %v5060_v37 }
0x4951   :  { %v6270_v36 = vpop.eup %6269 }
0x4952   :  { %v5062_v22 = vmul.f32 %v6270_v36, %v5041_v5 }
0x4954   :  { %5064 = vst.msk [vmem:[#allocation5] sm:$0x1] %vm5063_vm4, %v5062_v22 }
0x4955   :  { %6288 = shalt.err (!%p6285_p4)
}
0x4956   :  { %5074 = dma.vmem_to_hbm [thread:$0]  %s5072_s28, 16, %s8327_s22, [#allocation6]  }
0x4957   :  { %6297 = dma.done.wait [#allocation6], 16  }
0x4958   :  { %6298 = vsyncadd [#allocation6], 4294967280 }
0x4959   :  { %5078 = vsyncpa [#allocation6], 1 }

</bundles_post_ra>
